<compile_context>
chip_gen: v6e
topology: v6e:2x2x1
jax: 0.10.0
libtpu: 0.0.40
codegen_flags: <defaults>
</compile_context>

<pallas_src>
import jax
import jax.numpy as jnp
from jax import lax
from jax.experimental import pallas as pl
from jax.experimental.pallas import tpu as pltpu

NORM_EPS = 1e-5
LANE = 128          # pad channel dims to multiples of 128 lanes
TILE_M_MAX = 1024   # row-tile cap (256 leaves ~25% of HBM roofline on the table)


def _round_up(v, d):
    return (v + d - 1) // d * d


def _pick_tile_m(m, max_tile=TILE_M_MAX, min_grid=2):
    """Largest divisor of m that is a multiple of 8, <= max_tile, and (when m
    is big enough) leaves at least `min_grid` grid steps for pipelining."""
    cap = min(max_tile, m)
    if m // min_grid >= 8:
        cap = min(cap, m // min_grid)
    for t in range(cap, 7, -1):
        if m % t == 0 and t % 8 == 0:
            return t
    return m


def _make_divisible(v, divisor, min_value=None):
    if min_value is None:
        min_value = divisor
    new_v = max(min_value, int(v + divisor / 2) // divisor * divisor)
    if new_v < 0.9 * v:
        new_v += divisor
    return new_v


# ---------------------------------------------------------------------------
# Generic fused GEMM kernel:
#   out = [relu]( x*in_scale + in_shift ) @ W (+ bias) (+ res*res_scale+res_shift)
#   optionally also emits per-tile (sum, sumsq) BN partials of the f32 result.
# ---------------------------------------------------------------------------
def _make_gemm_kernel(in_affine, in_relu, has_bias, has_res, res_affine,
                      want_stats):
    def kernel(*refs):
        refs = list(refs)
        x_ref = refs.pop(0)
        w_ref = refs.pop(0)
        in_sc = refs.pop(0) if in_affine else None
        in_sh = refs.pop(0) if in_affine else None
        b_ref = refs.pop(0) if has_bias else None
        r_ref = refs.pop(0) if has_res else None
        r_sc = refs.pop(0) if res_affine else None
        r_sh = refs.pop(0) if res_affine else None
        out_ref = refs.pop(0)
        st_ref = refs.pop(0) if want_stats else None

        x = x_ref[...].astype(jnp.float32)
        if in_affine:                     # folded BN: one FMA per element
            x = x * in_sc[...] + in_sh[...]
        if in_relu:
            x = jnp.maximum(x, 0.0)
        y = jnp.dot(x.astype(jnp.bfloat16), w_ref[...],
                    preferred_element_type=jnp.float32)
        if has_bias:
            y = y + b_ref[...]
        if has_res:
            r = r_ref[...].astype(jnp.float32)
            if res_affine:                # re-apply BN to a pre-BN residual
                r = r * r_sc[...] + r_sh[...]
            y = y + r
        out_ref[...] = y.astype(out_ref.dtype)
        if want_stats:
            # BN partials from the f32 accumulator (before any downcast).
            st_ref[...] = jnp.zeros_like(st_ref)
            st_ref[0:1, :] = jnp.sum(y, axis=0, keepdims=True)
            st_ref[1:2, :] = jnp.sum(y * y, axis=0, keepdims=True)
    return kernel


def _gemm(x, w_bf16, *, scale=None, shift=None, in_relu=False, bias=None,
          residual=None, res_scale=None, res_shift=None,
          want_stats=False, out_dtype=jnp.float32):
    m, k = x.shape
    nc = w_bf16.shape[1]
    tile_m = _pick_tile_m(m)
    num_tiles = m // tile_m
    in_affine = scale is not None
    has_bias = bias is not None
    has_res = residual is not None
    res_affine = res_scale is not None

    operands = [x, w_bf16]
    in_specs = [pl.BlockSpec((tile_m, k), lambda i: (i, 0)),
                pl.BlockSpec((k, nc), lambda i: (0, 0))]
    if in_affine:
        operands += [scale, shift]
        in_specs += [pl.BlockSpec((1, k), lambda i: (0, 0)),
                     pl.BlockSpec((1, k), lambda i: (0, 0))]
    if has_bias:
        operands.append(bias)
        in_specs.append(pl.BlockSpec((1, nc), lambda i: (0, 0)))
    if has_res:
        operands.append(residual)
        in_specs.append(pl.BlockSpec((tile_m, nc), lambda i: (i, 0)))
    if res_affine:
        operands += [res_scale, res_shift]
        in_specs += [pl.BlockSpec((1, nc), lambda i: (0, 0)),
                     pl.BlockSpec((1, nc), lambda i: (0, 0))]

    out_shape = [jax.ShapeDtypeStruct((m, nc), out_dtype)]
    out_specs = [pl.BlockSpec((tile_m, nc), lambda i: (i, 0))]
    if want_stats:
        out_shape.append(jax.ShapeDtypeStruct((num_tiles * 8, nc), jnp.float32))
        out_specs.append(pl.BlockSpec((8, nc), lambda i: (i, 0)))

    x_isz = jnp.dtype(x.dtype).itemsize
    o_isz = jnp.dtype(out_dtype).itemsize
    bytes_acc = (x.size * x_isz + w_bf16.size * 2 + m * nc * o_isz)
    if has_res:
        bytes_acc += residual.size * jnp.dtype(residual.dtype).itemsize
    cost = pl.CostEstimate(flops=2 * m * k * nc, transcendentals=0,
                           bytes_accessed=int(bytes_acc))

    res = pl.pallas_call(
        _make_gemm_kernel(in_affine, in_relu, has_bias, has_res, res_affine,
                          want_stats),
        out_shape=tuple(out_shape) if want_stats else out_shape[0],
        grid=(num_tiles,),
        in_specs=in_specs,
        out_specs=tuple(out_specs) if want_stats else out_specs[0],
        compiler_params=pltpu.CompilerParams(
            dimension_semantics=("parallel",)),
        cost_estimate=cost,
    )(*operands)
    if want_stats:
        y, stats = res
        return y, stats.reshape(num_tiles, 8, nc)
    return res


# ---------------------------------------------------------------------------
# Fused Mlp: out = x2 + (ReLU((x2*sc3+sh3) @ Wm1 + b1) @ Wm2 + b2)
# Both GEMMs in one pallas_call -- the hidden activation never hits HBM.
# ---------------------------------------------------------------------------
def _mlp_kernel(x_ref, sc_ref, sh_ref, w1_ref, b1_ref, w2_ref, b2_ref, out_ref):
    x2 = x_ref[...]                                               # f32 residual
    xin = (x2 * sc_ref[...] + sh_ref[...]).astype(jnp.bfloat16)   # BN3 apply
    h = jnp.dot(xin, w1_ref[...], preferred_element_type=jnp.float32)
    h = jnp.maximum(h + b1_ref[...], 0.0).astype(jnp.bfloat16)    # bias + ReLU
    y = jnp.dot(h, w2_ref[...], preferred_element_type=jnp.float32)
    out_ref[...] = y + b2_ref[...] + x2                           # bias + resid


def _mlp(x2, sc3, sh3, w_m1, b_m1, w_m2, b_m2):
    m, c = x2.shape
    hid = w_m1.shape[1]
    tile_m = _pick_tile_m(m)
    cost = pl.CostEstimate(
        flops=2 * m * c * hid + 2 * m * hid * c, transcendentals=0,
        bytes_accessed=int(x2.size * 4 + m * c * 4
                           + (w_m1.size + w_m2.size) * 2))
    return pl.pallas_call(
        _mlp_kernel,
        out_shape=jax.ShapeDtypeStruct((m, c), jnp.float32),
        grid=(m // tile_m,),
        in_specs=[pl.BlockSpec((tile_m, c), lambda i: (i, 0)),
                  pl.BlockSpec((1, c), lambda i: (0, 0)),
                  pl.BlockSpec((1, c), lambda i: (0, 0)),
                  pl.BlockSpec((c, hid), lambda i: (0, 0)),
                  pl.BlockSpec((1, hid), lambda i: (0, 0)),
                  pl.BlockSpec((hid, c), lambda i: (0, 0)),
                  pl.BlockSpec((1, c), lambda i: (0, 0))],
        out_specs=pl.BlockSpec((tile_m, c), lambda i: (i, 0)),
        compiler_params=pltpu.CompilerParams(
            dimension_semantics=("parallel",)),
        cost_estimate=cost,
    )(x2, sc3, sh3, w_m1, b_m1, w_m2, b_m2)


# ---------------------------------------------------------------------------
# 3x3 conv (stride 1, pad 1) as 9 shifted-window GEMMs over the zero-padded
# bf16 NHWC image.  BN1 (scale/shift) is applied to the image in-kernel (pad
# positions re-zeroed by a skinny [prows,1] mask), the bf16 cast is hoisted
# out of the tap loop, and BN2 partials are emitted from the f32 accumulator.
# ---------------------------------------------------------------------------
def _make_conv3x3_kernel(h, w):
    wp = w + 2
    rows = h * wp

    def kernel(xp_ref, sc_ref, sh_ref, inm_ref, colm_ref, w_ref,
               out_ref, st_ref):
        c = out_ref.shape[-1]
        # BN1 apply + pad mask + single f32->bf16 cast (hoisted out of the loop)
        xbn = (xp_ref[0].astype(jnp.float32) * sc_ref[...] + sh_ref[...])
        xbn = (xbn * inm_ref[...]).astype(jnp.bfloat16)

        acc = jnp.zeros((rows, c), jnp.float32)
        for t in range(9):
            di, dj = divmod(t, 3)
            off = di * wp + dj
            acc = acc + jnp.dot(xbn[off:off + rows, :], w_ref[t],
                                preferred_element_type=jnp.float32)
        out_ref[...] = acc.astype(out_ref.dtype)

        # BN2 partials over the h*w valid output positions (junk cols masked).
        accm = acc * colm_ref[...]
        st_ref[...] = jnp.zeros_like(st_ref)
        st_ref[0:1, :] = jnp.sum(accm, axis=0, keepdims=True)
        st_ref[1:2, :] = jnp.sum(accm * accm, axis=0, keepdims=True)
    return kernel


def _conv3x3(xpad, sc1, sh1, w9_bf16, h, w):
    """xpad: [N, (h+3)*(w+2), C] bf16 flattened, spatially zero-padded PRE-BN
       image; returns the conv output on the padded row grid [N*h*(w+2), C]
       (bf16) and per-image (sum, sumsq) BN2 partials (f32)."""
    n, prows, c = xpad.shape
    wp = w + 2
    rows = h * wp

    # skinny masks (constants): valid padded-image positions / valid out cols
    pi = jnp.arange(h + 3)[:, None]
    pj = jnp.arange(wp)[None, :]
    in_mask = ((pi >= 1) & (pi <= h) & (pj >= 1) & (pj <= w))
    in_mask = in_mask.astype(jnp.float32).reshape(prows, 1)
    col_mask = jnp.tile((jnp.arange(wp) < w).astype(jnp.float32), h)
    col_mask = col_mask.reshape(rows, 1)

    out, stats = pl.pallas_call(
        _make_conv3x3_kernel(h, w),
        out_shape=(jax.ShapeDtypeStruct((n * rows, c), jnp.bfloat16),
                   jax.ShapeDtypeStruct((n * 8, c), jnp.float32)),
        grid=(n,),
        in_specs=[pl.BlockSpec((1, prows, c), lambda i: (i, 0, 0)),
                  pl.BlockSpec((1, c), lambda i: (0, 0)),
                  pl.BlockSpec((1, c), lambda i: (0, 0)),
                  pl.BlockSpec((prows, 1), lambda i: (0, 0)),
                  pl.BlockSpec((rows, 1), lambda i: (0, 0)),
                  pl.BlockSpec((9, c, c), lambda i: (0, 0, 0))],
        out_specs=(pl.BlockSpec((rows, c), lambda i: (i, 0)),
                   pl.BlockSpec((8, c), lambda i: (i, 0))),
        compiler_params=pltpu.CompilerParams(
            dimension_semantics=("parallel",)),
        cost_estimate=pl.CostEstimate(
            flops=2 * n * rows * c * c * 9, transcendentals=0,
            bytes_accessed=int(xpad.size * 2 + w9_bf16.size * 2
                               + n * rows * c * 2)),
    )(xpad, sc1, sh1, in_mask, col_mask, w9_bf16)
    return out, stats.reshape(n, 8, c)


# ---------------------------------------------------------------------------
# BN helper: reduce per-tile partials -> folded (scale, shift), f32 [1, C].
# ---------------------------------------------------------------------------
def _bn_scale_shift(stats, count, gamma_pad, beta_pad):
    s = jnp.sum(stats[:, 0, :], axis=0)
    sq = jnp.sum(stats[:, 1, :], axis=0)
    mean = s / count
    var = jnp.maximum(sq / count - mean * mean, 0.0)   # biased (train-mode) var
    inv_std = lax.rsqrt(var + NORM_EPS)
    scale = gamma_pad * inv_std
    shift = beta_pad - mean * scale
    return (scale.reshape(1, -1).astype(jnp.float32),
            shift.reshape(1, -1).astype(jnp.float32))


# ---------------------------------------------------------------------------
# PDCA forward
# ---------------------------------------------------------------------------
def pdca_forward(x, p):
    n, cin, h, w = x.shape
    cout = p["w_pc"].shape[0]
    hid = p["w_m1"].shape[0]
    m = n * h * w
    cout_p = _round_up(cout, LANE)
    hid_p = _round_up(hid, LANE)
    f32, bf16 = jnp.float32, jnp.bfloat16

    def pad2(a, r, c):
        return jnp.pad(a, ((0, r - a.shape[0]), (0, c - a.shape[1])))

    def padv(v, c):
        return jnp.pad(v.astype(f32), (0, c - v.shape[0]))

    # NCHW -> channels-last [M, cin]; the tiny contraction dim is NOT padded.
    x_flat = jnp.transpose(x, (0, 2, 3, 1)).reshape(m, cin).astype(f32)

    # weights in GEMM layout [K, Cout], output-channel padded, bf16 for the MXU
    w_pc = pad2(p["w_pc"].reshape(cout, cin).T, cin, cout_p).astype(bf16)
    w_33 = jnp.transpose(p["w_33"], (2, 3, 1, 0)).reshape(9, cout, cout)
    w_33 = jnp.pad(w_33, ((0, 0), (0, cout_p - cout),
                          (0, cout_p - cout))).astype(bf16)
    w_11 = pad2(p["w_11"].reshape(cout, cout).T, cout_p, cout_p).astype(bf16)
    w_m1 = pad2(p["w_m1"].reshape(hid, cout).T, cout_p, hid_p).astype(bf16)
    w_m2 = pad2(p["w_m2"].reshape(cout, hid).T, hid_p, cout_p).astype(bf16)
    b_m1 = padv(p["b_m1"], hid_p).reshape(1, hid_p)
    b_m2 = padv(p["b_m2"], cout_p).reshape(1, cout_p)
    g1, be1 = padv(p["bn1_g"], cout_p), padv(p["bn1_b"], cout_p)
    g2, be2 = padv(p["bn2_g"], cout_p), padv(p["bn2_b"], cout_p)
    g3, be3 = padv(p["bn3_g"], cout_p), padv(p["bn3_b"], cout_p)

    # --- PreConv: 1x1 conv GEMM, pre-BN result kept in bf16, BN1 partials ----
    y1, st1 = _gemm(x_flat, w_pc, want_stats=True, out_dtype=bf16)
    sc1, sh1 = _bn_scale_shift(st1, m, g1, be1)

    # --- DHConv 3x3: spatially pad the (bf16) pre-BN image; BN1 is applied
    #     inside the conv kernel (pad positions masked back to zero) ----------
    wp = w + 2
    xpad = jnp.pad(y1.reshape(n, h, w, cout_p),
                   ((0, 0), (1, 2), (1, 1), (0, 0)))
    xpad = xpad.reshape(n, (h + 3) * wp, cout_p)
    c33p, st2 = _conv3x3(xpad, sc1, sh1, w_33, h, w)
    sc2, sh2 = _bn_scale_shift(st2, m, g2, be2)
    # strip the junk halo columns (bf16, cheap slice)
    c33 = c33p.reshape(n, h, wp, cout_p)[:, :, :w, :].reshape(m, cout_p)

    # --- DHConv 1x1 GEMM fused with BN2-apply + ReLU; BN1 re-applied to the
    #     (pre-BN, bf16) residual in-kernel; BN3 partials in the same pass ----
    x2, st3 = _gemm(c33, w_11, scale=sc2, shift=sh2, in_relu=True,
                    residual=y1, res_scale=sc1, res_shift=sh1,
                    want_stats=True, out_dtype=f32)
    sc3, sh3 = _bn_scale_shift(st3, m, g3, be3)

    # --- Mlp: BN3-apply + conv1 + bias + ReLU + conv2 + bias + residual,
    #     all in one pallas_call (hidden activation stays in VMEM) ------------
    res = _mlp(x2, sc3, sh3, w_m1, b_m1, w_m2, b_m2)

    # strip channel padding, back to NCHW to match the PyTorch module output
    return res[:, :cout].reshape(n, h, w, cout).transpose(0, 3, 1, 2)


# ---------------------------------------------------------------------------
# Pure-JAX reference (f32, HIGHEST precision) matching the PyTorch module
# ---------------------------------------------------------------------------
def _conv_ref(x, w, b=None, padding=0):
    y = lax.conv_general_dilated(
        x, w, window_strides=(1, 1),
        padding=((padding, padding), (padding, padding)),
        dimension_numbers=("NCHW", "OIHW", "NCHW"),
        precision=lax.Precision.HIGHEST)
    if b is not None:
        y = y + b.reshape(1, -1, 1, 1)
    return y


def _bn_ref(y, gamma, beta):
    mean = jnp.mean(y, axis=(0, 2, 3), keepdims=True)
    var = jnp.mean((y - mean) ** 2, axis=(0, 2, 3), keepdims=True)
    yn = (y - mean) * lax.rsqrt(var + NORM_EPS)
    return yn * gamma.reshape(1, -1, 1, 1) + beta.reshape(1, -1, 1, 1)


def pdca_reference(x, p):
    y1 = _bn_ref(_conv_ref(x, p["w_pc"]), p["bn1_g"], p["bn1_b"])
    t = _conv_ref(y1, p["w_33"], padding=1)
    t = jnp.maximum(_bn_ref(t, p["bn2_g"], p["bn2_b"]), 0.0)
    x2 = y1 + _conv_ref(t, p["w_11"])
    out = _bn_ref(x2, p["bn3_g"], p["bn3_b"])
    m1 = jnp.maximum(_conv_ref(out, p["w_m1"], p["b_m1"]), 0.0)
    return x2 + _conv_ref(m1, p["w_m2"], p["b_m2"])


if __name__ == "__main__":
    # PDCA(in_channels=4, out_channels=32, mlp_ratio=3), input [2, 4, 16, 16]
    N, C_IN, C_OUT, H, W = 2, 4, 32, 16, 16
    MLP_RATIO = 3
    HID = _make_divisible(C_OUT * MLP_RATIO, 32)      # 96

    key = jax.random.PRNGKey(0)
    ks = jax.random.split(key, 14)

    def conv_w(k, shape):
        fan_in = shape[1] * shape[2] * shape[3]
        return jax.random.normal(k, shape, jnp.float32) * (2.0 / fan_in) ** 0.5

    params = {
        "w_pc": conv_w(ks[0], (C_OUT, C_IN, 1, 1)),
        "bn1_g": 1.0 + 0.1 * jax.random.normal(ks[1], (C_OUT,), jnp.float32),
        "bn1_b": 0.1 * jax.random.normal(ks[2], (C_OUT,), jnp.float32),
        "w_33": conv_w(ks[3], (C_OUT, C_OUT, 3, 3)),
        "bn2_g": 1.0 + 0.1 * jax.random.normal(ks[4], (C_OUT,), jnp.float32),
        "bn2_b": 0.1 * jax.random.normal(ks[5], (C_OUT,), jnp.float32),
        "w_11": conv_w(ks[6], (C_OUT, C_OUT, 1, 1)),
        "bn3_g": 1.0 + 0.1 * jax.random.normal(ks[7], (C_OUT,), jnp.float32),
        "bn3_b": 0.1 * jax.random.normal(ks[8], (C_OUT,), jnp.float32),
        "w_m1": conv_w(ks[9], (HID, C_OUT, 1, 1)),
        "b_m1": 0.05 * jax.random.normal(ks[10], (HID,), jnp.float32),
        "w_m2": conv_w(ks[11], (C_OUT, HID, 1, 1)),
        "b_m2": 0.05 * jax.random.normal(ks[12], (C_OUT,), jnp.float32),
    }
    x = jax.random.normal(ks[13], (N, C_IN, H, W), jnp.float32)

    out = jax.jit(pdca_forward)(x, params)
    out = jax.block_until_ready(out)

    ref = pdca_reference(x, params)
    assert out.shape == (N, C_OUT, H, W), out.shape
    max_err = float(jnp.max(jnp.abs(out - ref)))
    # bf16 MXU inputs + bf16 inter-stage activations (y1, c33) across 5 chained
    # matmul stages with f32 accumulation -> tolerance relaxed accordingly.
    assert jnp.allclose(out, ref, atol=7e-2, rtol=7e-2), max_err
    print("KERNEL_OK")
</pallas_src>

<mosaic_0001>
module attributes {stable_mosaic.version = 11 : i64} {
  func.func @kernel(%arg0: i32, %arg1: memref<256x4xf32, #tpu.memory_space<vmem>>, %arg2: memref<4x128xbf16, #tpu.memory_space<vmem>>, %arg3: memref<256x128xbf16, #tpu.memory_space<vmem>>, %arg4: memref<8x128xf32, #tpu.memory_space<vmem>>) attributes {dimension_semantics = [#tpu.dimension_semantics<parallel>], iteration_bounds = array<i64: 2>, scalar_prefetch = 0 : i64, scratch_operands = 0 : i64, tpu.core_type = #tpu.core_type<tc>, window_params = [{transform_indices = @transform_0, window_bounds = array<i64: 256, 4>}, {pipeline_mode = #tpu.pipeline_mode<synchronous>, transform_indices = @transform_1, window_bounds = array<i64: 4, 128>}, {transform_indices = @transform_2, window_bounds = array<i64: 256, 128>}, {transform_indices = @transform_3, window_bounds = array<i64: 8, 128>}]} {
    %c0 = arith.constant 0 : index
    %c0_0 = arith.constant 0 : index
    %0 = vector.load %arg1[%c0, %c0_0] : memref<256x4xf32, #tpu.memory_space<vmem>>, vector<256x4xf32>
    %1 = arith.truncf %0 : vector<256x4xf32> to vector<256x4xbf16>
    %c0_1 = arith.constant 0 : index
    %c0_2 = arith.constant 0 : index
    %2 = vector.load %arg2[%c0_1, %c0_2] : memref<4x128xbf16, #tpu.memory_space<vmem>>, vector<4x128xbf16>
    %cst = arith.constant dense<0.000000e+00> : vector<256x128xf32>
    %3 = tpu.matmul %1, %2, %cst {dimension_numbers = #tpu.dot_dimension_numbers<[1], [0], [0], [1], [0, 0, 1, 1], [], []>} : vector<256x4xbf16>, vector<4x128xbf16>, vector<256x128xf32> -> vector<256x128xf32>
    %4 = arith.truncf %3 : vector<256x128xf32> to vector<256x128xbf16>
    %c0_3 = arith.constant 0 : index
    %c0_4 = arith.constant 0 : index
    %5 = vector.load %arg3[%c0_3, %c0_4] : memref<256x128xbf16, #tpu.memory_space<vmem>>, vector<256x128xbf16>
    tpu.vector_store %arg3[%c0_3, %c0_4], %4 {strides = array<i32>} : memref<256x128xbf16, #tpu.memory_space<vmem>>, vector<256x128xbf16>,
    %cst_5 = arith.constant 0.000000e+00 : f32
    %6 = vector.broadcast %cst_5 : f32 to vector<8x128xf32>
    %c0_6 = arith.constant 0 : index
    %c0_7 = arith.constant 0 : index
    %7 = vector.load %arg4[%c0_6, %c0_7] : memref<8x128xf32, #tpu.memory_space<vmem>>, vector<8x128xf32>
    tpu.vector_store %arg4[%c0_6, %c0_7], %6 {strides = array<i32>} : memref<8x128xf32, #tpu.memory_space<vmem>>, vector<8x128xf32>,
    %cst_8 = arith.constant dense<0.000000e+00> : vector<128xf32>
    %8 = vector.multi_reduction <add>, %3, %cst_8 [0] : vector<256x128xf32> to vector<128xf32>
    %9 = vector.shape_cast %8 : vector<128xf32> to vector<1x128xf32>
    %c0_9 = arith.constant 0 : index
    %c0_10 = arith.constant 0 : index
    %10 = vector.load %arg4[%c0_9, %c0_10] : memref<8x128xf32, #tpu.memory_space<vmem>>, vector<1x128xf32>
    tpu.vector_store %arg4[%c0_9, %c0_10], %9 {strides = array<i32>} : memref<8x128xf32, #tpu.memory_space<vmem>>, vector<1x128xf32>,
    %11 = arith.mulf %3, %3 : vector<256x128xf32>
    %cst_11 = arith.constant dense<0.000000e+00> : vector<128xf32>
    %12 = vector.multi_reduction <add>, %11, %cst_11 [0] : vector<256x128xf32> to vector<128xf32>
    %13 = vector.shape_cast %12 : vector<128xf32> to vector<1x128xf32>
    %c1 = arith.constant 1 : index
    %c0_12 = arith.constant 0 : index
    %14 = vector.load %arg4[%c1, %c0_12] : memref<8x128xf32, #tpu.memory_space<vmem>>, vector<1x128xf32>
    tpu.vector_store %arg4[%c1, %c0_12], %13 {strides = array<i32>} : memref<8x128xf32, #tpu.memory_space<vmem>>, vector<1x128xf32>,
    return
  }
  func.func @transform_0(%arg0: i32) -> (i32, i32) {
    %c0_i32 = arith.constant 0 : i32
    %c0_i32_0 = arith.constant 0 : i32
    return %arg0, %c0_i32 : i32, i32
  }
  func.func @transform_1(%arg0: i32) -> (i32, i32) {
    %c0_i32 = arith.constant 0 : i32
    %c0_i32_0 = arith.constant 0 : i32
    %c0_i32_1 = arith.constant 0 : i32
    return %c0_i32, %c0_i32_0 : i32, i32
  }
  func.func @transform_2(%arg0: i32) -> (i32, i32) {
    %c0_i32 = arith.constant 0 : i32
    %c0_i32_0 = arith.constant 0 : i32
    return %arg0, %c0_i32 : i32, i32
  }
  func.func @transform_3(%arg0: i32) -> (i32, i32) {
    %c0_i32 = arith.constant 0 : i32
    %c0_i32_0 = arith.constant 0 : i32
    return %arg0, %c0_i32 : i32, i32
  }
}

module attributes {stable_mosaic.version = 11 : i64} {
  func.func @kernel(%arg0: i32, %arg1: memref<1x342x128xbf16, #tpu.memory_space<vmem>>, %arg2: memref<1x128xf32, #tpu.memory_space<vmem>>, %arg3: memref<1x128xf32, #tpu.memory_space<vmem>>, %arg4: memref<342x1xf32, #tpu.memory_space<vmem>>, %arg5: memref<288x1xf32, #tpu.memory_space<vmem>>, %arg6: memref<9x128x128xbf16, #tpu.memory_space<vmem>>, %arg7: memref<288x128xbf16, #tpu.memory_space<vmem>>, %arg8: memref<8x128xf32, #tpu.memory_space<vmem>>) attributes {dimension_semantics = [#tpu.dimension_semantics<parallel>], iteration_bounds = array<i64: 2>, scalar_prefetch = 0 : i64, scratch_operands = 0 : i64, tpu.core_type = #tpu.core_type<tc>, window_params = [{transform_indices = @transform_0, window_bounds = array<i64: 1, 342, 128>}, {pipeline_mode = #tpu.pipeline_mode<synchronous>, transform_indices = @transform_1, window_bounds = array<i64: 1, 128>}, {pipeline_mode = #tpu.pipeline_mode<synchronous>, transform_indices = @transform_2, window_bounds = array<i64: 1, 128>}, {pipeline_mode = #tpu.pipeline_mode<synchronous>, transform_indices = @transform_3, window_bounds = array<i64: 342, 1>}, {pipeline_mode = #tpu.pipeline_mode<synchronous>, transform_indices = @transform_4, window_bounds = array<i64: 288, 1>}, {pipeline_mode = #tpu.pipeline_mode<synchronous>, transform_indices = @transform_5, window_bounds = array<i64: 9, 128, 128>}, {transform_indices = @transform_6, window_bounds = array<i64: 288, 128>}, {transform_indices = @transform_7, window_bounds = array<i64: 8, 128>}]} {
    %c0 = arith.constant 0 : index
    %c0_0 = arith.constant 0 : index
    %c0_1 = arith.constant 0 : index
    %0 = vector.load %arg1[%c0, %c0_0, %c0_1] : memref<1x342x128xbf16, #tpu.memory_space<vmem>>, vector<1x342x128xbf16>
    %1 = vector.shape_cast %0 : vector<1x342x128xbf16> to vector<342x128xbf16>
    %2 = arith.extf %1 : vector<342x128xbf16> to vector<342x128xf32>
    %c0_2 = arith.constant 0 : index
    %c0_3 = arith.constant 0 : index
    %3 = vector.load %arg2[%c0_2, %c0_3] : memref<1x128xf32, #tpu.memory_space<vmem>>, vector<1x128xf32>
    %4 = vector.broadcast %3 : vector<1x128xf32> to vector<342x128xf32>
    %5 = arith.mulf %2, %4 : vector<342x128xf32>
    %c0_4 = arith.constant 0 : index
    %c0_5 = arith.constant 0 : index
    %6 = vector.load %arg3[%c0_4, %c0_5] : memref<1x128xf32, #tpu.memory_space<vmem>>, vector<1x128xf32>
    %7 = vector.broadcast %6 : vector<1x128xf32> to vector<342x128xf32>
    %8 = arith.addf %5, %7 : vector<342x128xf32>
    %c0_6 = arith.constant 0 : index
    %c0_7 = arith.constant 0 : index
    %9 = vector.load %arg4[%c0_6, %c0_7] : memref<342x1xf32, #tpu.memory_space<vmem>>, vector<342x1xf32>
    %10 = vector.broadcast %9 : vector<342x1xf32> to vector<342x128xf32>
    %11 = arith.mulf %8, %10 : vector<342x128xf32>
    %12 = arith.truncf %11 : vector<342x128xf32> to vector<342x128xbf16>
    %cst = arith.constant 0.000000e+00 : f32
    %13 = vector.broadcast %cst : f32 to vector<288x128xf32>
    %14 = vector.extract_strided_slice %12 {offsets = [0, 0], sizes = [288, 128], strides = [1, 1]} : vector<342x128xbf16> to vector<288x128xbf16>
    %c0_8 = arith.constant 0 : index
    %c0_9 = arith.constant 0 : index
    %c0_10 = arith.constant 0 : index
    %15 = vector.load %arg6[%c0_8, %c0_9, %c0_10] : memref<9x128x128xbf16, #tpu.memory_space<vmem>>, vector<1x128x128xbf16>
    %16 = vector.shape_cast %15 : vector<1x128x128xbf16> to vector<128x128xbf16>
    %cst_11 = arith.constant dense<0.000000e+00> : vector<288x128xf32>
    %17 = tpu.matmul %14, %16, %cst_11 {dimension_numbers = #tpu.dot_dimension_numbers<[1], [0], [0], [1], [0, 0, 1, 1], [], []>} : vector<288x128xbf16>, vector<128x128xbf16>, vector<288x128xf32> -> vector<288x128xf32>
    %18 = arith.addf %13, %17 : vector<288x128xf32>
    %19 = vector.extract_strided_slice %12 {offsets = [1, 0], sizes = [288, 128], strides = [1, 1]} : vector<342x128xbf16> to vector<288x128xbf16>
    %c1 = arith.constant 1 : index
    %c0_12 = arith.constant 0 : index
    %c0_13 = arith.constant 0 : index
    %20 = vector.load %arg6[%c1, %c0_12, %c0_13] : memref<9x128x128xbf16, #tpu.memory_space<vmem>>, vector<1x128x128xbf16>
    %21 = vector.shape_cast %20 : vector<1x128x128xbf16> to vector<128x128xbf16>
    %cst_14 = arith.constant dense<0.000000e+00> : vector<288x128xf32>
    %22 = tpu.matmul %19, %21, %cst_14 {dimension_numbers = #tpu.dot_dimension_numbers<[1], [0], [0], [1], [0, 0, 1, 1], [], []>} : vector<288x128xbf16>, vector<128x128xbf16>, vector<288x128xf32> -> vector<288x128xf32>
    %23 = arith.addf %18, %22 : vector<288x128xf32>
    %24 = vector.extract_strided_slice %12 {offsets = [2, 0], sizes = [288, 128], strides = [1, 1]} : vector<342x128xbf16> to vector<288x128xbf16>
    %c2 = arith.constant 2 : index
    %c0_15 = arith.constant 0 : index
    %c0_16 = arith.constant 0 : index
    %25 = vector.load %arg6[%c2, %c0_15, %c0_16] : memref<9x128x128xbf16, #tpu.memory_space<vmem>>, vector<1x128x128xbf16>
    %26 = vector.shape_cast %25 : vector<1x128x128xbf16> to vector<128x128xbf16>
    %cst_17 = arith.constant dense<0.000000e+00> : vector<288x128xf32>
    %27 = tpu.matmul %24, %26, %cst_17 {dimension_numbers = #tpu.dot_dimension_numbers<[1], [0], [0], [1], [0, 0, 1, 1], [], []>} : vector<288x128xbf16>, vector<128x128xbf16>, vector<288x128xf32> -> vector<288x128xf32>
    %28 = arith.addf %23, %27 : vector<288x128xf32>
    %29 = vector.extract_strided_slice %12 {offsets = [18, 0], sizes = [288, 128], strides = [1, 1]} : vector<342x128xbf16> to vector<288x128xbf16>
    %c3 = arith.constant 3 : index
    %c0_18 = arith.constant 0 : index
    %c0_19 = arith.constant 0 : index
    %30 = vector.load %arg6[%c3, %c0_18, %c0_19] : memref<9x128x128xbf16, #tpu.memory_space<vmem>>, vector<1x128x128xbf16>
    %31 = vector.shape_cast %30 : vector<1x128x128xbf16> to vector<128x128xbf16>
    %cst_20 = arith.constant dense<0.000000e+00> : vector<288x128xf32>
    %32 = tpu.matmul %29, %31, %cst_20 {dimension_numbers = #tpu.dot_dimension_numbers<[1], [0], [0], [1], [0, 0, 1, 1], [], []>} : vector<288x128xbf16>, vector<128x128xbf16>, vector<288x128xf32> -> vector<288x128xf32>
    %33 = arith.addf %28, %32 : vector<288x128xf32>
    %34 = vector.extract_strided_slice %12 {offsets = [19, 0], sizes = [288, 128], strides = [1, 1]} : vector<342x128xbf16> to vector<288x128xbf16>
    %c4 = arith.constant 4 : index
    %c0_21 = arith.constant 0 : index
    %c0_22 = arith.constant 0 : index
    %35 = vector.load %arg6[%c4, %c0_21, %c0_22] : memref<9x128x128xbf16, #tpu.memory_space<vmem>>, vector<1x128x128xbf16>
    %36 = vector.shape_cast %35 : vector<1x128x128xbf16> to vector<128x128xbf16>
    %cst_23 = arith.constant dense<0.000000e+00> : vector<288x128xf32>
    %37 = tpu.matmul %34, %36, %cst_23 {dimension_numbers = #tpu.dot_dimension_numbers<[1], [0], [0], [1], [0, 0, 1, 1], [], []>} : vector<288x128xbf16>, vector<128x128xbf16>, vector<288x128xf32> -> vector<288x128xf32>
    %38 = arith.addf %33, %37 : vector<288x128xf32>
    %39 = vector.extract_strided_slice %12 {offsets = [20, 0], sizes = [288, 128], strides = [1, 1]} : vector<342x128xbf16> to vector<288x128xbf16>
    %c5 = arith.constant 5 : index
    %c0_24 = arith.constant 0 : index
    %c0_25 = arith.constant 0 : index
    %40 = vector.load %arg6[%c5, %c0_24, %c0_25] : memref<9x128x128xbf16, #tpu.memory_space<vmem>>, vector<1x128x128xbf16>
    %41 = vector.shape_cast %40 : vector<1x128x128xbf16> to vector<128x128xbf16>
    %cst_26 = arith.constant dense<0.000000e+00> : vector<288x128xf32>
    %42 = tpu.matmul %39, %41, %cst_26 {dimension_numbers = #tpu.dot_dimension_numbers<[1], [0], [0], [1], [0, 0, 1, 1], [], []>} : vector<288x128xbf16>, vector<128x128xbf16>, vector<288x128xf32> -> vector<288x128xf32>
    %43 = arith.addf %38, %42 : vector<288x128xf32>
    %44 = vector.extract_strided_slice %12 {offsets = [36, 0], sizes = [288, 128], strides = [1, 1]} : vector<342x128xbf16> to vector<288x128xbf16>
    %c6 = arith.constant 6 : index
    %c0_27 = arith.constant 0 : index
    %c0_28 = arith.constant 0 : index
    %45 = vector.load %arg6[%c6, %c0_27, %c0_28] : memref<9x128x128xbf16, #tpu.memory_space<vmem>>, vector<1x128x128xbf16>
    %46 = vector.shape_cast %45 : vector<1x128x128xbf16> to vector<128x128xbf16>
    %cst_29 = arith.constant dense<0.000000e+00> : vector<288x128xf32>
    %47 = tpu.matmul %44, %46, %cst_29 {dimension_numbers = #tpu.dot_dimension_numbers<[1], [0], [0], [1], [0, 0, 1, 1], [], []>} : vector<288x128xbf16>, vector<128x128xbf16>, vector<288x128xf32> -> vector<288x128xf32>
    %48 = arith.addf %43, %47 : vector<288x128xf32>
    %49 = vector.extract_strided_slice %12 {offsets = [37, 0], sizes = [288, 128], strides = [1, 1]} : vector<342x128xbf16> to vector<288x128xbf16>
    %c7 = arith.constant 7 : index
    %c0_30 = arith.constant 0 : index
    %c0_31 = arith.constant 0 : index
    %50 = vector.load %arg6[%c7, %c0_30, %c0_31] : memref<9x128x128xbf16, #tpu.memory_space<vmem>>, vector<1x128x128xbf16>
    %51 = vector.shape_cast %50 : vector<1x128x128xbf16> to vector<128x128xbf16>
    %cst_32 = arith.constant dense<0.000000e+00> : vector<288x128xf32>
    %52 = tpu.matmul %49, %51, %cst_32 {dimension_numbers = #tpu.dot_dimension_numbers<[1], [0], [0], [1], [0, 0, 1, 1], [], []>} : vector<288x128xbf16>, vector<128x128xbf16>, vector<288x128xf32> -> vector<288x128xf32>
    %53 = arith.addf %48, %52 : vector<288x128xf32>
    %54 = vector.extract_strided_slice %12 {offsets = [38, 0], sizes = [288, 128], strides = [1, 1]} : vector<342x128xbf16> to vector<288x128xbf16>
    %c8 = arith.constant 8 : index
    %c0_33 = arith.constant 0 : index
    %c0_34 = arith.constant 0 : index
    %55 = vector.load %arg6[%c8, %c0_33, %c0_34] : memref<9x128x128xbf16, #tpu.memory_space<vmem>>, vector<1x128x128xbf16>
    %56 = vector.shape_cast %55 : vector<1x128x128xbf16> to vector<128x128xbf16>
    %cst_35 = arith.constant dense<0.000000e+00> : vector<288x128xf32>
    %57 = tpu.matmul %54, %56, %cst_35 {dimension_numbers = #tpu.dot_dimension_numbers<[1], [0], [0], [1], [0, 0, 1, 1], [], []>} : vector<288x128xbf16>, vector<128x128xbf16>, vector<288x128xf32> -> vector<288x128xf32>
    %58 = arith.addf %53, %57 : vector<288x128xf32>
    %59 = arith.truncf %58 : vector<288x128xf32> to vector<288x128xbf16>
    %c0_36 = arith.constant 0 : index
    %c0_37 = arith.constant 0 : index
    %60 = vector.load %arg7[%c0_36, %c0_37] : memref<288x128xbf16, #tpu.memory_space<vmem>>, vector<288x128xbf16>
    tpu.vector_store %arg7[%c0_36, %c0_37], %59 {strides = array<i32>} : memref<288x128xbf16, #tpu.memory_space<vmem>>, vector<288x128xbf16>,
    %c0_38 = arith.constant 0 : index
    %c0_39 = arith.constant 0 : index
    %61 = vector.load %arg5[%c0_38, %c0_39] : memref<288x1xf32, #tpu.memory_space<vmem>>, vector<288x1xf32>
    %62 = vector.broadcast %61 : vector<288x1xf32> to vector<288x128xf32>
    %63 = arith.mulf %58, %62 : vector<288x128xf32>
    %cst_40 = arith.constant 0.000000e+00 : f32
    %64 = vector.broadcast %cst_40 : f32 to vector<8x128xf32>
    %c0_41 = arith.constant 0 : index
    %c0_42 = arith.constant 0 : index
    %65 = vector.load %arg8[%c0_41, %c0_42] : memref<8x128xf32, #tpu.memory_space<vmem>>, vector<8x128xf32>
    tpu.vector_store %arg8[%c0_41, %c0_42], %64 {strides = array<i32>} : memref<8x128xf32, #tpu.memory_space<vmem>>, vector<8x128xf32>,
    %cst_43 = arith.constant dense<0.000000e+00> : vector<128xf32>
    %66 = vector.multi_reduction <add>, %63, %cst_43 [0] : vector<288x128xf32> to vector<128xf32>
    %67 = vector.shape_cast %66 : vector<128xf32> to vector<1x128xf32>
    %c0_44 = arith.constant 0 : index
    %c0_45 = arith.constant 0 : index
    %68 = vector.load %arg8[%c0_44, %c0_45] : memref<8x128xf32, #tpu.memory_space<vmem>>, vector<1x128xf32>
    tpu.vector_store %arg8[%c0_44, %c0_45], %67 {strides = array<i32>} : memref<8x128xf32, #tpu.memory_space<vmem>>, vector<1x128xf32>,
    %69 = arith.mulf %63, %63 : vector<288x128xf32>
    %cst_46 = arith.constant dense<0.000000e+00> : vector<128xf32>
    %70 = vector.multi_reduction <add>, %69, %cst_46 [0] : vector<288x128xf32> to vector<128xf32>
    %71 = vector.shape_cast %70 : vector<128xf32> to vector<1x128xf32>
    %c1_47 = arith.constant 1 : index
    %c0_48 = arith.constant 0 : index
    %72 = vector.load %arg8[%c1_47, %c0_48] : memref<8x128xf32, #tpu.memory_space<vmem>>, vector<1x128xf32>
    tpu.vector_store %arg8[%c1_47, %c0_48], %71 {strides = array<i32>} : memref<8x128xf32, #tpu.memory_space<vmem>>, vector<1x128xf32>,
    return
  }
  func.func @transform_0(%arg0: i32) -> (i32, i32, i32) {
    %c0_i32 = arith.constant 0 : i32
    %c0_i32_0 = arith.constant 0 : i32
    %c0_i32_1 = arith.constant 0 : i32
    return %arg0, %c0_i32, %c0_i32_0 : i32, i32, i32
  }
  func.func @transform_1(%arg0: i32) -> (i32, i32) {
    %c0_i32 = arith.constant 0 : i32
    %c0_i32_0 = arith.constant 0 : i32
    %c0_i32_1 = arith.constant 0 : i32
    return %c0_i32, %c0_i32_0 : i32, i32
  }
  func.func @transform_2(%arg0: i32) -> (i32, i32) {
    %c0_i32 = arith.constant 0 : i32
    %c0_i32_0 = arith.constant 0 : i32
    %c0_i32_1 = arith.constant 0 : i32
    return %c0_i32, %c0_i32_0 : i32, i32
  }
  func.func @transform_3(%arg0: i32) -> (i32, i32) {
    %c0_i32 = arith.constant 0 : i32
    %c0_i32_0 = arith.constant 0 : i32
    %c0_i32_1 = arith.constant 0 : i32
    return %c0_i32, %c0_i32_0 : i32, i32
  }
  func.func @transform_4(%arg0: i32) -> (i32, i32) {
    %c0_i32 = arith.constant 0 : i32
    %c0_i32_0 = arith.constant 0 : i32
    %c0_i32_1 = arith.constant 0 : i32
    return %c0_i32, %c0_i32_0 : i32, i32
  }
  func.func @transform_5(%arg0: i32) -> (i32, i32, i32) {
    %c0_i32 = arith.constant 0 : i32
    %c0_i32_0 = arith.constant 0 : i32
    %c0_i32_1 = arith.constant 0 : i32
    %c0_i32_2 = arith.constant 0 : i32
    return %c0_i32, %c0_i32_0, %c0_i32_1 : i32, i32, i32
  }
  func.func @transform_6(%arg0: i32) -> (i32, i32) {
    %c0_i32 = arith.constant 0 : i32
    %c0_i32_0 = arith.constant 0 : i32
    return %arg0, %c0_i32 : i32, i32
  }
  func.func @transform_7(%arg0: i32) -> (i32, i32) {
    %c0_i32 = arith.constant 0 : i32
    %c0_i32_0 = arith.constant 0 : i32
    return %arg0, %c0_i32 : i32, i32
  }
}

module attributes {stable_mosaic.version = 11 : i64} {
  func.func @kernel(%arg0: i32, %arg1: memref<256x128xbf16, #tpu.memory_space<vmem>>, %arg2: memref<128x128xbf16, #tpu.memory_space<vmem>>, %arg3: memref<1x128xf32, #tpu.memory_space<vmem>>, %arg4: memref<1x128xf32, #tpu.memory_space<vmem>>, %arg5: memref<256x128xbf16, #tpu.memory_space<vmem>>, %arg6: memref<1x128xf32, #tpu.memory_space<vmem>>, %arg7: memref<1x128xf32, #tpu.memory_space<vmem>>, %arg8: memref<256x128xf32, #tpu.memory_space<vmem>>, %arg9: memref<8x128xf32, #tpu.memory_space<vmem>>) attributes {dimension_semantics = [#tpu.dimension_semantics<parallel>], iteration_bounds = array<i64: 2>, scalar_prefetch = 0 : i64, scratch_operands = 0 : i64, tpu.core_type = #tpu.core_type<tc>, window_params = [{transform_indices = @transform_0, window_bounds = array<i64: 256, 128>}, {pipeline_mode = #tpu.pipeline_mode<synchronous>, transform_indices = @transform_1, window_bounds = array<i64: 128, 128>}, {pipeline_mode = #tpu.pipeline_mode<synchronous>, transform_indices = @transform_2, window_bounds = array<i64: 1, 128>}, {pipeline_mode = #tpu.pipeline_mode<synchronous>, transform_indices = @transform_3, window_bounds = array<i64: 1, 128>}, {transform_indices = @transform_4, window_bounds = array<i64: 256, 128>}, {pipeline_mode = #tpu.pipeline_mode<synchronous>, transform_indices = @transform_5, window_bounds = array<i64: 1, 128>}, {pipeline_mode = #tpu.pipeline_mode<synchronous>, transform_indices = @transform_6, window_bounds = array<i64: 1, 128>}, {transform_indices = @transform_7, window_bounds = array<i64: 256, 128>}, {transform_indices = @transform_8, window_bounds = array<i64: 8, 128>}]} {
    %c0 = arith.constant 0 : index
    %c0_0 = arith.constant 0 : index
    %0 = vector.load %arg1[%c0, %c0_0] : memref<256x128xbf16, #tpu.memory_space<vmem>>, vector<256x128xbf16>
    %1 = arith.extf %0 : vector<256x128xbf16> to vector<256x128xf32>
    %c0_1 = arith.constant 0 : index
    %c0_2 = arith.constant 0 : index
    %2 = vector.load %arg3[%c0_1, %c0_2] : memref<1x128xf32, #tpu.memory_space<vmem>>, vector<1x128xf32>
    %3 = vector.broadcast %2 : vector<1x128xf32> to vector<256x128xf32>
    %4 = arith.mulf %1, %3 : vector<256x128xf32>
    %c0_3 = arith.constant 0 : index
    %c0_4 = arith.constant 0 : index
    %5 = vector.load %arg4[%c0_3, %c0_4] : memref<1x128xf32, #tpu.memory_space<vmem>>, vector<1x128xf32>
    %6 = vector.broadcast %5 : vector<1x128xf32> to vector<256x128xf32>
    %7 = arith.addf %4, %6 : vector<256x128xf32>
    %cst = arith.constant 0.000000e+00 : f32
    %8 = vector.broadcast %cst : f32 to vector<256x128xf32>
    %9 = arith.maximumf %7, %8 : vector<256x128xf32>
    %10 = arith.truncf %9 : vector<256x128xf32> to vector<256x128xbf16>
    %c0_5 = arith.constant 0 : index
    %c0_6 = arith.constant 0 : index
    %11 = vector.load %arg2[%c0_5, %c0_6] : memref<128x128xbf16, #tpu.memory_space<vmem>>, vector<128x128xbf16>
    %cst_7 = arith.constant dense<0.000000e+00> : vector<256x128xf32>
    %12 = tpu.matmul %10, %11, %cst_7 {dimension_numbers = #tpu.dot_dimension_numbers<[1], [0], [0], [1], [0, 0, 1, 1], [], []>} : vector<256x128xbf16>, vector<128x128xbf16>, vector<256x128xf32> -> vector<256x128xf32>
    %c0_8 = arith.constant 0 : index
    %c0_9 = arith.constant 0 : index
    %13 = vector.load %arg5[%c0_8, %c0_9] : memref<256x128xbf16, #tpu.memory_space<vmem>>, vector<256x128xbf16>
    %14 = arith.extf %13 : vector<256x128xbf16> to vector<256x128xf32>
    %c0_10 = arith.constant 0 : index
    %c0_11 = arith.constant 0 : index
    %15 = vector.load %arg6[%c0_10, %c0_11] : memref<1x128xf32, #tpu.memory_space<vmem>>, vector<1x128xf32>
    %16 = vector.broadcast %15 : vector<1x128xf32> to vector<256x128xf32>
    %17 = arith.mulf %14, %16 : vector<256x128xf32>
    %c0_12 = arith.constant 0 : index
    %c0_13 = arith.constant 0 : index
    %18 = vector.load %arg7[%c0_12, %c0_13] : memref<1x128xf32, #tpu.memory_space<vmem>>, vector<1x128xf32>
    %19 = vector.broadcast %18 : vector<1x128xf32> to vector<256x128xf32>
    %20 = arith.addf %17, %19 : vector<256x128xf32>
    %21 = arith.addf %12, %20 : vector<256x128xf32>
    %c0_14 = arith.constant 0 : index
    %c0_15 = arith.constant 0 : index
    %22 = vector.load %arg8[%c0_14, %c0_15] : memref<256x128xf32, #tpu.memory_space<vmem>>, vector<256x128xf32>
    tpu.vector_store %arg8[%c0_14, %c0_15], %21 {strides = array<i32>} : memref<256x128xf32, #tpu.memory_space<vmem>>, vector<256x128xf32>,
    %cst_16 = arith.constant 0.000000e+00 : f32
    %23 = vector.broadcast %cst_16 : f32 to vector<8x128xf32>
    %c0_17 = arith.constant 0 : index
    %c0_18 = arith.constant 0 : index
    %24 = vector.load %arg9[%c0_17, %c0_18] : memref<8x128xf32, #tpu.memory_space<vmem>>, vector<8x128xf32>
    tpu.vector_store %arg9[%c0_17, %c0_18], %23 {strides = array<i32>} : memref<8x128xf32, #tpu.memory_space<vmem>>, vector<8x128xf32>,
    %cst_19 = arith.constant dense<0.000000e+00> : vector<128xf32>
    %25 = vector.multi_reduction <add>, %21, %cst_19 [0] : vector<256x128xf32> to vector<128xf32>
    %26 = vector.shape_cast %25 : vector<128xf32> to vector<1x128xf32>
    %c0_20 = arith.constant 0 : index
    %c0_21 = arith.constant 0 : index
    %27 = vector.load %arg9[%c0_20, %c0_21] : memref<8x128xf32, #tpu.memory_space<vmem>>, vector<1x128xf32>
    tpu.vector_store %arg9[%c0_20, %c0_21], %26 {strides = array<i32>} : memref<8x128xf32, #tpu.memory_space<vmem>>, vector<1x128xf32>,
    %28 = arith.mulf %21, %21 : vector<256x128xf32>
    %cst_22 = arith.constant dense<0.000000e+00> : vector<128xf32>
    %29 = vector.multi_reduction <add>, %28, %cst_22 [0] : vector<256x128xf32> to vector<128xf32>
    %30 = vector.shape_cast %29 : vector<128xf32> to vector<1x128xf32>
    %c1 = arith.constant 1 : index
    %c0_23 = arith.constant 0 : index
    %31 = vector.load %arg9[%c1, %c0_23] : memref<8x128xf32, #tpu.memory_space<vmem>>, vector<1x128xf32>
    tpu.vector_store %arg9[%c1, %c0_23], %30 {strides = array<i32>} : memref<8x128xf32, #tpu.memory_space<vmem>>, vector<1x128xf32>,
    return
  }
  func.func @transform_0(%arg0: i32) -> (i32, i32) {
    %c0_i32 = arith.constant 0 : i32
    %c0_i32_0 = arith.constant 0 : i32
    return %arg0, %c0_i32 : i32, i32
  }
  func.func @transform_1(%arg0: i32) -> (i32, i32) {
    %c0_i32 = arith.constant 0 : i32
    %c0_i32_0 = arith.constant 0 : i32
    %c0_i32_1 = arith.constant 0 : i32
    return %c0_i32, %c0_i32_0 : i32, i32
  }
  func.func @transform_2(%arg0: i32) -> (i32, i32) {
    %c0_i32 = arith.constant 0 : i32
    %c0_i32_0 = arith.constant 0 : i32
    %c0_i32_1 = arith.constant 0 : i32
    return %c0_i32, %c0_i32_0 : i32, i32
  }
  func.func @transform_3(%arg0: i32) -> (i32, i32) {
    %c0_i32 = arith.constant 0 : i32
    %c0_i32_0 = arith.constant 0 : i32
    %c0_i32_1 = arith.constant 0 : i32
    return %c0_i32, %c0_i32_0 : i32, i32
  }
  func.func @transform_4(%arg0: i32) -> (i32, i32) {
    %c0_i32 = arith.constant 0 : i32
    %c0_i32_0 = arith.constant 0 : i32
    return %arg0, %c0_i32 : i32, i32
  }
  func.func @transform_5(%arg0: i32) -> (i32, i32) {
    %c0_i32 = arith.constant 0 : i32
    %c0_i32_0 = arith.constant 0 : i32
    %c0_i32_1 = arith.constant 0 : i32
    return %c0_i32, %c0_i32_0 : i32, i32
  }
  func.func @transform_6(%arg0: i32) -> (i32, i32) {
    %c0_i32 = arith.constant 0 : i32
    %c0_i32_0 = arith.constant 0 : i32
    %c0_i32_1 = arith.constant 0 : i32
    return %c0_i32, %c0_i32_0 : i32, i32
  }
  func.func @transform_7(%arg0: i32) -> (i32, i32) {
    %c0_i32 = arith.constant 0 : i32
    %c0_i32_0 = arith.constant 0 : i32
    return %arg0, %c0_i32 : i32, i32
  }
  func.func @transform_8(%arg0: i32) -> (i32, i32) {
    %c0_i32 = arith.constant 0 : i32
    %c0_i32_0 = arith.constant 0 : i32
    return %arg0, %c0_i32 : i32, i32
  }
}

module attributes {stable_mosaic.version = 11 : i64} {
  func.func @_mlp_kernel(%arg0: i32, %arg1: memref<256x128xf32, #tpu.memory_space<vmem>>, %arg2: memref<1x128xf32, #tpu.memory_space<vmem>>, %arg3: memref<1x128xf32, #tpu.memory_space<vmem>>, %arg4: memref<128x128xbf16, #tpu.memory_space<vmem>>, %arg5: memref<1x128xf32, #tpu.memory_space<vmem>>, %arg6: memref<128x128xbf16, #tpu.memory_space<vmem>>, %arg7: memref<1x128xf32, #tpu.memory_space<vmem>>, %arg8: memref<256x128xf32, #tpu.memory_space<vmem>>) attributes {dimension_semantics = [#tpu.dimension_semantics<parallel>], iteration_bounds = array<i64: 2>, scalar_prefetch = 0 : i64, scratch_operands = 0 : i64, tpu.core_type = #tpu.core_type<tc>, window_params = [{transform_indices = @transform_0, window_bounds = array<i64: 256, 128>}, {pipeline_mode = #tpu.pipeline_mode<synchronous>, transform_indices = @transform_1, window_bounds = array<i64: 1, 128>}, {pipeline_mode = #tpu.pipeline_mode<synchronous>, transform_indices = @transform_2, window_bounds = array<i64: 1, 128>}, {pipeline_mode = #tpu.pipeline_mode<synchronous>, transform_indices = @transform_3, window_bounds = array<i64: 128, 128>}, {pipeline_mode = #tpu.pipeline_mode<synchronous>, transform_indices = @transform_4, window_bounds = array<i64: 1, 128>}, {pipeline_mode = #tpu.pipeline_mode<synchronous>, transform_indices = @transform_5, window_bounds = array<i64: 128, 128>}, {pipeline_mode = #tpu.pipeline_mode<synchronous>, transform_indices = @transform_6, window_bounds = array<i64: 1, 128>}, {transform_indices = @transform_7, window_bounds = array<i64: 256, 128>}]} {
    %c0 = arith.constant 0 : index
    %c0_0 = arith.constant 0 : index
    %0 = vector.load %arg1[%c0, %c0_0] : memref<256x128xf32, #tpu.memory_space<vmem>>, vector<256x128xf32>
    %c0_1 = arith.constant 0 : index
    %c0_2 = arith.constant 0 : index
    %1 = vector.load %arg2[%c0_1, %c0_2] : memref<1x128xf32, #tpu.memory_space<vmem>>, vector<1x128xf32>
    %2 = vector.broadcast %1 : vector<1x128xf32> to vector<256x128xf32>
    %3 = arith.mulf %0, %2 : vector<256x128xf32>
    %c0_3 = arith.constant 0 : index
    %c0_4 = arith.constant 0 : index
    %4 = vector.load %arg3[%c0_3, %c0_4] : memref<1x128xf32, #tpu.memory_space<vmem>>, vector<1x128xf32>
    %5 = vector.broadcast %4 : vector<1x128xf32> to vector<256x128xf32>
    %6 = arith.addf %3, %5 : vector<256x128xf32>
    %7 = arith.truncf %6 : vector<256x128xf32> to vector<256x128xbf16>
    %c0_5 = arith.constant 0 : index
    %c0_6 = arith.constant 0 : index
    %8 = vector.load %arg4[%c0_5, %c0_6] : memref<128x128xbf16, #tpu.memory_space<vmem>>, vector<128x128xbf16>
    %cst = arith.constant dense<0.000000e+00> : vector<256x128xf32>
    %9 = tpu.matmul %7, %8, %cst {dimension_numbers = #tpu.dot_dimension_numbers<[1], [0], [0], [1], [0, 0, 1, 1], [], []>} : vector<256x128xbf16>, vector<128x128xbf16>, vector<256x128xf32> -> vector<256x128xf32>
    %c0_7 = arith.constant 0 : index
    %c0_8 = arith.constant 0 : index
    %10 = vector.load %arg5[%c0_7, %c0_8] : memref<1x128xf32, #tpu.memory_space<vmem>>, vector<1x128xf32>
    %11 = vector.broadcast %10 : vector<1x128xf32> to vector<256x128xf32>
    %12 = arith.addf %9, %11 : vector<256x128xf32>
    %cst_9 = arith.constant 0.000000e+00 : f32
    %13 = vector.broadcast %cst_9 : f32 to vector<256x128xf32>
    %14 = arith.maximumf %12, %13 : vector<256x128xf32>
    %15 = arith.truncf %14 : vector<256x128xf32> to vector<256x128xbf16>
    %c0_10 = arith.constant 0 : index
    %c0_11 = arith.constant 0 : index
    %16 = vector.load %arg6[%c0_10, %c0_11] : memref<128x128xbf16, #tpu.memory_space<vmem>>, vector<128x128xbf16>
    %cst_12 = arith.constant dense<0.000000e+00> : vector<256x128xf32>
    %17 = tpu.matmul %15, %16, %cst_12 {dimension_numbers = #tpu.dot_dimension_numbers<[1], [0], [0], [1], [0, 0, 1, 1], [], []>} : vector<256x128xbf16>, vector<128x128xbf16>, vector<256x128xf32> -> vector<256x128xf32>
    %c0_13 = arith.constant 0 : index
    %c0_14 = arith.constant 0 : index
    %18 = vector.load %arg7[%c0_13, %c0_14] : memref<1x128xf32, #tpu.memory_space<vmem>>, vector<1x128xf32>
    %19 = vector.broadcast %18 : vector<1x128xf32> to vector<256x128xf32>
    %20 = arith.addf %17, %19 : vector<256x128xf32>
    %21 = arith.addf %20, %0 : vector<256x128xf32>
    %c0_15 = arith.constant 0 : index
    %c0_16 = arith.constant 0 : index
    %22 = vector.load %arg8[%c0_15, %c0_16] : memref<256x128xf32, #tpu.memory_space<vmem>>, vector<256x128xf32>
    tpu.vector_store %arg8[%c0_15, %c0_16], %21 {strides = array<i32>} : memref<256x128xf32, #tpu.memory_space<vmem>>, vector<256x128xf32>,
    return
  }
  func.func @transform_0(%arg0: i32) -> (i32, i32) {
    %c0_i32 = arith.constant 0 : i32
    %c0_i32_0 = arith.constant 0 : i32
    return %arg0, %c0_i32 : i32, i32
  }
  func.func @transform_1(%arg0: i32) -> (i32, i32) {
    %c0_i32 = arith.constant 0 : i32
    %c0_i32_0 = arith.constant 0 : i32
    %c0_i32_1 = arith.constant 0 : i32
    return %c0_i32, %c0_i32_0 : i32, i32
  }
  func.func @transform_2(%arg0: i32) -> (i32, i32) {
    %c0_i32 = arith.constant 0 : i32
    %c0_i32_0 = arith.constant 0 : i32
    %c0_i32_1 = arith.constant 0 : i32
    return %c0_i32, %c0_i32_0 : i32, i32
  }
  func.func @transform_3(%arg0: i32) -> (i32, i32) {
    %c0_i32 = arith.constant 0 : i32
    %c0_i32_0 = arith.constant 0 : i32
    %c0_i32_1 = arith.constant 0 : i32
    return %c0_i32, %c0_i32_0 : i32, i32
  }
  func.func @transform_4(%arg0: i32) -> (i32, i32) {
    %c0_i32 = arith.constant 0 : i32
    %c0_i32_0 = arith.constant 0 : i32
    %c0_i32_1 = arith.constant 0 : i32
    return %c0_i32, %c0_i32_0 : i32, i32
  }
  func.func @transform_5(%arg0: i32) -> (i32, i32) {
    %c0_i32 = arith.constant 0 : i32
    %c0_i32_0 = arith.constant 0 : i32
    %c0_i32_1 = arith.constant 0 : i32
    return %c0_i32, %c0_i32_0 : i32, i32
  }
  func.func @transform_6(%arg0: i32) -> (i32, i32) {
    %c0_i32 = arith.constant 0 : i32
    %c0_i32_0 = arith.constant 0 : i32
    %c0_i32_1 = arith.constant 0 : i32
    return %c0_i32, %c0_i32_0 : i32, i32
  }
  func.func @transform_7(%arg0: i32) -> (i32, i32) {
    %c0_i32 = arith.constant 0 : i32
    %c0_i32_0 = arith.constant 0 : i32
    return %arg0, %c0_i32 : i32, i32
  }
}

</mosaic_0001>

<bundles_post_ra>
// kernel: pdca_forward.4
= control target key start
LH: loop header
LB: loop body
LE: loop exit
PB: predicated region body
PF: predicated region fallthrough
CT: control target
= control target key end

     0   :  { %s1085_s12 = smov 0   ;;  %s1262_s0 = inlined_call_operand.vmem [shape: f32[512,4], index: 0, kind: input, shape index: {}]   ;;  %s1263_s1 = inlined_call_operand.vmem [shape: bf16[4,128], index: 1, kind: input, shape index: {}]   ;;  %s1264_s2 = inlined_call_operand.vmem [shape: bf16[512,128], index: 2, kind: output, shape index: {0}]   ;;  %s1265_s3 = inlined_call_operand.vmem [shape: f32[16,128], index: 3, kind: output, shape index: {1}]  }
   0x1 LB: > { %s1091_s13 = sadd.s32 4294967295, %s1062_s12   ;;  %p809_p0 = scmp.ge.s32.totalorder %s1062_s12, 1  ;;  %s1062_s12 = sphi %s1085_s12, %s14_s12  }
   0x2   : > { %p141_p1 = scmp.lt.s32.totalorder %s1062_s12, 3 }
   0x4   : > { %p142_p2 = pnand %p809_p0, %p141_p1 }
   0x5   : > { %s810_s16 = sshll.u32 (!%p142_p2), %s1091_s13, 5  ;;  %p181_p4 = scmp.lt.s32.totalorder (!%p142_p2), %s1091_s13, 1 }
   0x6   : > { %145 = sbr.rel (%p142_p2) target bundleno = 294 (0x126), region = 28  ;;  %p170_p3 = scmp.lt.s32.totalorder (!%p142_p2), %s810_s16, 63 }
   0xb   : > { %v234_v0 = vld [vmem:[%s1263_s1] sm:$0x3]  ;;  %vm284_vm0 = vcmask 1041408   ;;  %s1267_s16 = smov (!%p170_p3, %s810_s16), 63  ;;  %vm235_vm1 = vcmask 31744   ;;  %s1269_s13 = smov (!%p181_p4, %s1091_s13), 1 }
   0xc   : > { %1045 = vmatprep.subr.msk.bf16.mxu0 %vm284_vm0, %v234_v0  ;;  %v286_v1 = vsel %vm284_vm0, %v234_v0, 0  ;;  %1046 = vmatprep.subr.msk.bf16.mxu1 %vm284_vm0, %v234_v0  ;;  %s811_s17 = sshll.u32 %s1267_s16, 3  ;;  %s814_s21 = sshll.u32 %s1269_s13, 3  ;;  %v1064_v50 = vmov 0.0  }
   0xd   : > { %1010 = vmatpush3.bf16.msra.mxu0 %v286_v1  ;;  %1044 = vmatpush3.bf16.msra.mxu1 %v286_v1  ;;  %s1105_s20 = scalar_lea.vmem %s1262_s0, %s811_s17  ;;  %s1160_s24 = scalar_lea.vmem %s1265_s3, %s814_s21 }
   0xe   : > { %v186_v2 = vld [vmem:[%s1105_s20] sm:$0xff]  ;;  %v187_v3 = vld [vmem:[%s1105_s20 + $0x8] sm:$0xff]  ;;  %v188_v4 = vld [vmem:[%s1105_s20 + $0x10] sm:$0xff]  ;;  %609 = vst [vmem:[%s1160_s24] sm:$0xff] %v1064_v50  ;;  %s813_s25 = sshll.u32 %s1267_s16, 2 }
   0xf   : > { %v218_v5 = vpack.c.bf16 %v187_v3, %v186_v2  ;;  %v189_v6 = vld [vmem:[%s1105_s20 + $0x18] sm:$0xff]  ;;  %v190_v7 = vld [vmem:[%s1105_s20 + $0x20] sm:$0xff]  ;;  %v191_v8 = vld [vmem:[%s1105_s20 + $0x28] sm:$0xff]  ;;  %s1167_s28 = scalar_lea.vmem %s1264_s2, %s813_s25 }
  0x10   : > { %v219_v9 = vpack.c.bf16 %v189_v6, %v188_v4  ;;  %v220_v10 = vpack.c.bf16 %v191_v8, %v190_v7  ;;  %v192_v11 = vld [vmem:[%s1105_s20 + $0x30] sm:$0xff]  ;;  %v193_v12 = vld [vmem:[%s1105_s20 + $0x38] sm:$0xff]  ;;  %v194_v13 = vld [vmem:[%s1105_s20 + $0x40] sm:$0xff] }
  0x11   : > { %1011 = vmatprep.mubr.msk.bf16.mxu0 %vm235_vm1, %v218_v5  ;;  %v195_v14 = vld [vmem:[%s1105_s20 + $0x48] sm:$0xff]  ;;  %v202_v15 = vld [vmem:[%s1105_s20 + $0x80] sm:$0xff]  ;;  %v204_v18 = vld [vmem:[%s1105_s20 + $0x90] sm:$0xff]  ;;  %v221_v23 = vpack.c.bf16 %v193_v12, %v192_v11 }
  0x12   : > { %1012 = vmatmul.mubr.msk.bf16.vlgmr.msra.gmra.mxu0 %vm235_vm1, %v219_v9  ;;  %v203_v16 = vld [vmem:[%s1105_s20 + $0x88] sm:$0xff]  ;;  %v205_v19 = vld [vmem:[%s1105_s20 + $0x98] sm:$0xff]  ;;  %v206_v20 = vld [vmem:[%s1105_s20 + $0xa0] sm:$0xff]  ;;  %v222_v25 = vpack.c.bf16 %v195_v14, %v194_v13 }
  0x13   : > { %1015 = vmatprep.mubr.msk.bf16.mxu0 %vm235_vm1, %v220_v10  ;;  %v226_v17 = vpack.c.bf16 %v203_v16, %v202_v15  ;;  %v227_v21 = vpack.c.bf16 %v205_v19, %v204_v18  ;;  %v207_v22 = vld [vmem:[%s1105_s20 + $0xa8] sm:$0xff]  ;;  %v208_v26 = vld [vmem:[%s1105_s20 + $0xb0] sm:$0xff]  ;;  %v209_v27 = vld [vmem:[%s1105_s20 + $0xb8] sm:$0xff] }
  0x14   : > { %v228_v24 = vpack.c.bf16 %v207_v22, %v206_v20  ;;  %v210_v28 = vld [vmem:[%s1105_s20 + $0xc0] sm:$0xff]  ;;  %v211_v29 = vld [vmem:[%s1105_s20 + $0xc8] sm:$0xff]  ;;  %v196_v30 = vld [vmem:[%s1105_s20 + $0x50] sm:$0xff]  ;;  %v229_v32 = vpack.c.bf16 %v209_v27, %v208_v26 }
  0x15   : > { %1027 = vmatprep.mubr.msk.bf16.mxu1 %vm235_vm1, %v226_v17  ;;  %v197_v31 = vld [vmem:[%s1105_s20 + $0x58] sm:$0xff]  ;;  %v198_v33 = vld [vmem:[%s1105_s20 + $0x60] sm:$0xff]  ;;  %v199_v34 = vld [vmem:[%s1105_s20 + $0x68] sm:$0xff]  ;;  %v230_v35 = vpack.c.bf16 %v211_v29, %v210_v28 }
  0x16   : > { %1028 = vmatmul.mubr.msk.bf16.vlgmr.msra.gmra.mxu1 %vm235_vm1, %v227_v21  ;;  %v223_v36 = vpack.c.bf16 %v197_v31, %v196_v30  ;;  %v224_v37 = vpack.c.bf16 %v199_v34, %v198_v33  ;;  %v212_v38 = vld [vmem:[%s1105_s20 + $0xd0] sm:$0xff]  ;;  %v213_v39 = vld [vmem:[%s1105_s20 + $0xd8] sm:$0xff]  ;;  %v214_v40 = vld [vmem:[%s1105_s20 + $0xe0] sm:$0xff] }
  0x17   : > { %1031 = vmatprep.mubr.msk.bf16.mxu1 %vm235_vm1, %v228_v24  ;;  %v215_v41 = vld [vmem:[%s1105_s20 + $0xe8] sm:$0xff]  ;;  %v200_v42 = vld [vmem:[%s1105_s20 + $0x70] sm:$0xff]  ;;  %v201_v43 = vld [vmem:[%s1105_s20 + $0x78] sm:$0xff]  ;;  %v231_v44 = vpack.c.bf16 %v213_v39, %v212_v38 }
  0x18   : > { %v232_v45 = vpack.c.bf16 %v215_v41, %v214_v40  ;;  %v225_v46 = vpack.c.bf16 %v201_v43, %v200_v42  ;;  %v216_v47 = vld [vmem:[%s1105_s20 + $0xf0] sm:$0xff]  ;;  %v217_v48 = vld [vmem:[%s1105_s20 + $0xf8] sm:$0xff] }
  0x19   : > { %v233_v49 = vpack.c.bf16 %v217_v48, %v216_v47 }
  0x1a   : > { %1016 = vmatmul.mubr.msk.bf16.gmra.mxu0 %vm235_vm1, %v221_v23 }
  0x1b   : > { %1019 = vmatprep.mubr.msk.bf16.mxu0 %vm235_vm1, %v222_v25 }
  0x1e   : > { %1032 = vmatmul.mubr.msk.bf16.gmra.mxu1 %vm235_vm1, %v229_v32 }
  0x1f   : > { %1035 = vmatprep.mubr.msk.bf16.mxu1 %vm235_vm1, %v230_v35 }
  0x22   : > { %1020 = vmatmul.mubr.msk.bf16.gmra.mxu0 %vm235_vm1, %v223_v36 }
  0x23   : > { %1023 = vmatprep.mubr.msk.bf16.mxu0 %vm235_vm1, %v224_v37 }
  0x26   : > { %1036 = vmatmul.mubr.msk.bf16.gmra.mxu1 %vm235_vm1, %v231_v44 }
  0x27   : > { %1039 = vmatprep.mubr.msk.bf16.mxu1 %vm235_vm1, %v232_v45 }
  0x2a   : > { %1024 = vmatmul.mubr.msk.bf16.gmra.mxu0 %vm235_vm1, %v225_v46 }
  0x2e   : > { %1040 = vmatmul.mubr.msk.bf16.gmra.mxu1 %vm235_vm1, %v233_v49 }
  0xd2   : > { %v1013_v51 = vpop.f32.mrf.mxu0 }
  0xd3   : > { %v650_v63 = vmul.f32 %v1013_v51, %v1013_v51 }
  0xd4   : > { %v322_v52 = vpop.f32.mrf.mxu0 }
  0xd5   : > { %v648_v57 = vmul.f32 %v322_v52, %v322_v52 }
  0xd6   : > { %v1014_v53 = vpop.f32.mrf.mxu0  ;;  %v1169_v55 = vpop.f32.mrf.mxu1 }
  0xd7   : > { %v905_v54 = vpack.c.bf16 %v1014_v53, %v1013_v51  ;;  %v651_v5 = vmul.f32 %v1014_v53, %v1014_v53 }
  0xd8   : > { %v325_v56 = vpop.f32.mrf.mxu0  ;;  %v1172_v61 = vpop.f32.mrf.mxu1 }
  0xd9   : > { %977 = vst [vmem:[%s1167_s28 + $0x8] sm:$0xff] %v905_v54   ;;  %v900_v58 = vpack.c.bf16 %v325_v56, %v322_v52  ;;  %v610_v59 = vadd.f32 %v325_v56, %v322_v52  ;;  %v649_v60 = vmul.f32 %v325_v56, %v325_v56 }
  0xda   : > { %v1017_v62 = vpop.f32.mrf.mxu0  ;;  %v1175_v2 = vpop.f32.mrf.mxu1 }
  0xdb   : > { %901 = vst [vmem:[%s1167_s28] sm:$0xff] %v900_v58   ;;  %v611_v0 = vadd.f32 %v1013_v51, %v610_v59  ;;  %v680_v1 = vadd.f32 %v649_v60, %v648_v57  ;;  %v945_v4 = vpack.c.bf16 %v1175_v2, %v1169_v55  ;;  %v654_v23 = vmul.f32 %v1017_v62, %v1017_v62 }
  0xdc   : > { %v338_v3 = vpop.f32.mrf.mxu0  ;;  %v1179_v8 = vpop.f32.mrf.mxu1 }
  0xdd   : > { %v681_v6 = vadd.f32 %v680_v1, %v650_v63  ;;  %v612_v7 = vadd.f32 %v1014_v53, %v611_v0  ;;  %985 = vst [vmem:[%s1167_s28 + $0x48] sm:$0xff] %v945_v4   ;;  %v940_v10 = vpack.c.bf16 %v1179_v8, %v1172_v61  ;;  %v652_v12 = vmul.f32 %v338_v3, %v338_v3 }
  0xde   : > { %v1018_v9 = vpop.f32.mrf.mxu0  ;;  %v1184_v15 = vpop.f32.mrf.mxu1 }
  0xdf   : > { %v613_v11 = vadd.f32 %v612_v7, %v338_v3  ;;  %v682_v13 = vadd.f32 %v681_v6, %v651_v5  ;;  %v915_v14 = vpack.c.bf16 %v1018_v9, %v1017_v62  ;;  %984 = vst [vmem:[%s1167_s28 + $0x40] sm:$0xff] %v940_v10   ;;  %v655_v29 = vmul.f32 %v1018_v9, %v1018_v9 }
  0xe0   : > { %v341_v16 = vpop.f32.mrf.mxu0  ;;  %v1188_v21 = vpop.f32.mrf.mxu1 }
  0xe1   : > { %v683_v17 = vadd.f32 %v682_v13, %v652_v12  ;;  %979 = vst [vmem:[%s1167_s28 + $0x18] sm:$0xff] %v915_v14   ;;  %v910_v18 = vpack.c.bf16 %v341_v16, %v338_v3  ;;  %v614_v19 = vadd.f32 %v613_v11, %v341_v16  ;;  %v653_v20 = vmul.f32 %v341_v16, %v341_v16 }
  0xe2   : > { %v1021_v22 = vpop.f32.mrf.mxu0  ;;  %v1191_v26 = vpop.f32.mrf.mxu1 }
  0xe3   : > { %978 = vst [vmem:[%s1167_s28 + $0x10] sm:$0xff] %v910_v18   ;;  %v615_v24 = vadd.f32 %v1017_v62, %v614_v19  ;;  %v684_v25 = vadd.f32 %v683_v17, %v653_v20  ;;  %v955_v28 = vpack.c.bf16 %v1191_v26, %v1184_v15  ;;  %v658_v47 = vmul.f32 %v1021_v22, %v1021_v22 }
  0xe4   : > { %v354_v27 = vpop.f32.mrf.mxu0  ;;  %v1195_v32 = vpop.f32.mrf.mxu1 }
  0xe5   : > { %v685_v30 = vadd.f32 %v684_v25, %v654_v23  ;;  %v616_v31 = vadd.f32 %v1018_v9, %v615_v24  ;;  %987 = vst [vmem:[%s1167_s28 + $0x58] sm:$0xff] %v955_v28   ;;  %v950_v34 = vpack.c.bf16 %v1195_v32, %v1188_v21  ;;  %v656_v36 = vmul.f32 %v354_v27, %v354_v27 }
  0xe6   : > { %v1022_v33 = vpop.f32.mrf.mxu0  ;;  %v1200_v39 = vpop.f32.mrf.mxu1 }
  0xe7   : > { %v617_v35 = vadd.f32 %v616_v31, %v354_v27  ;;  %v686_v37 = vadd.f32 %v685_v30, %v655_v29  ;;  %v925_v38 = vpack.c.bf16 %v1022_v33, %v1021_v22  ;;  %986 = vst [vmem:[%s1167_s28 + $0x50] sm:$0xff] %v950_v34   ;;  %v659_v53 = vmul.f32 %v1022_v33, %v1022_v33 }
  0xe8   : > { %v357_v40 = vpop.f32.mrf.mxu0  ;;  %v1204_v45 = vpop.f32.mrf.mxu1  ;;  %v666_v29 = vmul.f32 %v1169_v55, %v1169_v55 }
  0xe9   : > { %v687_v41 = vadd.f32 %v686_v37, %v656_v36  ;;  %981 = vst [vmem:[%s1167_s28 + $0x28] sm:$0xff] %v925_v38   ;;  %v920_v42 = vpack.c.bf16 %v357_v40, %v354_v27  ;;  %v618_v43 = vadd.f32 %v617_v35, %v357_v40  ;;  %v657_v44 = vmul.f32 %v357_v40, %v357_v40 }
  0xea   : > { %v1025_v46 = vpop.f32.mrf.mxu0  ;;  %v1207_v50 = vpop.f32.mrf.mxu1  ;;  %v665_v27 = vmul.f32 %v1179_v8, %v1179_v8  ;;  %v668_v36 = vmul.f32 %v1188_v21, %v1188_v21  ;;  %v669_v40 = vmul.f32 %v1195_v32, %v1195_v32 }
  0xeb   : > { %980 = vst [vmem:[%s1167_s28 + $0x20] sm:$0xff] %v920_v42   ;;  %v619_v48 = vadd.f32 %v1021_v22, %v618_v43  ;;  %v688_v49 = vadd.f32 %v687_v41, %v657_v44  ;;  %v965_v52 = vpack.c.bf16 %v1207_v50, %v1200_v39  ;;  %v662_v10 = vmul.f32 %v1025_v46, %v1025_v46 }
  0xec   : > { %v370_v51 = vpop.f32.mrf.mxu0  ;;  %v421_v57 = vpop.f32.mrf.mxu1  ;;  %v664_v22 = vmul.f32 %v1172_v61, %v1172_v61 }
  0xed   : > { %v689_v54 = vadd.f32 %v688_v49, %v658_v47  ;;  %v620_v56 = vadd.f32 %v1022_v33, %v619_v48  ;;  %989 = vst [vmem:[%s1167_s28 + $0x68] sm:$0xff] %v965_v52   ;;  %v960_v59 = vpack.c.bf16 %v421_v57, %v1204_v45  ;;  %v660_v62 = vmul.f32 %v370_v51, %v370_v51 }
  0xee   : > { %v1026_v58 = vpop.f32.mrf.mxu0  ;;  %v1213_v1 = vpop.f32.mrf.mxu1  ;;  %v667_v33 = vmul.f32 %v1175_v2, %v1175_v2  ;;  %v673_v49 = vmul.f32 %v421_v57, %v421_v57 }
  0xef   : > { %v621_v60 = vadd.f32 %v620_v56, %v370_v51  ;;  %v690_v63 = vadd.f32 %v689_v54, %v659_v53  ;;  %v935_v0 = vpack.c.bf16 %v1026_v58, %v1025_v46  ;;  %988 = vst [vmem:[%s1167_s28 + $0x60] sm:$0xff] %v960_v59   ;;  %v663_v16 = vmul.f32 %v1026_v58, %v1026_v58 }
  0xf0   : > { %v373_v3 = vpop.f32.mrf.mxu0  ;;  %v434_v9 = vpop.f32.mrf.mxu1  ;;  %v675_v53 = vmul.f32 %v1207_v50, %v1207_v50 }
  0xf1   : > { %v691_v4 = vadd.f32 %v690_v63, %v660_v62  ;;  %983 = vst [vmem:[%s1167_s28 + $0x38] sm:$0xff] %v935_v0   ;;  %v930_v5 = vpack.c.bf16 %v373_v3, %v370_v51  ;;  %v622_v6 = vadd.f32 %v621_v60, %v373_v3  ;;  %v661_v7 = vmul.f32 %v373_v3, %v373_v3 }
  0xf2   : > { %v1042_v13 = vpop.f32.mrf.mxu1  ;;  %v674_v51 = vmul.f32 %v1200_v39, %v1200_v39 }
  0xf3   : > { %982 = vst [vmem:[%s1167_s28 + $0x30] sm:$0xff] %v930_v5   ;;  %v623_v11 = vadd.f32 %v1025_v46, %v622_v6  ;;  %v692_v12 = vadd.f32 %v691_v4, %v661_v7  ;;  %v975_v14 = vpack.c.bf16 %v1042_v13, %v1213_v1  ;;  %v672_v46 = vmul.f32 %v1204_v45, %v1204_v45 }
  0xf4   : > { %v437_v19 = vpop.f32.mrf.mxu1 }
  0xf5   : > { %v624_v17 = vadd.f32 %v1026_v58, %v623_v11  ;;  %v693_v18 = vadd.f32 %v692_v12, %v662_v10  ;;  %991 = vst [vmem:[%s1167_s28 + $0x78] sm:$0xff] %v975_v14   ;;  %v970_v20 = vpack.c.bf16 %v437_v19, %v434_v9  ;;  %v676_v58 = vmul.f32 %v434_v9, %v434_v9 }
  0xf6   : > { %v677_v62 = vmul.f32 %v437_v19, %v437_v19 }
  0xf7   : > { %v694_v23 = vadd.f32 %v693_v18, %v663_v16  ;;  %v625_v24 = vadd.f32 %v624_v17, %v1172_v61  ;;  %990 = vst [vmem:[%s1167_s28 + $0x70] sm:$0xff] %v970_v20  }
  0xf9   : > { %v626_v25 = vadd.f32 %v625_v24, %v1179_v8  ;;  %v695_v28 = vadd.f32 %v694_v23, %v664_v22 }
  0xfb   : > { %v627_v30 = vadd.f32 %v1169_v55, %v626_v25  ;;  %v696_v31 = vadd.f32 %v695_v28, %v665_v27  ;;  %v670_v55 = vmul.f32 %v1184_v15, %v1184_v15 }
  0xfd   : > { %v697_v34 = vadd.f32 %v696_v31, %v666_v29  ;;  %v628_v35 = vadd.f32 %v1175_v2, %v627_v30  ;;  %v671_v2 = vmul.f32 %v1191_v26, %v1191_v26 }
  0xff   : > { %v629_v61 = vadd.f32 %v628_v35, %v1188_v21  ;;  %v698_v37 = vadd.f32 %v697_v34, %v667_v33 }
 0x101   : > { %v699_v8 = vadd.f32 %v698_v37, %v668_v36  ;;  %v630_v38 = vadd.f32 %v629_v61, %v1195_v32 }
 0x103   : > { %v631_v41 = vadd.f32 %v1184_v15, %v630_v38  ;;  %v700_v42 = vadd.f32 %v699_v8, %v669_v40 }
 0x105   : > { %v701_v43 = vadd.f32 %v700_v42, %v670_v55  ;;  %v632_v44 = vadd.f32 %v1191_v26, %v631_v41 }
 0x107   : > { %v633_v21 = vadd.f32 %v632_v44, %v1204_v45  ;;  %v702_v47 = vadd.f32 %v701_v43, %v671_v2 }
 0x109   : > { %v703_v48 = vadd.f32 %v702_v47, %v672_v46  ;;  %v634_v32 = vadd.f32 %v633_v21, %v421_v57  ;;  %v678_v57 = vmul.f32 %v1213_v1, %v1213_v1 }
 0x10b   : > { %v635_v15 = vadd.f32 %v1200_v39, %v634_v32  ;;  %v704_v52 = vadd.f32 %v703_v48, %v673_v49  ;;  %v679_v39 = vmul.f32 %v1042_v13, %v1042_v13 }
 0x10d   : > { %v705_v54 = vadd.f32 %v704_v52, %v674_v51  ;;  %v636_v26 = vadd.f32 %v1207_v50, %v635_v15 }
 0x10f   : > { %v637_v56 = vadd.f32 %v636_v26, %v434_v9  ;;  %v706_v59 = vadd.f32 %v705_v54, %v675_v53 }
 0x111   : > { %v707_v45 = vadd.f32 %v706_v59, %v676_v58  ;;  %v638_v60 = vadd.f32 %v637_v56, %v437_v19 }
 0x113   : > { %v639_v63 = vadd.f32 %v1213_v1, %v638_v60  ;;  %v708_v0 = vadd.f32 %v707_v45, %v677_v62 }
 0x115   : > { %v640_v3 = vadd.f32 %v1042_v13, %v639_v63  ;;  %v709_v4 = vadd.f32 %v708_v0, %v678_v57 }
 0x117   : > { %v641_v5 = vrot.slane %v640_v3, 4  ;;  %v710_v6 = vadd.f32 %v709_v4, %v679_v39 }
 0x119   : > { %v642_v50 = vadd.f32 %v641_v5, %v640_v3  ;;  %v711_v7 = vrot.slane %v710_v6, 4 }
 0x11b   : > { %v643_v9 = vrot.slane %v642_v50, 2  ;;  %v712_v10 = vadd.f32 %v711_v7, %v710_v6 }
 0x11d   : > { %v644_v11 = vadd.f32 %v643_v9, %v642_v50  ;;  %v713_v12 = vrot.slane %v712_v10, 2 }
 0x11f   : > { %v645_v14 = vrot.slane %v644_v11, 1  ;;  %v714_v16 = vadd.f32 %v713_v12, %v712_v10 }
 0x121   : > { %v646_v17 = vadd.f32 %v645_v14, %v644_v11  ;;  %v715_v18 = vrot.slane %v714_v16, 1 }
 0x123   : > { %647 = vst [vmem:[%s1160_s24] sm:$0x1] %v646_v17  ;;  %v716_v1 = vadd.f32 %v715_v18, %v714_v16 }
 0x125   : > { %717 = vst [vmem:[%s1160_s24 + $0x1] sm:$0x1] %v716_v1 }
 0x126 PF: > { %s14_s12 = sadd.s32 1, %s1062_s12  }
 0x127   : > { %p11_p5 = scmp.ge.s32.totalorder %s14_s12, 4  }
 0x129   :  { %13 = sbr.rel (!%p11_p5) target bundleno = 1 (0x1), region = 70 }

// kernel: tile.8
= control target key start
LH: loop header
LB: loop body
LE: loop exit
PB: predicated region body
PF: predicated region fallthrough
CT: control target
= control target key end

     0   :  { %s28_s0 = inlined_call_operand.vmem [shape: f32[18], index: 0, kind: input, shape index: {}]   ;;  %s29_s1 = inlined_call_operand.vmem [shape: f32[16,18], index: 1, kind: output, shape index: {}]  }
   0x1   :  { %v4_v0 = vld [vmem:[%s28_s0] ss:$0 sm:$0xff] }
   0x2   :  { %5 = vst [vmem:[%s29_s1] sm:$0xff] %v4_v0  ;;  %8 = vst [vmem:[%s29_s1 + $0x8] sm:$0xff] %v4_v0 }

// kernel: tile.0
= control target key start
LH: loop header
LB: loop body
LE: loop exit
PB: predicated region body
PF: predicated region fallthrough
CT: control target
= control target key end

     0   :  { %s607_s10 = smov 126   ;;  %s608_s11 = smov 127   ;;  %vm3_vm0 = vcmask 7168   ;;  %s1250_s0 = inlined_call_operand.vmem [shape: f32[16,18], index: 0, kind: input, shape index: {}]   ;;  %s1251_s1 = inlined_call_operand.vmem [shape: f32[288,1], index: 1, kind: output, shape index: {}]  }
   0x1   :  { %v35_v0 = vld.sshfl [vmem:[%s1250_s0] sm:$0xff pattern:$0x6d4b2907]   ;;  %v450_v2 = vld.sshfl [vmem:[%s1250_s0 + $0x1] sm:$0xff pattern:$0xd4b2907e]  }
   0x2   :  { %v640_v1 = vld.sshfl [vmem:[%s1250_s0] sm:$0xff pattern:$0xf6d4b290]   ;;  %36 = vrot.lane.b32.xlu1 %v35_v0, %s607_s10  ;;  %v649_v3 = vld.sshfl [vmem:[%s1250_s0 + $0x1] sm:$0xff pattern:$0x6d4b2907]  }
   0x3   :  { %11 = vrot.lane.b32.xlu0 %v640_v1, %s608_s11  ;;  %s609_s16 = smov 125   ;;  %v468_v4 = vld.sshfl [vmem:[%s1250_s0 + $0x1] sm:$0xff pattern:$0x4b2907e5]   ;;  %s610_s21 = smov 124  }
   0x4   :  { %v85_v5 = vld.sshfl [vmem:[%s1250_s0] sm:$0xff pattern:$0xd4b2907e]   ;;  %s611_s22 = smov 123   ;;  %s612_s27 = smov 122  }
   0x5   :  { %v486_v6 = vld.sshfl [vmem:[%s1250_s0 + $0x1] sm:$0xff pattern:$0xb2907e5c]   ;;  %v135_v7 = vld.sshfl [vmem:[%s1250_s0] sm:$0xff pattern:$0x4b2907e5]  }
   0x6   :  { %49 = vrot.lane.b32.xlu1 %v450_v2, %s607_s10  ;;  %s613_s28 = smov 121   ;;  %v504_v8 = vld.sshfl [vmem:[%s1250_s0 + $0x1] sm:$0xff pattern:$0x2907e5c3]   ;;  %s614_s4 = smov 120  }
   0x7   :  { %24 = vrot.lane.b32.xlu0 %v649_v3, %s608_s11  ;;  %v185_v9 = vld.sshfl [vmem:[%s1250_s0] sm:$0xff pattern:$0xb2907e5c]   ;;  %s615_s5 = smov 119   ;;  %s616_s10 = smov 118  }
   0x8   :  { %v522_v10 = vld.sshfl [vmem:[%s1250_s0 + $0x1] sm:$0xff pattern:$0x907e5c3a]   ;;  %v235_v11 = vld.sshfl [vmem:[%s1250_s0] sm:$0xff pattern:$0x2907e5c3]  }
   0x9   :  { %s617_s11 = smov 117   ;;  %v540_v12 = vld.sshfl [vmem:[%s1250_s0 + $0x1] sm:$0xff pattern:$0x7e5c3a1]   ;;  %s619_s17 = smov 115  }
   0xa   :  { %74 = vrot.lane.b32.xlu1 %v450_v2, %s609_s16  ;;  %v285_v13 = vld.sshfl [vmem:[%s1250_s0] sm:$0xff pattern:$0x907e5c3a]   ;;  %s620_s29 = smov 114   ;;  %s621_s30 = smov 113  }
   0xb   :  { %61 = vrot.lane.b32.xlu0 %v35_v0, %s609_s16  ;;  %s618_s16 = smov 116   ;;  %v558_v14 = vld.sshfl [vmem:[%s1250_s0 + $0x2] sm:$0xff pattern:$0x6d4b2907]   ;;  %s622_s2 = smov 112  }
   0xc   :  { %v335_v15 = vld.sshfl [vmem:[%s1250_s0] sm:$0xff pattern:$0x7e5c3a1]   ;;  %s623_s3 = smov 111  }
   0xd   :  { %v2_v16 = vld [vmem:[%s1250_s0] sm:$0xff]   ;;  %v435_v17 = vld [vmem:[%s1250_s0 + $0x8] sm:$0xff]  }
   0xe   :  { %99 = vrot.lane.b32.xlu1 %v468_v4, %s610_s21  ;;  %4 = vst.msk [vmem:[%s1251_s1] ss:$18 sm:$0xff] %vm3_vm0, %v2_v16   ;;  %436 = vst.msk [vmem:[%s1251_s1 + $0x90] ss:$18 sm:$0xff] %vm3_vm0, %v435_v17  }
   0xf   :  { %86 = vrot.lane.b32.xlu0 %v85_v5, %s610_s21 }
  0x12   :  { %124 = vrot.lane.b32.xlu1 %v468_v4, %s611_s22 }
  0x13   :  { %111 = vrot.lane.b32.xlu0 %v85_v5, %s611_s22 }
  0x16   :  { %149 = vrot.lane.b32.xlu1 %v486_v6, %s612_s27 }
  0x17   :  { %136 = vrot.lane.b32.xlu0 %v135_v7, %s612_s27 }
  0x1a   :  { %174 = vrot.lane.b32.xlu1 %v486_v6, %s613_s28 }
  0x1b   :  { %161 = vrot.lane.b32.xlu0 %v135_v7, %s613_s28 }
  0x1e   :  { %199 = vrot.lane.b32.xlu1 %v504_v8, %s614_s4 }
  0x1f   :  { %186 = vrot.lane.b32.xlu0 %v185_v9, %s614_s4 }
  0x22   :  { %224 = vrot.lane.b32.xlu1 %v504_v8, %s615_s5 }
  0x23   :  { %211 = vrot.lane.b32.xlu0 %v185_v9, %s615_s5 }
  0x26   :  { %249 = vrot.lane.b32.xlu1 %v522_v10, %s616_s10 }
  0x27   :  { %236 = vrot.lane.b32.xlu0 %v235_v11, %s616_s10 }
  0x2a   :  { %274 = vrot.lane.b32.xlu1 %v522_v10, %s617_s11 }
  0x2b   :  { %261 = vrot.lane.b32.xlu0 %v235_v11, %s617_s11 }
  0x2e   :  { %299 = vrot.lane.b32.xlu1 %v540_v12, %s618_s16 }
  0x2f   :  { %286 = vrot.lane.b32.xlu0 %v285_v13, %s618_s16 }
  0x32   :  { %324 = vrot.lane.b32.xlu1 %v540_v12, %s619_s17 }
  0x33   :  { %311 = vrot.lane.b32.xlu0 %v285_v13, %s619_s17 }
  0x36   :  { %349 = vrot.lane.b32.xlu1 %v558_v14, %s620_s29 }
  0x37   :  { %336 = vrot.lane.b32.xlu0 %v335_v15, %s620_s29 }
  0x3a   :  { %374 = vrot.lane.b32.xlu1 %v558_v14, %s621_s30 }
  0x3b   :  { %361 = vrot.lane.b32.xlu0 %v335_v15, %s621_s30 }
  0x3e   :  { %399 = vrot.lane.b32.xlu1 %v640_v1, %s622_s2 }
  0x3f   :  { %387 = vrot.lane.b32.xlu0 %v649_v3, %s622_s2 }
  0x42   :  { %424 = vrot.lane.b32.xlu1 %v640_v1, %s623_s3 }
  0x43   :  { %412 = vrot.lane.b32.xlu0 %v649_v3, %s623_s3 }
  0x74   :  { %v37_v18 = vpop.permute.xlu1 %36  }
  0x75   :  { %v12_v19 = vpop.permute.xlu0 %11   ;;  %446 = vst.msk [vmem:[%s1251_s1 + $0x80] ss:$-126 sm:$0x3] %vm3_vm0, %v37_v18   ;;  %447 = vst.msk [vmem:[%s1251_s1 + $0x1a0] ss:$-126 sm:$0xc] %vm3_vm0, %v37_v18  }
  0x76   :  { %448 = vst.msk [vmem:[%s1251_s1 + $0x2c0] ss:$-126 sm:$0x30] %vm3_vm0, %v37_v18   ;;  %449 = vst.msk [vmem:[%s1251_s1 + $0x3e0] ss:$-126 sm:$0xc0] %vm3_vm0, %v37_v18  }
  0x77   :  { %437 = vst.msk [vmem:[%s1251_s1 + $0x1] ss:$162 sm:$0x3] %vm3_vm0, %v12_v19   ;;  %438 = vst.msk [vmem:[%s1251_s1 - $0x11f] ss:$162 sm:$0xc] %vm3_vm0, %v12_v19  }
  0x78   :  { %439 = vst.msk [vmem:[%s1251_s1 - $0x23f] ss:$162 sm:$0x30] %vm3_vm0, %v12_v19   ;;  %440 = vst.msk [vmem:[%s1251_s1 - $0x35f] ss:$162 sm:$0xc0] %vm3_vm0, %v12_v19   ;;  %v50_v20 = vpop.permute.xlu1 %49  }
  0x79   :  { %v25_v21 = vpop.permute.xlu0 %24   ;;  %451 = vst.msk [vmem:[%s1251_s1 + $0x110] ss:$-126 sm:$0x7] %vm3_vm0, %v50_v20   ;;  %452 = vst.msk [vmem:[%s1251_s1 + $0x230] ss:$-126 sm:$0x18] %vm3_vm0, %v50_v20  }
  0x7a   :  { %453 = vst.msk [vmem:[%s1251_s1 + $0x350] ss:$-126 sm:$0x60] %vm3_vm0, %v50_v20   ;;  %454 = vst.msk [vmem:[%s1251_s1 + $0xf7] sm:$0x80] %vm3_vm0, %v50_v20  }
  0x7b   :  { %442 = vst.msk [vmem:[%s1251_s1 + $0x91] ss:$-126 sm:$0x3] %vm3_vm0, %v25_v21   ;;  %443 = vst.msk [vmem:[%s1251_s1 + $0x1b1] ss:$-126 sm:$0xc] %vm3_vm0, %v25_v21  }
  0x7c   :  { %444 = vst.msk [vmem:[%s1251_s1 + $0x2d1] ss:$-126 sm:$0x30] %vm3_vm0, %v25_v21   ;;  %445 = vst.msk [vmem:[%s1251_s1 + $0x3f1] ss:$-126 sm:$0xc0] %vm3_vm0, %v25_v21   ;;  %v75_v22 = vpop.permute.xlu1 %74  }
  0x7d   :  { %v62_v23 = vpop.permute.xlu0 %61   ;;  %460 = vst.msk [vmem:[%s1251_s1 + $0x111] ss:$-126 sm:$0x7] %vm3_vm0, %v75_v22   ;;  %461 = vst.msk [vmem:[%s1251_s1 + $0x231] ss:$-126 sm:$0x18] %vm3_vm0, %v75_v22  }
  0x7e   :  { %462 = vst.msk [vmem:[%s1251_s1 + $0x351] ss:$-126 sm:$0x60] %vm3_vm0, %v75_v22   ;;  %463 = vst.msk [vmem:[%s1251_s1 + $0xf8] sm:$0x80] %vm3_vm0, %v75_v22  }
  0x7f   :  { %455 = vst.msk [vmem:[%s1251_s1 + $0x81] ss:$-126 sm:$0x3] %vm3_vm0, %v62_v23   ;;  %456 = vst.msk [vmem:[%s1251_s1 + $0x1a1] ss:$-126 sm:$0xc] %vm3_vm0, %v62_v23  }
  0x80   :  { %457 = vst.msk [vmem:[%s1251_s1 + $0x2c1] ss:$-126 sm:$0x30] %vm3_vm0, %v62_v23   ;;  %458 = vst.msk [vmem:[%s1251_s1 + $0x3e1] ss:$-126 sm:$0xc0] %vm3_vm0, %v62_v23   ;;  %v100_v24 = vpop.permute.xlu1 %99  }
  0x81   :  { %v87_v25 = vpop.permute.xlu0 %86   ;;  %469 = vst.msk [vmem:[%s1251_s1 + $0x70] ss:$162 sm:$0x3] %vm3_vm0, %v100_v24   ;;  %470 = vst.msk [vmem:[%s1251_s1 + $0x190] ss:$-126 sm:$0xc] %vm3_vm0, %v100_v24  }
  0x82   :  { %471 = vst.msk [vmem:[%s1251_s1 + $0x2b0] ss:$-126 sm:$0x30] %vm3_vm0, %v100_v24   ;;  %472 = vst.msk [vmem:[%s1251_s1 + $0x3d0] ss:$-126 sm:$0xc0] %vm3_vm0, %v100_v24  }
  0x83   :  { %464 = vst.msk [vmem:[%s1251_s1 + $0x100] ss:$-126 sm:$0x7] %vm3_vm0, %v87_v25   ;;  %465 = vst.msk [vmem:[%s1251_s1 + $0x220] ss:$-126 sm:$0x18] %vm3_vm0, %v87_v25  }
  0x84   :  { %466 = vst.msk [vmem:[%s1251_s1 + $0x340] ss:$-126 sm:$0x60] %vm3_vm0, %v87_v25   ;;  %467 = vst.msk [vmem:[%s1251_s1 + $0xe7] sm:$0x80] %vm3_vm0, %v87_v25   ;;  %v125_v26 = vpop.permute.xlu1 %124  }
  0x85   :  { %v112_v27 = vpop.permute.xlu0 %111   ;;  %478 = vst.msk [vmem:[%s1251_s1 + $0x71] ss:$162 sm:$0x3] %vm3_vm0, %v125_v26   ;;  %479 = vst.msk [vmem:[%s1251_s1 + $0x191] ss:$-126 sm:$0xc] %vm3_vm0, %v125_v26  }
  0x86   :  { %480 = vst.msk [vmem:[%s1251_s1 + $0x2b1] ss:$-126 sm:$0x30] %vm3_vm0, %v125_v26   ;;  %481 = vst.msk [vmem:[%s1251_s1 + $0x3d1] ss:$-126 sm:$0xc0] %vm3_vm0, %v125_v26  }
  0x87   :  { %473 = vst.msk [vmem:[%s1251_s1 + $0x101] ss:$-126 sm:$0x7] %vm3_vm0, %v112_v27   ;;  %474 = vst.msk [vmem:[%s1251_s1 + $0x221] ss:$-126 sm:$0x18] %vm3_vm0, %v112_v27  }
  0x88   :  { %475 = vst.msk [vmem:[%s1251_s1 + $0x341] ss:$-126 sm:$0x60] %vm3_vm0, %v112_v27   ;;  %476 = vst.msk [vmem:[%s1251_s1 + $0xe8] sm:$0x80] %vm3_vm0, %v112_v27   ;;  %v150_v28 = vpop.permute.xlu1 %149  }
  0x89   :  { %v137_v29 = vpop.permute.xlu0 %136   ;;  %487 = vst.msk [vmem:[%s1251_s1 + $0xf0] ss:$-126 sm:$0x3] %vm3_vm0, %v150_v28   ;;  %488 = vst.msk [vmem:[%s1251_s1 + $0x210] ss:$-126 sm:$0x1c] %vm3_vm0, %v150_v28  }
  0x8a   :  { %489 = vst.msk [vmem:[%s1251_s1 + $0x330] ss:$-126 sm:$0x60] %vm3_vm0, %v150_v28   ;;  %490 = vst.msk [vmem:[%s1251_s1 + $0xd7] sm:$0x80] %vm3_vm0, %v150_v28  }
  0x8b   :  { %482 = vst.msk [vmem:[%s1251_s1 + $0x60] ss:$162 sm:$0x3] %vm3_vm0, %v137_v29   ;;  %483 = vst.msk [vmem:[%s1251_s1 + $0x180] ss:$-126 sm:$0xc] %vm3_vm0, %v137_v29  }
  0x8c   :  { %484 = vst.msk [vmem:[%s1251_s1 + $0x2a0] ss:$-126 sm:$0x30] %vm3_vm0, %v137_v29   ;;  %485 = vst.msk [vmem:[%s1251_s1 + $0x3c0] ss:$-126 sm:$0xc0] %vm3_vm0, %v137_v29   ;;  %v175_v30 = vpop.permute.xlu1 %174  }
  0x8d   :  { %v162_v31 = vpop.permute.xlu0 %161   ;;  %496 = vst.msk [vmem:[%s1251_s1 + $0xf1] ss:$-126 sm:$0x3] %vm3_vm0, %v175_v30   ;;  %497 = vst.msk [vmem:[%s1251_s1 + $0x211] ss:$-126 sm:$0x1c] %vm3_vm0, %v175_v30  }
  0x8e   :  { %498 = vst.msk [vmem:[%s1251_s1 + $0x331] ss:$-126 sm:$0x60] %vm3_vm0, %v175_v30   ;;  %499 = vst.msk [vmem:[%s1251_s1 + $0xd8] sm:$0x80] %vm3_vm0, %v175_v30  }
  0x8f   :  { %491 = vst.msk [vmem:[%s1251_s1 + $0x61] ss:$162 sm:$0x3] %vm3_vm0, %v162_v31   ;;  %492 = vst.msk [vmem:[%s1251_s1 + $0x181] ss:$-126 sm:$0xc] %vm3_vm0, %v162_v31  }
  0x90   :  { %493 = vst.msk [vmem:[%s1251_s1 + $0x2a1] ss:$-126 sm:$0x30] %vm3_vm0, %v162_v31   ;;  %494 = vst.msk [vmem:[%s1251_s1 + $0x3c1] ss:$-126 sm:$0xc0] %vm3_vm0, %v162_v31   ;;  %v200_v32 = vpop.permute.xlu1 %199  }
  0x91   :  { %v187_v33 = vpop.permute.xlu0 %186   ;;  %505 = vst.msk [vmem:[%s1251_s1 + $0x50] ss:$162 sm:$0x3] %vm3_vm0, %v200_v32   ;;  %506 = vst.msk [vmem:[%s1251_s1 - $0xd0] ss:$162 sm:$0xc] %vm3_vm0, %v200_v32  }
  0x92   :  { %507 = vst.msk [vmem:[%s1251_s1 + $0x290] ss:$-126 sm:$0x30] %vm3_vm0, %v200_v32   ;;  %508 = vst.msk [vmem:[%s1251_s1 + $0x3b0] ss:$-126 sm:$0xc0] %vm3_vm0, %v200_v32  }
  0x93   :  { %500 = vst.msk [vmem:[%s1251_s1 + $0xe0] ss:$-126 sm:$0x3] %vm3_vm0, %v187_v33   ;;  %501 = vst.msk [vmem:[%s1251_s1 + $0x200] ss:$-126 sm:$0x1c] %vm3_vm0, %v187_v33  }
  0x94   :  { %502 = vst.msk [vmem:[%s1251_s1 + $0x320] ss:$-126 sm:$0x60] %vm3_vm0, %v187_v33   ;;  %503 = vst.msk [vmem:[%s1251_s1 + $0xc7] sm:$0x80] %vm3_vm0, %v187_v33   ;;  %v225_v34 = vpop.permute.xlu1 %224  }
  0x95   :  { %v212_v35 = vpop.permute.xlu0 %211   ;;  %514 = vst.msk [vmem:[%s1251_s1 + $0x51] ss:$162 sm:$0x3] %vm3_vm0, %v225_v34   ;;  %515 = vst.msk [vmem:[%s1251_s1 - $0xcf] ss:$162 sm:$0xc] %vm3_vm0, %v225_v34  }
  0x96   :  { %516 = vst.msk [vmem:[%s1251_s1 + $0x291] ss:$-126 sm:$0x30] %vm3_vm0, %v225_v34   ;;  %517 = vst.msk [vmem:[%s1251_s1 + $0x3b1] ss:$-126 sm:$0xc0] %vm3_vm0, %v225_v34  }
  0x97   :  { %509 = vst.msk [vmem:[%s1251_s1 + $0xe1] ss:$-126 sm:$0x3] %vm3_vm0, %v212_v35   ;;  %510 = vst.msk [vmem:[%s1251_s1 + $0x201] ss:$-126 sm:$0x1c] %vm3_vm0, %v212_v35  }
  0x98   :  { %511 = vst.msk [vmem:[%s1251_s1 + $0x321] ss:$-126 sm:$0x60] %vm3_vm0, %v212_v35   ;;  %512 = vst.msk [vmem:[%s1251_s1 + $0xc8] sm:$0x80] %vm3_vm0, %v212_v35   ;;  %v250_v36 = vpop.permute.xlu1 %249  }
  0x99   :  { %v237_v37 = vpop.permute.xlu0 %236   ;;  %523 = vst.msk [vmem:[%s1251_s1 + $0xd0] ss:$-126 sm:$0x3] %vm3_vm0, %v250_v36   ;;  %524 = vst.msk [vmem:[%s1251_s1 + $0x1f0] ss:$-126 sm:$0xc] %vm3_vm0, %v250_v36  }
  0x9a   :  { %525 = vst.msk [vmem:[%s1251_s1 + $0x310] ss:$-126 sm:$0x70] %vm3_vm0, %v250_v36   ;;  %526 = vst.msk [vmem:[%s1251_s1 + $0xb7] sm:$0x80] %vm3_vm0, %v250_v36  }
  0x9b   :  { %518 = vst.msk [vmem:[%s1251_s1 + $0x40] ss:$162 sm:$0x3] %vm3_vm0, %v237_v37   ;;  %519 = vst.msk [vmem:[%s1251_s1 - $0xe0] ss:$162 sm:$0xc] %vm3_vm0, %v237_v37  }
  0x9c   :  { %520 = vst.msk [vmem:[%s1251_s1 + $0x280] ss:$-126 sm:$0x30] %vm3_vm0, %v237_v37   ;;  %521 = vst.msk [vmem:[%s1251_s1 + $0x3a0] ss:$-126 sm:$0xc0] %vm3_vm0, %v237_v37   ;;  %v275_v38 = vpop.permute.xlu1 %274  }
  0x9d   :  { %v262_v39 = vpop.permute.xlu0 %261   ;;  %532 = vst.msk [vmem:[%s1251_s1 + $0xd1] ss:$-126 sm:$0x3] %vm3_vm0, %v275_v38   ;;  %533 = vst.msk [vmem:[%s1251_s1 + $0x1f1] ss:$-126 sm:$0xc] %vm3_vm0, %v275_v38  }
  0x9e   :  { %534 = vst.msk [vmem:[%s1251_s1 + $0x311] ss:$-126 sm:$0x70] %vm3_vm0, %v275_v38   ;;  %535 = vst.msk [vmem:[%s1251_s1 + $0xb8] sm:$0x80] %vm3_vm0, %v275_v38  }
  0x9f   :  { %527 = vst.msk [vmem:[%s1251_s1 + $0x41] ss:$162 sm:$0x3] %vm3_vm0, %v262_v39   ;;  %528 = vst.msk [vmem:[%s1251_s1 - $0xdf] ss:$162 sm:$0xc] %vm3_vm0, %v262_v39  }
  0xa0   :  { %529 = vst.msk [vmem:[%s1251_s1 + $0x281] ss:$-126 sm:$0x30] %vm3_vm0, %v262_v39   ;;  %530 = vst.msk [vmem:[%s1251_s1 + $0x3a1] ss:$-126 sm:$0xc0] %vm3_vm0, %v262_v39   ;;  %v300_v40 = vpop.permute.xlu1 %299  }
  0xa1   :  { %v287_v41 = vpop.permute.xlu0 %286   ;;  %541 = vst.msk [vmem:[%s1251_s1 + $0x30] ss:$162 sm:$0x3] %vm3_vm0, %v300_v40   ;;  %542 = vst.msk [vmem:[%s1251_s1 - $0xf0] ss:$162 sm:$0xc] %vm3_vm0, %v300_v40  }
  0xa2   :  { %543 = vst.msk [vmem:[%s1251_s1 - $0x210] ss:$162 sm:$0x30] %vm3_vm0, %v300_v40   ;;  %544 = vst.msk [vmem:[%s1251_s1 + $0x390] ss:$-126 sm:$0xc0] %vm3_vm0, %v300_v40  }
  0xa3   :  { %536 = vst.msk [vmem:[%s1251_s1 + $0xc0] ss:$-126 sm:$0x3] %vm3_vm0, %v287_v41   ;;  %537 = vst.msk [vmem:[%s1251_s1 + $0x1e0] ss:$-126 sm:$0xc] %vm3_vm0, %v287_v41  }
  0xa4   :  { %538 = vst.msk [vmem:[%s1251_s1 + $0x300] ss:$-126 sm:$0x70] %vm3_vm0, %v287_v41   ;;  %539 = vst.msk [vmem:[%s1251_s1 + $0xa7] sm:$0x80] %vm3_vm0, %v287_v41   ;;  %v325_v42 = vpop.permute.xlu1 %324  }
  0xa5   :  { %v312_v43 = vpop.permute.xlu0 %311   ;;  %550 = vst.msk [vmem:[%s1251_s1 + $0x31] ss:$162 sm:$0x3] %vm3_vm0, %v325_v42   ;;  %551 = vst.msk [vmem:[%s1251_s1 - $0xef] ss:$162 sm:$0xc] %vm3_vm0, %v325_v42  }
  0xa6   :  { %552 = vst.msk [vmem:[%s1251_s1 - $0x20f] ss:$162 sm:$0x30] %vm3_vm0, %v325_v42   ;;  %553 = vst.msk [vmem:[%s1251_s1 + $0x391] ss:$-126 sm:$0xc0] %vm3_vm0, %v325_v42  }
  0xa7   :  { %545 = vst.msk [vmem:[%s1251_s1 + $0xc1] ss:$-126 sm:$0x3] %vm3_vm0, %v312_v43   ;;  %546 = vst.msk [vmem:[%s1251_s1 + $0x1e1] ss:$-126 sm:$0xc] %vm3_vm0, %v312_v43  }
  0xa8   :  { %547 = vst.msk [vmem:[%s1251_s1 + $0x301] ss:$-126 sm:$0x70] %vm3_vm0, %v312_v43   ;;  %548 = vst.msk [vmem:[%s1251_s1 + $0xa8] sm:$0x80] %vm3_vm0, %v312_v43   ;;  %v350_v44 = vpop.permute.xlu1 %349  }
  0xa9   :  { %v337_v45 = vpop.permute.xlu0 %336   ;;  %559 = vst.msk [vmem:[%s1251_s1 + $0xb0] ss:$-126 sm:$0x3] %vm3_vm0, %v350_v44   ;;  %560 = vst.msk [vmem:[%s1251_s1 + $0x1d0] ss:$-126 sm:$0xc] %vm3_vm0, %v350_v44  }
  0xaa   :  { %561 = vst.msk [vmem:[%s1251_s1 + $0x2f0] ss:$-126 sm:$0x30] %vm3_vm0, %v350_v44   ;;  %562 = vst.msk [vmem:[%s1251_s1 + $0x410] ss:$-126 sm:$0xc0] %vm3_vm0, %v350_v44  }
  0xab   :  { %554 = vst.msk [vmem:[%s1251_s1 + $0x20] ss:$162 sm:$0x3] %vm3_vm0, %v337_v45   ;;  %555 = vst.msk [vmem:[%s1251_s1 - $0x100] ss:$162 sm:$0xc] %vm3_vm0, %v337_v45  }
  0xac   :  { %556 = vst.msk [vmem:[%s1251_s1 - $0x220] ss:$162 sm:$0x30] %vm3_vm0, %v337_v45   ;;  %557 = vst.msk [vmem:[%s1251_s1 + $0x380] ss:$-126 sm:$0xc0] %vm3_vm0, %v337_v45   ;;  %v375_v46 = vpop.permute.xlu1 %374  }
  0xad   :  { %v362_v47 = vpop.permute.xlu0 %361   ;;  %568 = vst.msk [vmem:[%s1251_s1 + $0xb1] ss:$-126 sm:$0x3] %vm3_vm0, %v375_v46   ;;  %569 = vst.msk [vmem:[%s1251_s1 + $0x1d1] ss:$-126 sm:$0xc] %vm3_vm0, %v375_v46  }
  0xae   :  { %570 = vst.msk [vmem:[%s1251_s1 + $0x2f1] ss:$-126 sm:$0x30] %vm3_vm0, %v375_v46   ;;  %571 = vst.msk [vmem:[%s1251_s1 + $0x411] ss:$-126 sm:$0xc0] %vm3_vm0, %v375_v46  }
  0xaf   :  { %563 = vst.msk [vmem:[%s1251_s1 + $0x21] ss:$162 sm:$0x3] %vm3_vm0, %v362_v47   ;;  %564 = vst.msk [vmem:[%s1251_s1 - $0xff] ss:$162 sm:$0xc] %vm3_vm0, %v362_v47  }
  0xb0   :  { %565 = vst.msk [vmem:[%s1251_s1 - $0x21f] ss:$162 sm:$0x30] %vm3_vm0, %v362_v47   ;;  %566 = vst.msk [vmem:[%s1251_s1 + $0x381] ss:$-126 sm:$0xc0] %vm3_vm0, %v362_v47   ;;  %v400_v48 = vpop.permute.xlu1 %399  }
  0xb1   :  { %v388_v49 = vpop.permute.xlu0 %387   ;;  %577 = vst.msk [vmem:[%s1251_s1 + $0x10] ss:$162 sm:$0x3] %vm3_vm0, %v400_v48   ;;  %578 = vst.msk [vmem:[%s1251_s1 - $0x110] ss:$162 sm:$0xc] %vm3_vm0, %v400_v48  }
  0xb2   :  { %579 = vst.msk [vmem:[%s1251_s1 - $0x230] ss:$162 sm:$0x30] %vm3_vm0, %v400_v48   ;;  %580 = vst.msk [vmem:[%s1251_s1 - $0x350] ss:$162 sm:$0xc0] %vm3_vm0, %v400_v48  }
  0xb3   :  { %573 = vst.msk [vmem:[%s1251_s1 + $0xa0] ss:$-126 sm:$0x3] %vm3_vm0, %v388_v49   ;;  %574 = vst.msk [vmem:[%s1251_s1 + $0x1c0] ss:$-126 sm:$0xc] %vm3_vm0, %v388_v49  }
  0xb4   :  { %575 = vst.msk [vmem:[%s1251_s1 + $0x2e0] ss:$-126 sm:$0x30] %vm3_vm0, %v388_v49   ;;  %576 = vst.msk [vmem:[%s1251_s1 + $0x400] ss:$-126 sm:$0xc0] %vm3_vm0, %v388_v49   ;;  %v425_v50 = vpop.permute.xlu1 %424  }
  0xb5   :  { %v413_v51 = vpop.permute.xlu0 %412   ;;  %586 = vst.msk [vmem:[%s1251_s1 + $0x11] ss:$162 sm:$0x3] %vm3_vm0, %v425_v50   ;;  %587 = vst.msk [vmem:[%s1251_s1 - $0x10f] ss:$162 sm:$0xc] %vm3_vm0, %v425_v50  }
  0xb6   :  { %588 = vst.msk [vmem:[%s1251_s1 - $0x22f] ss:$162 sm:$0x30] %vm3_vm0, %v425_v50   ;;  %589 = vst.msk [vmem:[%s1251_s1 - $0x34f] ss:$162 sm:$0xc0] %vm3_vm0, %v425_v50  }
  0xb7   :  { %582 = vst.msk [vmem:[%s1251_s1 + $0xa1] ss:$-126 sm:$0x3] %vm3_vm0, %v413_v51   ;;  %583 = vst.msk [vmem:[%s1251_s1 + $0x1c1] ss:$-126 sm:$0xc] %vm3_vm0, %v413_v51  }
  0xb8   :  { %584 = vst.msk [vmem:[%s1251_s1 + $0x2e1] ss:$-126 sm:$0x30] %vm3_vm0, %v413_v51   ;;  %585 = vst.msk [vmem:[%s1251_s1 + $0x401] ss:$-126 sm:$0xc0] %vm3_vm0, %v413_v51  }

// kernel: pdca_forward.6
= control target key start
LH: loop header
LB: loop body
LE: loop exit
PB: predicated region body
PF: predicated region fallthrough
CT: control target
= control target key end

     0   :  { %s1483_s27 = smov 0   ;;  %s1940_s0 = inlined_call_operand.vmem [shape: bf16[512,128], index: 0, kind: input, shape index: {}]   ;;  %s1941_s1 = inlined_call_operand.vmem [shape: bf16[128,128], index: 1, kind: input, shape index: {}]   ;;  %s1942_s2 = inlined_call_operand.vmem [shape: f32[1,128], index: 2, kind: input, shape index: {}]   ;;  %s1943_s3 = inlined_call_operand.vmem [shape: f32[1,128], index: 3, kind: input, shape index: {}]   ;;  %s1944_s4 = inlined_call_operand.vmem [shape: bf16[512,128], index: 4, kind: input, shape index: {}]   ;;  %s1945_s5 = inlined_call_operand.vmem [shape: f32[1,128], index: 5, kind: input, shape index: {}]   ;;  %s1946_s6 = inlined_call_operand.vmem [shape: f32[1,128], index: 6, kind: input, shape index: {}]   ;;  %s1947_s7 = inlined_call_operand.vmem [shape: f32[512,128], index: 7, kind: output, shape index: {0}]   ;;  %s1948_s8 = inlined_call_operand.vmem [shape: f32[16,128], index: 8, kind: output, shape index: {1}]  }
   0x1 LB: > { %s1489_s28 = sadd.s32 4294967295, %s1435_s27   ;;  %p1144_p0 = scmp.ge.s32.totalorder %s1435_s27, 1  ;;  %s1435_s27 = sphi %s1483_s27, %s19_s27  }
   0x2   : > { %p277_p1 = scmp.lt.s32.totalorder %s1435_s27, 3 }
   0x4   : > { %p278_p2 = pnand %p1144_p0, %p277_p1 }
   0x5   : > { %s1145_s9 = sshll.u32 (!%p278_p2), %s1489_s28, 5  ;;  %p338_p4 = scmp.lt.s32.totalorder (!%p278_p2), %s1489_s28, 1 }
   0x6   : > { %281 = sbr.rel (%p278_p2) target bundleno = 322 (0x142), region = 48  ;;  %p321_p3 = scmp.lt.s32.totalorder (!%p278_p2), %s1145_s9, 63 }
   0xb   : > { %v1421_v0 = vld [vmem:[%s1941_s1 + $0x38] sm:$0xff]   ;;  %v1422_v1 = vld [vmem:[%s1941_s1 + $0x30] sm:$0xff]   ;;  %s1950_s9 = smov (!%p321_p3, %s1145_s9), 63  ;;  %v1423_v2 = vld [vmem:[%s1941_s1 + $0x28] sm:$0xff]   ;;  %s1952_s28 = smov (!%p338_p4, %s1489_s28), 1 }
   0xc   : > { %1348 = vmatprep.subr.bf16.mxu0 %v1421_v0  ;;  %1396 = vmatprep.subr.bf16.mxu1 %v1421_v0  ;;  %s1146_s14 = sshll.u32 %s1950_s9, 2  ;;  %v1424_v3 = vld [vmem:[%s1941_s1 + $0x20] sm:$0xff]   ;;  %v1425_v21 = vld [vmem:[%s1941_s1 + $0x18] sm:$0xff]   ;;  %v1426_v35 = vld [vmem:[%s1941_s1 + $0x10] sm:$0xff]   ;;  %s1151_s13 = sshll.u32 %s1952_s28, 3 }
   0xd   : > { %1349 = vmatpush3.bf16.msra.mxu0 %v1421_v0  ;;  %1404 = vmatpush3.bf16.msra.mxu1 %v1421_v0  ;;  %s1511_s17 = scalar_lea.vmem %s1940_s0, %s1146_s14  ;;  %v1520_v5 = vld [vmem:[%s1942_s2] ss:$0 sm:$0xff]  ;;  %v1427_v50 = vld [vmem:[%s1941_s1 + $0x8] sm:$0xff]   ;;  %s1667_s20 = scalar_lea.vmem %s1944_s4, %s1146_s14 }
   0xe   : > { %1350 = vmatprep.subr.bf16.mxu0 %v1422_v1  ;;  %1397 = vmatprep.subr.bf16.mxu1 %v1422_v1  ;;  %v1167_v4 = vld [vmem:[%s1511_s17] sm:$0xff]   ;;  %v1294_v8 = vld [vmem:[%s1511_s17 + $0x8] sm:$0xff]   ;;  %v1295_v9 = vld [vmem:[%s1511_s17 + $0x10] sm:$0xff]   ;;  %s1150_s23 = sshll.u32 %s1950_s9, 3 }
   0xf   : > { %v1168_v6 = vunpack.c.l.bf16 %v1167_v4  ;;  %v1169_v7 = vunpack.c.h.bf16 %v1167_v4  ;;  %v1296_v10 = vld [vmem:[%s1511_s17 + $0x18] sm:$0xff]   ;;  %v1528_v11 = vld [vmem:[%s1943_s3] ss:$0 sm:$0xff]  ;;  %v1172_v12 = vunpack.c.l.bf16 %v1294_v8  ;;  %v1173_v13 = vunpack.c.h.bf16 %v1294_v8  ;;  %v1298_v34 = vld [vmem:[%s1511_s17 + $0x28] sm:$0xff]   ;;  %s1728_s25 = scalar_lea.vmem %s1947_s7, %s1150_s23 }
  0x10   : > { %v1176_v14 = vunpack.c.l.bf16 %v1295_v9  ;;  %v1177_v15 = vunpack.c.h.bf16 %v1295_v9  ;;  %v1180_v18 = vunpack.c.l.bf16 %v1296_v10  ;;  %v1181_v19 = vunpack.c.h.bf16 %v1296_v10  ;;  %v1297_v20 = vld [vmem:[%s1511_s17 + $0x20] sm:$0xff]   ;;  %v1299_v39 = vld [vmem:[%s1511_s17 + $0x30] sm:$0xff]   ;;  %v1565_v59 = vld [vmem:[%s1511_s17 + $0x38] sm:$0xff]  }
  0x11   : > { %1351 = vmatpush3.bf16.msra.mxu0 %v1422_v1  ;;  %1405 = vmatpush3.bf16.msra.mxu1 %v1422_v1  ;;  %v414_v16 = vmul.f32 %v1168_v6, %v1520_v5  ;;  %v415_v17 = vmul.f32 %v1169_v7, %v1520_v5  ;;  %v416_v22 = vmul.f32 %v1172_v12, %v1520_v5  ;;  %v1184_v30 = vunpack.c.l.bf16 %v1297_v20  ;;  %v1301_v60 = vld [vmem:[%s1511_s17 + $0x40] sm:$0xff]   ;;  %v1302_v6 = vld [vmem:[%s1511_s17 + $0x48] sm:$0xff]  }
  0x12   : > { %1352 = vmatprep.subr.bf16.mxu0 %v1423_v2  ;;  %1398 = vmatprep.subr.bf16.mxu1 %v1423_v2  ;;  %v417_v23 = vmul.f32 %v1173_v13, %v1520_v5  ;;  %v418_v24 = vmul.f32 %v1176_v14, %v1520_v5  ;;  %v419_v27 = vmul.f32 %v1177_v15, %v1520_v5  ;;  %v1185_v43 = vunpack.c.h.bf16 %v1297_v20  ;;  %v1428_v0 = vld [vmem:[%s1941_s1] sm:$0xff]  }
  0x13   : > { %v453_v25 = vadd.f32 %v1528_v11, %v414_v16  ;;  %v454_v26 = vadd.f32 %v1528_v11, %v415_v17  ;;  %v420_v28 = vmul.f32 %v1180_v18, %v1520_v5  ;;  %v421_v29 = vmul.f32 %v1181_v19, %v1520_v5  ;;  %v1303_v16 = vld [vmem:[%s1511_s17 + $0x50] sm:$0xff]  }
  0x14   : > { %v455_v33 = vadd.f32 %v1528_v11, %v416_v22  ;;  %v456_v36 = vadd.f32 %v1528_v11, %v417_v23  ;;  %v457_v37 = vadd.f32 %v1528_v11, %v418_v24  ;;  %v458_v38 = vadd.f32 %v1528_v11, %v419_v27 }
  0x15   : > { %1353 = vmatpush3.bf16.msra.mxu0 %v1423_v2  ;;  %1406 = vmatpush3.bf16.msra.mxu1 %v1423_v2  ;;  %v485_v31 = vmax.f32 %v453_v25, 0.0  ;;  %v486_v32 = vmax.f32 %v454_v26, 0.0  ;;  %v459_v41 = vadd.f32 %v1528_v11, %v420_v28  ;;  %v460_v42 = vadd.f32 %v1528_v11, %v421_v29 }
  0x16   : > { %1354 = vmatprep.subr.bf16.mxu0 %v1424_v3  ;;  %1399 = vmatprep.subr.bf16.mxu1 %v1424_v3  ;;  %v422_v44 = vmul.f32 %v1184_v30, %v1520_v5  ;;  %v1188_v45 = vunpack.c.l.bf16 %v1298_v34  ;;  %v487_v46 = vmax.f32 %v455_v33, 0.0  ;;  %v423_v47 = vmul.f32 %v1185_v43, %v1520_v5  ;;  %v1305_v30 = vld [vmem:[%s1511_s17 + $0x60] sm:$0xff]  }
  0x17   : > { %v517_v40 = vpack.c.bf16 %v486_v32, %v485_v31  ;;  %v1189_v48 = vunpack.c.h.bf16 %v1298_v34  ;;  %v1192_v49 = vunpack.c.l.bf16 %v1299_v39  ;;  %v488_v51 = vmax.f32 %v456_v36, 0.0 }
  0x18   : > { %v489_v52 = vmax.f32 %v457_v37, 0.0  ;;  %v490_v53 = vmax.f32 %v458_v38, 0.0  ;;  %v424_v54 = vmul.f32 %v1188_v45, %v1520_v5  ;;  %v491_v55 = vmax.f32 %v459_v41, 0.0 }
  0x19   : > { %1355 = vmatpush3.bf16.msra.mxu0 %v1424_v3  ;;  %1407 = vmatpush3.bf16.msra.mxu1 %v1424_v3  ;;  %v492_v56 = vmax.f32 %v460_v42, 0.0  ;;  %v1562_v57 = vadd.f32 %v1528_v11, %v422_v44  ;;  %v1193_v58 = vunpack.c.h.bf16 %v1299_v39  ;;  %v1569_v61 = vadd.f32 %v1528_v11, %v423_v47  ;;  %v1306_v47 = vld [vmem:[%s1511_s17 + $0x68] sm:$0xff]  }
  0x1a   : > { %1356 = vmatprep.subr.bf16.mxu0 %v1425_v21  ;;  %1400 = vmatprep.subr.bf16.mxu1 %v1425_v21  ;;  %v425_v62 = vmul.f32 %v1189_v48, %v1520_v5  ;;  %v426_v63 = vmul.f32 %v1192_v49, %v1520_v5  ;;  %v518_v1 = vpack.c.bf16 %v488_v51, %v487_v46  ;;  %v1196_v3 = vunpack.c.l.bf16 %v1565_v59 }
  0x1b   : > { %1364 = vmatprep.mubr.bf16.mxu0 %v517_v40  ;;  %v1577_v2 = vadd.f32 %v1528_v11, %v424_v54  ;;  %v1200_v4 = vunpack.c.l.bf16 %v1301_v60  ;;  %v519_v7 = vpack.c.bf16 %v490_v53, %v489_v52  ;;  %v1581_v8 = vpack.c.bf16 %v492_v56, %v491_v55  ;;  %v1307_v52 = vld [vmem:[%s1511_s17 + $0x70] sm:$0xff]  }
  0x1c   : > { %v493_v9 = vmax.f32 %v1562_v57, 0.0  ;;  %v427_v10 = vmul.f32 %v1193_v58, %v1520_v5  ;;  %v494_v12 = vmax.f32 %v1569_v61, 0.0  ;;  %v1197_v13 = vunpack.c.h.bf16 %v1565_v59 }
  0x1d   : > { %1357 = vmatpush3.bf16.msra.mxu0 %v1425_v21  ;;  %1408 = vmatpush3.bf16.msra.mxu1 %v1425_v21  ;;  %v1201_v14 = vunpack.c.h.bf16 %v1301_v60  ;;  %v430_v15 = vmul.f32 %v1200_v4, %v1520_v5  ;;  %v1590_v17 = vadd.f32 %v1528_v11, %v425_v62  ;;  %v1593_v18 = vadd.f32 %v1528_v11, %v426_v63  ;;  %v1304_v21 = vld [vmem:[%s1511_s17 + $0x58] sm:$0xff]  }
  0x1e   : > { %1358 = vmatprep.subr.bf16.mxu0 %v1426_v35  ;;  %1401 = vmatprep.subr.bf16.mxu1 %v1426_v35  ;;  %v1204_v19 = vunpack.c.l.bf16 %v1302_v6  ;;  %v1205_v20 = vunpack.c.h.bf16 %v1302_v6  ;;  %v495_v22 = vmax.f32 %v1577_v2, 0.0  ;;  %v1598_v23 = vmul.f32 %v1196_v3, %v1520_v5  ;;  %v1308_v6 = vld [vmem:[%s1511_s17 + $0x78] sm:$0xff]   ;;  %s1659_s17 = scalar_lea.vmem %s1948_s8, %s1151_s13 }
  0x1f   : > { %v431_v24 = vmul.f32 %v1201_v14, %v1520_v5  ;;  %v469_v25 = vadd.f32 %v1528_v11, %v430_v15  ;;  %v1208_v28 = vunpack.c.l.bf16 %v1303_v16  ;;  %v1209_v29 = vunpack.c.h.bf16 %v1303_v16 }
  0x20   : > { %v432_v26 = vmul.f32 %v1204_v19, %v1520_v5  ;;  %v433_v27 = vmul.f32 %v1205_v20, %v1520_v5  ;;  %v1606_v31 = vadd.f32 %v1528_v11, %v427_v10  ;;  %v1212_v34 = vunpack.c.l.bf16 %v1304_v21 }
  0x21   : > { %1359 = vmatpush3.bf16.msra.mxu0 %v1426_v35  ;;  %1409 = vmatpush3.bf16.msra.mxu1 %v1426_v35  ;;  %v470_v32 = vadd.f32 %v1528_v11, %v431_v24  ;;  %v501_v33 = vmax.f32 %v469_v25, 0.0  ;;  %v434_v37 = vmul.f32 %v1208_v28, %v1520_v5  ;;  %v435_v38 = vmul.f32 %v1209_v29, %v1520_v5 }
  0x22   : > { %1360 = vmatprep.subr.bf16.mxu0 %v1427_v50  ;;  %1402 = vmatprep.subr.bf16.mxu1 %v1427_v50  ;;  %v471_v35 = vadd.f32 %v1528_v11, %v432_v26  ;;  %v472_v36 = vadd.f32 %v1528_v11, %v433_v27  ;;  %v1213_v40 = vunpack.c.h.bf16 %v1304_v21  ;;  %v436_v41 = vmul.f32 %v1212_v34, %v1520_v5 }
  0x23   : > { %v502_v39 = vmax.f32 %v470_v32, 0.0  ;;  %v1216_v42 = vunpack.c.l.bf16 %v1305_v30  ;;  %v473_v45 = vadd.f32 %v1528_v11, %v434_v37  ;;  %v474_v46 = vadd.f32 %v1528_v11, %v435_v38 }
  0x24   : > { %v503_v43 = vmax.f32 %v471_v35, 0.0  ;;  %v504_v44 = vmax.f32 %v472_v36, 0.0  ;;  %v437_v49 = vmul.f32 %v1213_v40, %v1520_v5  ;;  %v1217_v51 = vunpack.c.h.bf16 %v1305_v30 }
  0x25   : > { %1361 = vmatpush3.bf16.msra.mxu0 %v1427_v50  ;;  %1410 = vmatpush3.bf16.msra.mxu1 %v1427_v50  ;;  %v525_v48 = vpack.c.bf16 %v502_v39, %v501_v33  ;;  %v475_v50 = vadd.f32 %v1528_v11, %v436_v41  ;;  %v505_v54 = vmax.f32 %v473_v45, 0.0  ;;  %v506_v55 = vmax.f32 %v474_v46, 0.0  ;;  %v1309_v45 = vld [vmem:[%s1667_s20 + $0x8] sm:$0xff]   ;;  %v1231_v46 = vld [vmem:[%s1667_s20] sm:$0xff]  }
  0x26   : > { %1362 = vmatprep.subr.bf16.mxu0 %v1428_v0  ;;  %1403 = vmatprep.subr.bf16.mxu1 %v1428_v0  ;;  %v526_v53 = vpack.c.bf16 %v504_v44, %v503_v43  ;;  %v438_v56 = vmul.f32 %v1216_v42, %v1520_v5  ;;  %v476_v58 = vadd.f32 %v1528_v11, %v437_v49  ;;  %v1220_v63 = vunpack.c.l.bf16 %v1306_v47 }
  0x27   : > { %1380 = vmatprep.mubr.bf16.mxu1 %v525_v48  ;;  %v507_v60 = vmax.f32 %v475_v50, 0.0  ;;  %v439_v62 = vmul.f32 %v1217_v51, %v1520_v5  ;;  %v1221_v3 = vunpack.c.h.bf16 %v1306_v47  ;;  %v1224_v4 = vunpack.c.l.bf16 %v1307_v52  ;;  %v1674_v48 = vld [vmem:[%s1945_s5] ss:$0 sm:$0xff]  ;;  %v1311_v50 = vld [vmem:[%s1667_s20 + $0x18] sm:$0xff]  }
  0x28   : > { %v440_v14 = vmul.f32 %v1220_v63, %v1520_v5  ;;  %v1225_v15 = vunpack.c.h.bf16 %v1307_v52  ;;  %v521_v16 = vpack.c.bf16 %v494_v12, %v493_v9  ;;  %v429_v24 = vmul.f32 %v1197_v13, %v1520_v5  ;;  %v1310_v52 = vld [vmem:[%s1667_s20 + $0x10] sm:$0xff]  }
  0x29   : > { %1363 = vmatpush3.bf16.msra.mxu0 %v1428_v0  ;;  %1411 = vmatpush3.bf16.msra.mxu1 %v1428_v0  ;;  %v527_v0 = vpack.c.bf16 %v506_v55, %v505_v54  ;;  %v478_v10 = vadd.f32 %v1528_v11, %v439_v62  ;;  %v441_v20 = vmul.f32 %v1221_v3, %v1520_v5  ;;  %v1228_v27 = vunpack.c.l.bf16 %v1308_v6  ;;  %v1313_v54 = vld [vmem:[%s1667_s20 + $0x28] sm:$0xff]   ;;  %v1312_v3 = vld [vmem:[%s1667_s20 + $0x20] sm:$0xff]  }
  0x2a   : > { %v442_v21 = vmul.f32 %v1224_v4, %v1520_v5  ;;  %v443_v26 = vmul.f32 %v1225_v15, %v1520_v5  ;;  %v479_v57 = vadd.f32 %v1528_v11, %v440_v14  ;;  %v1229_v9 = vunpack.c.h.bf16 %v1308_v6  ;;  %v1317_v55 = vld [vmem:[%s1667_s20 + $0x48] sm:$0xff]   ;;  %v1316_v4 = vld [vmem:[%s1667_s20 + $0x40] sm:$0xff]  }
  0x2b   : > { %v510_v25 = vmax.f32 %v478_v10, 0.0  ;;  %v480_v61 = vadd.f32 %v1528_v11, %v441_v20  ;;  %v496_v12 = vmax.f32 %v1590_v17, 0.0  ;;  %v497_v13 = vmax.f32 %v1593_v18, 0.0  ;;  %v1694_v20 = vld [vmem:[%s1667_s20 + $0x38] sm:$0xff]  }
  0x2c   : > { %1365 = vmatmul.mubr.bf16.vlgmr.msra.gmra.mxu0 %v518_v1  ;;  %1381 = vmatmul.mubr.bf16.vlgmr.msra.gmra.mxu1 %v526_v53  ;;  %v477_v1 = vadd.f32 %v1528_v11, %v438_v56  ;;  %v481_v30 = vadd.f32 %v1528_v11, %v442_v21  ;;  %v482_v59 = vadd.f32 %v1528_v11, %v443_v26  ;;  %v498_v32 = vmax.f32 %v1606_v31, 0.0 }
  0x2d   : > { %1368 = vmatprep.mubr.bf16.mxu0 %v519_v7  ;;  %v508_v7 = vmax.f32 %v476_v58, 0.0  ;;  %1384 = vmatprep.mubr.bf16.mxu1 %v527_v0  ;;  %v467_v33 = vadd.f32 %v1528_v11, %v1598_v23  ;;  %v511_v34 = vmax.f32 %v479_v57, 0.0  ;;  %v512_v35 = vmax.f32 %v480_v61, 0.0  ;;  %v1314_v61 = vld [vmem:[%s1667_s20 + $0x30] sm:$0xff]  }
  0x2e   : > { %v509_v19 = vmax.f32 %v477_v1, 0.0  ;;  %v445_v17 = vmul.f32 %v1229_v9, %v1520_v5  ;;  %v522_v36 = vpack.c.bf16 %v496_v12, %v495_v22  ;;  %v468_v37 = vadd.f32 %v1528_v11, %v429_v24 }
  0x2f   : > { %v528_v28 = vpack.c.bf16 %v508_v7, %v507_v60  ;;  %v513_v38 = vmax.f32 %v481_v30, 0.0  ;;  %v514_v18 = vmax.f32 %v482_v59, 0.0  ;;  %v523_v39 = vpack.c.bf16 %v498_v32, %v497_v13  ;;  %v1684_v60 = vld [vmem:[%s1946_s6] ss:$0 sm:$0xff]  ;;  %v1319_v32 = vld [vmem:[%s1667_s20 + $0x58] sm:$0xff]  }
  0x30   : > { %v529_v29 = vpack.c.bf16 %v510_v25, %v509_v19  ;;  %v530_v31 = vpack.c.bf16 %v512_v35, %v511_v34  ;;  %v484_v40 = vadd.f32 %v1528_v11, %v445_v17  ;;  %v499_v41 = vmax.f32 %v467_v33, 0.0 }
  0x31   : > { %v500_v42 = vmax.f32 %v468_v37, 0.0  ;;  %v1236_v47 = vunpack.c.l.bf16 %v1309_v45  ;;  %v1232_v49 = vunpack.c.l.bf16 %v1231_v46  ;;  %v1237_v51 = vunpack.c.h.bf16 %v1309_v45 }
  0x32   : > { %v516_v22 = vmax.f32 %v484_v40, 0.0  ;;  %v1233_v53 = vunpack.c.h.bf16 %v1231_v46  ;;  %v1244_v58 = vunpack.c.l.bf16 %v1311_v50  ;;  %v1240_v63 = vunpack.c.l.bf16 %v1310_v52 }
  0x33   : > { %v524_v43 = vpack.c.bf16 %v500_v42, %v499_v41  ;;  %v622_v56 = vmul.f32 %v1236_v47, %v1674_v48  ;;  %v620_v62 = vmul.f32 %v1232_v49, %v1674_v48  ;;  %v1245_v0 = vunpack.c.h.bf16 %v1311_v50 }
  0x34   : > { %1369 = vmatmul.mubr.bf16.gmra.mxu0 %v1581_v8  ;;  %1385 = vmatmul.mubr.bf16.gmra.mxu1 %v528_v28  ;;  %v444_v8 = vmul.f32 %v1228_v27, %v1520_v5  ;;  %v531_v5 = vpack.c.bf16 %v514_v18, %v513_v38  ;;  %v1241_v1 = vunpack.c.h.bf16 %v1310_v52  ;;  %v623_v6 = vmul.f32 %v1237_v51, %v1674_v48  ;;  %v1723_v18 = vld [vmem:[%s1667_s20 + $0x50] sm:$0xff]  }
  0x35   : > { %1372 = vmatprep.mubr.bf16.mxu0 %v521_v16  ;;  %1388 = vmatprep.mubr.bf16.mxu1 %v529_v29  ;;  %v1252_v7 = vunpack.c.l.bf16 %v1313_v54  ;;  %v1268_v10 = vunpack.c.l.bf16 %v1317_v55  ;;  %v621_v14 = vmul.f32 %v1233_v53, %v1674_v48  ;;  %v661_v15 = vadd.f32 %v1684_v60, %v622_v56 }
  0x36   : > { %v483_v23 = vadd.f32 %v1528_v11, %v444_v8  ;;  %v1437_v11 = vmov 0.0   ;;  %v626_v16 = vmul.f32 %v1244_v58, %v1674_v48  ;;  %v1248_v19 = vunpack.c.l.bf16 %v1312_v3 }
  0x37   : > { %932 = vst [vmem:[%s1659_s17] sm:$0xff] %v1437_v11  ;;  %v1264_v21 = vunpack.c.l.bf16 %v1316_v4  ;;  %v659_v24 = vadd.f32 %v1684_v60, %v620_v62  ;;  %v624_v25 = vmul.f32 %v1240_v63, %v1674_v48  ;;  %v627_v26 = vmul.f32 %v1245_v0, %v1674_v48 }
  0x38   : > { %v515_v2 = vmax.f32 %v483_v23, 0.0  ;;  %v625_v27 = vmul.f32 %v1241_v1, %v1674_v48  ;;  %v662_v28 = vadd.f32 %v1684_v60, %v623_v6  ;;  %v630_v57 = vmul.f32 %v1252_v7, %v1674_v48 }
  0x39   : > { %v638_v9 = vmul.f32 %v1268_v10, %v1674_v48  ;;  %v1269_v12 = vunpack.c.h.bf16 %v1317_v55  ;;  %v660_v29 = vadd.f32 %v1684_v60, %v621_v14  ;;  %v1253_v30 = vunpack.c.h.bf16 %v1313_v54 }
  0x3a   : > { %v532_v44 = vpack.c.bf16 %v516_v22, %v515_v2  ;;  %v1249_v59 = vunpack.c.h.bf16 %v1312_v3  ;;  %v1260_v13 = vunpack.c.l.bf16 %v1694_v20  ;;  %v1709_v33 = vadd.f32 %v1684_v60, %v626_v16 }
  0x3b   : > { %v628_v34 = vmul.f32 %v1248_v19, %v1674_v48  ;;  %v636_v35 = vmul.f32 %v1264_v21, %v1674_v48  ;;  %v1265_v8 = vunpack.c.h.bf16 %v1316_v4  ;;  %v1714_v17 = vadd.f32 %v1684_v60, %v624_v25  ;;  %v1762_v4 = vld [vmem:[%s1667_s20 + $0x68] sm:$0xff]   ;;  %v1782_v25 = vld [vmem:[%s1667_s20 + $0x60] sm:$0xff]  }
  0x3c   : > { %1373 = vmatmul.mubr.bf16.gmra.mxu0 %v522_v36  ;;  %1389 = vmatmul.mubr.bf16.gmra.mxu1 %v530_v31  ;;  %v1717_v36 = vadd.f32 %v1684_v60, %v627_v26  ;;  %v1720_v37 = vadd.f32 %v1684_v60, %v625_v27  ;;  %v1256_v38 = vunpack.c.l.bf16 %v1314_v61  ;;  %v1731_v31 = vadd.f32 %v1684_v60, %v630_v57 }
  0x3d   : > { %1376 = vmatprep.mubr.bf16.mxu0 %v523_v39  ;;  %1392 = vmatprep.mubr.bf16.mxu1 %v531_v5  ;;  %v677_v23 = vadd.f32 %v1684_v60, %v638_v9  ;;  %v639_v40 = vmul.f32 %v1269_v12, %v1674_v48  ;;  %v1276_v41 = vunpack.c.l.bf16 %v1319_v32  ;;  %v631_v5 = vmul.f32 %v1253_v30, %v1674_v48 }
  0x3e   : > { %v629_v2 = vmul.f32 %v1249_v59, %v1674_v48  ;;  %v634_v22 = vmul.f32 %v1260_v13, %v1674_v48  ;;  %v675_v11 = vadd.f32 %v1684_v60, %v636_v35  ;;  %v637_v45 = vmul.f32 %v1265_v8, %v1674_v48 }
  0x3f   : > { %v1272_v46 = vunpack.c.l.bf16 %v1723_v18  ;;  %v632_v49 = vmul.f32 %v1256_v38, %v1674_v48  ;;  %v1261_v51 = vunpack.c.h.bf16 %v1694_v20  ;;  %v1257_v52 = vunpack.c.h.bf16 %v1314_v61 }
  0x40   : > { %v678_v55 = vadd.f32 %v1684_v60, %v639_v40  ;;  %v642_v56 = vmul.f32 %v1276_v41, %v1674_v48  ;;  %v1277_v58 = vunpack.c.h.bf16 %v1319_v32  ;;  %v1753_v63 = vadd.f32 %v1684_v60, %v631_v5 }
  0x41   : > { %v1756_v0 = vadd.f32 %v1684_v60, %v629_v2  ;;  %v1759_v1 = vadd.f32 %v1684_v60, %v634_v22  ;;  %v676_v10 = vadd.f32 %v1684_v60, %v637_v45  ;;  %v640_v14 = vmul.f32 %v1272_v46, %v1674_v48  ;;  %v1812_v46 = vld [vmem:[%s1667_s20 + $0x78] sm:$0xff]  }
  0x42   : > { %v1773_v19 = vadd.f32 %v1684_v60, %v632_v49  ;;  %v1776_v20 = vmul.f32 %v1261_v51, %v1674_v48  ;;  %v1779_v21 = vmul.f32 %v1257_v52, %v1674_v48  ;;  %v643_v57 = vmul.f32 %v1277_v58, %v1674_v48 }
  0x43   : > { %v1284_v61 = vunpack.c.l.bf16 %v1762_v4  ;;  %v1280_v8 = vunpack.c.l.bf16 %v1782_v25  ;;  %v1285_v22 = vunpack.c.h.bf16 %v1762_v4  ;;  %v1281_v52 = vunpack.c.h.bf16 %v1782_v25 }
  0x44   : > { %1377 = vmatmul.mubr.bf16.gmra.mxu0 %v524_v43  ;;  %1393 = vmatmul.mubr.bf16.gmra.mxu1 %v532_v44  ;;  %v1739_v44 = vadd.f32 %v1684_v60, %v628_v34  ;;  %v679_v34 = vadd.f32 %v1684_v60, %v640_v14  ;;  %v682_v5 = vadd.f32 %v1684_v60, %v643_v57  ;;  %v1292_v14 = vunpack.c.l.bf16 %v1812_v46 }
  0x45   : > { %v646_v2 = vmul.f32 %v1284_v61, %v1674_v48  ;;  %v644_v51 = vmul.f32 %v1280_v8, %v1674_v48  ;;  %v645_v61 = vmul.f32 %v1281_v52, %v1674_v48 }
  0x47   : > { %v683_v57 = vadd.f32 %v1684_v60, %v644_v51 }
  0xec   : > { %v1366_v39 = vpop.f32.mrf.mxu0  ;;  %v1382_v50 = vpop.f32.mrf.mxu1 }
  0xed   : > { %v782_v42 = vadd.f32 %v1366_v39, %v661_v15  ;;  %v1747_v54 = vadd.f32 %v1382_v50, %v677_v23  ;;  %v1273_v15 = vunpack.c.h.bf16 %v1723_v18 }
  0xee   : > { %v773_v43 = vpop.f32.mrf.mxu0  ;;  %v837_v3 = vpop.f32.mrf.mxu1 }
  0xef   : > { %902 = vst [vmem:[%s1728_s25 + $0x10] sm:$0xff] %v782_v42  ;;  %v774_v47 = vadd.f32 %v773_v43, %v659_v24  ;;  %918 = vst [vmem:[%s1728_s25 + $0x90] sm:$0xff] %v1747_v54  ;;  %v1766_v7 = vadd.f32 %v837_v3, %v675_v11  ;;  %v641_v35 = vmul.f32 %v1273_v15, %v1674_v48 }
  0xf0   : > { %v1367_v53 = vpop.f32.mrf.mxu0  ;;  %v1383_v24 = vpop.f32.mrf.mxu1  ;;  %v973_v38 = vmul.f32 %v782_v42, %v782_v42 }
  0xf1   : > { %900 = vst [vmem:[%s1728_s25] sm:$0xff] %v774_v47  ;;  %v785_v62 = vadd.f32 %v1367_v53, %v662_v28  ;;  %916 = vst [vmem:[%s1728_s25 + $0x80] sm:$0xff] %v1766_v7  ;;  %v1786_v27 = vadd.f32 %v1383_v24, %v678_v55  ;;  %v681_v28 = vadd.f32 %v1684_v60, %v642_v56 }
  0xf2   : > { %v776_v6 = vpop.f32.mrf.mxu0  ;;  %v971_v9 = vmul.f32 %v774_v47, %v774_v47  ;;  %v840_v59 = vpop.f32.mrf.mxu1  ;;  %v680_v50 = vadd.f32 %v1684_v60, %v641_v35 }
  0xf3   : > { %903 = vst [vmem:[%s1728_s25 + $0x18] sm:$0xff] %v785_v62  ;;  %v777_v16 = vadd.f32 %v776_v6, %v660_v29  ;;  %919 = vst [vmem:[%s1728_s25 + $0x98] sm:$0xff] %v1786_v27  ;;  %v1795_v32 = vadd.f32 %v840_v59, %v676_v10  ;;  %v974_v43 = vmul.f32 %v785_v62, %v785_v62 }
  0xf4   : > { %v1370_v26 = vpop.f32.mrf.mxu0  ;;  %v1386_v23 = vpop.f32.mrf.mxu1  ;;  %v685_v6 = vadd.f32 %v1684_v60, %v646_v2  ;;  %v647_v10 = vmul.f32 %v1285_v22, %v1674_v48  ;;  %v684_v2 = vadd.f32 %v1684_v60, %v645_v61 }
  0xf5   : > { %901 = vst [vmem:[%s1728_s25 + $0x8] sm:$0xff] %v777_v16  ;;  %v933_v12 = vadd.f32 %v777_v16, %v774_v47  ;;  %v972_v29 = vmul.f32 %v777_v16, %v777_v16  ;;  %v798_v30 = vadd.f32 %v1370_v26, %v1709_v33  ;;  %917 = vst [vmem:[%s1728_s25 + $0x88] sm:$0xff] %v1795_v32 }
  0xf6   : > { %v789_v13 = vpop.f32.mrf.mxu0  ;;  %v1804_v41 = vadd.f32 %v1386_v23, %v681_v28  ;;  %v853_v45 = vpop.f32.mrf.mxu1  ;;  %v686_v8 = vadd.f32 %v1684_v60, %v647_v10 }
  0xf7   : > { %v934_v18 = vadd.f32 %v933_v12, %v782_v42  ;;  %v1003_v39 = vadd.f32 %v972_v29, %v971_v9  ;;  %906 = vst [vmem:[%s1728_s25 + $0x30] sm:$0xff] %v798_v30  ;;  %v790_v33 = vadd.f32 %v789_v13, %v1714_v17  ;;  %v1816_v49 = vadd.f32 %v853_v45, %v679_v34 }
  0xf8   : > { %v1371_v40 = vpop.f32.mrf.mxu0  ;;  %922 = vst [vmem:[%s1728_s25 + $0xb0] sm:$0xff] %v1804_v41  ;;  %v1387_v58 = vpop.f32.mrf.mxu1  ;;  %v977_v12 = vmul.f32 %v798_v30, %v798_v30 }
  0xf9   : > { %v1004_v42 = vadd.f32 %v1003_v39, %v973_v38  ;;  %904 = vst [vmem:[%s1728_s25 + $0x20] sm:$0xff] %v790_v33  ;;  %v935_v11 = vadd.f32 %v934_v18, %v785_v62  ;;  %v801_v17 = vadd.f32 %v1371_v40, %v1717_v36  ;;  %v975_v55 = vmul.f32 %v790_v33, %v790_v33  ;;  %v1824_v62 = vld [vmem:[%s1667_s20 + $0x70] sm:$0xff]  }
  0xfa   : > { %v792_v47 = vpop.f32.mrf.mxu0  ;;  %920 = vst [vmem:[%s1728_s25 + $0xa0] sm:$0xff] %v1816_v49  ;;  %v1828_v4 = vadd.f32 %v1387_v58, %v682_v5  ;;  %v856_v25 = vpop.f32.mrf.mxu1  ;;  %v1288_v9 = vunpack.c.l.bf16 %v1824_v62  ;;  %v650_v38 = vmul.f32 %v1292_v14, %v1674_v48  ;;  %v1293_v18 = vunpack.c.h.bf16 %v1812_v46 }
  0xfb   : > { %v936_v53 = vadd.f32 %v935_v11, %v790_v33  ;;  %v1005_v56 = vadd.f32 %v1004_v42, %v974_v43  ;;  %907 = vst [vmem:[%s1728_s25 + $0x38] sm:$0xff] %v801_v17  ;;  %v793_v36 = vadd.f32 %v792_v47, %v1720_v37  ;;  %v1837_v28 = vadd.f32 %v856_v25, %v680_v50 }
  0xfc   : > { %v1374_v3 = vpop.f32.mrf.mxu0  ;;  %923 = vst [vmem:[%s1728_s25 + $0xb8] sm:$0xff] %v1828_v4  ;;  %v1390_v13 = vpop.f32.mrf.mxu1  ;;  %v978_v39 = vmul.f32 %v801_v17, %v801_v17  ;;  %v648_v22 = vmul.f32 %v1288_v9, %v1674_v48  ;;  %v1289_v43 = vunpack.c.h.bf16 %v1824_v62  ;;  %v674_v47 = vadd.f32 %v1684_v60, %v1776_v20 }
  0xfd   : > { %v1006_v15 = vadd.f32 %v1005_v56, %v975_v55  ;;  %905 = vst [vmem:[%s1728_s25 + $0x28] sm:$0xff] %v793_v36  ;;  %v937_v16 = vadd.f32 %v936_v53, %v793_v36  ;;  %v976_v37 = vmul.f32 %v793_v36, %v793_v36  ;;  %v814_v24 = vadd.f32 %v1374_v3, %v1731_v31 }
  0xfe   : > { %v805_v26 = vpop.f32.mrf.mxu0  ;;  %921 = vst [vmem:[%s1728_s25 + $0xa8] sm:$0xff] %v1837_v28  ;;  %v1846_v35 = vadd.f32 %v1390_v13, %v685_v6  ;;  %v689_v51 = vadd.f32 %v1684_v60, %v650_v38  ;;  %v651_v52 = vmul.f32 %v1293_v18, %v1674_v48  ;;  %v672_v20 = vadd.f32 %v1684_v60, %v1779_v21 }
  0xff   : > { %v938_v29 = vadd.f32 %v937_v16, %v798_v30  ;;  %v1007_v59 = vadd.f32 %v1006_v15, %v976_v37  ;;  %910 = vst [vmem:[%s1728_s25 + $0x50] sm:$0xff] %v814_v24  ;;  %v806_v31 = vadd.f32 %v805_v26, %v1739_v44  ;;  %v869_v44 = vpop.f32.mrf.mxu1  ;;  %v687_v3 = vadd.f32 %v1684_v60, %v648_v22 }
 0x100   : > { %v1375_v34 = vpop.f32.mrf.mxu0  ;;  %926 = vst [vmem:[%s1728_s25 + $0xd0] sm:$0xff] %v1846_v35  ;;  %v1855_v5 = vadd.f32 %v869_v44, %v683_v57  ;;  %v649_v6 = vmul.f32 %v1289_v43, %v1674_v48  ;;  %v981_v10 = vmul.f32 %v814_v24, %v814_v24  ;;  %v690_v25 = vadd.f32 %v1684_v60, %v651_v52 }
 0x101   : > { %v1008_v30 = vadd.f32 %v1007_v59, %v977_v12  ;;  %908 = vst [vmem:[%s1728_s25 + $0x40] sm:$0xff] %v806_v31  ;;  %v939_v33 = vadd.f32 %v938_v29, %v801_v17  ;;  %v817_v23 = vadd.f32 %v1375_v34, %v1753_v63  ;;  %v979_v11 = vmul.f32 %v806_v31, %v806_v31  ;;  %v1391_v17 = vpop.f32.mrf.mxu1 }
 0x102   : > { %v808_v40 = vpop.f32.mrf.mxu0  ;;  %924 = vst [vmem:[%s1728_s25 + $0xc0] sm:$0xff] %v1855_v5  ;;  %v1866_v50 = vadd.f32 %v1391_v17, %v686_v8  ;;  %v688_v12 = vadd.f32 %v1684_v60, %v649_v6  ;;  %v987_v43 = vmul.f32 %v1766_v7, %v1766_v7  ;;  %v990_v52 = vmul.f32 %v1786_v27, %v1786_v27 }
 0x103   : > { %v940_v42 = vadd.f32 %v939_v33, %v806_v31  ;;  %v1009_v45 = vadd.f32 %v1008_v30, %v978_v39  ;;  %911 = vst [vmem:[%s1728_s25 + $0x58] sm:$0xff] %v817_v23  ;;  %v809_v63 = vadd.f32 %v808_v40, %v1756_v0  ;;  %v872_v36 = vpop.f32.mrf.mxu1  ;;  %v982_v26 = vmul.f32 %v817_v23, %v817_v23 }
 0x104   : > { %v1378_v46 = vpop.f32.mrf.mxu0  ;;  %927 = vst [vmem:[%s1728_s25 + $0xd8] sm:$0xff] %v1866_v50  ;;  %v1876_v62 = vadd.f32 %v872_v36, %v684_v2 }
 0x105   : > { %v1010_v53 = vadd.f32 %v1009_v45, %v979_v11  ;;  %909 = vst [vmem:[%s1728_s25 + $0x48] sm:$0xff] %v809_v63  ;;  %v941_v55 = vadd.f32 %v940_v42, %v809_v63  ;;  %v980_v56 = vmul.f32 %v809_v63, %v809_v63  ;;  %v830_v0 = vadd.f32 %v1378_v46, %v1759_v1  ;;  %v1394_v16 = vpop.f32.mrf.mxu1 }
 0x106   : > { %v821_v58 = vpop.f32.mrf.mxu0  ;;  %925 = vst [vmem:[%s1728_s25 + $0xc8] sm:$0xff] %v1876_v62  ;;  %v1884_v21 = vadd.f32 %v1394_v16, %v689_v51  ;;  %v988_v63 = vmul.f32 %v1795_v32, %v1795_v32  ;;  %v989_v46 = vmul.f32 %v1747_v54, %v1747_v54  ;;  %v996_v16 = vmul.f32 %v1876_v62, %v1876_v62 }
 0x107   : > { %v942_v14 = vadd.f32 %v941_v55, %v814_v24  ;;  %v1011_v15 = vadd.f32 %v1010_v53, %v980_v56  ;;  %914 = vst [vmem:[%s1728_s25 + $0x70] sm:$0xff] %v830_v0  ;;  %v822_v1 = vadd.f32 %v821_v58, %v1773_v19  ;;  %v885_v61 = vpop.f32.mrf.mxu1  ;;  %v991_v56 = vmul.f32 %v1816_v49, %v1816_v49 }
 0x108   : > { %v1379_v37 = vpop.f32.mrf.mxu0  ;;  %930 = vst [vmem:[%s1728_s25 + $0xf0] sm:$0xff] %v1884_v21  ;;  %v886_v19 = vadd.f32 %v885_v61, %v687_v3  ;;  %v992_v58 = vmul.f32 %v1837_v28, %v1837_v28 }
 0x109   : > { %v1012_v57 = vadd.f32 %v1011_v15, %v981_v10  ;;  %912 = vst [vmem:[%s1728_s25 + $0x60] sm:$0xff] %v822_v1  ;;  %v943_v48 = vadd.f32 %v942_v14, %v817_v23  ;;  %v833_v24 = vadd.f32 %v1379_v37, %v674_v47  ;;  %v983_v59 = vmul.f32 %v822_v1, %v822_v1  ;;  %v1395_v34 = vpop.f32.mrf.mxu1 }
 0x10a   : > { %v824_v9 = vpop.f32.mrf.mxu0  ;;  %928 = vst [vmem:[%s1728_s25 + $0xe0] sm:$0xff] %v886_v19  ;;  %v897_v8 = vadd.f32 %v1395_v34, %v690_v25  ;;  %v985_v23 = vmul.f32 %v830_v0, %v830_v0  ;;  %v995_v14 = vmul.f32 %v1855_v5, %v1855_v5 }
 0x10b   : > { %v944_v29 = vadd.f32 %v943_v48, %v822_v1  ;;  %v1013_v31 = vadd.f32 %v1012_v57, %v982_v26  ;;  %915 = vst [vmem:[%s1728_s25 + $0x78] sm:$0xff] %v833_v24  ;;  %v825_v13 = vadd.f32 %v824_v9, %v672_v20  ;;  %v888_v30 = vpop.f32.mrf.mxu1  ;;  %v986_v60 = vmul.f32 %v833_v24, %v833_v24 }
 0x10c   : > { %931 = vst [vmem:[%s1728_s25 + $0xf8] sm:$0xff] %v897_v8  ;;  %v889_v33 = vadd.f32 %v888_v30, %v688_v12  ;;  %v999_v48 = vmul.f32 %v886_v19, %v886_v19 }
 0x10d   : > { %v1014_v38 = vadd.f32 %v1013_v31, %v983_v59  ;;  %913 = vst [vmem:[%s1728_s25 + $0x68] sm:$0xff] %v825_v13  ;;  %v945_v18 = vadd.f32 %v944_v29, %v825_v13  ;;  %v984_v39 = vmul.f32 %v825_v13, %v825_v13 }
 0x10e   : > { %929 = vst [vmem:[%s1728_s25 + $0xe8] sm:$0xff] %v889_v33  ;;  %v1000_v12 = vmul.f32 %v889_v33, %v889_v33 }
 0x10f   : > { %v946_v44 = vadd.f32 %v945_v18, %v830_v0  ;;  %v1015_v40 = vadd.f32 %v1014_v38, %v984_v39 }
 0x111   : > { %v1016_v2 = vadd.f32 %v1015_v40, %v985_v23  ;;  %v947_v22 = vadd.f32 %v946_v44, %v833_v24 }
 0x113   : > { %v948_v42 = vadd.f32 %v947_v22, %v1766_v7  ;;  %v1017_v11 = vadd.f32 %v1016_v2, %v986_v60 }
 0x115   : > { %v949_v45 = vadd.f32 %v948_v42, %v1795_v32  ;;  %v1018_v17 = vadd.f32 %v1017_v11, %v987_v43 }
 0x117   : > { %v950_v47 = vadd.f32 %v949_v45, %v1747_v54  ;;  %v1019_v51 = vadd.f32 %v1018_v17, %v988_v63  ;;  %v993_v54 = vmul.f32 %v1804_v41, %v1804_v41 }
 0x119   : > { %v1020_v53 = vadd.f32 %v1019_v51, %v989_v46  ;;  %v951_v55 = vadd.f32 %v950_v47, %v1786_v27  ;;  %v994_v27 = vmul.f32 %v1828_v4, %v1828_v4 }
 0x11b   : > { %v952_v7 = vadd.f32 %v951_v55, %v1816_v49  ;;  %v1021_v0 = vadd.f32 %v1020_v53, %v990_v52 }
 0x11d   : > { %v1022_v32 = vadd.f32 %v1021_v0, %v991_v56  ;;  %v953_v36 = vadd.f32 %v952_v7, %v1837_v28 }
 0x11f   : > { %v954_v20 = vadd.f32 %v953_v36, %v1804_v41  ;;  %v1023_v3 = vadd.f32 %v1022_v32, %v992_v58  ;;  %v997_v41 = vmul.f32 %v1846_v35, %v1846_v35 }
 0x121   : > { %v1024_v6 = vadd.f32 %v1023_v3, %v993_v54  ;;  %v955_v10 = vadd.f32 %v954_v20, %v1828_v4  ;;  %v998_v4 = vmul.f32 %v1866_v50, %v1866_v50 }
 0x123   : > { %v956_v49 = vadd.f32 %v955_v10, %v1855_v5  ;;  %v1025_v15 = vadd.f32 %v1024_v6, %v994_v27 }
 0x125   : > { %v1026_v1 = vadd.f32 %v1025_v15, %v995_v14  ;;  %v957_v28 = vadd.f32 %v956_v49, %v1876_v62  ;;  %v1001_v62 = vmul.f32 %v1884_v21, %v1884_v21 }
 0x127   : > { %v958_v37 = vadd.f32 %v957_v28, %v1846_v35  ;;  %v1027_v25 = vadd.f32 %v1026_v1, %v996_v16  ;;  %v1002_v35 = vmul.f32 %v897_v8, %v897_v8 }
 0x129   : > { %v1028_v26 = vadd.f32 %v1027_v25, %v997_v41  ;;  %v959_v57 = vadd.f32 %v958_v37, %v1866_v50 }
 0x12b   : > { %v960_v5 = vadd.f32 %v959_v57, %v886_v19  ;;  %v1029_v24 = vadd.f32 %v1028_v26, %v998_v4 }
 0x12d   : > { %v1030_v61 = vadd.f32 %v1029_v24, %v999_v48  ;;  %v961_v9 = vadd.f32 %v960_v5, %v889_v33 }
 0x12f   : > { %v962_v29 = vadd.f32 %v961_v9, %v1884_v21  ;;  %v1031_v59 = vadd.f32 %v1030_v61, %v1000_v12 }
 0x131   : > { %v963_v31 = vadd.f32 %v962_v29, %v897_v8  ;;  %v1032_v13 = vadd.f32 %v1031_v59, %v1001_v62 }
 0x133   : > { %v964_v34 = vrot.slane %v963_v31, 4  ;;  %v1033_v38 = vadd.f32 %v1032_v13, %v1002_v35 }
 0x135   : > { %v965_v50 = vadd.f32 %v964_v34, %v963_v31  ;;  %v1034_v18 = vrot.slane %v1033_v38, 4 }
 0x137   : > { %v966_v19 = vrot.slane %v965_v50, 2  ;;  %v1035_v39 = vadd.f32 %v1034_v18, %v1033_v38 }
 0x139   : > { %v967_v30 = vadd.f32 %v966_v19, %v965_v50  ;;  %v1036_v23 = vrot.slane %v1035_v39, 2 }
 0x13b   : > { %v968_v33 = vrot.slane %v967_v30, 1  ;;  %v1037_v44 = vadd.f32 %v1036_v23, %v1035_v39 }
 0x13d   : > { %v969_v40 = vadd.f32 %v968_v33, %v967_v30  ;;  %v1038_v60 = vrot.slane %v1037_v44, 1 }
 0x13f   : > { %970 = vst [vmem:[%s1659_s17] sm:$0x1] %v969_v40  ;;  %v1039_v21 = vadd.f32 %v1038_v60, %v1037_v44 }
 0x141   : > { %1040 = vst [vmem:[%s1659_s17 + $0x1] sm:$0x1] %v1039_v21 }
 0x142 PF: > { %s19_s27 = sadd.s32 1, %s1435_s27  }
 0x143   : > { %p16_p5 = scmp.ge.s32.totalorder %s19_s27, 4  }
 0x145   :  { %18 = sbr.rel (!%p16_p5) target bundleno = 1 (0x1), region = 93 }

// kernel: pdca_forward.7
= control target key start
LH: loop header
LB: loop body
LE: loop exit
PB: predicated region body
PF: predicated region fallthrough
CT: control target
= control target key end

     0   :  { %12 = vsyncpa [#allocation3], 0  ;;  %s1923_s0 = inlined_call_operand.vmem [shape: f32[512,128], index: 0, kind: input, shape index: {}]   ;;  %s1924_s1 = inlined_call_operand.vmem [shape: f32[1,128], index: 1, kind: input, shape index: {}]   ;;  %s1925_s2 = inlined_call_operand.vmem [shape: f32[1,128], index: 2, kind: input, shape index: {}]   ;;  %s1926_s3 = inlined_call_operand.vmem [shape: bf16[128,128], index: 3, kind: input, shape index: {}]   ;;  %s1927_s4 = inlined_call_operand.vmem [shape: f32[1,128], index: 4, kind: input, shape index: {}]   ;;  %s1928_s5 = inlined_call_operand.vmem [shape: bf16[128,128], index: 5, kind: input, shape index: {}]   ;;  %s1929_s6 = inlined_call_operand.vmem [shape: f32[1,128], index: 6, kind: input, shape index: {}]   ;;  %s1930_s7 = inlined_call_operand.hbm [shape: f32[512,128], index: 7, kind: output, shape index: {}]  }
   0x1   :  { %14 = vsyncpa [#allocation3 + $0x1], 0  ;;  %s1398_s24 = smov 0   ;;  %s1400_s25 = smov 0  }
   0x2   :  { %s1402_s26 = smov 0   ;;  %s1404_s27 = smov 0  }
   0x3 LB: > { %s1419_s28 = sadd.s32 4294967295, %s1353_s27   ;;  %s1059_s29 = sadd.s32 4294967294, %s1353_s27   ;;  %s1353_s27 = sphi %s1404_s27, %s1936_s27   ;;  %s1349_s26 = sphi %s1402_s26, %s1935_s26   ;;  %s1345_s25 = sphi %s1400_s25, %s1934_s25   ;;  %s1341_s24 = sphi %s1398_s24, %s1933_s24  }
   0x4   : > { %s1423_s30 = sadd.s32 1, %s1353_s27   ;;  %s179_s8 = sadd.s32 1, %s1349_s26 }
   0x5   : > { %s176_s9 = ssub.s32 %s1353_s27, %s1423_s30  ;;  %p189_p0 = scmp.ne.s32.totalorder %s1349_s26, %s1345_s25 }
   0x6   : > { %p177_p1 = scmp.eq.s32.totalorder %s176_s9, 0  ;;  %p190_p2 = scmp.eq.s32.totalorder %s1419_s28, 1 }
   0x7   : > { %p195_p3 = scmp.ne.s32.totalorder %s1345_s25, %s1341_s24  ;;  %p196_p4 = scmp.eq.s32.totalorder %s1059_s29, 1 }
   0x8   : > { %s1434_s10 = scalar_select %p177_p1, %s1349_s26, %s179_s8  }
   0x9   : > { %p1436_p5 = por %p190_p2, %p189_p0  ;;  %p1440_p6 = por %p196_p4, %p195_p3 }
   0xa   : > { %p1062_p7 = scmp.ge.s32.totalorder %s1353_s27, 1  ;;  %p241_p8 = scmp.lt.s32.totalorder %s1353_s27, 3 }
   0xc   : > { %p242_p9 = pnand %p1062_p7, %p241_p8 }
   0xd   : > { %s1064_s15 = sshll.u32 (!%p242_p9), %s1419_s28, 5  ;;  %s1355_s9 = smov (!%p242_p9), [#allocation2]  }
   0xe   : > { %245 = sbr.rel (%p242_p9) target bundleno = 531 (0x213), region = 48  ;;  %p274_p10 = scmp.lt.s32.totalorder (!%p242_p9), %s1064_s15, 63 }
   0xf   : > { %s1297_s13 = sshll.u32 (!%p242_p9), %s1355_s9, 4  ;;  %s1298_s13 = int_to_ptr.vmem [resolvable:$false] %s1297_s13 }
  0x10   : > { %s1299_s14 = scalar_lea.vmem (!%p242_p9), %s1298_s13, 8192 }
  0x13   : > { %v1277_v0 = vld [vmem:[%s1926_s3 + $0x38] sm:$0xff]   ;;  %v1278_v1 = vld [vmem:[%s1926_s3 + $0x30] sm:$0xff]   ;;  %s1938_s15 = smov (!%p274_p10, %s1064_s15), 63  ;;  %v1279_v2 = vld [vmem:[%s1926_s3 + $0x28] sm:$0xff]  }
  0x14   : > { %1140 = vmatprep.subr.bf16.mxu0 %v1277_v0  ;;  %s1065_s20 = sshll.u32 %s1938_s15, 3  ;;  %v1280_v3 = vld [vmem:[%s1926_s3 + $0x20] sm:$0xff]   ;;  %v1281_v12 = vld [vmem:[%s1926_s3 + $0x18] sm:$0xff]   ;;  %v1282_v14 = vld [vmem:[%s1926_s3 + $0x10] sm:$0xff]   ;;  %s270_s15 = sand.u32 1, %s1345_s25  }
  0x15   : > { %1141 = vmatpush3.bf16.msra.mxu0 %v1277_v0  ;;  %s1459_s23 = scalar_lea.vmem %s1923_s0, %s1065_s20  ;;  %v1473_v6 = vld [vmem:[%s1924_s1] ss:$0 sm:$0xff]  ;;  %v1283_v15 = vld [vmem:[%s1926_s3 + $0x8] sm:$0xff]   ;;  %v1285_v22 = vld [vmem:[%s1928_s5 + $0x38] sm:$0xff]   ;;  %s1063_s18 = sshll.u32 %s270_s15, 8 }
  0x16   : > { %1142 = vmatprep.subr.bf16.mxu0 %v1278_v1  ;;  %v1465_v4 = vld [vmem:[%s1459_s23] sm:$0xff]  ;;  %v1468_v5 = vld [vmem:[%s1459_s23 + $0x8] sm:$0xff]  ;;  %v1496_v16 = vld [vmem:[%s1459_s23 + $0x10] sm:$0xff]  ;;  %1188 = vmatprep.subr.bf16.mxu1 %v1285_v22  ;;  %s1777_s19 = scalar_lea.vmem [#allocation2], %s1063_s18  ;;  %s1091_s20 = sshll.u32 %s1419_s28, 12 }
  0x17   : > { %v320_v7 = vmul.f32 %v1473_v6, %v1465_v4  ;;  %v321_v8 = vmul.f32 %v1473_v6, %v1468_v5  ;;  %v1482_v9 = vld [vmem:[%s1925_s2] ss:$0 sm:$0xff]  ;;  %v1499_v17 = vld [vmem:[%s1459_s23 + $0x18] sm:$0xff]  ;;  %v1505_v19 = vld [vmem:[%s1459_s23 + $0x28] sm:$0xff]  ;;  %v322_v23 = vmul.f32 %v1473_v6, %v1496_v16  ;;  %1189 = vmatpush3.bf16.msra.mxu1 %v1285_v22  ;;  %s1874_s29 = scalar_lea.hbm %s1930_s7, %s1091_s20  ;;  %s1883_s28 = scalar_lea.sflag [#allocation3], %s270_s15 }
  0x18   : > { %v1502_v18 = vld [vmem:[%s1459_s23 + $0x20] sm:$0xff]  ;;  %v1508_v20 = vld [vmem:[%s1459_s23 + $0xd0] sm:$0xff]  ;;  %v1511_v21 = vld [vmem:[%s1459_s23 + $0xd8] sm:$0xff]  ;;  %v323_v27 = vmul.f32 %v1473_v6, %v1499_v17  ;;  %v325_v30 = vmul.f32 %v1473_v6, %v1505_v19 }
  0x19   : > { %1143 = vmatpush3.bf16.msra.mxu0 %v1278_v1  ;;  %v359_v10 = vadd.f32 %v1482_v9, %v320_v7  ;;  %v360_v11 = vadd.f32 %v1482_v9, %v321_v8  ;;  %v1519_v24 = vld [vmem:[%s1459_s23 + $0xe0] sm:$0xff]  ;;  %v1522_v25 = vld [vmem:[%s1459_s23 + $0xe8] sm:$0xff]  ;;  %v324_v28 = vmul.f32 %v1473_v6, %v1502_v18  ;;  %v1286_v29 = vld [vmem:[%s1928_s5 + $0x30] sm:$0xff]   ;;  %v361_v33 = vadd.f32 %v1482_v9, %v322_v23 }
  0x1a   : > { %1144 = vmatprep.subr.bf16.mxu0 %v1279_v2  ;;  %v1284_v26 = vld [vmem:[%s1926_s3] sm:$0xff]   ;;  %v1537_v31 = vld [vmem:[%s1459_s23 + $0xf0] sm:$0xff]  ;;  %v1540_v32 = vld [vmem:[%s1459_s23 + $0xf8] sm:$0xff]  ;;  %v346_v34 = vmul.f32 %v1473_v6, %v1508_v20  ;;  %v347_v35 = vmul.f32 %v1473_v6, %v1511_v21  ;;  %v362_v36 = vadd.f32 %v1482_v9, %v323_v27  ;;  %v348_v39 = vmul.f32 %v1473_v6, %v1519_v24 }
  0x1b   : > { %v391_v13 = vpack.c.bf16 %v360_v11, %v359_v10  ;;  %v363_v37 = vadd.f32 %v1482_v9, %v324_v28  ;;  %v1550_v38 = vld [vmem:[%s1459_s23 + $0x30] sm:$0xff]  ;;  %v349_v40 = vmul.f32 %v1473_v6, %v1522_v25  ;;  %1190 = vmatprep.subr.bf16.mxu1 %v1286_v29  ;;  %v1287_v41 = vld [vmem:[%s1928_s5 + $0x28] sm:$0xff]   ;;  %v364_v42 = vadd.f32 %v1482_v9, %v325_v30  ;;  %v1561_v43 = vld [vmem:[%s1459_s23 + $0x38] sm:$0xff] }
  0x1c   : > { %v1564_v44 = vadd.f32 %v1482_v9, %v346_v34  ;;  %v1567_v45 = vadd.f32 %v1482_v9, %v347_v35  ;;  %v350_v46 = vmul.f32 %v1473_v6, %v1537_v31  ;;  %v1572_v47 = vld [vmem:[%s1459_s23 + $0x40] sm:$0xff]  ;;  %v1575_v48 = vld [vmem:[%s1459_s23 + $0x48] sm:$0xff]  ;;  %v1578_v49 = vadd.f32 %v1482_v9, %v348_v39  ;;  %1191 = vmatpush3.bf16.msra.mxu1 %v1286_v29  ;;  %v1616_v8 = vld [vmem:[%s1459_s23 + $0x50] sm:$0xff] }
  0x1d   : > { %1145 = vmatpush3.bf16.msra.mxu0 %v1279_v2  ;;  %1156 = vmatprep.mubr.bf16.mxu0 %v391_v13  ;;  %v1581_v50 = vadd.f32 %v1482_v9, %v349_v40  ;;  %v351_v51 = vmul.f32 %v1473_v6, %v1540_v32  ;;  %v326_v52 = vmul.f32 %v1473_v6, %v1550_v38  ;;  %v1288_v59 = vld [vmem:[%s1928_s5 + $0x20] sm:$0xff]   ;;  %v1289_v2 = vld [vmem:[%s1928_s5 + $0x18] sm:$0xff]  }
  0x1e   : > { %1146 = vmatprep.subr.bf16.mxu0 %v1280_v3  ;;  %v404_v53 = vpack.c.bf16 %v1567_v45, %v1564_v44  ;;  %v1590_v54 = vadd.f32 %v1482_v9, %v350_v46  ;;  %v392_v55 = vpack.c.bf16 %v362_v36, %v361_v33  ;;  %v327_v56 = vmul.f32 %v1473_v6, %v1561_v43  ;;  %v1619_v10 = vld [vmem:[%s1459_s23 + $0x58] sm:$0xff]  ;;  %v1622_v11 = vld [vmem:[%s1459_s23 + $0x60] sm:$0xff]  ;;  %v1640_v33 = vld [vmem:[%s1459_s23 + $0x70] sm:$0xff] }
  0x1f   : > { %v405_v57 = vpack.c.bf16 %v1581_v50, %v1578_v49  ;;  %v1597_v58 = vadd.f32 %v1482_v9, %v351_v51  ;;  %1192 = vmatprep.subr.bf16.mxu1 %v1287_v41  ;;  %v393_v60 = vpack.c.bf16 %v364_v42, %v363_v37  ;;  %v328_v61 = vmul.f32 %v1473_v6, %v1572_v47  ;;  %v1643_v34 = vld [vmem:[%s1459_s23 + $0x78] sm:$0xff]  ;;  %v1646_v35 = vld [vmem:[%s1459_s23 + $0x80] sm:$0xff]  ;;  %v1649_v36 = vld [vmem:[%s1459_s23 + $0x88] sm:$0xff] }
  0x20   : > { %v329_v62 = vmul.f32 %v1473_v6, %v1575_v48  ;;  %1193 = vmatpush3.bf16.msra.mxu1 %v1287_v41  ;;  %v365_v0 = vadd.f32 %v1482_v9, %v326_v52  ;;  %v366_v1 = vadd.f32 %v1482_v9, %v327_v56  ;;  %v332_v23 = vmul.f32 %v1473_v6, %v1622_v11  ;;  %v1292_v44 = vld [vmem:[%s1928_s5] sm:$0xff]  }
  0x21   : > { %1147 = vmatpush3.bf16.msra.mxu0 %v1280_v3  ;;  %v406_v63 = vpack.c.bf16 %v1597_v58, %v1590_v54  ;;  %1194 = vmatprep.subr.bf16.mxu1 %v1288_v59  ;;  %v367_v3 = vadd.f32 %v1482_v9, %v328_v61  ;;  %v334_v39 = vmul.f32 %v1473_v6, %v1640_v33  ;;  %v1670_v61 = vld [vmem:[%s1459_s23 + $0xa0] sm:$0xff] }
  0x22   : > { %1148 = vmatprep.subr.bf16.mxu0 %v1281_v12  ;;  %v368_v7 = vadd.f32 %v1482_v9, %v329_v62  ;;  %v394_v13 = vpack.c.bf16 %v366_v1, %v365_v0  ;;  %v371_v29 = vadd.f32 %v1482_v9, %v332_v23  ;;  %v335_v40 = vmul.f32 %v1473_v6, %v1643_v34  ;;  %v1673_v62 = vld [vmem:[%s1459_s23 + $0xa8] sm:$0xff]  ;;  %v1732_v50 = vld [vmem:[%s1927_s4] ss:$0 sm:$0xff] }
  0x23   : > { %v336_v42 = vmul.f32 %v1473_v6, %v1646_v35  ;;  %v337_v46 = vmul.f32 %v1473_v6, %v1649_v36  ;;  %v373_v51 = vadd.f32 %v1482_v9, %v334_v39 }
  0x24   : > { %1195 = vmatpush3.bf16.msra.mxu1 %v1288_v59  ;;  %v395_v22 = vpack.c.bf16 %v368_v7, %v367_v3  ;;  %v374_v52 = vadd.f32 %v1482_v9, %v335_v40  ;;  %v1664_v59 = vld [vmem:[%s1459_s23 + $0x90] sm:$0xff]  ;;  %v340_v7 = vmul.f32 %v1473_v6, %v1670_v61 }
  0x25   : > { %1149 = vmatpush3.bf16.msra.mxu0 %v1281_v12  ;;  %v1625_v12 = vld [vmem:[%s1459_s23 + $0x68] sm:$0xff]  ;;  %1196 = vmatprep.subr.bf16.mxu1 %v1289_v2  ;;  %v376_v56 = vadd.f32 %v1482_v9, %v337_v46  ;;  %v338_v1 = vmul.f32 %v1473_v6, %v1664_v59 }
  0x26   : > { %1150 = vmatprep.subr.bf16.mxu0 %v1282_v14  ;;  %v398_v0 = vpack.c.bf16 %v374_v52, %v373_v51 }
  0x28   : > { %1197 = vmatpush3.bf16.msra.mxu1 %v1289_v2 }
  0x29   : > { %1151 = vmatpush3.bf16.msra.mxu0 %v1282_v14  ;;  %v330_v14 = vmul.f32 %v1473_v6, %v1616_v8 }
  0x2a   : > { %1152 = vmatprep.subr.bf16.mxu0 %v1283_v15 }
  0x2b   : > { %v369_v27 = vadd.f32 %v1482_v9, %v330_v14  ;;  %v377_v14 = vadd.f32 %v1482_v9, %v338_v1 }
  0x2d   : > { %1153 = vmatpush3.bf16.msra.mxu0 %v1283_v15  ;;  %v331_v15 = vmul.f32 %v1473_v6, %v1619_v10 }
  0x2e   : > { %1154 = vmatprep.subr.bf16.mxu0 %v1284_v26 }
  0x2f   : > { %v370_v28 = vadd.f32 %v1482_v9, %v331_v15 }
  0x31   : > { %1155 = vmatpush3.bf16.msra.mxu0 %v1284_v26  ;;  %v333_v26 = vmul.f32 %v1473_v6, %v1625_v12  ;;  %v396_v37 = vpack.c.bf16 %v370_v28, %v369_v27  ;;  %v1691_v27 = vld [vmem:[%s1459_s23 + $0xb8] sm:$0xff]  ;;  %v1694_v28 = vld [vmem:[%s1459_s23 + $0xc0] sm:$0xff] }
  0x32   : > { %v343_v39 = vmul.f32 %v1473_v6, %v1691_v27 }
  0x33   : > { %v372_v30 = vadd.f32 %v1482_v9, %v333_v26  ;;  %v1688_v26 = vld [vmem:[%s1459_s23 + $0xb0] sm:$0xff] }
  0x34   : > { %1157 = vmatmul.mubr.bf16.vlgmr.msra.gmra.mxu0 %v392_v55  ;;  %v375_v55 = vadd.f32 %v1482_v9, %v336_v42  ;;  %v382_v51 = vadd.f32 %v1482_v9, %v343_v39 }
  0x35   : > { %1160 = vmatprep.mubr.bf16.mxu0 %v393_v60  ;;  %v397_v41 = vpack.c.bf16 %v372_v30, %v371_v29  ;;  %v1667_v60 = vld [vmem:[%s1459_s23 + $0x98] sm:$0xff]  ;;  %v1697_v29 = vld [vmem:[%s1459_s23 + $0xc8] sm:$0xff]  ;;  %s997_s23 = sshll.u32 %s1777_s19, 4  ;;  %s1876_s23 = int_to_ptr.vmem [resolvable:$true] %s997_s23 }
  0x36   : > { %v339_v2 = vmul.f32 %v1473_v6, %v1667_v60  ;;  %v399_v3 = vpack.c.bf16 %v376_v56, %v375_v55  ;;  %v345_v42 = vmul.f32 %v1473_v6, %v1697_v29  ;;  %s1293_s8 = scalar_lea.vmem %s1876_s23, 4096  ;;  %p1300_p0 = scmp.lt.s32.totalorder %s1876_s23, %s1298_s13 }
  0x37   : > { %p1294_p11 = scmp.ne.s32.totalorder %s1876_s23, %s1293_s8  ;;  %p1301_p1 = scmp.lt.s32.totalorder %s1299_s14, %s1293_s8 }
  0x38   : > { %v378_v15 = vadd.f32 %v1482_v9, %v339_v2  ;;  %v384_v55 = vadd.f32 %v1482_v9, %v345_v42 }
  0x39   : > { %p1295_p12 = pnand %p1294_p11, %p1436_p5  ;;  %p1302_p2 = por %p1301_p1, %p1300_p0 }
  0x3a   : > { %v400_v30 = vpack.c.bf16 %v378_v15, %v377_v14 }
  0x3b   : > { %p1296_p13 = pneg %p1295_p12 }
  0x3c   : > { %1161 = vmatmul.mubr.bf16.gmra.mxu0 %v394_v13  ;;  %v341_v13 = vmul.f32 %v1473_v6, %v1673_v62 }
  0x3d   : > { %1164 = vmatprep.mubr.bf16.mxu0 %v395_v22  ;;  %v379_v22 = vadd.f32 %v1482_v9, %v340_v7  ;;  %p1303_p3 = pnand %p1302_p2, %p1296_p13 }
  0x3e   : > { %v380_v23 = vadd.f32 %v1482_v9, %v341_v13 }
  0x40   : > { %v401_v40 = vpack.c.bf16 %v380_v23, %v379_v22 }
  0x44   : > { %1165 = vmatmul.mubr.bf16.gmra.mxu0 %v396_v37  ;;  %v342_v37 = vmul.f32 %v1473_v6, %v1688_v26 }
  0x45   : > { %1168 = vmatprep.mubr.bf16.mxu0 %v397_v41  ;;  %v344_v41 = vmul.f32 %v1473_v6, %v1694_v28  ;;  %v1290_v6 = vld [vmem:[%s1928_s5 + $0x10] sm:$0xff]  }
  0x46   : > { %v381_v46 = vadd.f32 %v1482_v9, %v342_v37  ;;  %1198 = vmatprep.subr.bf16.mxu1 %v1290_v6 }
  0x47   : > { %v383_v52 = vadd.f32 %v1482_v9, %v344_v41  ;;  %1199 = vmatpush3.bf16.msra.mxu1 %v1290_v6  ;;  %v1291_v9 = vld [vmem:[%s1928_s5 + $0x8] sm:$0xff]  }
  0x48   : > { %v402_v56 = vpack.c.bf16 %v382_v51, %v381_v46  ;;  %1200 = vmatprep.subr.bf16.mxu1 %v1291_v9 }
  0x4b   : > { %1201 = vmatpush3.bf16.msra.mxu1 %v1291_v9 }
  0x4c   : > { %1169 = vmatmul.mubr.bf16.gmra.mxu0 %v398_v0  ;;  %v403_v0 = vpack.c.bf16 %v384_v55, %v383_v52  ;;  %1202 = vmatprep.subr.bf16.mxu1 %v1292_v44 }
  0x4d   : > { %1172 = vmatprep.mubr.bf16.mxu0 %v399_v3 }
  0x4f   : > { %1203 = vmatpush3.bf16.msra.mxu1 %v1292_v44 }
  0x54   : > { %1173 = vmatmul.mubr.bf16.gmra.mxu0 %v400_v30 }
  0x55   : > { %1176 = vmatprep.mubr.bf16.mxu0 %v401_v40 }
  0x5c   : > { %1177 = vmatmul.mubr.bf16.gmra.mxu0 %v402_v56 }
  0x5d   : > { %1180 = vmatprep.mubr.bf16.mxu0 %v403_v0 }
  0x64   : > { %1181 = vmatmul.mubr.bf16.gmra.mxu0 %v404_v53 }
  0x65   : > { %1184 = vmatprep.mubr.bf16.mxu0 %v405_v57 }
  0x6c   : > { %1185 = vmatmul.mubr.bf16.gmra.mxu0 %v406_v63 }
  0xf4   : > { %v1158_v45 = vpop.f32.mrf.mxu0 }
  0xf5   : > { %v521_v58 = vadd.f32 %v1158_v45, %v1732_v50 }
  0xf6   : > { %v512_v49 = vpop.f32.mrf.mxu0 }
  0xf7   : > { %v513_v54 = vadd.f32 %v1732_v50, %v512_v49  ;;  %v641_v14 = vmax.f32 %v521_v58, 0.0 }
  0xf8   : > { %v1159_v53 = vpop.f32.mrf.mxu0 }
  0xf9   : > { %v524_v57 = vadd.f32 %v1159_v53, %v1732_v50  ;;  %v639_v7 = vmax.f32 %v513_v54, 0.0 }
  0xfa   : > { %v515_v63 = vpop.f32.mrf.mxu0 }
  0xfb   : > { %v516_v1 = vadd.f32 %v1732_v50, %v515_v63  ;;  %v642_v2 = vmax.f32 %v524_v57, 0.0 }
  0xfc   : > { %v1162_v3 = vpop.f32.mrf.mxu0 }
  0xfd   : > { %v640_v13 = vmax.f32 %v516_v1, 0.0  ;;  %v672_v23 = vpack.c.bf16 %v642_v2, %v641_v14  ;;  %v537_v40 = vadd.f32 %v1162_v3, %v1732_v50 }
  0xfe   : > { %v528_v15 = vpop.f32.mrf.mxu0 }
  0xff   : > { %v671_v22 = vpack.c.bf16 %v640_v13, %v639_v7  ;;  %v529_v37 = vadd.f32 %v1732_v50, %v528_v15  ;;  %v645_v56 = vmax.f32 %v537_v40, 0.0 }
 0x100   : > { %v1163_v30 = vpop.f32.mrf.mxu0 }
 0x101   : > { %v540_v39 = vadd.f32 %v1163_v30, %v1732_v50  ;;  %1204 = vmatprep.mubr.bf16.mxu1 %v671_v22  ;;  %v643_v52 = vmax.f32 %v529_v37, 0.0 }
 0x102   : > { %v531_v41 = vpop.f32.mrf.mxu0  ;;  %1205 = vmatmul.mubr.bf16.vlgmr.msra.gmra.mxu1 %v672_v23 }
 0x103   : > { %v532_v42 = vadd.f32 %v1732_v50, %v531_v41  ;;  %v646_v46 = vmax.f32 %v540_v39, 0.0 }
 0x104   : > { %v1166_v51 = vpop.f32.mrf.mxu0 }
 0x105   : > { %v644_v55 = vmax.f32 %v532_v42, 0.0  ;;  %v674_v9 = vpack.c.bf16 %v646_v46, %v645_v56  ;;  %v553_v53 = vadd.f32 %v1166_v51, %v1732_v50 }
 0x106   : > { %v544_v0 = vpop.f32.mrf.mxu0 }
 0x107   : > { %v673_v6 = vpack.c.bf16 %v644_v55, %v643_v52  ;;  %v545_v45 = vadd.f32 %v1732_v50, %v544_v0  ;;  %v649_v3 = vmax.f32 %v553_v53, 0.0 }
 0x108   : > { %v1167_v44 = vpop.f32.mrf.mxu0 }
 0x109   : > { %v556_v49 = vadd.f32 %v1167_v44, %v1732_v50  ;;  %1208 = vmatprep.mubr.bf16.mxu1 %v673_v6  ;;  %v647_v1 = vmax.f32 %v545_v45, 0.0 }
 0x10a   : > { %v547_v54 = vpop.f32.mrf.mxu0  ;;  %1209 = vmatmul.mubr.bf16.gmra.mxu1 %v674_v9 }
 0x10b   : > { %v548_v57 = vadd.f32 %v1732_v50, %v547_v54  ;;  %v650_v58 = vmax.f32 %v556_v49, 0.0 }
 0x10c   : > { %v1170_v63 = vpop.f32.mrf.mxu0 }
 0x10d   : > { %v648_v2 = vmax.f32 %v548_v57, 0.0  ;;  %v676_v14 = vpack.c.bf16 %v650_v58, %v649_v3  ;;  %v569_v30 = vadd.f32 %v1170_v63, %v1732_v50 }
 0x10e   : > { %v560_v7 = vpop.f32.mrf.mxu0 }
 0x10f   : > { %v675_v13 = vpack.c.bf16 %v648_v2, %v647_v1  ;;  %v561_v22 = vadd.f32 %v1732_v50, %v560_v7  ;;  %v653_v51 = vmax.f32 %v569_v30, 0.0 }
 0x110   : > { %v1171_v15 = vpop.f32.mrf.mxu0 }
 0x111   : > { %v572_v23 = vadd.f32 %v1171_v15, %v1732_v50  ;;  %1212 = vmatprep.mubr.bf16.mxu1 %v675_v13  ;;  %v651_v42 = vmax.f32 %v561_v22, 0.0 }
 0x112   : > { %v563_v37 = vpop.f32.mrf.mxu0  ;;  %1213 = vmatmul.mubr.bf16.gmra.mxu1 %v676_v14 }
 0x113   : > { %v564_v39 = vadd.f32 %v1732_v50, %v563_v37  ;;  %v654_v40 = vmax.f32 %v572_v23, 0.0 }
 0x114   : > { %v1174_v41 = vpop.f32.mrf.mxu0 }
 0x115   : > { %v652_v46 = vmax.f32 %v564_v39, 0.0  ;;  %v678_v56 = vpack.c.bf16 %v654_v40, %v653_v51  ;;  %v585_v44 = vadd.f32 %v1174_v41, %v1732_v50 }
 0x116   : > { %v576_v52 = vpop.f32.mrf.mxu0 }
 0x117   : > { %v677_v55 = vpack.c.bf16 %v652_v46, %v651_v42  ;;  %v577_v6 = vadd.f32 %v1732_v50, %v576_v52  ;;  %v657_v63 = vmax.f32 %v585_v44, 0.0 }
 0x118   : > { %v1175_v0 = vpop.f32.mrf.mxu0 }
 0x119   : > { %v588_v9 = vadd.f32 %v1175_v0, %v1732_v50  ;;  %1216 = vmatprep.mubr.bf16.mxu1 %v677_v55  ;;  %v655_v57 = vmax.f32 %v577_v6, 0.0 }
 0x11a   : > { %v579_v45 = vpop.f32.mrf.mxu0  ;;  %1217 = vmatmul.mubr.bf16.gmra.mxu1 %v678_v56 }
 0x11b   : > { %v580_v49 = vadd.f32 %v1732_v50, %v579_v45  ;;  %v658_v53 = vmax.f32 %v588_v9, 0.0 }
 0x11c   : > { %v1178_v54 = vpop.f32.mrf.mxu0 }
 0x11d   : > { %v656_v58 = vmax.f32 %v580_v49, 0.0  ;;  %v680_v3 = vpack.c.bf16 %v658_v53, %v657_v63  ;;  %v601_v15 = vadd.f32 %v1178_v54, %v1732_v50 }
 0x11e   : > { %v592_v1 = vpop.f32.mrf.mxu0 }
 0x11f   : > { %v679_v2 = vpack.c.bf16 %v656_v58, %v655_v57  ;;  %v593_v13 = vadd.f32 %v1732_v50, %v592_v1  ;;  %v661_v41 = vmax.f32 %v601_v15, 0.0 }
 0x120   : > { %v1179_v7 = vpop.f32.mrf.mxu0 }
 0x121   : > { %v604_v14 = vadd.f32 %v1179_v7, %v1732_v50  ;;  %1220 = vmatprep.mubr.bf16.mxu1 %v679_v2  ;;  %v659_v39 = vmax.f32 %v593_v13, 0.0 }
 0x122   : > { %v595_v22 = vpop.f32.mrf.mxu0  ;;  %1221 = vmatmul.mubr.bf16.gmra.mxu1 %v680_v3 }
 0x123   : > { %v596_v23 = vadd.f32 %v1732_v50, %v595_v22  ;;  %v662_v30 = vmax.f32 %v604_v14, 0.0 }
 0x124   : > { %v1182_v37 = vpop.f32.mrf.mxu0 }
 0x125   : > { %v660_v40 = vmax.f32 %v596_v23, 0.0  ;;  %v682_v51 = vpack.c.bf16 %v662_v30, %v661_v41  ;;  %v617_v0 = vadd.f32 %v1182_v37, %v1732_v50 }
 0x126   : > { %v608_v42 = vpop.f32.mrf.mxu0 }
 0x127   : > { %v681_v46 = vpack.c.bf16 %v660_v40, %v659_v39  ;;  %v609_v55 = vadd.f32 %v1732_v50, %v608_v42  ;;  %v665_v54 = vmax.f32 %v617_v0, 0.0  ;;  %v1770_v40 = vld [vmem:[%s1929_s6] ss:$0 sm:$0xff] }
 0x128   : > { %v1183_v52 = vpop.f32.mrf.mxu0 }
 0x129   : > { %v620_v56 = vadd.f32 %v1183_v52, %v1732_v50  ;;  %1224 = vmatprep.mubr.bf16.mxu1 %v681_v46  ;;  %v663_v49 = vmax.f32 %v609_v55, 0.0 }
 0x12a   : > { %v611_v6 = vpop.f32.mrf.mxu0  ;;  %1225 = vmatmul.mubr.bf16.gmra.mxu1 %v682_v51 }
 0x12b   : > { %v612_v9 = vadd.f32 %v1732_v50, %v611_v6  ;;  %v666_v44 = vmax.f32 %v620_v56, 0.0 }
 0x12c   : > { %v1186_v45 = vpop.f32.mrf.mxu0 }
 0x12d   : > { %v664_v53 = vmax.f32 %v612_v9, 0.0  ;;  %v684_v63 = vpack.c.bf16 %v666_v44, %v665_v54  ;;  %v633_v7 = vadd.f32 %v1186_v45, %v1732_v50 }
 0x12e   : > { %v624_v57 = vpop.f32.mrf.mxu0 }
 0x12f   : > { %v683_v58 = vpack.c.bf16 %v664_v53, %v663_v49  ;;  %v625_v2 = vadd.f32 %v1732_v50, %v624_v57  ;;  %v669_v30 = vmax.f32 %v633_v7, 0.0 }
 0x130   : > { %v1187_v1 = vpop.f32.mrf.mxu0 }
 0x131   : > { %v636_v3 = vadd.f32 %v1187_v1, %v1732_v50  ;;  %1228 = vmatprep.mubr.bf16.mxu1 %v683_v58  ;;  %v667_v22 = vmax.f32 %v625_v2, 0.0 }
 0x132   : > { %v627_v13 = vpop.f32.mrf.mxu0  ;;  %1229 = vmatmul.mubr.bf16.gmra.mxu1 %v684_v63 }
 0x133   : > { %v628_v14 = vadd.f32 %v1732_v50, %v627_v13  ;;  %v670_v15 = vmax.f32 %v636_v3, 0.0 }
 0x135   : > { %v668_v23 = vmax.f32 %v628_v14, 0.0  ;;  %v686_v39 = vpack.c.bf16 %v670_v15, %v669_v30 }
 0x137   : > { %v685_v37 = vpack.c.bf16 %v668_v23, %v667_v22 }
 0x139   : > { %1232 = vmatprep.mubr.bf16.mxu1 %v685_v37 }
 0x13a   : > { %1233 = vmatmul.mubr.bf16.gmra.mxu1 %v686_v39 }
 0x1c2   : > { %v1206_v41 = vpop.f32.mrf.mxu1 }
 0x1c3   : > { %v801_v42 = vadd.f32 %v1206_v41, %v1770_v40 }
 0x1c4   : > { %v792_v50 = vpop.f32.mrf.mxu1 }
 0x1c5   : > { %v921_v46 = vadd.f32 %v801_v42, %v1496_v16  ;;  %v793_v51 = vadd.f32 %v1770_v40, %v792_v50 }
 0x1c6   : > { %v1207_v52 = vpop.f32.mrf.mxu1 }
 0x1c7   : > { %953 = vst [vmem:[%s1777_s19 + $0x10] sm:$0xff] %v921_v46  ;;  %v919_v55 = vadd.f32 %v793_v51, %v1465_v4  ;;  %v804_v56 = vadd.f32 %v1207_v52, %v1770_v40 }
 0x1c8   : > { %v795_v0 = vpop.f32.mrf.mxu1 }
 0x1c9   : > { %951 = vst [vmem:[%s1777_s19] sm:$0xff] %v919_v55  ;;  %v922_v16 = vadd.f32 %v804_v56, %v1499_v17  ;;  %v796_v6 = vadd.f32 %v1770_v40, %v795_v0 }
 0x1ca   : > { %v1210_v9 = vpop.f32.mrf.mxu1 }
 0x1cb   : > { %954 = vst [vmem:[%s1777_s19 + $0x18] sm:$0xff] %v922_v16  ;;  %v920_v44 = vadd.f32 %v796_v6, %v1468_v5  ;;  %v817_v45 = vadd.f32 %v1210_v9, %v1770_v40 }
 0x1cc   : > { %v808_v49 = vpop.f32.mrf.mxu1 }
 0x1cd   : > { %952 = vst [vmem:[%s1777_s19 + $0x8] sm:$0xff] %v920_v44  ;;  %v925_v4 = vadd.f32 %v817_v45, %v1550_v38  ;;  %v809_v53 = vadd.f32 %v1770_v40, %v808_v49 }
 0x1ce   : > { %v1211_v54 = vpop.f32.mrf.mxu1 }
 0x1cf   : > { %957 = vst [vmem:[%s1777_s19 + $0x30] sm:$0xff] %v925_v4  ;;  %v923_v17 = vadd.f32 %v809_v53, %v1502_v18  ;;  %v820_v57 = vadd.f32 %v1211_v54, %v1770_v40 }
 0x1d0   : > { %v811_v58 = vpop.f32.mrf.mxu1 }
 0x1d1   : > { %955 = vst [vmem:[%s1777_s19 + $0x20] sm:$0xff] %v923_v17  ;;  %v926_v5 = vadd.f32 %v820_v57, %v1561_v43  ;;  %v812_v63 = vadd.f32 %v1770_v40, %v811_v58 }
 0x1d2   : > { %v1214_v1 = vpop.f32.mrf.mxu1 }
 0x1d3   : > { %958 = vst [vmem:[%s1777_s19 + $0x38] sm:$0xff] %v926_v5  ;;  %v924_v38 = vadd.f32 %v812_v63, %v1505_v19  ;;  %v833_v2 = vadd.f32 %v1214_v1, %v1770_v40 }
 0x1d4   : > { %v824_v3 = vpop.f32.mrf.mxu1 }
 0x1d5   : > { %956 = vst [vmem:[%s1777_s19 + $0x28] sm:$0xff] %v924_v38  ;;  %v929_v18 = vadd.f32 %v833_v2, %v1616_v8  ;;  %v825_v7 = vadd.f32 %v1770_v40, %v824_v3 }
 0x1d6   : > { %v1215_v13 = vpop.f32.mrf.mxu1 }
 0x1d7   : > { %961 = vst [vmem:[%s1777_s19 + $0x50] sm:$0xff] %v929_v18  ;;  %v927_v43 = vadd.f32 %v825_v7, %v1572_v47  ;;  %v836_v14 = vadd.f32 %v1215_v13, %v1770_v40 }
 0x1d8   : > { %v827_v15 = vpop.f32.mrf.mxu1 }
 0x1d9   : > { %959 = vst [vmem:[%s1777_s19 + $0x40] sm:$0xff] %v927_v43  ;;  %v930_v19 = vadd.f32 %v836_v14, %v1619_v10  ;;  %v828_v22 = vadd.f32 %v1770_v40, %v827_v15 }
 0x1da   : > { %v1218_v23 = vpop.f32.mrf.mxu1 }
 0x1db   : > { %962 = vst [vmem:[%s1777_s19 + $0x58] sm:$0xff] %v930_v19  ;;  %v928_v8 = vadd.f32 %v828_v22, %v1575_v48  ;;  %v849_v30 = vadd.f32 %v1218_v23, %v1770_v40 }
 0x1dc   : > { %v840_v37 = vpop.f32.mrf.mxu1 }
 0x1dd   : > { %960 = vst [vmem:[%s1777_s19 + $0x48] sm:$0xff] %v928_v8  ;;  %v933_v47 = vadd.f32 %v849_v30, %v1640_v33  ;;  %v841_v39 = vadd.f32 %v1770_v40, %v840_v37 }
 0x1de   : > { %v1219_v41 = vpop.f32.mrf.mxu1 }
 0x1df   : > { %965 = vst [vmem:[%s1777_s19 + $0x70] sm:$0xff] %v933_v47  ;;  %v931_v10 = vadd.f32 %v841_v39, %v1622_v11  ;;  %v852_v42 = vadd.f32 %v1219_v41, %v1770_v40 }
 0x1e0   : > { %v843_v50 = vpop.f32.mrf.mxu1 }
 0x1e1   : > { %963 = vst [vmem:[%s1777_s19 + $0x60] sm:$0xff] %v931_v10  ;;  %v934_v48 = vadd.f32 %v852_v42, %v1643_v34  ;;  %v844_v46 = vadd.f32 %v1770_v40, %v843_v50 }
 0x1e2   : > { %v1222_v51 = vpop.f32.mrf.mxu1 }
 0x1e3   : > { %966 = vst [vmem:[%s1777_s19 + $0x78] sm:$0xff] %v934_v48  ;;  %v932_v33 = vadd.f32 %v844_v46, %v1625_v12  ;;  %v865_v52 = vadd.f32 %v1222_v51, %v1770_v40 }
 0x1e4   : > { %v856_v55 = vpop.f32.mrf.mxu1 }
 0x1e5   : > { %964 = vst [vmem:[%s1777_s19 + $0x68] sm:$0xff] %v932_v33  ;;  %v937_v11 = vadd.f32 %v865_v52, %v1664_v59  ;;  %v857_v56 = vadd.f32 %v1770_v40, %v856_v55 }
 0x1e6   : > { %v1223_v0 = vpop.f32.mrf.mxu1 }
 0x1e7   : > { %969 = vst [vmem:[%s1777_s19 + $0x90] sm:$0xff] %v937_v11  ;;  %v935_v34 = vadd.f32 %v857_v56, %v1646_v35  ;;  %v868_v16 = vadd.f32 %v1223_v0, %v1770_v40 }
 0x1e8   : > { %v859_v6 = vpop.f32.mrf.mxu1 }
 0x1e9   : > { %967 = vst [vmem:[%s1777_s19 + $0x80] sm:$0xff] %v935_v34  ;;  %v938_v12 = vadd.f32 %v868_v16, %v1667_v60  ;;  %v860_v9 = vadd.f32 %v1770_v40, %v859_v6 }
 0x1ea   : > { %v1226_v44 = vpop.f32.mrf.mxu1 }
 0x1eb   : > { %970 = vst [vmem:[%s1777_s19 + $0x98] sm:$0xff] %v938_v12  ;;  %v936_v59 = vadd.f32 %v860_v9, %v1649_v36  ;;  %v881_v45 = vadd.f32 %v1226_v44, %v1770_v40 }
 0x1ec   : > { %v872_v49 = vpop.f32.mrf.mxu1 }
 0x1ed   : > { %968 = vst [vmem:[%s1777_s19 + $0x88] sm:$0xff] %v936_v59  ;;  %v941_v35 = vadd.f32 %v881_v45, %v1688_v26  ;;  %v873_v4 = vadd.f32 %v1770_v40, %v872_v49 }
 0x1ee   : > { %v1227_v53 = vpop.f32.mrf.mxu1 }
 0x1ef   : > { %973 = vst [vmem:[%s1777_s19 + $0xb0] sm:$0xff] %v941_v35  ;;  %v939_v60 = vadd.f32 %v873_v4, %v1670_v61  ;;  %v884_v54 = vadd.f32 %v1227_v53, %v1770_v40 }
 0x1f0   : > { %v875_v17 = vpop.f32.mrf.mxu1 }
 0x1f1   : > { %971 = vst [vmem:[%s1777_s19 + $0xa0] sm:$0xff] %v939_v60  ;;  %v942_v36 = vadd.f32 %v884_v54, %v1691_v27  ;;  %v876_v57 = vadd.f32 %v1770_v40, %v875_v17 }
 0x1f2   : > { %v1230_v58 = vpop.f32.mrf.mxu1 }
 0x1f3   : > { %974 = vst [vmem:[%s1777_s19 + $0xb8] sm:$0xff] %v942_v36  ;;  %v940_v26 = vadd.f32 %v876_v57, %v1673_v62  ;;  %v897_v5 = vadd.f32 %v1230_v58, %v1770_v40 }
 0x1f4   : > { %v888_v63 = vpop.f32.mrf.mxu1 }
 0x1f5   : > { %972 = vst [vmem:[%s1777_s19 + $0xa8] sm:$0xff] %v940_v26  ;;  %v945_v61 = vadd.f32 %v897_v5, %v1508_v20  ;;  %v889_v1 = vadd.f32 %v1770_v40, %v888_v63 }
 0x1f6   : > { %v1231_v38 = vpop.f32.mrf.mxu1 }
 0x1f7   : > { %977 = vst [vmem:[%s1777_s19 + $0xd0] sm:$0xff] %v945_v61  ;;  %v943_v27 = vadd.f32 %v889_v1, %v1694_v28  ;;  %v900_v2 = vadd.f32 %v1231_v38, %v1770_v40 }
 0x1f8   : > { %v891_v3 = vpop.f32.mrf.mxu1 }
 0x1f9   : > { %975 = vst [vmem:[%s1777_s19 + $0xc0] sm:$0xff] %v943_v27  ;;  %v946_v62 = vadd.f32 %v900_v2, %v1511_v21  ;;  %v892_v18 = vadd.f32 %v1770_v40, %v891_v3 }
 0x1fa   : > { %v1234_v7 = vpop.f32.mrf.mxu1 }
 0x1fb   : > { %978 = vst [vmem:[%s1777_s19 + $0xd8] sm:$0xff] %v946_v62  ;;  %v944_v20 = vadd.f32 %v892_v18, %v1697_v29  ;;  %v913_v13 = vadd.f32 %v1234_v7, %v1770_v40 }
 0x1fc   : > { %v904_v43 = vpop.f32.mrf.mxu1 }
 0x1fd   : > { %976 = vst [vmem:[%s1777_s19 + $0xc8] sm:$0xff] %v944_v20  ;;  %v949_v28 = vadd.f32 %v913_v13, %v1537_v31  ;;  %v905_v14 = vadd.f32 %v1770_v40, %v904_v43 }
 0x1fe   : > { %v1235_v15 = vpop.f32.mrf.mxu1 }
 0x1ff   : > { %981 = vst [vmem:[%s1777_s19 + $0xf0] sm:$0xff] %v949_v28  ;;  %v947_v21 = vadd.f32 %v905_v14, %v1519_v24  ;;  %v916_v19 = vadd.f32 %v1235_v15, %v1770_v40 }
 0x200   : > { %v907_v29 = vpop.f32.mrf.mxu1 }
 0x201   : > { %979 = vst [vmem:[%s1777_s19 + $0xe0] sm:$0xff] %v947_v21  ;;  %v950_v22 = vadd.f32 %v916_v19, %v1540_v32  ;;  %v908_v23 = vadd.f32 %v1770_v40, %v907_v29 }
 0x203   : > { %982 = vst [vmem:[%s1777_s19 + $0xf8] sm:$0xff] %v950_v22  ;;  %v948_v24 = vadd.f32 %v908_v23, %v1522_v25 }
 0x205   : > { %980 = vst [vmem:[%s1777_s19 + $0xe8] sm:$0xff] %v948_v24 }
 0x206   : > { %1306 = shalt.err (!%p1303_p3)
}
 0x207   : > { %s1307_s15 = scalar_lea.hbm %s1874_s29, 4096  ;;  %s1311_s18 = scalar_lea.hbm %s1930_s7, 8192 }
 0x208   : > { %p1308_p4 = scmp.ne.s32.totalorder %s1874_s29, %s1307_s15  ;;  %p1312_p9 = scmp.lt.s32.totalorder %s1874_s29, %s1930_s7 }
 0x209   : > { %p1313_p10 = scmp.lt.s32.totalorder %s1311_s18, %s1307_s15 }
 0x20a   : > { %p1309_p7 = pnand %p1308_p4, %p1436_p5 }
 0x20b   : > { %p1314_p11 = por %p1313_p10, %p1312_p9 }
 0x20c   : > { %p1310_p8 = pneg %p1309_p7 }
 0x20e   : > { %p1315_p12 = pnand %p1314_p11, %p1310_p8 }
 0x210   : > { %1318 = shalt.err (!%p1315_p12)
}
 0x211   : > { %s1356_s21 = smov 128   ;;  %s1357_s22 = smov 8  }
 0x212   : > { %1236 = dma.vmem_to_hbm [thread:$0]  (%p1436_p5), %s1876_s23, 4096, %s1874_s29, %s1883_s28, %s1356_s21, %s1356_s21, %s1357_s22  }
 0x213 PF: > { %p1242_p13 = scmp.ge.s32.totalorder %s1353_s27, 2  ;;  %s1012_s8 = sand.u32 1, %s1341_s24  }
 0x214   : > { %s1013_s9 = scalar_lea.sflag [#allocation3], %s1012_s8 }
 0x215   : > { %p1239_p0 = pnand %p1242_p13, %p1440_p6 }
 0x217   : > { %p1240_p1 = pneg %p1239_p0 }
 0x219   : > { %1336 = dma.done.wait (%p1240_p1), %s1013_s9, 4096  }
 0x21a   : > { %1338 = vsyncadd (%p1240_p1), %s1013_s9, 4294963200  ;;  %p17_p2 = scmp.ge.s32.totalorder %s1423_s30, 4   ;;  %s1933_s24 = smov %s1345_s25 }
 0x21b   : > { %s1934_s25 = smov %s1349_s26  ;;  %s1935_s26 = smov %s1434_s10 }
 0x21c   : > { %s1936_s27 = smov %s1423_s30  ;;  %19 = sbr.rel (!%p17_p2) target bundleno = 3 (0x3), region = 83 }
 0x221   :  { %1018 = vsyncpa [#allocation3], 1 }
 0x222   :  { %1020 = vsyncpa [#allocation3 + $0x1], 1 }

// kernel: pdca_forward.5
= control target key start
LH: loop header
LB: loop body
LE: loop exit
PB: predicated region body
PF: predicated region fallthrough
CT: control target
= control target key end

     0   :  { %s5770_s24 = smov 0   ;;  %s7745_s0 = inlined_call_operand.vmem [shape: bf16[2,342,128], index: 0, kind: input, shape index: {}]   ;;  %s7746_s1 = inlined_call_operand.vmem [shape: f32[1,128], index: 1, kind: input, shape index: {}]   ;;  %s7747_s2 = inlined_call_operand.vmem [shape: f32[1,128], index: 2, kind: input, shape index: {}]   ;;  %s7748_s3 = inlined_call_operand.vmem [shape: f32[342,1], index: 3, kind: input, shape index: {}]   ;;  %s7749_s4 = inlined_call_operand.vmem [shape: f32[288,1], index: 4, kind: input, shape index: {}]   ;;  %s7750_s5 = inlined_call_operand.vmem [shape: bf16[9,128,128], index: 5, kind: input, shape index: {}]   ;;  %s7751_s6 = inlined_call_operand.vmem [shape: bf16[576,128], index: 6, kind: output, shape index: {0}]   ;;  %s7752_s7 = inlined_call_operand.vmem [shape: f32[16,128], index: 7, kind: output, shape index: {1}]  }
   0x1 LB: > { %s5776_s25 = sadd.s32 4294967295, %s5726_s24   ;;  %p4424_p0 = scmp.ge.s32.totalorder %s5726_s24, 1  ;;  %s5726_s24 = sphi %s5770_s24, %s18_s24  }
   0x2   : > { %p240_p1 = scmp.lt.s32.totalorder %s5726_s24, 3 }
   0x4   : > { %p241_p2 = pnand %p4424_p0, %p240_p1 }
   0x6   : > { %244 = sbr.rel (%p241_p2) target bundleno = 735 (0x2df), region = 44 }
   0xb   : > { %v492_v0 = vld [vmem:[%s7748_s3 + $0x90] sm:$0xff]  ;;  %v490_v1 = vld [vmem:[%s7748_s3 + $0x80] sm:$0xff]  ;;  %v5728_v2 = vmov 0   ;;  %v493_v3 = vld [vmem:[%s7748_s3 + $0x98] sm:$0xff]  ;;  %p276_p3 = scmp.lt.s32.totalorder %s5776_s25, 1  ;;  %vm2470_vm2 = vcmask 1045504  }
   0xc   : > { %5645 = vset.pattern.permute.xlu1 %v5728_v2  ;;  %5644 = vset.pattern.permute.xlu0 %v5728_v2  ;;  %v491_v4 = vld [vmem:[%s7748_s3 + $0x88] sm:$0xff]  ;;  %v494_v6 = vld [vmem:[%s7748_s3 + $0xa0] sm:$0xff]  ;;  %v497_v7 = vld [vmem:[%s7748_s3 + $0xb8] sm:$0xff]  ;;  %vm822_vm0 = vsmask.f32 7424  ;;  %vm1475_vm3 = vcmask 1046528  }
   0xd   : > { %608 = vperm.xlu1 %5645, %v492_v0   ;;  %598 = vperm.xlu0 %5644, %v490_v1   ;;  %v495_v5 = vld [vmem:[%s7748_s3 + $0xa8] sm:$0xff]  ;;  %v496_v8 = vld [vmem:[%s7748_s3 + $0xb0] sm:$0xff]  ;;  %v474_v10 = vld [vmem:[%s7748_s3] sm:$0xff]  ;;  %s5884_s8 = scalar_select %p276_p3, %s5776_s25, 1  ;;  %vm2091_vm1 = vsmask.f32 6400 }
   0xe   : > { %v475_v9 = vld [vmem:[%s7748_s3 + $0x8] sm:$0xff]  ;;  %v477_v11 = vld [vmem:[%s7748_s3 + $0x18] sm:$0xff]  ;;  %v476_v12 = vld [vmem:[%s7748_s3 + $0x10] sm:$0xff]  ;;  %vm3463_vm4 = vcmask 1044480   ;;  %vm3086_vm5 = vsmask.f32 5376 }
   0xf   : > { %v5646_v13 = vld [vmem:[%s7750_s5 + $0x78] sm:$0xff]   ;;  %v5647_v14 = vld [vmem:[%s7750_s5 + $0x70] sm:$0xff]   ;;  %v499_v15 = vld [vmem:[%s7748_s3 + $0xc8] sm:$0xff]  ;;  %s5633_s15 = smul.u32 172, %s5884_s8  ;;  %s4427_s18 = sshll.u32 %s5884_s8, 3 }
  0x10   : > { %5617 = vmatprep.subr.bf16.mxu1 %v5646_v13  ;;  %5149 = vmatprep.subr.bf16.mxu0 %v5646_v13  ;;  %v498_v16 = vld [vmem:[%s7748_s3 + $0xc0] sm:$0xff]  ;;  %v5648_v17 = vld [vmem:[%s7750_s5 + $0x68] sm:$0xff]   ;;  %v501_v21 = vld [vmem:[%s7748_s3 + $0xd8] sm:$0xff]  ;;  %s7531_s21 = scalar_lea.vmem %s7752_s7, %s4427_s18  ;;  %s281_s8 = smul.u32 36, %s5776_s25 }
  0x11   : > { %613 = vperm.xlu1 %5645, %v493_v3   ;;  %603 = vperm.xlu0 %5644, %v491_v4   ;;  %v479_v18 = vld [vmem:[%s7748_s3 + $0x28] sm:$0xff]  ;;  %v478_v19 = vld [vmem:[%s7748_s3 + $0x20] sm:$0xff]  ;;  %v500_v22 = vld [vmem:[%s7748_s3 + $0xd0] sm:$0xff]  ;;  %s5920_s30 = scalar_lea.vmem %s7745_s0, %s5633_s15 }
  0x12   : > { %5625 = vmatpush3.bf16.msra.mxu1 %v5646_v13  ;;  %5150 = vmatpush3.bf16.msra.mxu0 %v5646_v13  ;;  %v5649_v20 = vld [vmem:[%s7750_s5 + $0x60] sm:$0xff]   ;;  %v5650_v23 = vld [vmem:[%s7750_s5 + $0x58] sm:$0xff]   ;;  %v480_v25 = vld [vmem:[%s7748_s3 + $0x30] sm:$0xff]  ;;  %p282_p4 = scmp.lt.s32.totalorder %s281_s8, 71 }
  0x13   : > { %5618 = vmatprep.subr.bf16.mxu1 %v5647_v14  ;;  %5151 = vmatprep.subr.bf16.mxu0 %v5647_v14  ;;  %v481_v24 = vld [vmem:[%s7748_s3 + $0x38] sm:$0xff]  ;;  %v5651_v26 = vld [vmem:[%s7750_s5 + $0x50] sm:$0xff]   ;;  %v503_v27 = vld [vmem:[%s7748_s3 + $0xe8] sm:$0xff] }
  0x14   : > { %v502_v28 = vld [vmem:[%s7748_s3 + $0xe0] sm:$0xff]  ;;  %v5652_v29 = vld [vmem:[%s7750_s5 + $0x48] sm:$0xff]   ;;  %v505_v33 = vld [vmem:[%s7748_s3 + $0xf8] sm:$0xff]  ;;  %s7964_s8 = smov (!%p282_p4, %s281_s8), 71 }
  0x15   : > { %623 = vperm.xlu1 %5645, %v495_v5   ;;  %618 = vperm.xlu0 %5644, %v494_v6   ;;  %v483_v30 = vld [vmem:[%s7748_s3 + $0x48] sm:$0xff]  ;;  %v482_v31 = vld [vmem:[%s7748_s3 + $0x40] sm:$0xff]  ;;  %v504_v34 = vld [vmem:[%s7748_s3 + $0xf0] sm:$0xff]  ;;  %s4426_s25 = sshll.u32 %s7964_s8, 2 }
  0x16   : > { %5626 = vmatpush3.bf16.msra.mxu1 %v5647_v14  ;;  %5152 = vmatpush3.bf16.msra.mxu0 %v5647_v14  ;;  %v5653_v32 = vld [vmem:[%s7750_s5 + $0x40] sm:$0xff]   ;;  %v5889_v35 = vld [vmem:[%s7750_s5 + $0x38] sm:$0xff]   ;;  %v484_v37 = vld [vmem:[%s7748_s3 + $0x50] sm:$0xff]  ;;  %s7641_s26 = scalar_lea.vmem %s7751_s6, %s4426_s25 }
  0x17   : > { %5619 = vmatprep.subr.bf16.mxu1 %v5648_v17  ;;  %5153 = vmatprep.subr.bf16.mxu0 %v5648_v17  ;;  %v485_v36 = vld [vmem:[%s7748_s3 + $0x58] sm:$0xff]  ;;  %v507_v39 = vld [vmem:[%s7748_s3 + $0x108] sm:$0xff]  ;;  %v506_v40 = vld [vmem:[%s7748_s3 + $0x100] sm:$0xff] }
  0x18   : > { %v5902_v38 = vld [vmem:[%s7750_s5 + $0xb8] sm:$0xff]   ;;  %v487_v41 = vld [vmem:[%s7748_s3 + $0x68] sm:$0xff]  ;;  %v486_v42 = vld [vmem:[%s7748_s3 + $0x60] sm:$0xff] }
  0x19   : > { %633 = vperm.xlu1 %5645, %v497_v7   ;;  %628 = vperm.xlu0 %5644, %v496_v8   ;;  %v5925_v43 = vld [vmem:[%s7746_s1] ss:$0 sm:$0xff]  ;;  %v4884_v44 = vld [vmem:[%s5920_s30 + $0x38] sm:$0xff]   ;;  %v508_v46 = vld [vmem:[%s7748_s3 + $0x110] sm:$0xff] }
  0x1a   : > { %5627 = vmatpush3.bf16.msra.mxu1 %v5648_v17  ;;  %5154 = vmatpush3.bf16.msra.mxu0 %v5648_v17  ;;  %v509_v45 = vld [vmem:[%s7748_s3 + $0x118] sm:$0xff]  ;;  %v4735_v47 = vunpack.c.h.bf16 %v4884_v44  ;;  %v4734_v48 = vunpack.c.l.bf16 %v4884_v44  ;;  %v5939_v51 = vld [vmem:[%s7747_s2] ss:$0 sm:$0xff]  ;;  %v4895_v52 = vld [vmem:[%s5920_s30 + $0x90] sm:$0xff]  }
  0x1b   : > { %5620 = vmatprep.subr.bf16.mxu1 %v5649_v20  ;;  %5155 = vmatprep.subr.bf16.mxu0 %v5649_v20  ;;  %v489_v53 = vld [vmem:[%s7748_s3 + $0x78] sm:$0xff]  ;;  %v488_v54 = vld [vmem:[%s7748_s3 + $0x70] sm:$0xff]  ;;  %v4779_v57 = vunpack.c.h.bf16 %v4895_v52  ;;  %v4778_v58 = vunpack.c.l.bf16 %v4895_v52  ;;  %v511_v62 = vld [vmem:[%s7748_s3 + $0x128] sm:$0xff] }
  0x1c   : > { %v398_v49 = vmul.f32 %v4735_v47, %v5925_v43  ;;  %v397_v50 = vmul.f32 %v4734_v48, %v5925_v43  ;;  %v4896_v61 = vld [vmem:[%s5920_s30 + $0x98] sm:$0xff]   ;;  %v510_v63 = vld [vmem:[%s7748_s3 + $0x120] sm:$0xff]  ;;  %v512_v8 = vld [vmem:[%s7748_s3 + $0x130] sm:$0xff] }
  0x1d   : > { %523 = vperm.xlu1 %5645, %v475_v9   ;;  %518 = vperm.xlu0 %5644, %v474_v10   ;;  %v420_v59 = vmul.f32 %v4779_v57, %v5925_v43  ;;  %v419_v60 = vmul.f32 %v4778_v58, %v5925_v43  ;;  %v4783_v2 = vunpack.c.h.bf16 %v4896_v61  ;;  %v4782_v3 = vunpack.c.l.bf16 %v4896_v61  ;;  %v4897_v6 = vld [vmem:[%s5920_s30 + $0xa0] sm:$0xff]   ;;  %v513_v7 = vld [vmem:[%s7748_s3 + $0x138] sm:$0xff]  ;;  %v3978_v48 = vld [vmem:[%s7749_s4 + $0x90] sm:$0xff] }
  0x1e   : > { %5628 = vmatpush3.bf16.msra.mxu1 %v5649_v20  ;;  %5156 = vmatpush3.bf16.msra.mxu0 %v5649_v20  ;;  %v5949_v55 = vadd.f32 %v5939_v51, %v398_v49  ;;  %v5952_v56 = vadd.f32 %v5939_v51, %v397_v50  ;;  %v3960_v20 = vld [vmem:[%s7749_s4] sm:$0xff]  ;;  %v3979_v47 = vld [vmem:[%s7749_s4 + $0x98] sm:$0xff]  ;;  %v3981_v61 = vld [vmem:[%s7749_s4 + $0xa8] sm:$0xff] }
  0x1f   : > { %5621 = vmatprep.subr.bf16.mxu1 %v5650_v23  ;;  %5157 = vmatprep.subr.bf16.mxu0 %v5650_v23  ;;  %v5964_v0 = vadd.f32 %v5939_v51, %v420_v59  ;;  %v5967_v1 = vadd.f32 %v5939_v51, %v419_v60  ;;  %v422_v4 = vmul.f32 %v4783_v2, %v5925_v43  ;;  %v4888_v52 = vld [vmem:[%s5920_s30 + $0x58] sm:$0xff]   ;;  %v4878_v60 = vld [vmem:[%s5920_s30 + $0x8] sm:$0xff]  }
  0x20   : > { %v421_v5 = vmul.f32 %v4782_v3, %v5925_v43  ;;  %v4750_v2 = vunpack.c.l.bf16 %v4888_v52 }
  0x21   : > { %533 = vperm.xlu1 %5645, %v477_v11   ;;  %528 = vperm.xlu0 %5644, %v476_v12   ;;  %v5979_v9 = vadd.f32 %v5939_v51, %v422_v4  ;;  %v4787_v11 = vunpack.c.h.bf16 %v4897_v6  ;;  %v4786_v12 = vunpack.c.l.bf16 %v4897_v6  ;;  %v4889_v6 = vld [vmem:[%s5920_s30 + $0x60] sm:$0xff]  }
  0x22   : > { %5629 = vmatpush3.bf16.msra.mxu1 %v5650_v23  ;;  %5158 = vmatpush3.bf16.msra.mxu0 %v5650_v23  ;;  %v5982_v10 = vadd.f32 %v5939_v51, %v421_v5  ;;  %v3965_v23 = vld [vmem:[%s7749_s4 + $0x28] sm:$0xff] }
  0x23   : > { %5622 = vmatprep.subr.bf16.mxu1 %v5651_v26  ;;  %5159 = vmatprep.subr.bf16.mxu0 %v5651_v26  ;;  %v424_v13 = vmul.f32 %v4787_v11, %v5925_v43  ;;  %v423_v14 = vmul.f32 %v4786_v12, %v5925_v43 }
  0x25   : > { %643 = vperm.xlu1 %5645, %v499_v15   ;;  %638 = vperm.xlu0 %5644, %v498_v16   ;;  %v515_v15 = vld [vmem:[%s7748_s3 + $0x148] sm:$0xff]  ;;  %v514_v16 = vld [vmem:[%s7748_s3 + $0x140] sm:$0xff]  ;;  %v5993_v17 = vadd.f32 %v5939_v51, %v424_v13  ;;  %v4711_v13 = vunpack.c.h.bf16 %v4878_v60 }
  0x26   : > { %5630 = vmatpush3.bf16.msra.mxu1 %v5651_v26  ;;  %5160 = vmatpush3.bf16.msra.mxu0 %v5651_v26  ;;  %v3966_v26 = vld [vmem:[%s7749_s4 + $0x30] sm:$0xff] }
  0x27   : > { %5623 = vmatprep.subr.bf16.mxu1 %v5652_v29  ;;  %5161 = vmatprep.subr.bf16.mxu0 %v5652_v29 }
  0x29   : > { %543 = vperm.xlu1 %5645, %v479_v18   ;;  %538 = vperm.xlu0 %5644, %v478_v19   ;;  %v5996_v18 = vadd.f32 %v5939_v51, %v423_v14  ;;  %v3961_v19 = vld [vmem:[%s7749_s4 + $0x8] sm:$0xff]  ;;  %v4710_v14 = vunpack.c.l.bf16 %v4878_v60 }
  0x2a   : > { %5631 = vmatpush3.bf16.msra.mxu1 %v5652_v29  ;;  %5162 = vmatpush3.bf16.msra.mxu0 %v5652_v29  ;;  %v3971_v29 = vld [vmem:[%s7749_s4 + $0x58] sm:$0xff] }
  0x2b   : > { %5624 = vmatprep.subr.bf16.mxu1 %v5653_v32  ;;  %5163 = vmatprep.subr.bf16.mxu0 %v5653_v32 }
  0x2d   : > { %653 = vperm.xlu1 %5645, %v501_v21   ;;  %648 = vperm.xlu0 %5644, %v500_v22   ;;  %v3963_v21 = vld [vmem:[%s7749_s4 + $0x18] sm:$0xff]  ;;  %v3962_v22 = vld [vmem:[%s7749_s4 + $0x10] sm:$0xff] }
  0x2e   : > { %5632 = vmatpush3.bf16.msra.mxu1 %v5653_v32  ;;  %5164 = vmatpush3.bf16.msra.mxu0 %v5653_v32  ;;  %v3972_v32 = vld [vmem:[%s7749_s4 + $0x60] sm:$0xff] }
  0x2f   : > { %5201 = vmatprep.subr.bf16.mxu1 %v5889_v35  ;;  %5253 = vmatprep.subr.bf16.mxu0 %v5902_v38 }
  0x31   : > { %553 = vperm.xlu1 %5645, %v481_v24   ;;  %548 = vperm.xlu0 %5644, %v480_v25   ;;  %v3964_v24 = vld [vmem:[%s7749_s4 + $0x20] sm:$0xff]  ;;  %v3967_v25 = vld [vmem:[%s7749_s4 + $0x38] sm:$0xff] }
  0x35   : > { %663 = vperm.xlu1 %5645, %v503_v27   ;;  %658 = vperm.xlu0 %5644, %v502_v28   ;;  %v3969_v27 = vld [vmem:[%s7749_s4 + $0x48] sm:$0xff]  ;;  %v3968_v28 = vld [vmem:[%s7749_s4 + $0x40] sm:$0xff] }
  0x39   : > { %563 = vperm.xlu1 %5645, %v483_v30   ;;  %558 = vperm.xlu0 %5644, %v482_v31   ;;  %v3970_v30 = vld [vmem:[%s7749_s4 + $0x50] sm:$0xff]  ;;  %v3973_v31 = vld [vmem:[%s7749_s4 + $0x68] sm:$0xff] }
  0x3d   : > { %673 = vperm.xlu1 %5645, %v505_v33   ;;  %668 = vperm.xlu0 %5644, %v504_v34   ;;  %v3975_v33 = vld [vmem:[%s7749_s4 + $0x78] sm:$0xff]  ;;  %v3974_v34 = vld [vmem:[%s7749_s4 + $0x70] sm:$0xff] }
  0x41   : > { %573 = vperm.xlu1 %5645, %v485_v36   ;;  %568 = vperm.xlu0 %5644, %v484_v37   ;;  %v4886_v36 = vld [vmem:[%s5920_s30 + $0x48] sm:$0xff]  }
  0x42   : > { %v3977_v37 = vld [vmem:[%s7749_s4 + $0x88] sm:$0xff] }
  0x45   : > { %683 = vperm.xlu1 %5645, %v507_v39   ;;  %678 = vperm.xlu0 %5644, %v506_v40   ;;  %v3976_v39 = vld [vmem:[%s7749_s4 + $0x80] sm:$0xff] }
  0x46   : > { %v4885_v40 = vld [vmem:[%s5920_s30 + $0x40] sm:$0xff]  }
  0x47   : > { %v4738_v44 = vunpack.c.l.bf16 %v4885_v40 }
  0x49   : > { %583 = vperm.xlu1 %5645, %v487_v41   ;;  %578 = vperm.xlu0 %5644, %v486_v42   ;;  %v4742_v41 = vunpack.c.l.bf16 %v4886_v36  ;;  %v4887_v42 = vld [vmem:[%s5920_s30 + $0x50] sm:$0xff]   ;;  %v399_v57 = vmul.f32 %v4738_v44, %v5925_v43 }
  0x4a   : > { %v4747_v49 = vunpack.c.h.bf16 %v4887_v42  ;;  %v4746_v50 = vunpack.c.l.bf16 %v4887_v42  ;;  %v3984_v42 = vld [vmem:[%s7749_s4 + $0xc0] sm:$0xff] }
  0x4c   : > { %v404_v3 = vmul.f32 %v4747_v49, %v5925_v43  ;;  %v403_v4 = vmul.f32 %v4746_v50, %v5925_v43 }
  0x4d   : > { %693 = vperm.xlu1 %5645, %v509_v45   ;;  %688 = vperm.xlu0 %5644, %v508_v46   ;;  %v4743_v45 = vunpack.c.h.bf16 %v4886_v36  ;;  %v4739_v46 = vunpack.c.h.bf16 %v4885_v40  ;;  %v6096_v40 = vld [vmem:[%s5920_s30 + $0x10] sm:$0xff]  }
  0x4f   : > { %v402_v58 = vmul.f32 %v4743_v45, %v5925_v43  ;;  %v400_v59 = vmul.f32 %v4739_v46, %v5925_v43 }
  0x51   : > { %593 = vperm.xlu1 %5645, %v489_v53   ;;  %588 = vperm.xlu0 %5644, %v488_v54   ;;  %v401_v53 = vmul.f32 %v4742_v41, %v5925_v43  ;;  %v4705_v54 = vld [vmem:[%s5920_s30] sm:$0xff]   ;;  %v3985_v41 = vld [vmem:[%s7749_s4 + $0xc8] sm:$0xff] }
  0x52   : > { %v4707_v5 = vunpack.c.h.bf16 %v4705_v54  ;;  %v4706_v12 = vunpack.c.l.bf16 %v4705_v54 }
  0x55   : > { %703 = vperm.xlu1 %5645, %v511_v62   ;;  %698 = vperm.xlu0 %5644, %v510_v63   ;;  %v3980_v62 = vld [vmem:[%s7749_s4 + $0xa0] sm:$0xff]  ;;  %v4751_v63 = vunpack.c.h.bf16 %v4888_v52 }
  0x59   : > { %713 = vperm.xlu1 %5645, %v513_v7   ;;  %708 = vperm.xlu0 %5644, %v512_v8   ;;  %v450_v8 = vadd.f32 %v5939_v51, %v401_v53 }
  0x5d   : > { %723 = vperm.xlu1 %5645, %v515_v15   ;;  %718 = vperm.xlu0 %5644, %v514_v16   ;;  %v448_v15 = vadd.f32 %v5939_v51, %v399_v57  ;;  %v451_v16 = vadd.f32 %v5939_v51, %v402_v58 }
  0x61   : > { %4003 = vperm.xlu1 %5645, %v3961_v19   ;;  %3998 = vperm.xlu0 %5644, %v3960_v20   ;;  %v449_v19 = vadd.f32 %v5939_v51, %v400_v59  ;;  %v3983_v20 = vld [vmem:[%s7749_s4 + $0xb8] sm:$0xff]  ;;  %v4715_v59 = vunpack.c.h.bf16 %v6096_v40 }
  0x65   : > { %4013 = vperm.xlu1 %5645, %v3963_v21   ;;  %4008 = vperm.xlu0 %5644, %v3962_v22   ;;  %v3982_v21 = vld [vmem:[%s7749_s4 + $0xb0] sm:$0xff]  ;;  %v406_v22 = vmul.f32 %v4751_v63, %v5925_v43 }
  0x67   : > { %v455_v44 = vadd.f32 %v5939_v51, %v406_v22 }
  0x69   : > { %4023 = vperm.xlu1 %5645, %v3965_v23   ;;  %4018 = vperm.xlu0 %5644, %v3964_v24   ;;  %v405_v23 = vmul.f32 %v4750_v2, %v5925_v43  ;;  %v4755_v24 = vunpack.c.h.bf16 %v4889_v6  ;;  %v3987_v2 = vld [vmem:[%s7749_s4 + $0xd8] sm:$0xff] }
  0x6b   : > { %v454_v45 = vadd.f32 %v5939_v51, %v405_v23  ;;  %v408_v46 = vmul.f32 %v4755_v24, %v5925_v43 }
  0x6d   : > { %4033 = vperm.xlu1 %5645, %v3967_v25   ;;  %4028 = vperm.xlu0 %5644, %v3966_v26   ;;  %v453_v25 = vadd.f32 %v5939_v51, %v404_v3  ;;  %v452_v26 = vadd.f32 %v5939_v51, %v403_v4  ;;  %v3986_v3 = vld [vmem:[%s7749_s4 + $0xd0] sm:$0xff] }
  0x71   : > { %4043 = vperm.xlu1 %5645, %v3969_v27   ;;  %4038 = vperm.xlu0 %5644, %v3968_v28   ;;  %v384_v27 = vmul.f32 %v4707_v5, %v5925_v43  ;;  %v4754_v28 = vunpack.c.l.bf16 %v4889_v6  ;;  %v6140_v6 = vadd.f32 %v5939_v51, %v408_v46 }
  0x73   : > { %v433_v49 = vadd.f32 %v5939_v51, %v384_v27  ;;  %v407_v50 = vmul.f32 %v4754_v28, %v5925_v43  ;;  %v4880_v27 = vld [vmem:[%s5920_s30 + $0x18] sm:$0xff]   ;;  %v3989_v28 = vld [vmem:[%s7749_s4 + $0xe8] sm:$0xff] }
  0x75   : > { %4053 = vperm.xlu1 %5645, %v3971_v29   ;;  %4048 = vperm.xlu0 %5644, %v3970_v30  }
  0x79   : > { %4063 = vperm.xlu1 %5645, %v3973_v31   ;;  %4058 = vperm.xlu0 %5644, %v3972_v32   ;;  %v383_v32 = vmul.f32 %v4706_v12, %v5925_v43  ;;  %v4890_v12 = vld [vmem:[%s5920_s30 + $0x68] sm:$0xff]  }
  0x7b   : > { %v432_v54 = vadd.f32 %v5939_v51, %v383_v32  ;;  %v4758_v32 = vunpack.c.l.bf16 %v4890_v12 }
  0x7d   : > { %4073 = vperm.xlu1 %5645, %v3975_v33   ;;  %4068 = vperm.xlu0 %5644, %v3974_v34   ;;  %v386_v33 = vmul.f32 %v4711_v13, %v5925_v43  ;;  %v385_v34 = vmul.f32 %v4710_v14, %v5925_v43 }
  0x7f   : > { %v6115_v57 = vadd.f32 %v5939_v51, %v386_v33  ;;  %v6118_v58 = vadd.f32 %v5939_v51, %v385_v34 }
  0x81   : > { %4083 = vperm.xlu1 %5645, %v3977_v37   ;;  %4078 = vperm.xlu0 %5644, %v3976_v39  }
  0x85   : > { %4093 = vperm.xlu1 %5645, %v3979_v47   ;;  %4088 = vperm.xlu0 %5644, %v3978_v48  }
  0x88   : > { %v609_v7 = vpop.permute.xlu1 %608  ;;  %v599_v11 = vpop.permute.xlu0 %598 }
  0x89   : > { %4103 = vperm.xlu1 %5645, %v3981_v61   ;;  %4098 = vperm.xlu0 %5644, %v3980_v62   ;;  %v744_v29 = vmul.f32 %v609_v7, %v450_v8  ;;  %v742_v36 = vmul.f32 %v599_v11, %v448_v15  ;;  %v4714_v7 = vunpack.c.l.bf16 %v6096_v40 }
  0x8b   : > { %v387_v46 = vmul.f32 %v4714_v7, %v5925_v43 }
  0x8c   : > { %v614_v30 = vpop.permute.xlu1 %613  ;;  %v604_v31 = vpop.permute.xlu0 %603 }
  0x8d   : > { %v745_v37 = vmul.f32 %v614_v30, %v451_v16  ;;  %v743_v39 = vmul.f32 %v604_v31, %v449_v19  ;;  %4113 = vperm.xlu1 %5645, %v3983_v20   ;;  %4108 = vperm.xlu0 %5644, %v3982_v21   ;;  %v6151_v20 = vadd.f32 %v5939_v51, %v407_v50  ;;  %v4759_v31 = vunpack.c.h.bf16 %v4890_v12 }
  0x8e   : > { %v4719_v50 = vunpack.c.h.bf16 %v4880_v27 }
  0x8f   : > { %v6107_v47 = vpack.c.bf16 %v745_v37, %v744_v29  ;;  %v6109_v48 = vpack.c.bf16 %v743_v39, %v742_v36  ;;  %v3988_v29 = vld [vmem:[%s7749_s4 + $0xe0] sm:$0xff]  ;;  %v4891_v39 = vld [vmem:[%s5920_s30 + $0x70] sm:$0xff]  }
  0x90   : > { %v624_v52 = vpop.permute.xlu1 %623  ;;  %v619_v53 = vpop.permute.xlu0 %618  ;;  %v4763_v7 = vunpack.c.h.bf16 %v4891_v39 }
  0x91   : > { %7807 = vst [vmem:[#allocation2_spill] sm:$0xff] %v6107_v47  ;;  %v747_v60 = vmul.f32 %v624_v52, %v453_v25  ;;  %v746_v61 = vmul.f32 %v619_v53, %v452_v26  ;;  %4123 = vperm.xlu1 %5645, %v3985_v41   ;;  %4118 = vperm.xlu0 %5644, %v3984_v42   ;;  %v6122_v62 = vshll.u32 %v6109_v48, 16  ;;  %v6125_v63 = vshrl.u32 %v6109_v48, 16  ;;  %v5655_v52 = vld [vmem:[%s7750_s5 + $0x30] sm:$0xff]  }
  0x92   : > { %v6134_v4 = vshll.u32 %v6107_v47, 16  ;;  %v6137_v5 = vshrl.u32 %v6107_v47, 16 }
  0x93   : > { %v6143_v8 = vpack.c.bf16 %v747_v60, %v746_v61  ;;  %v7753_v11 = vrot.slane %v6122_v62, 1  ;;  %v2119_v13 = vrot.slane %v6125_v63, 1  ;;  %v2120_v14 = vrot.slane %v6122_v62, 2 }
  0x94   : > { %v634_v15 = vpop.permute.xlu1 %633  ;;  %v629_v16 = vpop.permute.xlu0 %628  ;;  %v897_v19 = vrot.slane %v6134_v4, 1  ;;  %v2123_v21 = vrot.slane %v6137_v5, 1  ;;  %v2124_v22 = vrot.slane %v6134_v4, 2 }
  0x95   : > { %7808 = vst [vmem:[#allocation3_spill] sm:$0xff] %v6143_v8  ;;  %v749_v23 = vmul.f32 %v634_v15, %v455_v44  ;;  %v748_v24 = vmul.f32 %v629_v16, %v454_v45  ;;  %4133 = vperm.xlu1 %5645, %v3987_v2   ;;  %4128 = vperm.xlu0 %5644, %v3986_v3   ;;  %v6159_v26 = vshll.u32 %v6143_v8, 16  ;;  %v6179_v44 = vshrl.u32 %v6143_v8, 16  ;;  %v3990_v3 = vld [vmem:[%s7749_s4 + $0xf0] sm:$0xff] }
  0x96   : > { %v893_v25 = vor.u32 %v6125_v63, %v7753_v11  ;;  %v901_v30 = vor.u32 %v6137_v5, %v897_v19  ;;  %v6169_v33 = vor.u32 %v2120_v14, %v2119_v13  ;;  %v6176_v40 = vor.u32 %v2124_v22, %v2123_v21 }
  0x97   : > { %7809 = vst [vmem:[#allocation4_spill] sm:$0xff] %v6159_v26  ;;  %v6171_v34 = vpack.c.bf16 %v749_v23, %v748_v24  ;;  %v905_v37 = vrot.slane %v6159_v26, 1  ;;  %7812 = vst [vmem:[#allocation7_spill] sm:$0xff] %v6179_v44  ;;  %v388_v45 = vmul.f32 %v4715_v59, %v5925_v43  ;;  %v3991_v59 = vld [vmem:[%s7749_s4 + $0xf8] sm:$0xff]  ;;  %v409_v16 = vmul.f32 %v4758_v32, %v5925_v43  ;;  %v3992_v32 = vld [vmem:[%s7749_s4 + $0x100] sm:$0xff] }
  0x98   : > { %v898_v36 = vsel %vm822_vm0, %v893_v25, %v897_v19  ;;  %7811 = vst [vmem:[#allocation6_spill] sm:$0xff] %v6176_v40  ;;  %v524_v41 = vpop.permute.xlu1 %523  ;;  %v519_v42 = vpop.permute.xlu0 %518  ;;  %v6200_v12 = vsel %vm2091_vm1, %v6169_v33, %v6176_v40  ;;  %v4881_v19 = vld [vmem:[%s5920_s30 + $0x20] sm:$0xff]   ;;  %v436_v24 = vadd.f32 %v5939_v51, %v387_v46  ;;  %v390_v25 = vmul.f32 %v4719_v50, %v5925_v43  ;;  %v4892_v46 = vld [vmem:[%s5920_s30 + $0x78] sm:$0xff]  }
  0x99   : > { %7810 = vst [vmem:[#allocation5_spill] sm:$0xff] %v6171_v34  ;;  %5181 = vmatprep.mubr.bf16.mxu1 %v898_v36  ;;  %v727_v53 = vmul.f32 %v524_v41, %v433_v49  ;;  %v726_v60 = vmul.f32 %v519_v42, %v432_v54  ;;  %4143 = vperm.xlu1 %5645, %v3989_v28   ;;  %v6188_v2 = vshll.u32 %v6171_v34, 16  ;;  %v4718_v54 = vunpack.c.l.bf16 %v4880_v27  ;;  %v5657_v28 = vld [vmem:[%s7750_s5 + $0x28] sm:$0xff]  }
  0x9a   : > { %4138 = vperm.xlu0 %5644, %v3988_v29   ;;  %v906_v61 = vsel %vm822_vm0, %v901_v30, %v905_v37  ;;  %v410_v49 = vmul.f32 %v4759_v31, %v5925_v43  ;;  %7814 = vst [vmem:[#allocation9_spill] sm:$0xff] %v6200_v12  ;;  %v909_v14 = vor.u32 %v6179_v44, %v905_v37  ;;  %v4762_v27 = vunpack.c.l.bf16 %v4891_v39  ;;  %v3993_v31 = vld [vmem:[%s7749_s4 + $0x108] sm:$0xff] }
  0x9b   : > { %7813 = vst [vmem:[#allocation8_spill] sm:$0xff] %v6188_v2  ;;  %5182 = vmatmul.mubr.bf16.vlgmr.msra.gmra.mxu1 %v906_v61  ;;  %v6202_v13 = vpack.c.bf16 %v727_v53, %v726_v60  ;;  %v913_v15 = vrot.slane %v6188_v2, 1  ;;  %v437_v23 = vadd.f32 %v5939_v51, %v388_v45  ;;  %v4723_v37 = vunpack.c.h.bf16 %v4881_v19 }
  0x9c   : > { %5202 = vmatpush3.bf16.msra.mxu1 %v5889_v35  ;;  %v534_v21 = vpop.permute.xlu1 %533  ;;  %v529_v22 = vpop.permute.xlu0 %528  ;;  %v6228_v36 = vadd.f32 %v5939_v51, %v410_v49  ;;  %v6234_v41 = vadd.f32 %v5939_v51, %v409_v16  ;;  %v412_v42 = vmul.f32 %v4763_v7, %v5925_v43  ;;  %v4722_v45 = vunpack.c.l.bf16 %v4881_v19  ;;  %v5659_v49 = vld [vmem:[%s7750_s5 + $0x20] sm:$0xff]   ;;  %v6251_v16 = vld [vmem:[%s5920_s30 + $0x28] sm:$0xff]   ;;  %v3995_v19 = vld [vmem:[%s7749_s4 + $0x118] sm:$0xff] }
  0x9d   : > { %5203 = vmatprep.subr.bf16.mxu1 %v5655_v52  ;;  %v729_v29 = vmul.f32 %v534_v21, %v6115_v57  ;;  %v728_v30 = vmul.f32 %v529_v22, %v6118_v58  ;;  %4153 = vperm.xlu1 %5645, %v3991_v59   ;;  %v914_v35 = vsel %vm822_vm0, %v909_v14, %v913_v15  ;;  %v826_v57 = vshll.u32 %v6202_v13, 16  ;;  %v3994_v21 = vld [vmem:[%s7749_s4 + $0x110] sm:$0xff] }
  0x9e   : > { %4148 = vperm.xlu0 %5644, %v3990_v3   ;;  %5185 = vmatprep.mubr.bf16.mxu1 %v914_v35  ;;  %v389_v58 = vmul.f32 %v4718_v54, %v5925_v43  ;;  %v824_v60 = vshrl.u32 %v6202_v13, 16  ;;  %v6240_v59 = vadd.f32 %v5939_v51, %v390_v25  ;;  %v411_v3 = vmul.f32 %v4762_v27, %v5925_v43 }
  0x9f   : > { %v6231_v39 = vpack.c.bf16 %v729_v29, %v728_v30  ;;  %v828_v61 = vrot.slane %v826_v57, 1  ;;  %v4767_v25 = vunpack.c.h.bf16 %v4892_v46  ;;  %v6270_v57 = vshrl.u32 %v6171_v34, 16 }
  0xa0   : > { %5204 = vmatpush3.bf16.msra.mxu1 %v5655_v52  ;;  %v644_v50 = vpop.permute.xlu1 %643  ;;  %v639_v53 = vpop.permute.xlu0 %638 }
  0xa1   : > { %5205 = vmatprep.subr.bf16.mxu1 %v5657_v28  ;;  %v751_v54 = vmul.f32 %v644_v50, %v6140_v6  ;;  %v750_v7 = vmul.f32 %v639_v53, %v6151_v20  ;;  %4163 = vperm.xlu1 %5645, %v3993_v31   ;;  %v831_v52 = vshll.u32 %v6231_v39, 16  ;;  %v835_v14 = vshrl.u32 %v6231_v39, 16  ;;  %7816 = vst [vmem:[#allocation11_spill] sm:$0xff] %v6270_v57 }
  0xa2   : > { %4158 = vperm.xlu0 %5644, %v3992_v32   ;;  %v829_v22 = vor.u32 %v828_v61, %v824_v60  ;;  %v6260_v6 = vadd.f32 %v5939_v51, %v389_v58  ;;  %v392_v20 = vmul.f32 %v4723_v37, %v5925_v43  ;;  %v391_v50 = vmul.f32 %v4722_v45, %v5925_v43  ;;  %v5662_v37 = vld [vmem:[%s7750_s5 + $0x18] sm:$0xff]  }
  0xa3   : > { %v6263_v27 = vpack.c.bf16 %v751_v54, %v750_v7  ;;  %v833_v29 = vrot.slane %v831_v52, 1  ;;  %v6265_v30 = vrot.slane %v835_v14, 1  ;;  %v6267_v35 = vrot.slane %v831_v52, 2 }
  0xa4   : > { %5206 = vmatpush3.bf16.msra.mxu1 %v5657_v28  ;;  %v544_v31 = vpop.permute.xlu1 %543  ;;  %v539_v32 = vpop.permute.xlu0 %538  ;;  %v4766_v58 = vunpack.c.l.bf16 %v4892_v46  ;;  %v4727_v53 = vunpack.c.h.bf16 %v6251_v16  ;;  %v6282_v45 = vadd.f32 %v5939_v51, %v412_v42  ;;  %v6285_v46 = vadd.f32 %v5939_v51, %v411_v3  ;;  %v4893_v42 = vld [vmem:[%s5920_s30 + $0x80] sm:$0xff]  }
  0xa5   : > { %7815 = vst [vmem:[#allocation10_spill] sm:$0xff] %v6263_v27  ;;  %5207 = vmatprep.subr.bf16.mxu1 %v5659_v49  ;;  %v731_v28 = vmul.f32 %v544_v31, %v437_v23  ;;  %v730_v60 = vmul.f32 %v539_v32, %v436_v24  ;;  %4173 = vperm.xlu1 %5645, %v3995_v19   ;;  %v6279_v54 = vshll.u32 %v6263_v27, 16 }
  0xa6   : > { %4168 = vperm.xlu0 %5644, %v3994_v21   ;;  %v834_v61 = vsel %vm822_vm0, %v829_v22, %v833_v29  ;;  %v414_v7 = vmul.f32 %v4767_v25, %v5925_v43  ;;  %v917_v52 = vor.u32 %v6270_v57, %v913_v15  ;;  %v6297_v21 = vadd.f32 %v5939_v51, %v392_v20  ;;  %v5664_v15 = vld [vmem:[%s7750_s5 + $0x10] sm:$0xff]  }
  0xa7   : > { %7817 = vst [vmem:[#allocation12_spill] sm:$0xff] %v6279_v54  ;;  %5165 = vmatprep.mubr.bf16.mxu0 %v834_v61  ;;  %v6290_v24 = vpack.c.bf16 %v731_v28, %v730_v60  ;;  %v921_v19 = vrot.slane %v6279_v54, 1  ;;  %v6301_v25 = vadd.f32 %v5939_v51, %v391_v50  ;;  %v413_v31 = vmul.f32 %v4766_v58, %v5925_v43 }
  0xa8   : > { %5208 = vmatpush3.bf16.msra.mxu1 %v5659_v49  ;;  %v654_v3 = vpop.permute.xlu1 %653  ;;  %v649_v22 = vpop.permute.xlu0 %648  ;;  %v394_v32 = vmul.f32 %v4727_v53, %v5925_v43  ;;  %v4726_v28 = vunpack.c.l.bf16 %v6251_v16  ;;  %v6319_v16 = vadd.f32 %v5939_v51, %v414_v7  ;;  %v4771_v53 = vunpack.c.h.bf16 %v4893_v42 }
  0xa9   : > { %5209 = vmatprep.subr.bf16.mxu1 %v5662_v37  ;;  %v753_v20 = vmul.f32 %v654_v3, %v6228_v36  ;;  %v752_v49 = vmul.f32 %v649_v22, %v6234_v41  ;;  %v922_v60 = vsel %vm822_vm0, %v917_v52, %v921_v19  ;;  %v6313_v50 = vshll.u32 %v6290_v24, 16 }
  0xaa   : > { %5186 = vmatmul.mubr.bf16.gmra.mxu1 %v922_v60  ;;  %v6316_v58 = vshrl.u32 %v6290_v24, 16  ;;  %v4770_v61 = vunpack.c.l.bf16 %v4893_v42  ;;  %v837_v23 = vor.u32 %v835_v14, %v833_v29  ;;  %v6326_v22 = vshrl.u32 %v6263_v27, 16  ;;  %v5658_v42 = vld [vmem:[%s7750_s5 + $0xb0] sm:$0xff]   ;;  %v5666_v14 = vld [vmem:[%s7750_s5 + $0x8] sm:$0xff]  }
  0xab   : > { %v6321_v11 = vpack.c.bf16 %v753_v20, %v752_v49  ;;  %v841_v36 = vrot.slane %v6313_v50, 1  ;;  %v2096_v41 = vrot.slane %v6313_v50, 2  ;;  %v6329_v60 = vadd.f32 %v5939_v51, %v413_v31 }
  0xac   : > { %5210 = vmatpush3.bf16.msra.mxu1 %v5662_v37  ;;  %v554_v52 = vpop.permute.xlu1 %553  ;;  %v549_v3 = vpop.permute.xlu0 %548  ;;  %7819 = vst [vmem:[#allocation14_spill] sm:$0xff] %v6326_v22  ;;  %v393_v7 = vmul.f32 %v4726_v28, %v5925_v43  ;;  %v2095_v29 = vrot.slane %v6316_v58, 1  ;;  %v6349_v54 = vadd.f32 %v5939_v51, %v394_v32  ;;  %v416_v40 = vmul.f32 %v4771_v53, %v5925_v43 }
  0xad   : > { %7818 = vst [vmem:[#allocation13_spill] sm:$0xff] %v6321_v11  ;;  %5211 = vmatprep.subr.bf16.mxu1 %v5664_v15  ;;  %v733_v37 = vmul.f32 %v554_v52, %v6240_v59  ;;  %v732_v20 = vmul.f32 %v549_v3, %v6260_v6  ;;  %v842_v31 = vsel %vm822_vm0, %v837_v23, %v841_v36  ;;  %v6343_v28 = vshll.u32 %v6321_v11, 16  ;;  %v4883_v52 = vld [vmem:[%s5920_s30 + $0x30] sm:$0xff]  }
  0xae   : > { %5166 = vmatmul.mubr.bf16.vlgmr.msra.gmra.mxu0 %v842_v31  ;;  %v6346_v49 = vshrl.u32 %v6321_v11, 16  ;;  %v6352_v12 = vor.u32 %v2096_v41, %v2095_v29  ;;  %v925_v6 = vor.u32 %v6326_v22, %v921_v19  ;;  %v6362_v2 = vadd.f32 %v5939_v51, %v393_v7  ;;  %v5660_v19 = vld [vmem:[%s7750_s5 + $0xa8] sm:$0xff]  }
  0xaf   : > { %v6354_v59 = vpack.c.bf16 %v733_v37, %v732_v20  ;;  %v929_v23 = vrot.slane %v6343_v28, 1  ;;  %5254 = vmatpush3.bf16.msra.mxu0 %v5902_v38  ;;  %v2140_v3 = vrot.slane %v6343_v28, 2  ;;  %v415_v53 = vmul.f32 %v4770_v61, %v5925_v43  ;;  %v5668_v38 = vld [vmem:[%s7750_s5] sm:$0xff]  }
  0xb0   : > { %5212 = vmatpush3.bf16.msra.mxu1 %v5664_v15  ;;  %v664_v31 = vpop.permute.xlu1 %663  ;;  %v659_v32 = vpop.permute.xlu0 %658  ;;  %5255 = vmatprep.subr.bf16.mxu0 %v5658_v42  ;;  %v7820_v15 = vor.u32 %v6267_v35, %v6265_v30  ;;  %v2139_v7 = vrot.slane %v6346_v49, 1  ;;  %v845_v22 = vor.u32 %v6316_v58, %v841_v36  ;;  %v4731_v30 = vunpack.c.h.bf16 %v4883_v52 }
  0xb1   : > { %5213 = vmatprep.subr.bf16.mxu1 %v5666_v14  ;;  %v755_v61 = vmul.f32 %v664_v31, %v6282_v45  ;;  %v754_v29 = vmul.f32 %v659_v32, %v6285_v46  ;;  %v930_v37 = vsel %vm822_vm0, %v925_v6, %v929_v23  ;;  %v6383_v20 = vshll.u32 %v6354_v59, 16 }
  0xb2   : > { %v6376_v41 = vsel %vm2091_vm1, %v7820_v15, %v6352_v12  ;;  %5189 = vmatprep.mubr.bf16.mxu1 %v930_v37  ;;  %v6387_v57 = vshrl.u32 %v6354_v59, 16  ;;  %v6389_v35 = vor.u32 %v2140_v3, %v2139_v7  ;;  %v6397_v36 = vadd.f32 %v5939_v51, %v416_v40  ;;  %v5661_v3 = vld [vmem:[%s7750_s5 + $0xa0] sm:$0xff]  }
  0xb3   : > { %7821 = vst [vmem:[#allocation15_spill] sm:$0xff] %v6376_v41  ;;  %v6391_v15 = vpack.c.bf16 %v755_v61, %v754_v29  ;;  %v849_v45 = vrot.slane %v6383_v20, 1  ;;  %5256 = vmatpush3.bf16.msra.mxu0 %v5658_v42  ;;  %v2100_v46 = vrot.slane %v6383_v20, 2  ;;  %v4730_v37 = vunpack.c.l.bf16 %v4883_v52  ;;  %v6405_v42 = vld [vmem:[%s7750_s5 + $0xf8] sm:$0xff]  }
  0xb4   : > { %7822 = vst [vmem:[#allocation16_spill] sm:$0xff] %v6389_v35  ;;  %5214 = vmatpush3.bf16.msra.mxu1 %v5666_v14  ;;  %v564_v31 = vpop.permute.xlu1 %563  ;;  %v559_v32 = vpop.permute.xlu0 %558  ;;  %5257 = vmatprep.subr.bf16.mxu0 %v5660_v19  ;;  %v2099_v14 = vrot.slane %v6387_v57, 1  ;;  %v7769_v7 = vrot.slane %v6290_v24, 2  ;;  %v933_v6 = vor.u32 %v6346_v49, %v929_v23  ;;  %v396_v44 = vmul.f32 %v4731_v30, %v5925_v43 }
  0xb5   : > { %7823 = vst [vmem:[#allocation17_spill] sm:$0xff] %v6391_v15  ;;  %5215 = vmatprep.subr.bf16.mxu1 %v5668_v38  ;;  %v735_v61 = vmul.f32 %v564_v31, %v6297_v21  ;;  %v734_v40 = vmul.f32 %v559_v32, %v6301_v25  ;;  %v850_v52 = vsel %vm822_vm0, %v845_v22, %v849_v45  ;;  %v6413_v29 = vshll.u32 %v6391_v15, 16 }
  0xb6   : > { %5169 = vmatprep.mubr.bf16.mxu0 %v850_v52  ;;  %v6417_v26 = vshrl.u32 %v6391_v15, 16  ;;  %v2101_v41 = vor.u32 %v2100_v46, %v2099_v14  ;;  %v7824_v22 = vrot.slane %v6354_v59, 2  ;;  %v464_v30 = vadd.f32 %v5939_v51, %v415_v53 }
  0xb7   : > { %v6420_v11 = vpack.c.bf16 %v735_v61, %v734_v40  ;;  %v937_v21 = vrot.slane %v6413_v29, 1  ;;  %5258 = vmatpush3.bf16.msra.mxu0 %v5660_v19  ;;  %v2144_v25 = vrot.slane %v6413_v29, 2  ;;  %v395_v46 = vmul.f32 %v4730_v37, %v5925_v43  ;;  %v5663_v19 = vld [vmem:[%s7750_s5 + $0x98] sm:$0xff]   ;;  %v4894_v37 = vld [vmem:[%s5920_s30 + $0x88] sm:$0xff]  }
  0xb8   : > { %5216 = vmatpush3.bf16.msra.mxu1 %v5668_v38  ;;  %v6429_v23 = vsel %vm2470_vm2, %v7769_v7, %v7824_v22  ;;  %v674_v31 = vpop.permute.xlu1 %673  ;;  %v669_v32 = vpop.permute.xlu0 %668  ;;  %5259 = vmatprep.subr.bf16.mxu0 %v5661_v3  ;;  %v6439_v38 = vsel %vm2091_vm1, %v6352_v12, %v2101_v41  ;;  %v2143_v14 = vrot.slane %v6417_v26, 1  ;;  %v853_v52 = vor.u32 %v6387_v57, %v849_v45 }
  0xb9   : > { %7825 = vst [vmem:[#allocation18_spill] sm:$0xff] %v6429_v23  ;;  %5305 = vmatprep.subr.bf16.mxu1 %v6405_v42  ;;  %7826 = vst [vmem:[#allocation19_spill] sm:$0xff] %v6439_v38  ;;  %v757_v61 = vmul.f32 %v674_v31, %v6319_v16  ;;  %v756_v40 = vmul.f32 %v669_v32, %v6329_v60  ;;  %v938_v53 = vsel %vm822_vm0, %v933_v6, %v937_v21 }
  0xba   : > { %v6446_v43 = vshll.u32 %v6420_v11, 16  ;;  %5190 = vmatmul.mubr.bf16.gmra.mxu1 %v938_v53  ;;  %v445_v22 = vadd.f32 %v5939_v51, %v396_v44  ;;  %v6452_v12 = vshrl.u32 %v6420_v11, 16  ;;  %v2145_v7 = vor.u32 %v2144_v25, %v2143_v14  ;;  %v5665_v44 = vld [vmem:[%s7750_s5 + $0x90] sm:$0xff]  }
  0xbb   : > { %v6454_v23 = vpack.c.bf16 %v757_v61, %v756_v40  ;;  %5260 = vmatpush3.bf16.msra.mxu0 %v5661_v3  ;;  %v4775_v53 = vunpack.c.h.bf16 %v4894_v37  ;;  %v4774_v38 = vunpack.c.l.bf16 %v4894_v37  ;;  %v941_v37 = vor.u32 %v6417_v26, %v937_v21 }
  0xbc   : > { %v857_v16 = vrot.slane %v6446_v43, 1  ;;  %v2104_v60 = vrot.slane %v6446_v43, 2  ;;  %v574_v31 = vpop.permute.xlu1 %573  ;;  %v569_v32 = vpop.permute.xlu0 %568  ;;  %5261 = vmatprep.subr.bf16.mxu0 %v5663_v19  ;;  %v2103_v45 = vrot.slane %v6452_v12, 1  ;;  %v6465_v25 = vsel %vm2091_vm1, %v6389_v35, %v2145_v7 }
  0xbd   : > { %7827 = vst [vmem:[#allocation20_spill] sm:$0xff] %v6454_v23  ;;  %7828 = vst [vmem:[#allocation21_spill] sm:$0xff] %v6465_v25  ;;  %v737_v3 = vmul.f32 %v574_v31, %v6349_v54  ;;  %v736_v14 = vmul.f32 %v569_v32, %v6362_v2  ;;  %v6471_v40 = vshll.u32 %v6454_v23, 16  ;;  %v444_v6 = vadd.f32 %v5939_v51, %v395_v46  ;;  %v5718_v46 = vld [vmem:[%s7746_s1] ss:$0 sm:$0xff] }
  0xbe   : > { %v858_v61 = vsel %vm822_vm0, %v853_v52, %v857_v16  ;;  %v6476_v15 = vshrl.u32 %v6454_v23, 16  ;;  %v2105_v27 = vor.u32 %v2104_v60, %v2103_v45  ;;  %v7829_v52 = vrot.slane %v6420_v11, 2 }
  0xbf   : > { %5170 = vmatmul.mubr.bf16.gmra.mxu0 %v858_v61  ;;  %v6478_v35 = vpack.c.bf16 %v737_v3, %v736_v14  ;;  %v945_v54 = vrot.slane %v6471_v40, 1  ;;  %v2148_v2 = vrot.slane %v6471_v40, 2  ;;  %v7830_v31 = vrot.slane %v6354_v59, 2 }
  0xc0   : > { %5262 = vmatpush3.bf16.msra.mxu0 %v5663_v19  ;;  %v684_v21 = vpop.permute.xlu1 %683  ;;  %v679_v51 = vpop.permute.xlu0 %678  ;;  %v418_v60 = vmul.f32 %v5718_v46, %v4775_v53  ;;  %v417_v45 = vmul.f32 %v5718_v46, %v4774_v38  ;;  %v5667_v19 = vld [vmem:[%s7750_s5 + $0x88] sm:$0xff]   ;;  %v6496_v3 = vsel %vm2091_vm1, %v2101_v41, %v2105_v27  ;;  %v2147_v14 = vrot.slane %v6476_v15, 1 }
  0xc1   : > { %v6487_v32 = vsel %vm2470_vm2, %v7830_v31, %v7829_v52  ;;  %5263 = vmatprep.subr.bf16.mxu0 %v5665_v44  ;;  %7832 = vst [vmem:[#allocation23_spill] sm:$0xff] %v6496_v3  ;;  %v759_v61 = vmul.f32 %v684_v21, %v6397_v36  ;;  %v758_v52 = vmul.f32 %v679_v51, %v464_v30  ;;  %v6506_v53 = vshrl.u32 %v6478_v35, 16  ;;  %v5719_v51 = vld [vmem:[%s7747_s2] ss:$0 sm:$0xff] }
  0xc2   : > { %7831 = vst [vmem:[#allocation22_spill] sm:$0xff] %v6487_v32  ;;  %v946_v31 = vsel %vm822_vm0, %v941_v37, %v945_v54  ;;  %v6502_v32 = vshll.u32 %v6478_v35, 16  ;;  %v861_v38 = vor.u32 %v6452_v12, %v857_v16  ;;  %v2149_v46 = vor.u32 %v2148_v2, %v2147_v14  ;;  %v5669_v2 = vld [vmem:[%s7750_s5 + $0x80] sm:$0xff]  }
  0xc3   : > { %5193 = vmatprep.mubr.bf16.mxu1 %v946_v31  ;;  %v6508_v25 = vpack.c.bf16 %v759_v61, %v758_v52  ;;  %v467_v16 = vadd.f32 %v5719_v51, %v418_v60  ;;  %v466_v31 = vadd.f32 %v5719_v51, %v417_v45  ;;  %v2107_v14 = vrot.slane %v6506_v53, 1 }
  0xc4   : > { %v865_v41 = vrot.slane %v6502_v32, 1  ;;  %5264 = vmatpush3.bf16.msra.mxu0 %v5665_v44  ;;  %v2108_v36 = vrot.slane %v6502_v32, 2  ;;  %v584_v37 = vpop.permute.xlu1 %583  ;;  %v579_v21 = vpop.permute.xlu0 %578  ;;  %v6521_v44 = vsel %vm2091_vm1, %v2145_v7, %v2149_v46  ;;  %v949_v60 = vor.u32 %v6476_v15, %v945_v54 }
  0xc5   : > { %7833 = vst [vmem:[#allocation24_spill] sm:$0xff] %v6508_v25  ;;  %5265 = vmatprep.subr.bf16.mxu0 %v5667_v19  ;;  %7834 = vst [vmem:[#allocation25_spill] sm:$0xff] %v6521_v44  ;;  %v739_v61 = vmul.f32 %v584_v37, %v445_v22  ;;  %v738_v52 = vmul.f32 %v579_v21, %v444_v6  ;;  %v6525_v3 = vshll.u32 %v6508_v25, 16  ;;  %v6529_v45 = vshrl.u32 %v6508_v25, 16 }
  0xc6   : > { %v866_v30 = vsel %vm822_vm0, %v861_v38, %v865_v41  ;;  %v2109_v51 = vor.u32 %v2108_v36, %v2107_v14  ;;  %v7836_v22 = vrot.slane %v6478_v35, 2  ;;  %v7837_v6 = vrot.slane %v6420_v11, 2  ;;  %v6546_v36 = vld [vmem:[%s7750_s5 + $0x138] sm:$0xff]  }
  0xc7   : > { %7835 = vst [vmem:[#allocation26_spill] sm:$0xff] %v6525_v3  ;;  %5173 = vmatprep.mubr.bf16.mxu0 %v866_v30  ;;  %v6531_v23 = vpack.c.bf16 %v739_v61, %v738_v52  ;;  %v953_v34 = vrot.slane %v6525_v3, 1  ;;  %v2152_v7 = vrot.slane %v6525_v3, 2  ;;  %v1477_v37 = vrot.slane %v6231_v39, 1 }
  0xc8   : > { %5266 = vmatpush3.bf16.msra.mxu0 %v5667_v19  ;;  %v6540_v38 = vsel %vm2470_vm2, %v7837_v6, %v7836_v22  ;;  %v694_v30 = vpop.permute.xlu1 %693  ;;  %v689_v54 = vpop.permute.xlu0 %688  ;;  %v6549_v19 = vsel %vm2091_vm1, %v2105_v27, %v2109_v51  ;;  %v2151_v21 = vrot.slane %v6529_v45, 1  ;;  %v869_v6 = vor.u32 %v6506_v53, %v865_v41 }
  0xc9   : > { %7838 = vst [vmem:[#allocation27_spill] sm:$0xff] %v6540_v38  ;;  %5267 = vmatprep.subr.bf16.mxu0 %v5669_v2  ;;  %7839 = vst [vmem:[#allocation28_spill] sm:$0xff] %v6549_v19  ;;  %v761_v14 = vmul.f32 %v694_v30, %v467_v16  ;;  %v760_v61 = vmul.f32 %v689_v54, %v466_v31  ;;  %v954_v52 = vsel %vm822_vm0, %v949_v60, %v953_v34 }
  0xca   : > { %v6554_v22 = vshll.u32 %v6531_v23, 16  ;;  %5194 = vmatmul.mubr.bf16.gmra.mxu1 %v954_v52  ;;  %v6558_v38 = vshrl.u32 %v6531_v23, 16  ;;  %v1476_v44 = vrot.slane %v6202_v13, 1  ;;  %v2153_v25 = vor.u32 %v2152_v7, %v2151_v21 }
  0xcb   : > { %v6561_v27 = vpack.c.bf16 %v761_v14, %v760_v61  ;;  %v2480_v31 = vrot.slane %v6531_v23, 2 }
  0xcc   : > { %v873_v19 = vrot.slane %v6554_v22, 1  ;;  %5268 = vmatpush3.bf16.msra.mxu0 %v5669_v2  ;;  %v2112_v16 = vrot.slane %v6554_v22, 2  ;;  %v594_v60 = vpop.permute.xlu1 %593  ;;  %v589_v30 = vpop.permute.xlu0 %588  ;;  %v6567_v54 = vsel %vm1475_vm3, %v1476_v44, %v1477_v37  ;;  %v2111_v41 = vrot.slane %v6558_v38, 1 }
  0xcd   : > { %7840 = vst [vmem:[#allocation29_spill] sm:$0xff] %v6561_v27  ;;  %5357 = vmatprep.subr.bf16.mxu0 %v6546_v36  ;;  %v6572_v7 = vsel %vm2091_vm1, %v2149_v46, %v2153_v25  ;;  %v741_v21 = vmul.f32 %v594_v60, %v5949_v55  ;;  %v740_v2 = vmul.f32 %v589_v30, %v5952_v56  ;;  %v6578_v61 = vshll.u32 %v6561_v27, 16 }
  0xce   : > { %7841 = vst [vmem:[#allocation30_spill] sm:$0xff] %v6572_v7  ;;  %v874_v14 = vsel %vm822_vm0, %v869_v6, %v873_v19  ;;  %v957_v44 = vor.u32 %v6529_v45, %v953_v34  ;;  %v6582_v52 = vshrl.u32 %v6561_v27, 16  ;;  %v2113_v8 = vor.u32 %v2112_v16, %v2111_v41 }
  0xcf   : > { %7842 = vst [vmem:[#allocation31_spill] sm:$0xff] %v6578_v61  ;;  %5174 = vmatmul.mubr.bf16.gmra.mxu0 %v874_v14  ;;  %v6585_v46 = vpack.c.bf16 %v741_v21, %v740_v2  ;;  %v961_v55 = vrot.slane %v6578_v61, 1  ;;  %v2156_v56 = vrot.slane %v6578_v61, 2  ;;  %v7843_v6 = vrot.slane %v6478_v35, 2 }
  0xd0   : > { %v704_v30 = vpop.permute.xlu1 %703  ;;  %v699_v14 = vpop.permute.xlu0 %698  ;;  %v1479_v34 = vrot.slane %v6290_v24, 1  ;;  %v6596_v7 = vsel %vm2091_vm1, %v2109_v51, %v2113_v8  ;;  %v2155_v16 = vrot.slane %v6582_v52, 1 }
  0xd1   : > { %v6592_v60 = vsel %vm2470_vm2, %v7843_v6, %v2480_v31  ;;  %7845 = vst [vmem:[#allocation33_spill] sm:$0xff] %v6596_v7  ;;  %v763_v21 = vmul.f32 %v704_v30, %v5964_v0  ;;  %v762_v2 = vmul.f32 %v699_v14, %v5967_v1  ;;  %v962_v47 = vsel %vm822_vm0, %v957_v44, %v961_v55 }
  0xd2   : > { %7844 = vst [vmem:[#allocation32_spill] sm:$0xff] %v6592_v60  ;;  %v6604_v6 = vshll.u32 %v6585_v46, 16  ;;  %5197 = vmatprep.mubr.bf16.mxu1 %v962_v47  ;;  %v877_v60 = vor.u32 %v6558_v38, %v873_v19  ;;  %v6608_v27 = vshrl.u32 %v6585_v46, 16  ;;  %v2157_v7 = vor.u32 %v2156_v56, %v2155_v16 }
  0xd3   : > { %v6611_v61 = vpack.c.bf16 %v763_v21, %v762_v2  ;;  %v6617_v47 = vsel %vm1475_vm3, %v1477_v37, %v1479_v34  ;;  %v7847_v37 = vrot.slane %v6354_v59, 1 }
  0xd4   : > { %v881_v0 = vrot.slane %v6604_v6, 1  ;;  %v2116_v1 = vrot.slane %v6604_v6, 2  ;;  %v714_v30 = vpop.permute.xlu1 %713  ;;  %v709_v14 = vpop.permute.xlu0 %708  ;;  %v2115_v19 = vrot.slane %v6608_v27, 1  ;;  %v6621_v41 = vsel %vm2091_vm1, %v2153_v25, %v2157_v7 }
  0xd5   : > { %7846 = vst [vmem:[#allocation34_spill] sm:$0xff] %v6621_v41  ;;  %v765_v16 = vmul.f32 %v714_v30, %v5979_v9  ;;  %v764_v21 = vmul.f32 %v709_v14, %v5982_v10  ;;  %v6629_v51 = vshll.u32 %v6611_v61, 16  ;;  %v6634_v3 = vsel %vm1475_vm3, %v1479_v34, %v7847_v37 }
  0xd6   : > { %v882_v2 = vsel %vm822_vm0, %v877_v60, %v881_v0  ;;  %v885_v44 = vor.u32 %v6608_v27, %v881_v0  ;;  %v2117_v25 = vor.u32 %v2116_v1, %v2115_v19  ;;  %v2159_v56 = vshrl.u32 %v6611_v61, 16 }
  0xd7   : > { %5177 = vmatprep.mubr.bf16.mxu0 %v882_v2  ;;  %v6637_v41 = vpack.c.bf16 %v765_v16, %v764_v21  ;;  %v7848_v9 = vrot.slane %v6122_v62, 1  ;;  %v965_v60 = vor.u32 %v6582_v52, %v961_v55  ;;  %v7849_v0 = vrot.slane %v6585_v46, 2 }
  0xd8   : > { %v724_v14 = vpop.permute.xlu1 %723  ;;  %v719_v34 = vpop.permute.xlu0 %718  ;;  %v969_v1 = vrot.slane %v6629_v51, 1  ;;  %v7793_v19 = vrot.slane %v6611_v61, 1  ;;  %v6651_v16 = vsel %vm2091_vm1, %v2113_v8, %v2117_v25  ;;  %v2161_v21 = vrot.slane %v2159_v56, 1 }
  0xd9   : > { %v890_v10 = vsel %vm822_vm0, %v885_v44, %v7848_v9  ;;  %v6646_v30 = vsel %vm2470_vm2, %v2480_v31, %v7849_v0  ;;  %v6655_v44 = vsel %vm2091_vm1, %v2117_v25, %v6169_v33  ;;  %v767_v55 = vmul.f32 %v724_v14, %v5993_v17 }
  0xda   : > { %5178 = vmatmul.mubr.bf16.gmra.mxu0 %v890_v10  ;;  %v766_v31 = vmul.f32 %v719_v34, %v5996_v18  ;;  %v2162_v2 = vrot.slane %v6629_v51, 2  ;;  %v970_v37 = vsel %vm822_vm0, %v965_v60, %v969_v1  ;;  %v7795_v8 = vshrl.u32 %v6637_v41, 16 }
  0xdb   : > { %5269 = vmatprep.mubr.bf16.mxu0 %v6567_v54  ;;  %v7794_v9 = vshll.u32 %v6637_v41, 16  ;;  %v1810_v33 = vrot.slane %v6637_v41, 1  ;;  %5198 = vmatmul.mubr.bf16.gmra.mxu1 %v970_v37  ;;  %v1483_v17 = vrot.slane %v6420_v11, 1  ;;  %v7796_v54 = vrot.slane %v6611_v61, 2 }
  0xdc   : > { %v6667_v25 = vpack.c.bf16 %v767_v55, %v766_v31  ;;  %v2163_v18 = vor.u32 %v2162_v2, %v2161_v21  ;;  %5217 = vmatprep.mubr.bf16.mxu1 %v6202_v13  ;;  %v2168_v10 = vrot.slane %v7795_v8, 1  ;;  %v2506_v14 = vrot.slane %v6637_v41, 2  ;;  %v5673_v31 = vld [vmem:[%s7750_s5 + $0x130] sm:$0xff]  }
  0xdd   : > { %v2171_v60 = vrot.slane %v7794_v9, 2  ;;  %v6679_v0 = vsel %vm1475_vm3, %v7793_v19, %v1810_v33  ;;  %v1485_v34 = vrot.slane %v6478_v35, 1  ;;  %v3464_v55 = vrot.slane %v6290_v24, 3 }
  0xde   : > { %v6684_v1 = vsel %vm2091_vm1, %v2157_v7, %v2163_v18  ;;  %v2805_v13 = vrot.slane %v6667_v25, 2  ;;  %v6694_v2 = vsel %vm2470_vm2, %v7796_v54, %v2506_v14  ;;  %v3465_v37 = vrot.slane %v6354_v59, 3 }
  0xdf   : > { %v2172_v21 = vor.u32 %v2171_v60, %v2168_v10  ;;  %v3087_v33 = vrot.slane %v6316_v58, 2  ;;  %v3088_v19 = vrot.slane %v6313_v50, 3  ;;  %v3090_v9 = vrot.slane %v6387_v57, 2  ;;  %v5672_v57 = vld [vmem:[%s7750_s5 + $0xf0] sm:$0xff]  }
  0xe0   : > { %v6699_v7 = vsel %vm2470_vm2, %v2506_v14, %v2805_v13  ;;  %v3091_v8 = vrot.slane %v6383_v20, 3  ;;  %v6709_v60 = vsel %vm3463_vm4, %v3464_v55, %v3465_v37  ;;  %v3467_v54 = vrot.slane %v6420_v11, 3  ;;  %v5675_v13 = vld [vmem:[%s7750_s5 + $0x128] sm:$0xff]  }
  0xe1   : > { %v6706_v10 = vsel %vm2091_vm1, %v2163_v18, %v2172_v21  ;;  %v3469_v58 = vrot.slane %v6478_v35, 3  ;;  %v3089_v50 = vor.u32 %v3088_v19, %v3087_v33  ;;  %v3094_v18 = vrot.slane %v6452_v12, 2  ;;  %v5674_v33 = vld [vmem:[%s7750_s5 + $0xe8] sm:$0xff]  }
  0xe2   : > { %5270 = vmatmul.mubr.bf16.vlgmr.msra.gmra.mxu0 %v6617_v47  ;;  %v3092_v20 = vor.u32 %v3091_v8, %v3090_v9  ;;  %v3095_v14 = vrot.slane %v6446_v43, 3  ;;  %v6724_v55 = vsel %vm3463_vm4, %v3465_v37, %v3467_v54  ;;  %v3098_v21 = vrot.slane %v6506_v53, 2 }
  0xe3   : > { %5273 = vmatprep.mubr.bf16.mxu0 %v6634_v3  ;;  %5358 = vmatpush3.bf16.msra.mxu0 %v6546_v36  ;;  %v6727_v36 = vsel %vm3463_vm4, %v3467_v54, %v3469_v58  ;;  %v3099_v19 = vrot.slane %v6502_v32, 3  ;;  %v3471_v8 = vrot.slane %v6531_v23, 3  ;;  %v7798_v9 = vrot.slane %v6585_v46, 3 }
  0xe4   : > { %5359 = vmatprep.subr.bf16.mxu0 %v5673_v31  ;;  %5218 = vmatmul.mubr.bf16.vlgmr.msra.gmra.mxu1 %v6231_v39  ;;  %v6733_v12 = vsel %vm3086_vm5, %v3089_v50, %v3092_v20  ;;  %v3096_v43 = vor.u32 %v3095_v14, %v3094_v18  ;;  %v3102_v37 = vrot.slane %v6558_v38, 2  ;;  %v3103_v53 = vrot.slane %v6554_v22, 3 }
  0xe5   : > { %5306 = vmatpush3.bf16.msra.mxu1 %v6405_v42  ;;  %5221 = vmatprep.mubr.bf16.mxu1 %v6290_v24  ;;  %v3100_v54 = vor.u32 %v3099_v19, %v3098_v21  ;;  %v3106_v32 = vrot.slane %v6608_v27, 2  ;;  %v6749_v42 = vsel %vm3463_vm4, %v3469_v58, %v3471_v8  ;;  %v6754_v38 = vsel %vm3463_vm4, %v3471_v8, %v7798_v9 }
  0xe6   : > { %5307 = vmatprep.subr.bf16.mxu1 %v5672_v57  ;;  %v6746_v50 = vsel %vm3086_vm5, %v3092_v20, %v3096_v43  ;;  %v3107_v22 = vrot.slane %v6604_v6, 3  ;;  %v7850_v18 = vrot.slane %v6125_v63, 2  ;;  %v7851_v20 = vrot.slane %v6122_v62, 3  ;;  %v5677_v6 = vld [vmem:[%s7750_s5 + $0x120] sm:$0xff]  }
  0xe7   : > { %5360 = vmatpush3.bf16.msra.mxu0 %v5673_v31  ;;  %v6758_v27 = vsel %vm3086_vm5, %v3096_v43, %v3100_v54  ;;  %v3104_v31 = vor.u32 %v3103_v53, %v3102_v37  ;;  %v7852_v58 = vrot.slane %v6354_v59, 1  ;;  %v3115_v43 = vrot.slane %v6134_v4, 3  ;;  %v5676_v4 = vld [vmem:[%s7750_s5 + $0xe0] sm:$0xff]  }
  0xe8   : > { %5361 = vmatprep.subr.bf16.mxu0 %v5675_v13  ;;  %v3112_v14 = vor.u32 %v7851_v20, %v7850_v18  ;;  %v3108_v19 = vor.u32 %v3107_v22, %v3106_v32  ;;  %v6781_v62 = vsel %vm1475_vm3, %v1483_v17, %v1485_v34  ;;  %v3131_v22 = vrot.slane %v6343_v28, 3 }
  0xe9   : > { %v6769_v21 = vsel %vm1475_vm3, %v7852_v58, %v1483_v17  ;;  %5308 = vmatpush3.bf16.msra.mxu1 %v5672_v57  ;;  %v6784_v63 = vsel %vm3086_vm5, %v3100_v54, %v3104_v31  ;;  %v7853_v17 = vrot.slane %v6137_v5, 2  ;;  %v1487_v57 = vrot.slane %v6531_v23, 1  ;;  %v5679_v54 = vld [vmem:[%s7750_s5 + $0x118] sm:$0xff]  }
  0xea   : > { %5274 = vmatmul.mubr.bf16.gmra.mxu0 %v6769_v21  ;;  %5309 = vmatprep.subr.bf16.mxu1 %v5674_v33  ;;  %v6791_v8 = vsel %vm3086_vm5, %v3104_v31, %v3108_v19  ;;  %v6794_v37 = vsel %vm3086_vm5, %v3108_v19, %v3112_v14  ;;  %v1489_v5 = vrot.slane %v6585_v46, 1  ;;  %v3134_v31 = vrot.slane %v6417_v26, 2 }
  0xeb   : > { %5277 = vmatprep.mubr.bf16.mxu0 %v6781_v62  ;;  %v6798_v53 = vor.u32 %v3115_v43, %v7853_v17  ;;  %5362 = vmatpush3.bf16.msra.mxu0 %v5675_v13  ;;  %v3130_v13 = vrot.slane %v6346_v49, 2  ;;  %v3135_v18 = vrot.slane %v6413_v29, 3  ;;  %v5681_v49 = vld [vmem:[%s7750_s5 + $0x110] sm:$0xff]   ;;  %v3138_v20 = vrot.slane %v6476_v15, 2 }
  0xec   : > { %5222 = vmatmul.mubr.bf16.gmra.mxu1 %v6354_v59  ;;  %5363 = vmatprep.subr.bf16.mxu0 %v5677_v6  ;;  %v5678_v59 = vld [vmem:[%s7750_s5 + $0xd8] sm:$0xff]   ;;  %v3139_v28 = vrot.slane %v6471_v40, 3  ;;  %v6832_v26 = vsel %vm1475_vm3, %v1487_v57, %v1489_v5  ;;  %v3142_v58 = vrot.slane %v6529_v45, 2  ;;  %v1491_v15 = vrot.slane %v6109_v48, 1  ;;  %v5683_v45 = vld [vmem:[%s7750_s5 + $0x108] sm:$0xff]  }
  0xed   : > { %7854 = vst [vmem:[#allocation35_spill] sm:$0xff] %v6798_v53  ;;  %v6807_v32 = vsel %vm3086_vm5, %v3112_v14, %v6798_v53  ;;  %5225 = vmatprep.mubr.bf16.mxu1 %v6420_v11  ;;  %5310 = vmatpush3.bf16.msra.mxu1 %v5674_v33  ;;  %v6821_v11 = vsel %vm1475_vm3, %v1485_v34, %v1487_v57  ;;  %v5680_v34 = vld [vmem:[%s7750_s5 + $0xd0] sm:$0xff]   ;;  %v3146_v43 = vrot.slane %v6582_v52, 2 }
  0xee   : > { %5311 = vmatprep.subr.bf16.mxu1 %v5676_v4  ;;  %v6826_v33 = vor.u32 %v3131_v22, %v3130_v13  ;;  %v3136_v29 = vor.u32 %v3135_v18, %v3134_v31  ;;  %v3140_v14 = vor.u32 %v3139_v28, %v3138_v20  ;;  %v7797_v22 = vrot.slane %v6611_v61, 3  ;;  %v5682_v28 = vld [vmem:[%s7750_s5 + $0xc8] sm:$0xff]  }
  0xef   : > { %5364 = vmatpush3.bf16.msra.mxu0 %v5677_v6  ;;  %v7857_v6 = vld [vmem:[#allocation26_spill] sm:$0xff]  ;;  %v3150_v31 = vrot.slane %v2159_v56, 2  ;;  %v3151_v18 = vrot.slane %v6629_v51, 3  ;;  %v6862_v20 = vsel %vm1475_vm3, %v1489_v5, %v1491_v15 }
  0xf0   : > { %5365 = vmatprep.subr.bf16.mxu0 %v5679_v54  ;;  %7855 = vst [vmem:[#allocation36_spill] sm:$0xff] %v6826_v33  ;;  %v6842_v40 = vsel %vm3086_vm5, %v6826_v33, %v3136_v29  ;;  %v3143_v19 = vrot.slane %v7857_v6, 3  ;;  %v6852_v57 = vsel %vm3086_vm5, %v3136_v29, %v3140_v14 }
  0xf1   : > { %5312 = vmatpush3.bf16.msra.mxu1 %v5676_v4  ;;  %7856 = vst [vmem:[#allocation37_spill] sm:$0xff] %v6842_v40  ;;  %v7858_v4 = vld [vmem:[#allocation2_spill] sm:$0xff]  ;;  %7859 = vst [vmem:[#allocation26_spill] sm:$0xff] %v6852_v57  ;;  %v3152_v5 = vor.u32 %v3151_v18, %v3150_v31 }
  0xf2   : > { %5278 = vmatmul.mubr.bf16.gmra.mxu0 %v6821_v11  ;;  %5313 = vmatprep.subr.bf16.mxu1 %v5678_v59  ;;  %v1493_v17 = vrot.slane %v7858_v4, 1  ;;  %v3144_v52 = vor.u32 %v3143_v19, %v3142_v58  ;;  %v7862_v58 = vshll.u32 %v6637_v41, 16  ;;  %v3499_v19 = vrot.slane %v6667_v25, 3 }
  0xf3   : > { %5281 = vmatprep.mubr.bf16.mxu0 %v6832_v26  ;;  %5366 = vmatpush3.bf16.msra.mxu0 %v5679_v54  ;;  %v7860_v54 = vld [vmem:[#allocation31_spill] sm:$0xff] }
  0xf4   : > { %5226 = vmatmul.mubr.bf16.gmra.mxu1 %v6478_v35  ;;  %5367 = vmatprep.subr.bf16.mxu0 %v5681_v49  ;;  %v3147_v13 = vrot.slane %v7860_v54, 3  ;;  %v3497_v35 = vrot.slane %v6637_v41, 3  ;;  %v3155_v6 = vrot.slane %v7862_v58, 3  ;;  %v6872_v56 = vsel %vm3086_vm5, %v3140_v14, %v3144_v52  ;;  %v7870_v58 = vld [vmem:[#allocation5_spill] sm:$0xff] }
  0xf5   : > { %5229 = vmatprep.mubr.bf16.mxu1 %v6531_v23  ;;  %5314 = vmatpush3.bf16.msra.mxu1 %v5678_v59  ;;  %v7861_v23 = vshrl.u32 %v6637_v41, 16  ;;  %7863 = vst [vmem:[#allocation2_spill] sm:$0xff] %v6872_v56  ;;  %v3159_v14 = vshrl.u32 %v6667_v25, 16  ;;  %v3162_v54 = vshll.u32 %v6667_v25, 16  ;;  %v7891_v56 = vld [vmem:[#allocation12_spill] sm:$0xff] }
  0xf6   : > { %5315 = vmatprep.subr.bf16.mxu1 %v5680_v34  ;;  %v3148_v29 = vor.u32 %v3147_v13, %v3146_v43  ;;  %v6877_v51 = vsel %vm3463_vm4, %v7797_v22, %v3497_v35  ;;  %v5685_v43 = vld [vmem:[%s7750_s5 + $0x100] sm:$0xff]   ;;  %v6890_v13 = vsel %vm1475_vm3, %v1491_v15, %v1493_v17  ;;  %v6896_v18 = vsel %vm3463_vm4, %v3497_v35, %v3499_v19  ;;  %v5687_v35 = vld [vmem:[%s7750_s5 + $0x1b8] sm:$0xff]  }
  0xf7   : > { %v3154_v59 = vrot.slane %v7861_v23, 2  ;;  %5368 = vmatpush3.bf16.msra.mxu0 %v5681_v49  ;;  %7864 = vst [vmem:[#allocation31_spill] sm:$0xff] %v6877_v51  ;;  %7867 = vst [vmem:[#allocation40_spill] sm:$0xff] %v6896_v18  ;;  %v3161_v23 = vrot.slane %v3159_v14, 2  ;;  %v3164_v15 = vrot.slane %v3162_v54, 3  ;;  %v7880_v51 = vld [vmem:[#allocation19_spill] sm:$0xff] }
  0xf8   : > { %5369 = vmatprep.subr.bf16.mxu0 %v5683_v45  ;;  %v6884_v41 = vsel %vm3086_vm5, %v3144_v52, %v3148_v29  ;;  %v6893_v31 = vsel %vm3086_vm5, %v3148_v29, %v3152_v5  ;;  %v5684_v52 = vld [vmem:[%s7750_s5 + $0xc0] sm:$0xff]   ;;  %v2136_v57 = vrot.slane %v7891_v56, 2 }
  0xf9   : > { %7865 = vst [vmem:[#allocation38_spill] sm:$0xff] %v6884_v41  ;;  %v3156_v49 = vor.u32 %v3155_v6, %v3154_v59  ;;  %5316 = vmatpush3.bf16.msra.mxu1 %v5680_v34  ;;  %7866 = vst [vmem:[#allocation39_spill] sm:$0xff] %v6893_v31  ;;  %v7869_v34 = vld [vmem:[#allocation3_spill] sm:$0xff]  ;;  %v3165_v59 = vor.u32 %v3164_v15, %v3161_v23  ;;  %v1497_v6 = vrot.slane %v7870_v58, 1 }
  0xfa   : > { %5282 = vmatmul.mubr.bf16.gmra.mxu0 %v6862_v20  ;;  %5317 = vmatprep.subr.bf16.mxu1 %v5682_v28  ;;  %v1495_v29 = vrot.slane %v7869_v34, 1  ;;  %v7881_v41 = vld [vmem:[#allocation23_spill] sm:$0xff] }
  0xfb   : > { %5285 = vmatprep.mubr.bf16.mxu0 %v6890_v13  ;;  %v6903_v25 = vsel %vm3086_vm5, %v3152_v5, %v3156_v49  ;;  %5370 = vmatpush3.bf16.msra.mxu0 %v5683_v45  ;;  %v5686_v45 = vld [vmem:[%s7750_s5 + $0x178] sm:$0xff]   ;;  %v6916_v5 = vsel %vm3086_vm5, %v3156_v49, %v3165_v59 }
  0xfc   : > { %7868 = vst [vmem:[#allocation41_spill] sm:$0xff] %v6903_v25  ;;  %5230 = vmatmul.mubr.bf16.gmra.mxu1 %v6585_v46  ;;  %5371 = vmatprep.subr.bf16.mxu0 %v5685_v43  ;;  %7871 = vst [vmem:[#allocation3_spill] sm:$0xff] %v6916_v5  ;;  %v6919_v19 = vsel %vm1475_vm3, %v1493_v17, %v1495_v29  ;;  %v6923_v14 = vsel %vm1475_vm3, %v1495_v29, %v1497_v6  ;;  %v7875_v29 = vld [vmem:[#allocation20_spill] sm:$0xff]  ;;  %v7877_v5 = vld [vmem:[#allocation29_spill] sm:$0xff] }
  0xfd   : > { %5233 = vmatprep.mubr.bf16.mxu1 %v6109_v48  ;;  %5318 = vmatpush3.bf16.msra.mxu1 %v5682_v28  ;;  %v7872_v28 = vld [vmem:[#allocation10_spill] sm:$0xff]  ;;  %v1505_v59 = vrot.slane %v7875_v29, 1  ;;  %v1509_v18 = vrot.slane %v7877_v5, 1 }
  0xfe   : > { %5319 = vmatprep.subr.bf16.mxu1 %v5684_v52  ;;  %v1499_v54 = vrot.slane %v7872_v28, 1 }
  0xff   : > { %5372 = vmatpush3.bf16.msra.mxu0 %v5685_v43  ;;  %v7873_v43 = vld [vmem:[#allocation13_spill] sm:$0xff] }
 0x100   : > { %5461 = vmatprep.subr.bf16.mxu0 %v5687_v35  ;;  %v1501_v49 = vrot.slane %v7873_v43, 1  ;;  %v6931_v17 = vsel %vm1475_vm3, %v1497_v6, %v1499_v54 }
 0x101   : > { %5320 = vmatpush3.bf16.msra.mxu1 %v5684_v52  ;;  %v7874_v52 = vld [vmem:[#allocation17_spill] sm:$0xff] }
 0x102   : > { %5286 = vmatmul.mubr.bf16.gmra.mxu0 %v6919_v19  ;;  %5409 = vmatprep.subr.bf16.mxu1 %v5686_v45  ;;  %v6935_v23 = vsel %vm1475_vm3, %v1499_v54, %v1501_v49  ;;  %v1503_v15 = vrot.slane %v7874_v52, 1  ;;  %v7876_v54 = vld [vmem:[#allocation24_spill] sm:$0xff] }
 0x103   : > { %5289 = vmatprep.mubr.bf16.mxu0 %v6923_v14  ;;  %v1507_v9 = vrot.slane %v7876_v54, 1 }
 0x104   : > { %5234 = vmatmul.mubr.bf16.gmra.mxu1 %v7858_v4  ;;  %v6943_v22 = vsel %vm1475_vm3, %v1501_v49, %v1503_v15  ;;  %v6947_v6 = vsel %vm1475_vm3, %v1503_v15, %v1505_v59  ;;  %v7878_v15 = vrot.slane %v6611_v61, 1 }
 0x105   : > { %5237 = vmatprep.mubr.bf16.mxu1 %v7869_v34  ;;  %v6955_v25 = vsel %vm1475_vm3, %v1505_v59, %v1507_v9  ;;  %v6959_v49 = vsel %vm1475_vm3, %v1507_v9, %v1509_v18  ;;  %v7879_v59 = vld [vmem:[#allocation15_spill] sm:$0xff]  ;;  %v5689_v9 = vld [vmem:[%s7750_s5 + $0x1b0] sm:$0xff]  }
 0x106   : > { %v6967_v31 = vsel %vm1475_vm3, %v1509_v18, %v7878_v15  ;;  %v5688_v18 = vld [vmem:[%s7750_s5 + $0x170] sm:$0xff]   ;;  %v5691_v15 = vld [vmem:[%s7750_s5 + $0x1a8] sm:$0xff]  }
 0x10a   : > { %5290 = vmatmul.mubr.bf16.gmra.mxu0 %v6931_v17 }
 0x10b   : > { %5293 = vmatprep.mubr.bf16.mxu0 %v6935_v23 }
 0x10c   : > { %5238 = vmatmul.mubr.bf16.gmra.mxu1 %v7870_v58 }
 0x10d   : > { %5241 = vmatprep.mubr.bf16.mxu1 %v7872_v28 }
 0x112   : > { %5294 = vmatmul.mubr.bf16.gmra.mxu0 %v6943_v22 }
 0x113   : > { %5297 = vmatprep.mubr.bf16.mxu0 %v6947_v6 }
 0x114   : > { %5242 = vmatmul.mubr.bf16.gmra.mxu1 %v7873_v43 }
 0x115   : > { %5245 = vmatprep.mubr.bf16.mxu1 %v7874_v52 }
 0x11a   : > { %5298 = vmatmul.mubr.bf16.gmra.mxu0 %v6955_v25 }
 0x11b   : > { %5301 = vmatprep.mubr.bf16.mxu0 %v6959_v49 }
 0x11c   : > { %5246 = vmatmul.mubr.bf16.gmra.mxu1 %v7875_v29 }
 0x11d   : > { %5249 = vmatprep.mubr.bf16.mxu1 %v7876_v54 }
 0x122   : > { %5302 = vmatmul.mubr.bf16.gmra.mxu0 %v6967_v31 }
 0x123   : > { %5373 = vmatprep.mubr.bf16.mxu0 %v7879_v59  ;;  %v5697_v59 = vld [vmem:[%s7750_s5 + $0x190] sm:$0xff]  }
 0x124   : > { %5250 = vmatmul.mubr.bf16.gmra.mxu1 %v7877_v5 }
 0x125   : > { %5321 = vmatprep.mubr.bf16.mxu1 %v6617_v47  ;;  %v5690_v47 = vld [vmem:[%s7750_s5 + $0x168] sm:$0xff]  }
 0x12a   : > { %5374 = vmatmul.mubr.bf16.vlgmr.msra.gmra.mxu0 %v7880_v51  ;;  %v5693_v51 = vld [vmem:[%s7750_s5 + $0x1a0] sm:$0xff]  }
 0x12b   : > { %5377 = vmatprep.mubr.bf16.mxu0 %v7881_v41  ;;  %5462 = vmatpush3.bf16.msra.mxu0 %v5687_v35  ;;  %v7882_v41 = vld [vmem:[#allocation28_spill] sm:$0xff]  ;;  %v7883_v35 = vld [vmem:[#allocation33_spill] sm:$0xff] }
 0x12c   : > { %5463 = vmatprep.subr.bf16.mxu0 %v5689_v9  ;;  %5322 = vmatmul.mubr.bf16.vlgmr.msra.gmra.mxu1 %v6634_v3  ;;  %v5692_v3 = vld [vmem:[%s7750_s5 + $0x160] sm:$0xff]  }
 0x12d   : > { %5410 = vmatpush3.bf16.msra.mxu1 %v5686_v45  ;;  %5325 = vmatprep.mubr.bf16.mxu1 %v6769_v21  ;;  %v5695_v21 = vld [vmem:[%s7750_s5 + $0x198] sm:$0xff]  }
 0x12e   : > { %5411 = vmatprep.subr.bf16.mxu1 %v5688_v18  ;;  %v5694_v45 = vld [vmem:[%s7750_s5 + $0x158] sm:$0xff]  }
 0x12f   : > { %5464 = vmatpush3.bf16.msra.mxu0 %v5689_v9 }
 0x130   : > { %5465 = vmatprep.subr.bf16.mxu0 %v5691_v15 }
 0x131   : > { %5412 = vmatpush3.bf16.msra.mxu1 %v5688_v18  ;;  %v7885_v18 = vld [vmem:[#allocation4_spill] sm:$0xff] }
 0x132   : > { %5378 = vmatmul.mubr.bf16.gmra.mxu0 %v7882_v41  ;;  %5413 = vmatprep.subr.bf16.mxu1 %v5690_v47 }
 0x133   : > { %5381 = vmatprep.mubr.bf16.mxu0 %v7883_v35  ;;  %5466 = vmatpush3.bf16.msra.mxu0 %v5691_v15  ;;  %v2128_v15 = vrot.slane %v7885_v18, 2  ;;  %v7887_v35 = vld [vmem:[#allocation8_spill] sm:$0xff] }
 0x134   : > { %5326 = vmatmul.mubr.bf16.gmra.mxu1 %v6781_v62  ;;  %5467 = vmatprep.subr.bf16.mxu0 %v5693_v51  ;;  %v7884_v62 = vld [vmem:[#allocation7_spill] sm:$0xff] }
 0x135   : > { %5329 = vmatprep.mubr.bf16.mxu1 %v6821_v11  ;;  %5414 = vmatpush3.bf16.msra.mxu1 %v5690_v47  ;;  %v2127_v9 = vrot.slane %v7884_v62, 1  ;;  %v5696_v11 = vld [vmem:[%s7750_s5 + $0x150] sm:$0xff]  }
 0x136   : > { %5415 = vmatprep.subr.bf16.mxu1 %v5692_v3 }
 0x137   : > { %5468 = vmatpush3.bf16.msra.mxu0 %v5693_v51  ;;  %v2129_v47 = vor.u32 %v2128_v15, %v2127_v9  ;;  %v7886_v51 = vld [vmem:[#allocation11_spill] sm:$0xff]  ;;  %v7890_v9 = vld [vmem:[#allocation14_spill] sm:$0xff] }
 0x138   : > { %5469 = vmatprep.subr.bf16.mxu0 %v5695_v21  ;;  %v2131_v41 = vrot.slane %v7886_v51, 1  ;;  %v2135_v15 = vrot.slane %v7890_v9, 1  ;;  %v7917_v9 = vrot.slane %v6611_v61, 2 }
 0x139   : > { %5416 = vmatpush3.bf16.msra.mxu1 %v5692_v3  ;;  %v2132_v3 = vrot.slane %v7887_v35, 2 }
 0x13a   : > { %5382 = vmatmul.mubr.bf16.gmra.mxu0 %v6651_v16  ;;  %5417 = vmatprep.subr.bf16.mxu1 %v5694_v45  ;;  %v5699_v16 = vld [vmem:[%s7750_s5 + $0x188] sm:$0xff]  }
 0x13b   : > { %5385 = vmatprep.mubr.bf16.mxu0 %v6655_v44  ;;  %5470 = vmatpush3.bf16.msra.mxu0 %v5695_v21  ;;  %v5698_v44 = vld [vmem:[%s7750_s5 + $0x148] sm:$0xff]   ;;  %v7888_v21 = vld [vmem:[#allocation9_spill] sm:$0xff]  ;;  %v2133_v40 = vor.u32 %v2132_v3, %v2131_v41 }
 0x13c   : > { %5330 = vmatmul.mubr.bf16.gmra.mxu1 %v6832_v26  ;;  %5471 = vmatprep.subr.bf16.mxu0 %v5697_v59  ;;  %v5701_v26 = vld [vmem:[%s7750_s5 + $0x180] sm:$0xff]  }
 0x13d   : > { %5333 = vmatprep.mubr.bf16.mxu1 %v6862_v20  ;;  %5418 = vmatpush3.bf16.msra.mxu1 %v5694_v45  ;;  %v7889_v20 = vld [vmem:[#allocation6_spill] sm:$0xff] }
 0x13e   : > { %5419 = vmatprep.subr.bf16.mxu1 %v5696_v11  ;;  %v2130_v45 = vsel %vm2091_vm1, %v7889_v20, %v2129_v47  ;;  %v2137_v20 = vor.u32 %v2136_v57, %v2135_v15  ;;  %v7892_v57 = vld [vmem:[#allocation16_spill] sm:$0xff]  ;;  %v5706_v15 = vld [vmem:[%s7750_s5 + $0x1e8] sm:$0xff]  }
 0x13f   : > { %5472 = vmatpush3.bf16.msra.mxu0 %v5697_v59  ;;  %v5700_v59 = vld [vmem:[%s7750_s5 + $0x140] sm:$0xff]  }
 0x140   : > { %5473 = vmatprep.subr.bf16.mxu0 %v5699_v16 }
 0x141   : > { %5420 = vmatpush3.bf16.msra.mxu1 %v5696_v11  ;;  %v5702_v11 = vld [vmem:[%s7750_s5 + $0x1f8] sm:$0xff]  }
 0x142   : > { %5386 = vmatmul.mubr.bf16.gmra.mxu0 %v7888_v21  ;;  %5421 = vmatprep.subr.bf16.mxu1 %v5698_v44  ;;  %v5703_v21 = vld [vmem:[%s7750_s5 + $0x238] sm:$0xff]  }
 0x143   : > { %5389 = vmatprep.mubr.bf16.mxu0 %v2130_v45  ;;  %5474 = vmatpush3.bf16.msra.mxu0 %v5699_v16  ;;  %v2134_v16 = vsel %vm2091_vm1, %v2129_v47, %v2133_v40  ;;  %v7894_v47 = vld [vmem:[#allocation25_spill] sm:$0xff] }
 0x144   : > { %5334 = vmatmul.mubr.bf16.gmra.mxu1 %v6890_v13  ;;  %5475 = vmatprep.subr.bf16.mxu0 %v5701_v26  ;;  %v2138_v13 = vsel %vm2091_vm1, %v2133_v40, %v2137_v20  ;;  %v7895_v40 = vld [vmem:[#allocation30_spill] sm:$0xff] }
 0x145   : > { %5337 = vmatprep.mubr.bf16.mxu1 %v6919_v19  ;;  %5422 = vmatpush3.bf16.msra.mxu1 %v5698_v44  ;;  %v2142_v19 = vsel %vm2091_vm1, %v2137_v20, %v7892_v57  ;;  %v7893_v44 = vld [vmem:[#allocation21_spill] sm:$0xff]  ;;  %v7901_v20 = vld [vmem:[#allocation32_spill] sm:$0xff] }
 0x146   : > { %5423 = vmatprep.subr.bf16.mxu1 %v5700_v59  ;;  %v5711_v57 = vld [vmem:[%s7750_s5 + $0x218] sm:$0xff]  }
 0x147   : > { %5476 = vmatpush3.bf16.msra.mxu0 %v5701_v26  ;;  %v5707_v26 = vld [vmem:[%s7750_s5 + $0x228] sm:$0xff]  }
 0x148   : > { %5565 = vmatprep.subr.bf16.mxu0 %v5703_v21 }
 0x149   : > { %5424 = vmatpush3.bf16.msra.mxu1 %v5700_v59 }
 0x14a   : > { %5390 = vmatmul.mubr.bf16.gmra.mxu0 %v2134_v16  ;;  %5513 = vmatprep.subr.bf16.mxu1 %v5702_v11  ;;  %v5708_v16 = vld [vmem:[%s7750_s5 + $0x1e0] sm:$0xff]  }
 0x14b   : > { %5393 = vmatprep.mubr.bf16.mxu0 %v2138_v13 }
 0x14c   : > { %5338 = vmatmul.mubr.bf16.gmra.mxu1 %v6923_v14  ;;  %v7896_v14 = vld [vmem:[#allocation34_spill] sm:$0xff] }
 0x14d   : > { %5341 = vmatprep.mubr.bf16.mxu1 %v6931_v17 }
 0x152   : > { %5394 = vmatmul.mubr.bf16.gmra.mxu0 %v2142_v19  ;;  %v2484_v19 = vrot.slane %v6109_v48, 2 }
 0x153   : > { %5397 = vmatprep.mubr.bf16.mxu0 %v7893_v44  ;;  %v2486_v44 = vrot.slane %v7858_v4, 2 }
 0x154   : > { %5342 = vmatmul.mubr.bf16.gmra.mxu1 %v6935_v23 }
 0x155   : > { %5345 = vmatprep.mubr.bf16.mxu1 %v6943_v22  ;;  %v7897_v22 = vld [vmem:[#allocation18_spill] sm:$0xff] }
 0x15a   : > { %5398 = vmatmul.mubr.bf16.gmra.mxu0 %v7894_v47 }
 0x15b   : > { %5401 = vmatprep.mubr.bf16.mxu0 %v7895_v40  ;;  %v7059_v17 = vpop.f32.mrf.mxu1  ;;  %v5710_v40 = vld [vmem:[%s7750_s5 + $0x1d8] sm:$0xff]  }
 0x15c   : > { %5346 = vmatmul.mubr.bf16.gmra.mxu1 %v6947_v6  ;;  %v2471_v6 = vrot.slane %v6231_v39, 2  ;;  %v7900_v39 = vld [vmem:[#allocation27_spill] sm:$0xff] }
 0x15d   : > { %5349 = vmatprep.mubr.bf16.mxu1 %v6955_v25  ;;  %v7063_v23 = vpop.f32.mrf.mxu1 }
 0x15f   : > { %v7068_v41 = vpop.f32.mrf.mxu1 }
 0x162   : > { %5402 = vmatmul.mubr.bf16.gmra.mxu0 %v7896_v14 }
 0x163   : > { %5405 = vmatprep.mubr.bf16.mxu0 %v6684_v1  ;;  %v7898_v1 = vrot.slane %v6290_v24, 2  ;;  %v5704_v24 = vld [vmem:[%s7750_s5 + $0x1f0] sm:$0xff]  }
 0x164   : > { %5350 = vmatmul.mubr.bf16.gmra.mxu1 %v6959_v49  ;;  %v7077_v49 = vpop.f32.mrf.mxu1 }
 0x165   : > { %5353 = vmatprep.mubr.bf16.mxu1 %v6967_v31  ;;  %v2473_v25 = vsel %vm2470_vm2, %v2471_v6, %v7898_v1  ;;  %v5705_v31 = vld [vmem:[%s7750_s5 + $0x230] sm:$0xff]   ;;  %v7905_v6 = vrot.slane %v6585_v46, 2 }
 0x167   : > { %v2485_v1 = vsel %vm2470_vm2, %v7905_v6, %v2484_v19 }
 0x16a   : > { %5406 = vmatmul.mubr.bf16.gmra.mxu0 %v6706_v10  ;;  %v7899_v10 = vld [vmem:[#allocation22_spill] sm:$0xff]  ;;  %v7080_v3 = vpop.f32.mrf.mxu1 }
 0x16b   : > { %5477 = vmatprep.mubr.bf16.mxu0 %v7897_v22 }
 0x16c   : > { %5354 = vmatmul.mubr.bf16.gmra.mxu1 %v6679_v0  ;;  %v7093_v45 = vpop.f32.mrf.mxu1 }
 0x16d   : > { %5425 = vmatprep.mubr.bf16.mxu1 %v2473_v25  ;;  %v5713_v25 = vld [vmem:[%s7750_s5 + $0x210] sm:$0xff]  }
 0x16e   : > { %v7086_v0 = vpop.f32.mrf.mxu0 }
 0x170   : > { %v7098_v59 = vpop.f32.mrf.mxu0 }
 0x172   : > { %5478 = vmatmul.mubr.bf16.vlgmr.msra.gmra.mxu0 %v7899_v10  ;;  %v7110_v13 = vpop.f32.mrf.mxu0 }
 0x173   : > { %5481 = vmatprep.mubr.bf16.mxu0 %v7900_v39  ;;  %5566 = vmatpush3.bf16.msra.mxu0 %v5703_v21  ;;  %v5709_v21 = vld [vmem:[%s7750_s5 + $0x220] sm:$0xff]  }
 0x174   : > { %5567 = vmatprep.subr.bf16.mxu0 %v5705_v31  ;;  %5426 = vmatmul.mubr.bf16.vlgmr.msra.gmra.mxu1 %v7897_v22  ;;  %v7124_v14 = vpop.f32.mrf.mxu0 }
 0x175   : > { %5514 = vmatpush3.bf16.msra.mxu1 %v5702_v11  ;;  %5429 = vmatprep.mubr.bf16.mxu1 %v7899_v10  ;;  %v7104_v11 = vpop.f32.mrf.mxu1  ;;  %v2487_v10 = vsel %vm2470_vm2, %v2484_v19, %v2486_v44  ;;  %v5717_v19 = vld [vmem:[%s7750_s5 + $0x200] sm:$0xff]  }
 0x176   : > { %5515 = vmatprep.subr.bf16.mxu1 %v5704_v24  ;;  %7902 = vst [vmem:[#allocation5_spill] sm:$0xff] %v7104_v11 }
 0x177   : > { %5568 = vmatpush3.bf16.msra.mxu0 %v5705_v31  ;;  %v7119_v47 = vpop.f32.mrf.mxu1 }
 0x178   : > { %5569 = vmatprep.subr.bf16.mxu0 %v5707_v26  ;;  %7903 = vst [vmem:[#allocation15_spill] sm:$0xff] %v7119_v47 }
 0x179   : > { %5516 = vmatpush3.bf16.msra.mxu1 %v5704_v24 }
 0x17a   : > { %5482 = vmatmul.mubr.bf16.gmra.mxu0 %v7901_v20  ;;  %5517 = vmatprep.subr.bf16.mxu1 %v5706_v15  ;;  %v7126_v22 = vpop.f32.mrf.mxu1 }
 0x17b   : > { %5485 = vmatprep.mubr.bf16.mxu0 %v6646_v30  ;;  %5570 = vmatpush3.bf16.msra.mxu0 %v5707_v26  ;;  %7904 = vst [vmem:[#allocation19_spill] sm:$0xff] %v7126_v22  ;;  %v2488_v26 = vrot.slane %v7869_v34, 2 }
 0x17c   : > { %5430 = vmatmul.mubr.bf16.gmra.mxu1 %v7900_v39  ;;  %5571 = vmatprep.subr.bf16.mxu0 %v5709_v21  ;;  %v5712_v39 = vld [vmem:[%s7750_s5 + $0x1d0] sm:$0xff]   ;;  %v7140_v24 = vpop.f32.mrf.mxu1 }
 0x17d   : > { %5433 = vmatprep.mubr.bf16.mxu1 %v7901_v20  ;;  %5518 = vmatpush3.bf16.msra.mxu1 %v5706_v15  ;;  %7906 = vst [vmem:[#allocation23_spill] sm:$0xff] %v7140_v24  ;;  %v5715_v15 = vld [vmem:[%s7750_s5 + $0x208] sm:$0xff]   ;;  %v2490_v20 = vrot.slane %v7870_v58, 2 }
 0x17e   : > { %5519 = vmatprep.subr.bf16.mxu1 %v5708_v16 }
 0x17f   : > { %5572 = vmatpush3.bf16.msra.mxu0 %v5709_v21  ;;  %v7134_v31 = vpop.f32.mrf.mxu0 }
 0x180   : > { %5573 = vmatprep.subr.bf16.mxu0 %v5711_v57 }
 0x181   : > { %5520 = vmatpush3.bf16.msra.mxu1 %v5708_v16  ;;  %v7147_v21 = vpop.f32.mrf.mxu0  ;;  %v5714_v16 = vld [vmem:[%s7750_s5 + $0x1c8] sm:$0xff]  }
 0x182   : > { %5486 = vmatmul.mubr.bf16.gmra.mxu0 %v2485_v1  ;;  %5521 = vmatprep.subr.bf16.mxu1 %v5710_v40 }
 0x183   : > { %5489 = vmatprep.mubr.bf16.mxu0 %v2487_v10  ;;  %5574 = vmatpush3.bf16.msra.mxu0 %v5711_v57  ;;  %v2489_v57 = vsel %vm2470_vm2, %v2486_v44, %v2488_v26  ;;  %v7159_v6 = vpop.f32.mrf.mxu0  ;;  %v2492_v44 = vrot.slane %v7872_v28, 2 }
 0x184   : > { %5434 = vmatmul.mubr.bf16.gmra.mxu1 %v6646_v30  ;;  %5575 = vmatprep.subr.bf16.mxu0 %v5713_v25  ;;  %v7153_v30 = vpop.f32.mrf.mxu1 }
 0x185   : > { %5437 = vmatprep.mubr.bf16.mxu1 %v2485_v1  ;;  %5522 = vmatpush3.bf16.msra.mxu1 %v5710_v40  ;;  %7907 = vst [vmem:[#allocation28_spill] sm:$0xff] %v7153_v30  ;;  %v2491_v40 = vsel %vm2470_vm2, %v2488_v26, %v2490_v20  ;;  %v5716_v1 = vld [vmem:[%s7750_s5 + $0x1c0] sm:$0xff]   ;;  %v7168_v33 = vpop.f32.mrf.mxu0  ;;  %v2494_v30 = vrot.slane %v7873_v43, 2 }
 0x186   : > { %5523 = vmatprep.subr.bf16.mxu1 %v5712_v39 }
 0x187   : > { %5576 = vmatpush3.bf16.msra.mxu0 %v5713_v25  ;;  %v7165_v25 = vpop.f32.mrf.mxu1 }
 0x188   : > { %5577 = vmatprep.subr.bf16.mxu0 %v5715_v15  ;;  %7908 = vst [vmem:[#allocation33_spill] sm:$0xff] %v7165_v25 }
 0x189   : > { %5524 = vmatpush3.bf16.msra.mxu1 %v5712_v39 }
 0x18a   : > { %5490 = vmatmul.mubr.bf16.gmra.mxu0 %v2489_v57  ;;  %5525 = vmatprep.subr.bf16.mxu1 %v5714_v16  ;;  %v7171_v39 = vpop.f32.mrf.mxu1 }
 0x18b   : > { %5493 = vmatprep.mubr.bf16.mxu0 %v2491_v40  ;;  %5578 = vmatpush3.bf16.msra.mxu0 %v5715_v15  ;;  %7909 = vst [vmem:[#allocation7_spill] sm:$0xff] %v7171_v39  ;;  %v2493_v15 = vsel %vm2470_vm2, %v2490_v20, %v2492_v44  ;;  %v2498_v39 = vrot.slane %v7875_v29, 2 }
 0x18c   : > { %5438 = vmatmul.mubr.bf16.gmra.mxu1 %v2487_v10  ;;  %5579 = vmatprep.subr.bf16.mxu0 %v5717_v19  ;;  %v2495_v10 = vsel %vm2470_vm2, %v2492_v44, %v2494_v30  ;;  %v7179_v25 = vpop.f32.mrf.mxu1 }
 0x18d   : > { %5441 = vmatprep.mubr.bf16.mxu1 %v2489_v57  ;;  %5526 = vmatpush3.bf16.msra.mxu1 %v5714_v16  ;;  %7910 = vst [vmem:[#allocation4_spill] sm:$0xff] %v7179_v25  ;;  %v2496_v16 = vrot.slane %v7874_v52, 2 }
 0x18e   : > { %5527 = vmatprep.subr.bf16.mxu1 %v5716_v1 }
 0x18f   : > { %v7173_v26 = vpop.f32.mrf.mxu0  ;;  %5580 = vmatpush3.bf16.msra.mxu0 %v5717_v19  ;;  %v7185_v19 = vpop.f32.mrf.mxu1  ;;  %v2497_v43 = vsel %vm2470_vm2, %v2494_v30, %v2496_v16  ;;  %v2502_v30 = vrot.slane %v7877_v5, 2 }
 0x190   : > { %7911 = vst [vmem:[#allocation11_spill] sm:$0xff] %v7185_v19 }
 0x191   : > { %v7176_v24 = vpop.f32.mrf.mxu0  ;;  %5528 = vmatpush3.bf16.msra.mxu1 %v5716_v1  ;;  %v2499_v1 = vsel %vm2470_vm2, %v2496_v16, %v2498_v39  ;;  %v7193_v44 = vpop.f32.mrf.mxu1 }
 0x192   : > { %5494 = vmatmul.mubr.bf16.gmra.mxu0 %v2493_v15  ;;  %7912 = vst [vmem:[#allocation8_spill] sm:$0xff] %v7193_v44 }
 0x193   : > { %5497 = vmatprep.mubr.bf16.mxu0 %v2495_v10  ;;  %v7181_v57 = vpop.f32.mrf.mxu0 }
 0x194   : > { %5442 = vmatmul.mubr.bf16.gmra.mxu1 %v2491_v40 }
 0x195   : > { %5445 = vmatprep.mubr.bf16.mxu1 %v2493_v15  ;;  %v7187_v20 = vpop.f32.mrf.mxu0  ;;  %v2500_v15 = vrot.slane %v7876_v54, 2 }
 0x197   : > { %v2501_v44 = vsel %vm2470_vm2, %v2498_v39, %v2500_v15 }
 0x19a   : > { %v7190_v22 = vpop.f32.mrf.mxu0  ;;  %5498 = vmatmul.mubr.bf16.gmra.mxu0 %v2497_v43 }
 0x19b   : > { %5501 = vmatprep.mubr.bf16.mxu0 %v2499_v1  ;;  %v7197_v25 = vpop.f32.mrf.mxu1 }
 0x19c   : > { %v7195_v40 = vpop.f32.mrf.mxu0  ;;  %7913 = vst [vmem:[#allocation9_spill] sm:$0xff] %v7197_v25  ;;  %5446 = vmatmul.mubr.bf16.gmra.mxu1 %v2495_v10  ;;  %v2503_v25 = vsel %vm2470_vm2, %v2500_v15, %v2502_v30  ;;  %v2505_v15 = vsel %vm2470_vm2, %v2502_v30, %v7917_v9 }
 0x19d   : > { %5449 = vmatprep.mubr.bf16.mxu1 %v2497_v43  ;;  %v7203_v29 = vpop.f32.mrf.mxu1 }
 0x19e   : > { %v7200_v19 = vpop.f32.mrf.mxu0  ;;  %7914 = vst [vmem:[#allocation6_spill] sm:$0xff] %v7203_v29 }
 0x19f   : > { %v7207_v16 = vpop.f32.mrf.mxu1 }
 0x1a0   : > { %v7205_v52 = vpop.f32.mrf.mxu0  ;;  %7915 = vst [vmem:[#allocation16_spill] sm:$0xff] %v7207_v16 }
 0x1a1   : > { %v7211_v10 = vpop.f32.mrf.mxu1 }
 0x1a2   : > { %v5271_v28 = vpop.f32.mrf.mxu0  ;;  %5502 = vmatmul.mubr.bf16.gmra.mxu0 %v2501_v44  ;;  %7916 = vst [vmem:[#allocation21_spill] sm:$0xff] %v7211_v10 }
 0x1a3   : > { %5505 = vmatprep.mubr.bf16.mxu0 %v2503_v25 }
 0x1a4   : > { %v1613_v43 = vpop.f32.mrf.mxu0  ;;  %v5219_v54 = vpop.f32.mrf.mxu1  ;;  %5450 = vmatmul.mubr.bf16.gmra.mxu1 %v2499_v1 }
 0x1a5   : > { %v1305_v5 = vadd.f32 %v5219_v54, %v7086_v0  ;;  %5453 = vmatprep.mubr.bf16.mxu1 %v2501_v44 }
 0x1a6   : > { %v5272_v29 = vpop.f32.mrf.mxu0  ;;  %v1296_v56 = vpop.f32.mrf.mxu1 }
 0x1a7   : > { %v1297_v53 = vadd.f32 %v1296_v56, %v7098_v59  ;;  %v7215_v47 = vadd.f32 %v5271_v28, %v1305_v5 }
 0x1a8   : > { %v1616_v16 = vpop.f32.mrf.mxu0  ;;  %v5220_v39 = vpop.f32.mrf.mxu1 }
 0x1a9   : > { %v1308_v10 = vadd.f32 %v5220_v39, %v7110_v13  ;;  %v7221_v1 = vadd.f32 %v1613_v43, %v1297_v53 }
 0x1aa   : > { %v5275_v11 = vpop.f32.mrf.mxu0  ;;  %5506 = vmatmul.mubr.bf16.gmra.mxu0 %v2505_v15  ;;  %v1299_v54 = vpop.f32.mrf.mxu1 }
 0x1ab   : > { %5509 = vmatprep.mubr.bf16.mxu0 %v6694_v2  ;;  %v1300_v0 = vadd.f32 %v1299_v54, %v7124_v14  ;;  %v7225_v59 = vadd.f32 %v5272_v29, %v1308_v10 }
 0x1ac   : > { %v1629_v56 = vpop.f32.mrf.mxu0  ;;  %v5223_v5 = vpop.f32.mrf.mxu1  ;;  %5454 = vmatmul.mubr.bf16.gmra.mxu1 %v2503_v25 }
 0x1ad   : > { %v1321_v28 = vadd.f32 %v5223_v5, %v7134_v31  ;;  %5457 = vmatprep.mubr.bf16.mxu1 %v2505_v15  ;;  %v7228_v44 = vadd.f32 %v1616_v16, %v1300_v0 }
 0x1ae   : > { %v5276_v9 = vpop.f32.mrf.mxu0  ;;  %v1312_v13 = vpop.f32.mrf.mxu1 }
 0x1af   : > { %v1313_v53 = vadd.f32 %v1312_v13, %v7147_v21  ;;  %v7231_v43 = vadd.f32 %v5275_v11, %v1321_v28 }
 0x1b0   : > { %v1632_v30 = vpop.f32.mrf.mxu0  ;;  %v5224_v39 = vpop.f32.mrf.mxu1 }
 0x1b1   : > { %v1324_v14 = vadd.f32 %v5224_v39, %v7159_v6  ;;  %v7235_v29 = vadd.f32 %v1629_v56, %v1313_v53 }
 0x1b2   : > { %v5279_v54 = vpop.f32.mrf.mxu0  ;;  %5510 = vmatmul.mubr.bf16.gmra.mxu0 %v6699_v7  ;;  %v1315_v25 = vpop.f32.mrf.mxu1 }
 0x1b3   : > { %5581 = vmatprep.mubr.bf16.mxu0 %v6709_v60  ;;  %v1316_v31 = vadd.f32 %v1315_v25, %v7168_v33  ;;  %v7239_v10 = vadd.f32 %v5276_v9, %v1324_v14 }
 0x1b4   : > { %v1645_v16 = vpop.f32.mrf.mxu0  ;;  %v5227_v21 = vpop.f32.mrf.mxu1  ;;  %5458 = vmatmul.mubr.bf16.gmra.mxu1 %v6694_v2 }
 0x1b5   : > { %v1337_v11 = vadd.f32 %v5227_v21, %v7173_v26  ;;  %5529 = vmatprep.mubr.bf16.mxu1 %v6733_v12  ;;  %v7244_v15 = vadd.f32 %v1632_v30, %v1316_v31 }
 0x1b6   : > { %v5280_v6 = vpop.f32.mrf.mxu0  ;;  %v1328_v7 = vpop.f32.mrf.mxu1 }
 0x1b7   : > { %v1329_v0 = vadd.f32 %v1328_v7, %v7176_v24  ;;  %v7247_v60 = vadd.f32 %v5279_v54, %v1337_v11  ;;  %v3477_v11 = vrot.slane %v7858_v4, 3 }
 0x1b8   : > { %v1648_v56 = vpop.f32.mrf.mxu0  ;;  %v5228_v33 = vpop.f32.mrf.mxu1 }
 0x1b9   : > { %v1340_v5 = vadd.f32 %v5228_v33, %v7181_v57  ;;  %v7251_v2 = vadd.f32 %v1645_v16, %v1329_v0 }
 0x1ba   : > { %v5283_v28 = vpop.f32.mrf.mxu0  ;;  %5582 = vmatmul.mubr.bf16.vlgmr.msra.gmra.mxu0 %v6724_v55  ;;  %v1331_v26 = vpop.f32.mrf.mxu1 }
 0x1bb   : > { %5585 = vmatprep.mubr.bf16.mxu0 %v6727_v36  ;;  %v1332_v12 = vadd.f32 %v1331_v26, %v7187_v20  ;;  %v7255_v13 = vadd.f32 %v5280_v6, %v1340_v5  ;;  %v3118_v26 = vrot.slane %v7884_v62, 2  ;;  %v3481_v62 = vrot.slane %v7870_v58, 3 }
 0x1bc   : > { %v1661_v9 = vpop.f32.mrf.mxu0  ;;  %v5231_v24 = vpop.f32.mrf.mxu1  ;;  %5530 = vmatmul.mubr.bf16.vlgmr.msra.gmra.mxu1 %v6746_v50 }
 0x1bd   : > { %v1353_v53 = vadd.f32 %v5231_v24, %v7190_v22  ;;  %5533 = vmatprep.mubr.bf16.mxu1 %v6758_v27  ;;  %v7260_v30 = vadd.f32 %v1648_v56, %v1332_v12  ;;  %v3119_v12 = vrot.slane %v7885_v18, 3  ;;  %v3122_v24 = vrot.slane %v7886_v51, 2 }
 0x1be   : > { %v5284_v57 = vpop.f32.mrf.mxu0  ;;  %v1344_v55 = vpop.f32.mrf.mxu1 }
 0x1bf   : > { %v1345_v39 = vadd.f32 %v1344_v55, %v7195_v40  ;;  %v7263_v36 = vadd.f32 %v5283_v28, %v1353_v53  ;;  %v3123_v53 = vrot.slane %v7887_v35, 3 }
 0x1c0   : > { %v1664_v14 = vpop.f32.mrf.mxu0  ;;  %v5232_v20 = vpop.f32.mrf.mxu1 }
 0x1c1   : > { %v1356_v54 = vadd.f32 %v5232_v20, %v7200_v19  ;;  %v7267_v50 = vadd.f32 %v1661_v9, %v1345_v39  ;;  %v3124_v35 = vor.u32 %v3123_v53, %v3122_v24 }
 0x1c2   : > { %v5287_v25 = vpop.f32.mrf.mxu0  ;;  %5586 = vmatmul.mubr.bf16.gmra.mxu0 %v6749_v42  ;;  %v1347_v22 = vpop.f32.mrf.mxu1  ;;  %v3475_v42 = vrot.slane %v6109_v48, 3 }
 0x1c3   : > { %5589 = vmatprep.mubr.bf16.mxu0 %v6754_v38  ;;  %v1348_v27 = vadd.f32 %v1347_v22, %v7205_v52  ;;  %v7271_v16 = vadd.f32 %v5284_v57, %v1356_v54  ;;  %v7919_v54 = vld [vmem:[#allocation5_spill] sm:$0xff] }
 0x1c4   : > { %v1677_v31 = vpop.f32.mrf.mxu0  ;;  %v5235_v40 = vpop.f32.mrf.mxu1  ;;  %5534 = vmatmul.mubr.bf16.gmra.mxu1 %v6784_v63  ;;  %v7918_v63 = vrot.slane %v6585_v46, 3  ;;  %v3478_v48 = vsel %vm3463_vm4, %v3475_v42, %v3477_v11 }
 0x1c5   : > { %v1369_v21 = vadd.f32 %v5235_v40, %v7059_v17  ;;  %5537 = vmatprep.mubr.bf16.mxu1 %v6791_v8  ;;  %v7278_v6 = vadd.f32 %v1664_v14, %v1348_v27  ;;  %v7920_v27 = vld [vmem:[#allocation14_spill] sm:$0xff] }
 0x1c6   : > { %v5288_v19 = vpop.f32.mrf.mxu0  ;;  %v1360_v38 = vpop.f32.mrf.mxu1  ;;  %v3476_v17 = vsel %vm3463_vm4, %v7918_v63, %v3475_v42  ;;  %v7924_v63 = vld [vmem:[#allocation10_spill] sm:$0xff] }
 0x1c7   : > { %v1361_v52 = vadd.f32 %v1360_v38, %v7063_v23  ;;  %v7281_v0 = vadd.f32 %v5287_v25, %v1369_v21 }
 0x1c8   : > { %v1680_v7 = vpop.f32.mrf.mxu0  ;;  %v5236_v56 = vpop.f32.mrf.mxu1 }
 0x1c9   : > { %v1372_v8 = vadd.f32 %v5236_v56, %v7068_v41  ;;  %v7288_v4 = vadd.f32 %v1677_v31, %v1361_v52  ;;  %v3479_v41 = vrot.slane %v7869_v34, 3  ;;  %v7921_v31 = vld [vmem:[#allocation15_spill] sm:$0xff] }
 0x1ca   : > { %v5291_v33 = vpop.f32.mrf.mxu0  ;;  %5590 = vmatmul.mubr.bf16.gmra.mxu0 %v3476_v17  ;;  %v1363_v5 = vpop.f32.mrf.mxu1  ;;  %v3483_v17 = vrot.slane %v7924_v63, 3  ;;  %v7934_v63 = vld [vmem:[#allocation4_spill] sm:$0xff] }
 0x1cb   : > { %5593 = vmatprep.mubr.bf16.mxu0 %v3478_v48  ;;  %v1364_v23 = vadd.f32 %v1363_v5, %v7077_v49  ;;  %v7293_v46 = vadd.f32 %v5288_v19, %v1372_v8  ;;  %v3480_v51 = vsel %vm3463_vm4, %v3477_v11, %v3479_v41  ;;  %v7922_v19 = vld [vmem:[#allocation35_spill] sm:$0xff]  ;;  %v7923_v11 = vld [vmem:[#allocation12_spill] sm:$0xff]  ;;  %v7926_v5 = vld [vmem:[#allocation13_spill] sm:$0xff] }
 0x1cc   : > { %v1693_v28 = vpop.f32.mrf.mxu0  ;;  %v5239_v9 = vpop.f32.mrf.mxu1  ;;  %5538 = vmatmul.mubr.bf16.gmra.mxu1 %v6794_v37  ;;  %v3120_v37 = vor.u32 %v3119_v12, %v3118_v26  ;;  %v3127_v38 = vrot.slane %v7923_v11, 3  ;;  %v7925_v8 = vld [vmem:[#allocation19_spill] sm:$0xff]  ;;  %v7933_v11 = vld [vmem:[#allocation20_spill] sm:$0xff] }
 0x1cd   : > { %v1385_v57 = vadd.f32 %v5239_v9, %v7080_v3  ;;  %5541 = vmatprep.mubr.bf16.mxu1 %v6807_v32  ;;  %v7302_v55 = vadd.f32 %v1680_v7, %v1364_v23  ;;  %v3482_v32 = vsel %vm3463_vm4, %v3479_v41, %v3481_v62  ;;  %v3485_v23 = vrot.slane %v7926_v5, 3  ;;  %v7927_v12 = vld [vmem:[#allocation23_spill] sm:$0xff] }
 0x1ce   : > { %v5292_v49 = vpop.f32.mrf.mxu0  ;;  %v1376_v18 = vpop.f32.mrf.mxu1  ;;  %v3121_v42 = vsel %vm3086_vm5, %v7922_v19, %v3120_v37  ;;  %v3125_v56 = vsel %vm3086_vm5, %v3120_v37, %v3124_v35  ;;  %v7932_v19 = vld [vmem:[#allocation7_spill] sm:$0xff] }
 0x1cf   : > { %v1377_v39 = vadd.f32 %v1376_v18, %v7093_v45  ;;  %v7305_v20 = vadd.f32 %v5291_v33, %v1385_v57  ;;  %v3126_v45 = vrot.slane %v7920_v27, 2  ;;  %v7928_v18 = vld [vmem:[#allocation28_spill] sm:$0xff]  ;;  %v7935_v5 = vld [vmem:[#allocation11_spill] sm:$0xff] }
 0x1d0   : > { %v1696_v14 = vpop.f32.mrf.mxu0  ;;  %v5240_v34 = vpop.f32.mrf.mxu1 }
 0x1d1   : > { %v1388_v3 = vadd.f32 %v5240_v34, %v7919_v54  ;;  %v7310_v58 = vadd.f32 %v1693_v28, %v1377_v39  ;;  %v3128_v24 = vor.u32 %v3127_v38, %v3126_v45  ;;  %v3486_v34 = vsel %vm3463_vm4, %v3483_v17, %v3485_v23  ;;  %v7929_v54 = vld [vmem:[#allocation33_spill] sm:$0xff] }
 0x1d2   : > { %v5295_v25 = vpop.f32.mrf.mxu0  ;;  %5594 = vmatmul.mubr.bf16.gmra.mxu0 %v3480_v51  ;;  %v1379_v22 = vpop.f32.mrf.mxu1  ;;  %v3489_v38 = vrot.slane %v7933_v11, 3 }
 0x1d3   : > { %5597 = vmatprep.mubr.bf16.mxu0 %v3482_v32  ;;  %v1380_v40 = vadd.f32 %v1379_v22, %v7921_v31  ;;  %v7317_v52 = vadd.f32 %v5292_v49, %v1388_v3  ;;  %v3484_v49 = vsel %vm3463_vm4, %v3481_v62, %v3483_v17  ;;  %v3129_v22 = vsel %vm3086_vm5, %v3124_v35, %v3128_v24  ;;  %v7930_v62 = vld [vmem:[#allocation36_spill] sm:$0xff]  ;;  %v7931_v31 = vld [vmem:[#allocation17_spill] sm:$0xff] }
 0x1d4   : > { %v1709_v21 = vpop.f32.mrf.mxu0  ;;  %v5243_v7 = vpop.f32.mrf.mxu1  ;;  %5542 = vmatmul.mubr.bf16.gmra.mxu1 %v3121_v42  ;;  %v3133_v45 = vsel %vm3086_vm5, %v3128_v24, %v7930_v62  ;;  %v7941_v62 = vld [vmem:[#allocation29_spill] sm:$0xff] }
 0x1d5   : > { %v1401_v33 = vadd.f32 %v5243_v7, %v7925_v8  ;;  %5545 = vmatprep.mubr.bf16.mxu1 %v3125_v56  ;;  %v7323_v28 = vadd.f32 %v1696_v14, %v1380_v40  ;;  %v3487_v40 = vrot.slane %v7931_v31, 3 }
 0x1d6   : > { %v5296_v48 = vpop.f32.mrf.mxu0  ;;  %v1392_v26 = vpop.f32.mrf.mxu1 }
 0x1d7   : > { %v1393_v9 = vadd.f32 %v1392_v26, %v7927_v12  ;;  %v7326_v53 = vadd.f32 %v5295_v25, %v1401_v33 }
 0x1d8   : > { %v1712_v41 = vpop.f32.mrf.mxu0  ;;  %v5244_v57 = vpop.f32.mrf.mxu1 }
 0x1d9   : > { %v1404_v39 = vadd.f32 %v5244_v57, %v7928_v18  ;;  %v7331_v51 = vadd.f32 %v1709_v21, %v1393_v9  ;;  %v3490_v9 = vsel %vm3463_vm4, %v3487_v40, %v3489_v38 }
 0x1da   : > { %v5299_v37 = vpop.f32.mrf.mxu0  ;;  %5598 = vmatmul.mubr.bf16.gmra.mxu0 %v3484_v49  ;;  %v1395_v14 = vpop.f32.mrf.mxu1 }
 0x1db   : > { %5601 = vmatprep.mubr.bf16.mxu0 %v3486_v34  ;;  %v1396_v3 = vadd.f32 %v1395_v14, %v7929_v54  ;;  %v7335_v25 = vadd.f32 %v5296_v48, %v1404_v39  ;;  %v3488_v48 = vsel %vm3463_vm4, %v3485_v23, %v3487_v40  ;;  %v7937_v34 = vld [vmem:[#allocation37_spill] sm:$0xff]  ;;  %v7938_v14 = vld [vmem:[#allocation24_spill] sm:$0xff]  ;;  %v7942_v40 = vld [vmem:[#allocation6_spill] sm:$0xff] }
 0x1dc   : > { %v1725_v32 = vpop.f32.mrf.mxu0  ;;  %v5247_v27 = vpop.f32.mrf.mxu1  ;;  %5546 = vmatmul.mubr.bf16.gmra.mxu1 %v3129_v22  ;;  %v3491_v23 = vrot.slane %v7938_v14, 3  ;;  %v7939_v54 = vld [vmem:[#allocation9_spill] sm:$0xff]  ;;  %v7940_v22 = vld [vmem:[#allocation26_spill] sm:$0xff] }
 0x1dd   : > { %v1417_v42 = vadd.f32 %v5247_v27, %v7932_v19  ;;  %5549 = vmatprep.mubr.bf16.mxu1 %v3133_v45  ;;  %v7342_v7 = vadd.f32 %v1712_v41, %v1396_v3  ;;  %v7936_v41 = vld [vmem:[#allocation8_spill] sm:$0xff] }
 0x1de   : > { %v5300_v21 = vpop.f32.mrf.mxu0  ;;  %v1408_v56 = vpop.f32.mrf.mxu1 }
 0x1df   : > { %v1409_v35 = vadd.f32 %v1408_v56, %v7934_v63  ;;  %v7345_v8 = vadd.f32 %v5299_v37, %v1417_v42  ;;  %v3492_v56 = vsel %vm3463_vm4, %v3489_v38, %v3491_v23  ;;  %v7943_v63 = vld [vmem:[#allocation16_spill] sm:$0xff] }
 0x1e0   : > { %v1728_v17 = vpop.f32.mrf.mxu0  ;;  %v5248_v33 = vpop.f32.mrf.mxu1 }
 0x1e1   : > { %v1420_v26 = vadd.f32 %v5248_v33, %v7935_v5  ;;  %v7350_v24 = vadd.f32 %v1725_v32, %v1409_v35  ;;  %v3493_v32 = vrot.slane %v7941_v62, 3 }
 0x1e2   : > { %v5303_v12 = vpop.f32.mrf.mxu0  ;;  %5602 = vmatmul.mubr.bf16.gmra.mxu0 %v3488_v48  ;;  %v1411_v57 = vpop.f32.mrf.mxu1 }
 0x1e3   : > { %5605 = vmatprep.mubr.bf16.mxu0 %v3490_v9  ;;  %v1412_v49 = vadd.f32 %v1411_v57, %v7936_v41  ;;  %v7353_v39 = vadd.f32 %v5300_v21, %v1420_v26  ;;  %v3494_v48 = vsel %vm3463_vm4, %v3491_v23, %v3493_v32 }
 0x1e4   : > { %v1741_v18 = vpop.f32.mrf.mxu0  ;;  %v5251_v37 = vpop.f32.mrf.mxu1  ;;  %5550 = vmatmul.mubr.bf16.gmra.mxu1 %v7937_v34 }
 0x1e5   : > { %v1433_v3 = vadd.f32 %v5251_v37, %v7939_v54  ;;  %5553 = vmatprep.mubr.bf16.mxu1 %v7940_v22  ;;  %v7360_v45 = vadd.f32 %v1728_v17, %v1412_v49  ;;  %v7944_v17 = vld [vmem:[#allocation21_spill] sm:$0xff]  ;;  %v7945_v49 = vld [vmem:[#allocation2_spill] sm:$0xff] }
 0x1e6   : > { %v5304_v27 = vpop.f32.mrf.mxu0  ;;  %v1424_v31 = vpop.f32.mrf.mxu1  ;;  %v7946_v37 = vld [vmem:[#allocation38_spill] sm:$0xff] }
 0x1e7   : > { %v1425_v19 = vadd.f32 %v1424_v31, %v7942_v40  ;;  %v7363_v21 = vadd.f32 %v5303_v12, %v1433_v3 }
 0x1e8   : > { %v1744_v42 = vpop.f32.mrf.mxu0  ;;  %v5252_v11 = vpop.f32.mrf.mxu1 }
 0x1e9   : > { %v1436_v35 = vadd.f32 %v5252_v11, %v7943_v63  ;;  %v7368_v5 = vadd.f32 %v1741_v18, %v1425_v19 }
 0x1ea   : > { %v5375_v33 = vpop.f32.mrf.mxu0  ;;  %5606 = vmatmul.mubr.bf16.gmra.mxu0 %v3492_v56  ;;  %v1427_v26 = vpop.f32.mrf.mxu1 }
 0x1eb   : > { %5609 = vmatprep.mubr.bf16.mxu0 %v3494_v48  ;;  %v1428_v9 = vadd.f32 %v1427_v26, %v7944_v17  ;;  %v7371_v41 = vadd.f32 %v5304_v27, %v1436_v35  ;;  %v7947_v27 = vrot.slane %v6611_v61, 3  ;;  %v7949_v35 = vld [vmem:[#allocation39_spill] sm:$0xff] }
 0x1ec   : > { %v2274_v57 = vpop.f32.mrf.mxu0  ;;  %v5323_v12 = vpop.f32.mrf.mxu1  ;;  %5554 = vmatmul.mubr.bf16.gmra.mxu1 %v7945_v49  ;;  %v7951_v49 = vld [vmem:[#allocation40_spill] sm:$0xff] }
 0x1ed   : > { %v2040_v38 = vadd.f32 %v5323_v12, %v7215_v47  ;;  %5557 = vmatprep.mubr.bf16.mxu1 %v7946_v37  ;;  %v7376_v14 = vadd.f32 %v1744_v42, %v1428_v9  ;;  %v3496_v62 = vsel %vm3463_vm4, %v3493_v32, %v7947_v27  ;;  %v7948_v42 = vld [vmem:[#allocation31_spill] sm:$0xff]  ;;  %v7950_v32 = vld [vmem:[#allocation41_spill] sm:$0xff] }
 0x1ee   : > { %v5376_v34 = vpop.f32.mrf.mxu0  ;;  %v1895_v23 = vpop.f32.mrf.mxu1 }
 0x1ef   : > { %v2038_v18 = vadd.f32 %v1895_v23, %v7221_v1  ;;  %v7379_v3 = vadd.f32 %v5375_v33, %v2040_v38 }
 0x1f0   : > { %v2277_v54 = vpop.f32.mrf.mxu0  ;;  %v5324_v22 = vpop.f32.mrf.mxu1 }
 0x1f1   : > { %v2041_v31 = vadd.f32 %v5324_v22, %v7225_v59  ;;  %v7385_v47 = vadd.f32 %v2274_v57, %v2038_v18 }
 0x1f2   : > { %v5379_v40 = vpop.f32.mrf.mxu0  ;;  %5610 = vmatmul.mubr.bf16.gmra.mxu0 %v3496_v62  ;;  %v1898_v19 = vpop.f32.mrf.mxu1 }
 0x1f3   : > { %5613 = vmatprep.mubr.bf16.mxu0 %v7948_v42  ;;  %v2039_v11 = vadd.f32 %v1898_v19, %v7228_v44  ;;  %v7389_v56 = vadd.f32 %v5376_v34, %v2041_v31 }
 0x1f4   : > { %v2290_v1 = vpop.f32.mrf.mxu0  ;;  %v5327_v63 = vpop.f32.mrf.mxu1  ;;  %5558 = vmatmul.mubr.bf16.gmra.mxu1 %v7949_v35 }
 0x1f5   : > { %v2044_v61 = vadd.f32 %v5327_v63, %v7231_v43  ;;  %5561 = vmatprep.mubr.bf16.mxu1 %v7950_v32  ;;  %v7394_v33 = vadd.f32 %v2277_v54, %v2039_v11  ;;  %v7952_v54 = vld [vmem:[#allocation3_spill] sm:$0xff] }
 0x1f6   : > { %v5380_v59 = vpop.f32.mrf.mxu0  ;;  %v1911_v48 = vpop.f32.mrf.mxu1 }
 0x1f7   : > { %v2042_v26 = vadd.f32 %v1911_v48, %v7235_v29  ;;  %v7397_v9 = vadd.f32 %v5379_v40, %v2044_v61 }
 0x1f8   : > { %v2293_v17 = vpop.f32.mrf.mxu0  ;;  %v5328_v44 = vpop.f32.mrf.mxu1 }
 0x1f9   : > { %v2045_v57 = vadd.f32 %v5328_v44, %v7239_v10  ;;  %v7401_v38 = vadd.f32 %v2290_v1, %v2042_v26 }
 0x1fa   : > { %v5383_v12 = vpop.f32.mrf.mxu0  ;;  %5614 = vmatmul.mubr.bf16.gmra.mxu0 %v7951_v49  ;;  %v1914_v43 = vpop.f32.mrf.mxu1 }
 0x1fb   : > { %v2043_v37 = vadd.f32 %v1914_v43, %v7244_v15  ;;  %v7404_v23 = vadd.f32 %v5380_v59, %v2045_v57 }
 0x1fc   : > { %v2306_v34 = vpop.f32.mrf.mxu0  ;;  %v5331_v18 = vpop.f32.mrf.mxu1  ;;  %5562 = vmatmul.mubr.bf16.gmra.mxu1 %v7952_v54 }
 0x1fd   : > { %v2048_v29 = vadd.f32 %v5331_v18, %v7247_v60  ;;  %v7408_v27 = vadd.f32 %v2293_v17, %v2043_v37 }
 0x1fe   : > { %v5384_v22 = vpop.f32.mrf.mxu0  ;;  %v1927_v10 = vpop.f32.mrf.mxu1 }
 0x1ff   : > { %v2046_v62 = vadd.f32 %v1927_v10, %v7251_v2  ;;  %v7411_v40 = vadd.f32 %v5383_v12, %v2048_v29 }
 0x200   : > { %v2309_v31 = vpop.f32.mrf.mxu0  ;;  %v5332_v19 = vpop.f32.mrf.mxu1 }
 0x201   : > { %v2049_v15 = vadd.f32 %v5332_v19, %v7255_v13  ;;  %v7414_v11 = vadd.f32 %v2306_v34, %v2046_v62 }
 0x202   : > { %v5387_v42 = vpop.f32.mrf.mxu0  ;;  %v1930_v1 = vpop.f32.mrf.mxu1 }
 0x203   : > { %v2047_v63 = vadd.f32 %v1930_v1, %v7260_v30  ;;  %v7417_v60 = vadd.f32 %v5384_v22, %v2049_v15 }
 0x204   : > { %v2322_v35 = vpop.f32.mrf.mxu0  ;;  %v5335_v61 = vpop.f32.mrf.mxu1 }
 0x205   : > { %v2052_v32 = vadd.f32 %v5335_v61, %v7263_v36  ;;  %v7420_v2 = vadd.f32 %v2309_v31, %v2047_v63 }
 0x206   : > { %v5388_v59 = vpop.f32.mrf.mxu0  ;;  %v1943_v48 = vpop.f32.mrf.mxu1 }
 0x207   : > { %v2050_v26 = vadd.f32 %v1943_v48, %v7267_v50  ;;  %v7423_v13 = vadd.f32 %v5387_v42, %v2052_v32 }
 0x208   : > { %v2325_v17 = vpop.f32.mrf.mxu0  ;;  %v5336_v44 = vpop.f32.mrf.mxu1 }
 0x209   : > { %v2053_v57 = vadd.f32 %v5336_v44, %v7271_v16  ;;  %v7426_v30 = vadd.f32 %v2322_v35, %v2050_v26 }
 0x20a   : > { %v5391_v12 = vpop.f32.mrf.mxu0  ;;  %v1946_v49 = vpop.f32.mrf.mxu1 }
 0x20b   : > { %v2051_v43 = vadd.f32 %v1946_v49, %v7278_v6  ;;  %v7429_v36 = vadd.f32 %v5388_v59, %v2053_v57 }
 0x20c   : > { %v2338_v37 = vpop.f32.mrf.mxu0  ;;  %v5339_v34 = vpop.f32.mrf.mxu1 }
 0x20d   : > { %v2056_v18 = vadd.f32 %v5339_v34, %v7281_v0  ;;  %v7432_v50 = vadd.f32 %v2325_v17, %v2051_v43 }
 0x20e   : > { %v5392_v54 = vpop.f32.mrf.mxu0  ;;  %v1959_v29 = vpop.f32.mrf.mxu1 }
 0x20f   : > { %v2054_v22 = vadd.f32 %v1959_v29, %v7288_v4  ;;  %v7435_v16 = vadd.f32 %v5391_v12, %v2056_v18 }
 0x210   : > { %v2341_v10 = vpop.f32.mrf.mxu0  ;;  %v5340_v62 = vpop.f32.mrf.mxu1 }
 0x211   : > { %v2057_v31 = vadd.f32 %v5340_v62, %v7293_v46  ;;  %v7438_v6 = vadd.f32 %v2338_v37, %v2054_v22 }
 0x212   : > { %v5395_v19 = vpop.f32.mrf.mxu0  ;;  %v1962_v15 = vpop.f32.mrf.mxu1 }
 0x213   : > { %v2055_v42 = vadd.f32 %v1962_v15, %v7302_v55  ;;  %v7441_v0 = vadd.f32 %v5392_v54, %v2057_v31 }
 0x214   : > { %v2354_v1 = vpop.f32.mrf.mxu0  ;;  %v5343_v63 = vpop.f32.mrf.mxu1 }
 0x215   : > { %v2060_v35 = vadd.f32 %v5343_v63, %v7305_v20  ;;  %v7444_v4 = vadd.f32 %v2341_v10, %v2055_v42 }
 0x216   : > { %v5396_v61 = vpop.f32.mrf.mxu0  ;;  %v1975_v32 = vpop.f32.mrf.mxu1 }
 0x217   : > { %v2058_v59 = vadd.f32 %v1975_v32, %v7310_v58  ;;  %v7447_v46 = vadd.f32 %v5395_v19, %v2060_v35 }
 0x218   : > { %v2357_v48 = vpop.f32.mrf.mxu0  ;;  %v5344_v26 = vpop.f32.mrf.mxu1 }
 0x219   : > { %v2061_v17 = vadd.f32 %v5344_v26, %v7317_v52  ;;  %v7450_v55 = vadd.f32 %v2354_v1, %v2058_v59 }
 0x21a   : > { %v5399_v44 = vpop.f32.mrf.mxu0  ;;  %v1978_v57 = vpop.f32.mrf.mxu1 }
 0x21b   : > { %v2059_v12 = vadd.f32 %v1978_v57, %v7323_v28  ;;  %v7453_v20 = vadd.f32 %v5396_v61, %v2061_v17 }
 0x21c   : > { %v2370_v49 = vpop.f32.mrf.mxu0  ;;  %v5347_v43 = vpop.f32.mrf.mxu1 }
 0x21d   : > { %v2064_v37 = vadd.f32 %v5347_v43, %v7326_v53  ;;  %v7456_v58 = vadd.f32 %v2357_v48, %v2059_v12 }
 0x21e   : > { %v5400_v34 = vpop.f32.mrf.mxu0  ;;  %v1991_v18 = vpop.f32.mrf.mxu1 }
 0x21f   : > { %v2062_v54 = vadd.f32 %v1991_v18, %v7331_v51  ;;  %v7459_v52 = vadd.f32 %v5399_v44, %v2064_v37 }
 0x220   : > { %v2373_v29 = vpop.f32.mrf.mxu0  ;;  %v5348_v22 = vpop.f32.mrf.mxu1 }
 0x221   : > { %v2065_v10 = vadd.f32 %v5348_v22, %v7335_v25  ;;  %v7462_v28 = vadd.f32 %v2370_v49, %v2062_v54 }
 0x222   : > { %v5403_v62 = vpop.f32.mrf.mxu0  ;;  %v1994_v31 = vpop.f32.mrf.mxu1 }
 0x223   : > { %v2063_v19 = vadd.f32 %v1994_v31, %v7342_v7  ;;  %v7465_v53 = vadd.f32 %v5400_v34, %v2065_v10 }
 0x224   : > { %v2386_v15 = vpop.f32.mrf.mxu0  ;;  %v5351_v42 = vpop.f32.mrf.mxu1 }
 0x225   : > { %v2068_v1 = vadd.f32 %v5351_v42, %v7345_v8  ;;  %v7468_v51 = vadd.f32 %v2373_v29, %v2063_v19 }
 0x226   : > { %v5404_v63 = vpop.f32.mrf.mxu0  ;;  %v2007_v35 = vpop.f32.mrf.mxu1 }
 0x227   : > { %v2066_v61 = vadd.f32 %v2007_v35, %v7350_v24  ;;  %v7471_v25 = vadd.f32 %v5403_v62, %v2068_v1 }
 0x228   : > { %v2389_v32 = vpop.f32.mrf.mxu0  ;;  %v5352_v59 = vpop.f32.mrf.mxu1 }
 0x229   : > { %v2069_v48 = vadd.f32 %v5352_v59, %v7353_v39  ;;  %v7474_v7 = vadd.f32 %v2386_v15, %v2066_v61 }
 0x22a   : > { %v5407_v26 = vpop.f32.mrf.mxu0  ;;  %v2010_v17 = vpop.f32.mrf.mxu1 }
 0x22b   : > { %v2067_v44 = vadd.f32 %v2010_v17, %v7360_v45  ;;  %v7477_v8 = vadd.f32 %v5404_v63, %v2069_v48 }
 0x22c   : > { %v2402_v57 = vpop.f32.mrf.mxu0  ;;  %v5355_v12 = vpop.f32.mrf.mxu1 }
 0x22d   : > { %v2072_v49 = vadd.f32 %v5355_v12, %v7363_v21  ;;  %v7480_v24 = vadd.f32 %v2389_v32, %v2067_v44 }
 0x22e   : > { %v5408_v43 = vpop.f32.mrf.mxu0  ;;  %v2023_v37 = vpop.f32.mrf.mxu1 }
 0x22f   : > { %v2070_v34 = vadd.f32 %v2023_v37, %v7368_v5  ;;  %v7483_v39 = vadd.f32 %v5407_v26, %v2072_v49 }
 0x230   : > { %v2405_v18 = vpop.f32.mrf.mxu0  ;;  %v5356_v54 = vpop.f32.mrf.mxu1 }
 0x231   : > { %v2073_v29 = vadd.f32 %v5356_v54, %v7371_v41  ;;  %v7486_v45 = vadd.f32 %v2402_v57, %v2070_v34 }
 0x232   : > { %v5479_v22 = vpop.f32.mrf.mxu0  ;;  %v2026_v10 = vpop.f32.mrf.mxu1 }
 0x233   : > { %v2071_v62 = vadd.f32 %v2026_v10, %v7376_v14  ;;  %v7489_v21 = vadd.f32 %v5408_v43, %v2073_v29 }
 0x234   : > { %v2890_v31 = vpop.f32.mrf.mxu0  ;;  %v5427_v19 = vpop.f32.mrf.mxu1 }
 0x235   : > { %v2753_v15 = vadd.f32 %v5427_v19, %v7379_v3  ;;  %v7492_v5 = vadd.f32 %v2405_v18, %v2071_v62 }
 0x236   : > { %v5480_v42 = vpop.f32.mrf.mxu0  ;;  %v2608_v1 = vpop.f32.mrf.mxu1 }
 0x237   : > { %v2751_v63 = vadd.f32 %v2608_v1, %v7385_v47  ;;  %v7495_v41 = vadd.f32 %v5479_v22, %v2753_v15 }
 0x238   : > { %v2893_v35 = vpop.f32.mrf.mxu0  ;;  %v5428_v61 = vpop.f32.mrf.mxu1 }
 0x239   : > { %v2754_v32 = vadd.f32 %v5428_v61, %v7389_v56  ;;  %v7498_v14 = vadd.f32 %v2890_v31, %v2751_v63 }
 0x23a   : > { %v5483_v59 = vpop.f32.mrf.mxu0  ;;  %v2611_v48 = vpop.f32.mrf.mxu1 }
 0x23b   : > { %v2752_v26 = vadd.f32 %v2611_v48, %v7394_v33  ;;  %v7501_v3 = vadd.f32 %v5480_v42, %v2754_v32 }
 0x23c   : > { %v2906_v17 = vpop.f32.mrf.mxu0  ;;  %v5431_v44 = vpop.f32.mrf.mxu1 }
 0x23d   : > { %v2757_v57 = vadd.f32 %v5431_v44, %v7397_v9  ;;  %v7504_v47 = vadd.f32 %v2893_v35, %v2752_v26  ;;  %v5729_v26 = vmov 0.0  }
 0x23e   : > { %v5484_v12 = vpop.f32.mrf.mxu0  ;;  %v2624_v49 = vpop.f32.mrf.mxu1  ;;  %4212 = vst [vmem:[%s7531_s21] sm:$0xff] %v5729_v26 }
 0x23f   : > { %v2755_v43 = vadd.f32 %v2624_v49, %v7401_v38  ;;  %v7507_v56 = vadd.f32 %v5483_v59, %v2757_v57 }
 0x240   : > { %v2909_v37 = vpop.f32.mrf.mxu0  ;;  %v5432_v34 = vpop.f32.mrf.mxu1 }
 0x241   : > { %v2758_v18 = vadd.f32 %v5432_v34, %v7404_v23  ;;  %v7510_v33 = vadd.f32 %v2906_v17, %v2755_v43 }
 0x242   : > { %v5487_v54 = vpop.f32.mrf.mxu0  ;;  %v2627_v29 = vpop.f32.mrf.mxu1 }
 0x243   : > { %v2756_v22 = vadd.f32 %v2627_v29, %v7408_v27  ;;  %v7513_v10 = vadd.f32 %v5484_v12, %v2758_v18 }
 0x244   : > { %v2922_v9 = vpop.f32.mrf.mxu0  ;;  %v5435_v62 = vpop.f32.mrf.mxu1 }
 0x245   : > { %v2761_v31 = vadd.f32 %v5435_v62, %v7411_v40  ;;  %v7516_v19 = vadd.f32 %v2909_v37, %v2756_v22 }
 0x246   : > { %v5488_v38 = vpop.f32.mrf.mxu0  ;;  %v2640_v15 = vpop.f32.mrf.mxu1 }
 0x247   : > { %v2759_v42 = vadd.f32 %v2640_v15, %v7414_v11  ;;  %v7519_v1 = vadd.f32 %v5487_v54, %v2761_v31 }
 0x248   : > { %v2925_v23 = vpop.f32.mrf.mxu0  ;;  %v5436_v63 = vpop.f32.mrf.mxu1 }
 0x249   : > { %v2762_v35 = vadd.f32 %v5436_v63, %v7417_v60  ;;  %v7522_v61 = vadd.f32 %v2922_v9, %v2759_v42 }
 0x24a   : > { %v5491_v27 = vpop.f32.mrf.mxu0  ;;  %v2643_v32 = vpop.f32.mrf.mxu1 }
 0x24b   : > { %v2760_v59 = vadd.f32 %v2643_v32, %v7420_v2  ;;  %v7526_v48 = vadd.f32 %v5488_v38, %v2762_v35 }
 0x24c   : > { %v2938_v40 = vpop.f32.mrf.mxu0  ;;  %v5439_v11 = vpop.f32.mrf.mxu1 }
 0x24d   : > { %v2765_v60 = vadd.f32 %v5439_v11, %v7423_v13  ;;  %v7535_v44 = vadd.f32 %v2925_v23, %v2760_v59 }
 0x24e   : > { %v5492_v17 = vpop.f32.mrf.mxu0  ;;  %v2656_v57 = vpop.f32.mrf.mxu1 }
 0x24f   : > { %v2763_v2 = vadd.f32 %v2656_v57, %v7426_v30  ;;  %v7538_v49 = vadd.f32 %v5491_v27, %v2765_v60 }
 0x250   : > { %v2941_v12 = vpop.f32.mrf.mxu0  ;;  %v5440_v43 = vpop.f32.mrf.mxu1 }
 0x251   : > { %v2766_v37 = vadd.f32 %v5440_v43, %v7429_v36  ;;  %v7541_v18 = vadd.f32 %v2938_v40, %v2763_v2 }
 0x252   : > { %v5495_v34 = vpop.f32.mrf.mxu0  ;;  %v2659_v54 = vpop.f32.mrf.mxu1 }
 0x253   : > { %v2764_v29 = vadd.f32 %v2659_v54, %v7432_v50  ;;  %v7544_v13 = vadd.f32 %v5492_v17, %v2766_v37  ;;  %v7569_v54 = vpop.permute.xlu1 %4003 }
 0x254   : > { %v2954_v22 = vpop.f32.mrf.mxu0  ;;  %v5443_v9 = vpop.f32.mrf.mxu1 }
 0x255   : > { %v2769_v62 = vadd.f32 %v5443_v9, %v7435_v16  ;;  %v7547_v30 = vadd.f32 %v2941_v12, %v2764_v29  ;;  %v7564_v12 = vpop.permute.xlu0 %3998 }
 0x256   : > { %v5496_v31 = vpop.f32.mrf.mxu0  ;;  %v2672_v38 = vpop.f32.mrf.mxu1 }
 0x257   : > { %v2767_v15 = vadd.f32 %v2672_v38, %v7438_v6  ;;  %v7550_v36 = vadd.f32 %v5495_v34, %v2769_v62 }
 0x258   : > { %v2957_v42 = vpop.f32.mrf.mxu0  ;;  %v5444_v23 = vpop.f32.mrf.mxu1 }
 0x259   : > { %v2770_v63 = vadd.f32 %v5444_v23, %v7441_v0  ;;  %v7553_v50 = vadd.f32 %v2954_v22, %v2767_v15  ;;  %v7577_v15 = vpop.permute.xlu0 %4008 }
 0x25a   : > { %v5499_v35 = vpop.f32.mrf.mxu0  ;;  %v2675_v27 = vpop.f32.mrf.mxu1 }
 0x25b   : > { %v2768_v32 = vadd.f32 %v2675_v27, %v7444_v4  ;;  %v7556_v16 = vadd.f32 %v5496_v31, %v2770_v63 }
 0x25c   : > { %v2970_v59 = vpop.f32.mrf.mxu0  ;;  %v5447_v40 = vpop.f32.mrf.mxu1 }
 0x25d   : > { %v2773_v11 = vadd.f32 %v5447_v40, %v7447_v46  ;;  %v7559_v6 = vadd.f32 %v2957_v42, %v2768_v32 }
 0x25e   : > { %v5500_v26 = vpop.f32.mrf.mxu0  ;;  %v2688_v60 = vpop.f32.mrf.mxu1 }
 0x25f   : > { %v2771_v17 = vadd.f32 %v2688_v60, %v7450_v55  ;;  %v7562_v0 = vadd.f32 %v5499_v35, %v2773_v11  ;;  %v7582_v35 = vpop.permute.xlu1 %4013  ;;  %v7590_v60 = vpop.permute.xlu0 %4018 }
 0x260   : > { %v2973_v57 = vpop.f32.mrf.mxu0  ;;  %v5448_v2 = vpop.f32.mrf.mxu1 }
 0x261   : > { %v2774_v4 = vadd.f32 %v5448_v2, %v7453_v20  ;;  %v7567_v37 = vadd.f32 %v2970_v59, %v2771_v17 }
 0x262   : > { %v5503_v43 = vpop.f32.mrf.mxu0  ;;  %v2691_v34 = vpop.f32.mrf.mxu1 }
 0x263   : > { %v2772_v46 = vadd.f32 %v2691_v34, %v7456_v58  ;;  %v7572_v22 = vadd.f32 %v5500_v26, %v2774_v4  ;;  %v7595_v4 = vpop.permute.xlu1 %4023 }
 0x264   : > { %v2986_v29 = vpop.f32.mrf.mxu0  ;;  %v5451_v55 = vpop.f32.mrf.mxu1 }
 0x265   : > { %v2777_v9 = vadd.f32 %v5451_v55, %v7459_v52  ;;  %v7575_v31 = vadd.f32 %v2973_v57, %v2772_v46 }
 0x266   : > { %v5504_v62 = vpop.f32.mrf.mxu0  ;;  %v2704_v38 = vpop.f32.mrf.mxu1 }
 0x267   : > { %v2775_v20 = vadd.f32 %v2704_v38, %v7462_v28  ;;  %v7580_v23 = vadd.f32 %v5503_v43, %v2777_v9 }
 0x268   : > { %v2989_v42 = vpop.f32.mrf.mxu0  ;;  %v5452_v63 = vpop.f32.mrf.mxu1 }
 0x269   : > { %v2778_v58 = vadd.f32 %v5452_v63, %v7465_v53  ;;  %v7585_v32 = vadd.f32 %v2986_v29, %v2775_v20 }
 0x26a   : > { %v5507_v27 = vpop.f32.mrf.mxu0  ;;  %v2707_v52 = vpop.f32.mrf.mxu1 }
 0x26b   : > { %v2776_v59 = vadd.f32 %v2707_v52, %v7468_v51  ;;  %v7588_v11 = vadd.f32 %v5504_v62, %v2778_v58 }
 0x26c   : > { %v3002_v40 = vpop.f32.mrf.mxu0  ;;  %v5455_v26 = vpop.f32.mrf.mxu1 }
 0x26d   : > { %v2781_v28 = vadd.f32 %v5455_v26, %v7471_v25  ;;  %v7593_v57 = vadd.f32 %v2989_v42, %v2776_v59  ;;  %v7603_v25 = vpop.permute.xlu0 %4028 }
 0x26e   : > { %v5508_v17 = vpop.f32.mrf.mxu0  ;;  %v2720_v2 = vpop.f32.mrf.mxu1 }
 0x26f   : > { %v2779_v53 = vadd.f32 %v2720_v2, %v7474_v7  ;;  %v7598_v34 = vadd.f32 %v5507_v27, %v2781_v28  ;;  %v7608_v7 = vpop.permute.xlu1 %4033 }
 0x270   : > { %v3005_v43 = vpop.f32.mrf.mxu0  ;;  %v5456_v51 = vpop.f32.mrf.mxu1 }
 0x271   : > { %v2782_v46 = vadd.f32 %v5456_v51, %v7477_v8  ;;  %v7601_v55 = vadd.f32 %v3002_v40, %v2779_v53 }
 0x272   : > { %v5511_v29 = vpop.f32.mrf.mxu0  ;;  %v2723_v9 = vpop.f32.mrf.mxu1 }
 0x273   : > { %v2780_v62 = vadd.f32 %v2723_v9, %v7480_v24  ;;  %v7606_v20 = vadd.f32 %v5508_v17, %v2782_v46  ;;  %v7617_v24 = vpop.permute.xlu0 %4038  ;;  %v7622_v53 = vpop.permute.xlu1 %4043 }
 0x274   : > { %v3018_v38 = vpop.f32.mrf.mxu0  ;;  %v5459_v42 = vpop.f32.mrf.mxu1 }
 0x275   : > { %v2785_v63 = vadd.f32 %v5459_v42, %v7483_v39  ;;  %v7612_v27 = vadd.f32 %v3005_v43, %v2780_v62 }
 0x276   : > { %v5512_v58 = vpop.f32.mrf.mxu0  ;;  %v2736_v8 = vpop.f32.mrf.mxu1 }
 0x277   : > { %7953 = vst [vmem:[#allocation25_spill] sm:$0xff] %v7612_v27  ;;  %v2783_v52 = vadd.f32 %v2736_v8, %v7486_v45  ;;  %v7615_v40 = vadd.f32 %v5511_v29, %v2785_v63  ;;  %v7630_v42 = vpop.permute.xlu0 %4048 }
 0x278   : > { %v3021_v59 = vpop.f32.mrf.mxu0  ;;  %v5460_v26 = vpop.f32.mrf.mxu1 }
 0x279   : > { %7954 = vst [vmem:[#allocation30_spill] sm:$0xff] %v7615_v40  ;;  %v2786_v28 = vadd.f32 %v5460_v26, %v7489_v21  ;;  %v7620_v2 = vadd.f32 %v3018_v38, %v2783_v52  ;;  %v7633_v52 = vpop.permute.xlu1 %4053 }
 0x27a   : > { %v5583_v17 = vpop.f32.mrf.mxu0  ;;  %v2739_v39 = vpop.f32.mrf.mxu1 }
 0x27b   : > { %7955 = vst [vmem:[#allocation34_spill] sm:$0xff] %v7620_v2  ;;  %v2784_v43 = vadd.f32 %v2739_v39, %v7492_v5  ;;  %v7625_v46 = vadd.f32 %v5512_v58, %v2786_v28 }
 0x27c   : > { %v3601_v51 = vpop.f32.mrf.mxu0  ;;  %v5531_v45 = vpop.f32.mrf.mxu1 }
 0x27d   : > { %7956 = vst [vmem:[#allocation18_spill] sm:$0xff] %v7625_v46  ;;  %v7627_v9 = vadd.f32 %v3021_v59, %v2784_v43  ;;  %v3412_v62 = vadd.f32 %v5531_v45, %v7495_v41 }
 0x27e   : > { %v5584_v29 = vpop.f32.mrf.mxu0  ;;  %v3267_v21 = vpop.f32.mrf.mxu1 }
 0x27f   : > { %7957 = vst [vmem:[#allocation22_spill] sm:$0xff] %v7627_v9  ;;  %v3410_v38 = vadd.f32 %v3267_v21, %v7498_v14  ;;  %v3746_v28 = vadd.f32 %v5583_v17, %v3412_v62 }
 0x280   : > { %v3604_v63 = vpop.f32.mrf.mxu0  ;;  %v5532_v8 = vpop.f32.mrf.mxu1 }
 0x281   : > { %v3744_v5 = vadd.f32 %v3601_v51, %v3410_v38  ;;  %v3413_v58 = vadd.f32 %v5532_v8, %v7501_v3  ;;  %v7643_v51 = vpop.permute.xlu0 %4058  ;;  %v7647_v38 = vpop.permute.xlu1 %4063 }
 0x282   : > { %v5587_v26 = vpop.f32.mrf.mxu0  ;;  %v3270_v39 = vpop.f32.mrf.mxu1 }
 0x283   : > { %v3747_v59 = vadd.f32 %v5584_v29, %v3413_v58  ;;  %v3411_v43 = vadd.f32 %v3270_v39, %v7504_v47  ;;  %v4176_v45 = vmul.f32 %v7564_v12, %v3744_v5  ;;  %v4178_v29 = vmul.f32 %v7577_v15, %v3746_v28 }
 0x284   : > { %v3617_v41 = vpop.f32.mrf.mxu0  ;;  %v5535_v14 = vpop.f32.mrf.mxu1 }
 0x285   : > { %v4796_v3 = vpack.c.bf16 %v3747_v59, %v3746_v28  ;;  %v3745_v21 = vadd.f32 %v3604_v63, %v3411_v43  ;;  %v3416_v47 = vadd.f32 %v5535_v14, %v7507_v56  ;;  %v4255_v9 = vmul.f32 %v4176_v45, %v4176_v45 }
 0x286   : > { %v5588_v17 = vpop.f32.mrf.mxu0  ;;  %v3283_v62 = vpop.f32.mrf.mxu1  ;;  %v4179_v46 = vmul.f32 %v7582_v35, %v3747_v59  ;;  %v4257_v14 = vmul.f32 %v4178_v29, %v4178_v29 }
 0x287   : > { %4898 = vst [vmem:[%s7641_s26 + $0x8] sm:$0xff] %v4796_v3   ;;  %v4791_v12 = vpack.c.bf16 %v3745_v21, %v3744_v5  ;;  %v4177_v8 = vmul.f32 %v7569_v54, %v3745_v21  ;;  %v3414_v58 = vadd.f32 %v3283_v62, %v7510_v33  ;;  %v3750_v40 = vadd.f32 %v5587_v26, %v3416_v47  ;;  %v7655_v5 = vpop.permute.xlu0 %4068 }
 0x288   : > { %v3620_v39 = vpop.f32.mrf.mxu0  ;;  %v5536_v2 = vpop.f32.mrf.mxu1 }
 0x289   : > { %4792 = vst [vmem:[%s7641_s26] sm:$0xff] %v4791_v12   ;;  %v4213_v63 = vadd.f32 %v4177_v8, %v4176_v45  ;;  %v4256_v43 = vmul.f32 %v4177_v8, %v4177_v8  ;;  %v3748_v15 = vadd.f32 %v3617_v41, %v3414_v58  ;;  %v3417_v56 = vadd.f32 %v5536_v2, %v7513_v10  ;;  %v7659_v12 = vpop.permute.xlu1 %4073 }
 0x28a   : > { %v5591_v28 = vpop.f32.mrf.mxu0  ;;  %v3286_v3 = vpop.f32.mrf.mxu1  ;;  %v4258_v41 = vmul.f32 %v4179_v46, %v4179_v46 }
 0x28b   : > { %v4214_v54 = vadd.f32 %v4213_v63, %v4178_v29  ;;  %v4291_v21 = vadd.f32 %v4256_v43, %v4255_v9  ;;  %v4180_v33 = vmul.f32 %v7590_v60, %v3748_v15  ;;  %v3751_v62 = vadd.f32 %v5588_v17, %v3417_v56 }
 0x28c   : > { %v3633_v35 = vpop.f32.mrf.mxu0  ;;  %v3415_v59 = vadd.f32 %v3286_v3, %v7516_v19  ;;  %v5539_v45 = vpop.f32.mrf.mxu1  ;;  %v4182_v63 = vmul.f32 %v7603_v25, %v3750_v40 }
 0x28d   : > { %v4292_v10 = vadd.f32 %v4291_v21, %v4257_v14  ;;  %v4215_v2 = vadd.f32 %v4214_v54, %v4179_v46  ;;  %v4806_v8 = vpack.c.bf16 %v3751_v62, %v3750_v40  ;;  %v4259_v47 = vmul.f32 %v4180_v33, %v4180_v33  ;;  %v7666_v14 = vpop.permute.xlu0 %4078 }
 0x28e   : > { %v5592_v26 = vpop.f32.mrf.mxu0  ;;  %v3749_v58 = vadd.f32 %v3620_v39, %v3415_v59  ;;  %v3299_v27 = vpop.f32.mrf.mxu1  ;;  %v3420_v60 = vadd.f32 %v5539_v45, %v7519_v1  ;;  %v4261_v45 = vmul.f32 %v4182_v63, %v4182_v63 }
 0x28f   : > { %v4216_v29 = vadd.f32 %v4215_v2, %v4180_v33  ;;  %v4293_v9 = vadd.f32 %v4292_v10, %v4258_v41  ;;  %4900 = vst [vmem:[%s7641_s26 + $0x18] sm:$0xff] %v4806_v8   ;;  %v3418_v17 = vadd.f32 %v3299_v27, %v7522_v61  ;;  %v4183_v33 = vmul.f32 %v7608_v7, %v3751_v62  ;;  %v7671_v27 = vpop.permute.xlu1 %4083 }
 0x290   : > { %v3636_v19 = vpop.f32.mrf.mxu0  ;;  %v4801_v43 = vpack.c.bf16 %v3749_v58, %v3748_v15  ;;  %v4181_v56 = vmul.f32 %v7595_v4, %v3749_v58  ;;  %v5540_v46 = vpop.f32.mrf.mxu1  ;;  %v3754_v25 = vadd.f32 %v5591_v28, %v3420_v60 }
 0x291   : > { %v4294_v3 = vadd.f32 %v4293_v9, %v4259_v47  ;;  %v3752_v39 = vadd.f32 %v3633_v35, %v3418_v17  ;;  %v3421_v54 = vadd.f32 %v5540_v46, %v7526_v48  ;;  %v4262_v8 = vmul.f32 %v4183_v33, %v4183_v33  ;;  %v7675_v28 = vpop.permute.xlu0 %4088 }
 0x292   : > { %v5595_v21 = vpop.f32.mrf.mxu0  ;;  %4899 = vst [vmem:[%s7641_s26 + $0x10] sm:$0xff] %v4801_v43   ;;  %v4217_v1 = vadd.f32 %v4216_v29, %v4181_v56  ;;  %v4260_v59 = vmul.f32 %v4181_v56, %v4181_v56  ;;  %v3302_v61 = vpop.f32.mrf.mxu1  ;;  %v4186_v17 = vmul.f32 %v7630_v42, %v3754_v25 }
 0x293   : > { %v3755_v40 = vadd.f32 %v5592_v26, %v3421_v54  ;;  %v3419_v4 = vadd.f32 %v3302_v61, %v7535_v44  ;;  %v4184_v48 = vmul.f32 %v7617_v24, %v3752_v39  ;;  %v7682_v46 = vpop.permute.xlu1 %4093 }
 0x294   : > { %v3649_v15 = vpop.f32.mrf.mxu0  ;;  %v4218_v41 = vadd.f32 %v4217_v1, %v4182_v63  ;;  %v4295_v35 = vadd.f32 %v4294_v3, %v4260_v59  ;;  %v5543_v10 = vpop.f32.mrf.mxu1 }
 0x295   : > { %v4816_v2 = vpack.c.bf16 %v3755_v40, %v3754_v25  ;;  %v3753_v7 = vadd.f32 %v3636_v19, %v3419_v4  ;;  %v3424_v9 = vadd.f32 %v5543_v10, %v7538_v49  ;;  %v4263_v63 = vmul.f32 %v4184_v48, %v4184_v48 }
 0x296   : > { %v5596_v62 = vpop.f32.mrf.mxu0  ;;  %v4296_v47 = vadd.f32 %v4295_v35, %v4261_v45  ;;  %v4219_v58 = vadd.f32 %v4218_v41, %v4183_v33  ;;  %v3315_v29 = vpop.f32.mrf.mxu1  ;;  %v4187_v49 = vmul.f32 %v7633_v52, %v3755_v40  ;;  %v4265_v4 = vmul.f32 %v4186_v17, %v4186_v17 }
 0x297   : > { %4902 = vst [vmem:[%s7641_s26 + $0x28] sm:$0xff] %v4816_v2   ;;  %v4811_v26 = vpack.c.bf16 %v3753_v7, %v3752_v39  ;;  %v4185_v44 = vmul.f32 %v7622_v53, %v3753_v7  ;;  %v3422_v60 = vadd.f32 %v3315_v29, %v7541_v18  ;;  %v3758_v59 = vadd.f32 %v5595_v21, %v3424_v9 }
 0x298   : > { %v3652_v24 = vpop.f32.mrf.mxu0  ;;  %v4220_v19 = vadd.f32 %v4219_v58, %v4184_v48  ;;  %v4297_v43 = vadd.f32 %v4296_v47, %v4262_v8  ;;  %v5544_v56 = vpop.f32.mrf.mxu1  ;;  %v4266_v52 = vmul.f32 %v4187_v49, %v4187_v49 }
 0x299   : > { %4901 = vst [vmem:[%s7641_s26 + $0x20] sm:$0xff] %v4811_v26   ;;  %v4264_v3 = vmul.f32 %v4185_v44, %v4185_v44  ;;  %v3756_v54 = vadd.f32 %v3649_v15, %v3422_v60  ;;  %v3425_v39 = vadd.f32 %v5544_v56, %v7544_v13  ;;  %v7689_v48 = vpop.permute.xlu0 %4098  ;;  %v4190_v29 = vmul.f32 %v7655_v5, %v3758_v59 }
 0x29a   : > { %v5599_v33 = vpop.f32.mrf.mxu0  ;;  %v4298_v53 = vadd.f32 %v4297_v43, %v4263_v63  ;;  %v4221_v1 = vadd.f32 %v4220_v19, %v4185_v44  ;;  %v3318_v18 = vpop.f32.mrf.mxu1 }
 0x29b   : > { %v3759_v61 = vadd.f32 %v5596_v62, %v3425_v39  ;;  %v3423_v42 = vadd.f32 %v3318_v18, %v7547_v30  ;;  %v4188_v35 = vmul.f32 %v7643_v51, %v3756_v54  ;;  %v7691_v62 = vpop.permute.xlu1 %4103 }
 0x29c   : > { %v3665_v25 = vpop.f32.mrf.mxu0  ;;  %v4222_v45 = vadd.f32 %v4221_v1, %v4186_v17  ;;  %v4299_v41 = vadd.f32 %v4298_v53, %v4264_v3  ;;  %v5547_v15 = vpop.f32.mrf.mxu1  ;;  %v4269_v53 = vmul.f32 %v4190_v29, %v4190_v29 }
 0x29d   : > { %v4826_v13 = vpack.c.bf16 %v3759_v61, %v3758_v59  ;;  %v3757_v10 = vadd.f32 %v3652_v24, %v3423_v42  ;;  %v3428_v47 = vadd.f32 %v5547_v15, %v7550_v36  ;;  %v4267_v44 = vmul.f32 %v4188_v35, %v4188_v35  ;;  %v7701_v3 = vpop.permute.xlu0 %4108 }
 0x29e   : > { %v5600_v2 = vpop.f32.mrf.mxu0  ;;  %v4300_v40 = vadd.f32 %v4299_v41, %v4265_v4  ;;  %v4223_v21 = vadd.f32 %v4222_v45, %v4187_v49  ;;  %v3331_v7 = vpop.f32.mrf.mxu1 }
 0x29f   : > { %4904 = vst [vmem:[%s7641_s26 + $0x38] sm:$0xff] %v4826_v13   ;;  %v4821_v30 = vpack.c.bf16 %v3757_v10, %v3756_v54  ;;  %v4189_v8 = vmul.f32 %v7647_v38, %v3757_v10  ;;  %v3426_v51 = vadd.f32 %v3331_v7, %v7553_v50  ;;  %v4191_v38 = vmul.f32 %v7659_v12, %v3759_v61  ;;  %v7705_v59 = vpop.permute.xlu1 %4113 }
 0x2a0   : > { %v3668_v58 = vpop.f32.mrf.mxu0  ;;  %v4224_v26 = vadd.f32 %v4223_v21, %v4188_v35  ;;  %v4301_v9 = vadd.f32 %v4300_v40, %v4266_v52  ;;  %v5548_v60 = vpop.f32.mrf.mxu1  ;;  %v3762_v50 = vadd.f32 %v5599_v33, %v3428_v47 }
 0x2a1   : > { %4903 = vst [vmem:[%s7641_s26 + $0x30] sm:$0xff] %v4821_v30   ;;  %v4268_v24 = vmul.f32 %v4189_v8, %v4189_v8  ;;  %v3760_v17 = vadd.f32 %v3665_v25, %v3426_v51  ;;  %v3429_v19 = vadd.f32 %v5548_v60, %v7556_v16  ;;  %v4270_v25 = vmul.f32 %v4191_v38, %v4191_v38  ;;  %v4119_v21 = vpop.permute.xlu0 %4118 }
 0x2a2   : > { %v5603_v63 = vpop.f32.mrf.mxu0  ;;  %v4302_v43 = vadd.f32 %v4301_v9, %v4267_v44  ;;  %v4225_v56 = vadd.f32 %v4224_v26, %v4189_v8  ;;  %v3334_v36 = vpop.f32.mrf.mxu1  ;;  %v4194_v13 = vmul.f32 %v7675_v28, %v3762_v50 }
 0x2a3   : > { %v3763_v54 = vadd.f32 %v5600_v2, %v3429_v19  ;;  %v3427_v5 = vadd.f32 %v3334_v36, %v7559_v6  ;;  %v4192_v18 = vmul.f32 %v7666_v14, %v3760_v17 }
 0x2a4   : > { %v3681_v39 = vpop.f32.mrf.mxu0  ;;  %v4226_v49 = vadd.f32 %v4225_v56, %v4190_v29  ;;  %v4303_v1 = vadd.f32 %v4302_v43, %v4268_v24  ;;  %v5551_v16 = vpop.f32.mrf.mxu1  ;;  %v4273_v9 = vmul.f32 %v4194_v13, %v4194_v13 }
 0x2a5   : > { %v4836_v42 = vpack.c.bf16 %v3763_v54, %v3762_v50  ;;  %v3761_v12 = vadd.f32 %v3668_v58, %v3427_v5  ;;  %v3432_v35 = vadd.f32 %v5551_v16, %v7562_v0  ;;  %v4271_v2 = vmul.f32 %v4192_v18, %v4192_v18 }
 0x2a6   : > { %v5604_v61 = vpop.f32.mrf.mxu0  ;;  %v4304_v4 = vadd.f32 %v4303_v1, %v4269_v53  ;;  %v4227_v33 = vadd.f32 %v4226_v49, %v4191_v38  ;;  %v3347_v45 = vpop.f32.mrf.mxu1 }
 0x2a7   : > { %4906 = vst [vmem:[%s7641_s26 + $0x48] sm:$0xff] %v4836_v42   ;;  %v4831_v41 = vpack.c.bf16 %v3761_v12, %v3760_v17  ;;  %v4193_v6 = vmul.f32 %v7671_v27, %v3761_v12  ;;  %v3430_v15 = vadd.f32 %v3347_v45, %v7567_v37  ;;  %v4195_v27 = vmul.f32 %v7682_v46, %v3763_v54  ;;  %v4124_v37 = vpop.permute.xlu1 %4123 }
 0x2a8   : > { %v3684_v14 = vpop.f32.mrf.mxu0  ;;  %v4228_v10 = vadd.f32 %v4227_v33, %v4192_v18  ;;  %v4305_v52 = vadd.f32 %v4304_v4, %v4270_v25  ;;  %v5552_v40 = vpop.f32.mrf.mxu1  ;;  %v3766_v29 = vadd.f32 %v5603_v63, %v3432_v35 }
 0x2a9   : > { %4905 = vst [vmem:[%s7641_s26 + $0x40] sm:$0xff] %v4831_v41   ;;  %v4272_v7 = vmul.f32 %v4193_v6, %v4193_v6  ;;  %v3764_v30 = vadd.f32 %v3681_v39, %v3430_v15  ;;  %v3433_v8 = vadd.f32 %v5552_v40, %v7572_v22  ;;  %v4274_v56 = vmul.f32 %v4195_v27, %v4195_v27  ;;  %v4129_v63 = vpop.permute.xlu0 %4128 }
 0x2aa   : > { %v5607_v47 = vpop.f32.mrf.mxu0  ;;  %v4306_v51 = vadd.f32 %v4305_v52, %v4271_v2  ;;  %v4229_v0 = vadd.f32 %v4228_v10, %v4193_v6  ;;  %v3350_v58 = vpop.f32.mrf.mxu1 }
 0x2ab   : > { %v3767_v26 = vadd.f32 %v5604_v61, %v3433_v8  ;;  %v3431_v28 = vadd.f32 %v3350_v58, %v7575_v31  ;;  %v4196_v17 = vmul.f32 %v7689_v48, %v3764_v30  ;;  %v4198_v48 = vmul.f32 %v7701_v3, %v3766_v29  ;;  %v4134_v42 = vpop.permute.xlu1 %4133 }
 0x2ac   : > { %v3697_v44 = vpop.f32.mrf.mxu0  ;;  %v4230_v60 = vadd.f32 %v4229_v0, %v4194_v13  ;;  %v4307_v24 = vadd.f32 %v4306_v51, %v4272_v7  ;;  %v5555_v19 = vpop.f32.mrf.mxu1 }
 0x2ad   : > { %v4846_v22 = vpack.c.bf16 %v3767_v26, %v3766_v29  ;;  %v3765_v43 = vadd.f32 %v3684_v14, %v3431_v28  ;;  %v3436_v5 = vadd.f32 %v5555_v19, %v7580_v23  ;;  %v4275_v1 = vmul.f32 %v4196_v17, %v4196_v17  ;;  %v4139_v2 = vpop.permute.xlu0 %4138 }
 0x2ae   : > { %v5608_v38 = vpop.f32.mrf.mxu0  ;;  %v4308_v46 = vadd.f32 %v4307_v24, %v4273_v9  ;;  %v4231_v36 = vadd.f32 %v4230_v60, %v4195_v27  ;;  %v3363_v50 = vpop.f32.mrf.mxu1  ;;  %v4277_v35 = vmul.f32 %v4198_v48, %v4198_v48 }
 0x2af   : > { %4908 = vst [vmem:[%s7641_s26 + $0x58] sm:$0xff] %v4846_v22   ;;  %v4841_v54 = vpack.c.bf16 %v3765_v43, %v3764_v30  ;;  %v4197_v31 = vmul.f32 %v7691_v62, %v3765_v43  ;;  %v3434_v39 = vadd.f32 %v3363_v50, %v7585_v32  ;;  %v4199_v62 = vmul.f32 %v7705_v59, %v3767_v26 }
 0x2b0   : > { %v3700_v53 = vpop.f32.mrf.mxu0  ;;  %v4232_v49 = vadd.f32 %v4231_v36, %v4196_v17  ;;  %v4309_v18 = vadd.f32 %v4308_v46, %v4274_v56  ;;  %v5556_v16 = vpop.f32.mrf.mxu1  ;;  %v3770_v32 = vadd.f32 %v5607_v47, %v3436_v5  ;;  %v7958_v56 = vld [vmem:[#allocation25_spill] sm:$0xff] }
 0x2b1   : > { %4907 = vst [vmem:[%s7641_s26 + $0x50] sm:$0xff] %v4841_v54   ;;  %v4276_v12 = vmul.f32 %v4197_v31, %v4197_v31  ;;  %v3768_v61 = vadd.f32 %v3697_v44, %v3434_v39  ;;  %v3437_v25 = vadd.f32 %v5556_v16, %v7588_v11  ;;  %v4278_v7 = vmul.f32 %v4199_v62, %v4199_v62  ;;  %v4144_v47 = vpop.permute.xlu1 %4143 }
 0x2b2   : > { %v5611_v4 = vpop.f32.mrf.mxu0  ;;  %v4310_v33 = vadd.f32 %v4309_v18, %v4275_v1  ;;  %v4233_v23 = vadd.f32 %v4232_v49, %v4197_v31  ;;  %v3366_v45 = vpop.f32.mrf.mxu1 }
 0x2b3   : > { %v3771_v41 = vadd.f32 %v5608_v38, %v3437_v25  ;;  %v3435_v3 = vadd.f32 %v3366_v45, %v7593_v57  ;;  %v4200_v13 = vmul.f32 %v4119_v21, %v3768_v61  ;;  %v4202_v21 = vmul.f32 %v4129_v63, %v3770_v32  ;;  %v4149_v38 = vpop.permute.xlu0 %4148  ;;  %v7960_v25 = vld [vmem:[#allocation34_spill] sm:$0xff] }
 0x2b4   : > { %v3713_v6 = vpop.f32.mrf.mxu0  ;;  %v4234_v15 = vadd.f32 %v4233_v23, %v4198_v48  ;;  %v4311_v14 = vadd.f32 %v4310_v33, %v4276_v12  ;;  %v5559_v10 = vpop.f32.mrf.mxu1  ;;  %v7959_v12 = vld [vmem:[#allocation30_spill] sm:$0xff] }
 0x2b5   : > { %v4856_v52 = vpack.c.bf16 %v3771_v41, %v3770_v32  ;;  %v3769_v11 = vadd.f32 %v3700_v53, %v3435_v3  ;;  %v3440_v27 = vadd.f32 %v5559_v10, %v7598_v34  ;;  %v4279_v26 = vmul.f32 %v4200_v13, %v4200_v13  ;;  %v4154_v39 = vpop.permute.xlu1 %4153 }
 0x2b6   : > { %v5612_v40 = vpop.f32.mrf.mxu0  ;;  %v4312_v59 = vadd.f32 %v4311_v14, %v4277_v35  ;;  %v4235_v30 = vadd.f32 %v4234_v15, %v4199_v62  ;;  %v3379_v8 = vpop.f32.mrf.mxu1  ;;  %v4203_v22 = vmul.f32 %v4134_v42, %v3771_v41  ;;  %v4281_v36 = vmul.f32 %v4202_v21, %v4202_v21  ;;  %v7961_v15 = vld [vmem:[#allocation18_spill] sm:$0xff] }
 0x2b7   : > { %4910 = vst [vmem:[%s7641_s26 + $0x68] sm:$0xff] %v4856_v52   ;;  %v4851_v51 = vpack.c.bf16 %v3769_v11, %v3768_v61  ;;  %v4201_v57 = vmul.f32 %v4124_v37, %v3769_v11  ;;  %v3438_v0 = vadd.f32 %v3379_v8, %v7601_v55  ;;  %v3774_v34 = vadd.f32 %v5611_v4, %v3440_v27  ;;  %v4159_v3 = vpop.permute.xlu0 %4158 }
 0x2b8   : > { %v3716_v58 = vpop.f32.mrf.mxu0  ;;  %v4236_v29 = vadd.f32 %v4235_v30, %v4200_v13  ;;  %v4313_v28 = vadd.f32 %v4312_v59, %v4278_v7  ;;  %v5560_v44 = vpop.f32.mrf.mxu1  ;;  %v4282_v48 = vmul.f32 %v4203_v22, %v4203_v22  ;;  %v7962_v59 = vld [vmem:[#allocation22_spill] sm:$0xff] }
 0x2b9   : > { %4909 = vst [vmem:[%s7641_s26 + $0x60] sm:$0xff] %v4851_v51   ;;  %v4280_v9 = vmul.f32 %v4201_v57, %v4201_v57  ;;  %v3772_v60 = vadd.f32 %v3713_v6, %v3438_v0  ;;  %v3441_v24 = vadd.f32 %v5560_v44, %v7606_v20  ;;  %v4206_v33 = vmul.f32 %v4149_v38, %v3774_v34  ;;  %v4164_v11 = vpop.permute.xlu1 %4163 }
 0x2ba   : > { %v5615_v17 = vpop.f32.mrf.mxu0  ;;  %v4314_v19 = vadd.f32 %v4313_v28, %v4279_v26  ;;  %v4237_v43 = vadd.f32 %v4236_v29, %v4201_v57  ;;  %v3382_v37 = vpop.f32.mrf.mxu1 }
 0x2bb   : > { %v3775_v55 = vadd.f32 %v5612_v40, %v3441_v24  ;;  %v3439_v46 = vadd.f32 %v3382_v37, %v7958_v56  ;;  %v4204_v54 = vmul.f32 %v4139_v2, %v3772_v60  ;;  %v4285_v8 = vmul.f32 %v4206_v33, %v4206_v33  ;;  %v4169_v28 = vpop.permute.xlu0 %4168 }
 0x2bc   : > { %v4238_v50 = vadd.f32 %v4237_v43, %v4202_v21  ;;  %v4315_v63 = vadd.f32 %v4314_v19, %v4280_v9  ;;  %v5563_v31 = vpop.f32.mrf.mxu1  ;;  %v3729_v5 = vpop.f32.mrf.mxu0 }
 0x2bd   : > { %v4866_v53 = vpack.c.bf16 %v3775_v55, %v3774_v34  ;;  %v3773_v20 = vadd.f32 %v3716_v58, %v3439_v46  ;;  %v3444_v61 = vadd.f32 %v5563_v31, %v7959_v12  ;;  %v4283_v23 = vmul.f32 %v4204_v54, %v4204_v54 }
 0x2be   : > { %v4316_v49 = vadd.f32 %v4315_v63, %v4281_v36  ;;  %v4239_v1 = vadd.f32 %v4238_v50, %v4203_v22  ;;  %v3395_v18 = vpop.f32.mrf.mxu1  ;;  %v5616_v32 = vpop.f32.mrf.mxu0  ;;  %v4207_v10 = vmul.f32 %v4154_v39, %v3775_v55 }
 0x2bf   : > { %4912 = vst [vmem:[%s7641_s26 + $0x78] sm:$0xff] %v4866_v53   ;;  %v4861_v16 = vpack.c.bf16 %v3773_v20, %v3772_v60  ;;  %v4205_v42 = vmul.f32 %v4144_v47, %v3773_v20  ;;  %v3442_v4 = vadd.f32 %v3395_v18, %v7960_v25  ;;  %v3778_v40 = vadd.f32 %v5615_v17, %v3444_v61  ;;  %v4174_v22 = vpop.permute.xlu1 %4173 }
 0x2c0   : > { %v4240_v62 = vadd.f32 %v4239_v1, %v4204_v54  ;;  %v4317_v45 = vadd.f32 %v4316_v49, %v4282_v48  ;;  %v5564_v41 = vpop.f32.mrf.mxu1  ;;  %v3732_v27 = vpop.f32.mrf.mxu0  ;;  %v4286_v21 = vmul.f32 %v4207_v10, %v4207_v10 }
 0x2c1   : > { %4911 = vst [vmem:[%s7641_s26 + $0x70] sm:$0xff] %v4861_v16   ;;  %v4284_v6 = vmul.f32 %v4205_v42, %v4205_v42  ;;  %v3776_v35 = vadd.f32 %v3729_v5, %v3442_v4  ;;  %v3445_v14 = vadd.f32 %v5564_v41, %v7961_v15  ;;  %v4210_v60 = vmul.f32 %v4169_v28, %v3778_v40 }
 0x2c2   : > { %v4318_v13 = vadd.f32 %v4317_v45, %v4283_v23  ;;  %v4241_v2 = vadd.f32 %v4240_v62, %v4205_v42  ;;  %v3398_v52 = vpop.f32.mrf.mxu1 }
 0x2c3   : > { %v3779_v7 = vadd.f32 %v5616_v32, %v3445_v14  ;;  %v3443_v30 = vadd.f32 %v3398_v52, %v7962_v59  ;;  %v4208_v57 = vmul.f32 %v4159_v3, %v3776_v35  ;;  %v4289_v55 = vmul.f32 %v4210_v60, %v4210_v60 }
 0x2c4   : > { %v4242_v47 = vadd.f32 %v4241_v2, %v4206_v33  ;;  %v4319_v51 = vadd.f32 %v4318_v13, %v4284_v6 }
 0x2c5   : > { %v4876_v0 = vpack.c.bf16 %v3779_v7, %v3778_v40  ;;  %v3777_v58 = vadd.f32 %v3732_v27, %v3443_v30  ;;  %v4287_v17 = vmul.f32 %v4208_v57, %v4208_v57  ;;  %v4211_v38 = vmul.f32 %v4174_v22, %v3779_v7 }
 0x2c6   : > { %v4320_v29 = vadd.f32 %v4319_v51, %v4285_v8  ;;  %v4243_v26 = vadd.f32 %v4242_v47, %v4207_v10 }
 0x2c7   : > { %4914 = vst [vmem:[%s7641_s26 + $0x88] sm:$0xff] %v4876_v0   ;;  %v4871_v44 = vpack.c.bf16 %v3777_v58, %v3776_v35  ;;  %v4209_v9 = vmul.f32 %v4164_v11, %v3777_v58  ;;  %v4290_v36 = vmul.f32 %v4211_v38, %v4211_v38 }
 0x2c8   : > { %v4244_v24 = vadd.f32 %v4243_v26, %v4208_v57  ;;  %v4321_v19 = vadd.f32 %v4320_v29, %v4286_v21 }
 0x2c9   : > { %4913 = vst [vmem:[%s7641_s26 + $0x80] sm:$0xff] %v4871_v44   ;;  %v4288_v43 = vmul.f32 %v4209_v9, %v4209_v9 }
 0x2ca   : > { %v4322_v37 = vadd.f32 %v4321_v19, %v4287_v17  ;;  %v4245_v34 = vadd.f32 %v4244_v24, %v4209_v9 }
 0x2cc   : > { %v4246_v56 = vadd.f32 %v4245_v34, %v4210_v60  ;;  %v4323_v46 = vadd.f32 %v4322_v37, %v4288_v43 }
 0x2ce   : > { %v4247_v50 = vadd.f32 %v4246_v56, %v4211_v38  ;;  %v4324_v63 = vadd.f32 %v4323_v46, %v4289_v55 }
 0x2d0   : > { %v4248_v54 = vrot.slane %v4247_v50, 4  ;;  %v4325_v31 = vadd.f32 %v4324_v63, %v4290_v36 }
 0x2d2   : > { %v4249_v5 = vadd.f32 %v4248_v54, %v4247_v50  ;;  %v4326_v39 = vrot.slane %v4325_v31, 4 }
 0x2d4   : > { %v4250_v53 = vrot.slane %v4249_v5, 2  ;;  %v4327_v20 = vadd.f32 %v4326_v39, %v4325_v31 }
 0x2d6   : > { %v4251_v48 = vadd.f32 %v4250_v53, %v4249_v5  ;;  %v4328_v49 = vrot.slane %v4327_v20, 2 }
 0x2d8   : > { %v4252_v1 = vrot.slane %v4251_v48, 1  ;;  %v4329_v18 = vadd.f32 %v4328_v49, %v4327_v20 }
 0x2da   : > { %v4253_v16 = vadd.f32 %v4252_v1, %v4251_v48  ;;  %v4330_v42 = vrot.slane %v4329_v18, 1 }
 0x2dc   : > { %4254 = vst [vmem:[%s7531_s21] sm:$0x1] %v4253_v16  ;;  %v4331_v12 = vadd.f32 %v4330_v42, %v4329_v18 }
 0x2de   : > { %4332 = vst [vmem:[%s7531_s21 + $0x1] sm:$0x1] %v4331_v12 }
 0x2df PF: > { %s18_s24 = sadd.s32 1, %s5726_s24  }
 0x2e0   : > { %p15_p5 = scmp.ge.s32.totalorder %s18_s24, 4  }
 0x2e2   :  { %17 = sbr.rel (!%p15_p5) target bundleno = 1 (0x1), region = 94 }

</bundles_post_ra>
